<compile_context>
chip_gen: v7x
topology: tpu7x:2x2x1
jax: 0.10.0
libtpu: 0.0.40
codegen_flags: <defaults>
</compile_context>

<pallas_src>
import numpy as np
import jax
import jax.numpy as jnp
from jax.experimental import pallas as pl
from jax.experimental.pallas import tpu as pltpu

BN_EPS = 1e-5


# ----------------------------------------------------------------------------
# Constant gather matrices: upsample(x2, nearest) + 2x2 'same' conv patch taps
# ----------------------------------------------------------------------------
def build_upsample_conv_gather(B, H, W):
    """Return S of shape (4, B*2H*2W, B*H*W), 0/1.

    For tap k = kh*2 + kw, S[k] maps the pre-upsample flattened feature rows to the
    post-upsample conv-output rows:  S[k][n, m] = 1  iff the (padded) upsampled pixel
    read by tap k at output position n equals input pixel m.  All-zero rows encode the
    PyTorch 'same' padding for an even kernel (zero pad on bottom/right only).
    """
    Ho, Wo = 2 * H, 2 * W
    n_out, n_in = B * Ho * Wo, B * H * W
    S = np.zeros((4, n_out, n_in), np.float32)
    for b in range(B):
        for i in range(Ho):
            for j in range(Wo):
                n = (b * Ho + i) * Wo + j
                for kh in (0, 1):
                    for kw in (0, 1):
                        ii, jj = i + kh, j + kw
                        if ii < Ho and jj < Wo:          # else: zero padding
                            m = (b * H + ii // 2) * W + jj // 2
                            S[kh * 2 + kw, n, m] = 1.0
    return S


# ----------------------------------------------------------------------------
# Pallas kernels
# ----------------------------------------------------------------------------
def conv_stack_kernel(noise_ref, *refs):
    """Fused 4x [upsample -> conv2x2 'same' -> BatchNorm(train)] on VMEM-resident data.

    refs = (S1, W1, g1, b1, ..., S4, W4, g4, b4, out).
    Per layer:  y = sum_k S_k @ (x @ W_k)   (W_k = rows [k*Cin,(k+1)*Cin) of the (4Cin,Cout) weight)
    then training-mode BN with batch stats (biased variance) and the affine transform.
    Conv bias is intentionally omitted: BN's batch-mean subtraction cancels it exactly.
    """
    o_ref = refs[-1]
    layer_refs = refs[:-1]
    x = noise_ref[...]                       # (B, 128) == flattened (B*1*1, Cin) feature map
    for li in range(4):
        s_ref, w_ref, g_ref, b_ref = layer_refs[4 * li: 4 * li + 4]
        cin = w_ref.shape[0] // 4
        y = None
        for k in range(4):
            tap = jnp.dot(x, w_ref[k * cin:(k + 1) * cin, :],
                          preferred_element_type=jnp.float32)               # (Nin, Cout)
            yk = jnp.dot(s_ref[k], tap, preferred_element_type=jnp.float32)  # (Nout, Cout)
            y = yk if y is None else y + yk
        # Training-mode BatchNorm over rows (= batch*spatial), biased variance, two-pass.
        mean = jnp.mean(y, axis=0, keepdims=True)
        d = y - mean
        var = jnp.mean(d * d, axis=0, keepdims=True)
        x = d * (g_ref[...] * jax.lax.rsqrt(var + BN_EPS)) + b_ref[...]
    o_ref[...] = x                           # (B*16*16, 16), NHWC-flattened rows


def linear_sigmoid_kernel(x_ref, w_ref, b_ref, o_ref, acc_ref):
    """grid=(nj, nk): parallel Nout blocks (j), K-tiled accumulation (k, 'arbitrary')."""
    k = pl.program_id(1)

    @pl.when(k == 0)
    def _():
        acc_ref[...] = jnp.zeros_like(acc_ref)

    acc_ref[...] += jnp.dot(x_ref[...], w_ref[...],
                            preferred_element_type=jnp.float32)

    @pl.when(k == pl.num_programs(1) - 1)
    def _():
        z = acc_ref[...] + b_ref[...]
        o_ref[...] = 1.0 / (1.0 + jnp.exp(-z))    # f32-safe sigmoid (underflow -> exact 0/1 limits)


# ----------------------------------------------------------------------------
# Wrappers (pallas_call)
# ----------------------------------------------------------------------------
def conv_stack(noise, layers):
    """Single pallas_call for the whole upsample/conv/BN stack. Output: (B*256, 16)."""
    B = noise.shape[0]
    cout_last = layers[-1]["w"].shape[1]
    n_out = B * 16 * 16

    args = [noise]
    in_specs = [pl.BlockSpec(noise.shape, lambda i: (0, 0))]
    for L in layers:
        for name in ("S", "w", "gamma", "beta"):
            a = L[name]
            args.append(a)
            in_specs.append(pl.BlockSpec(a.shape, lambda i, n=a.ndim: (0,) * n))

    return pl.pallas_call(
        conv_stack_kernel,
        out_shape=jax.ShapeDtypeStruct((n_out, cout_last), jnp.float32),
        grid=(1,),
        in_specs=in_specs,
        out_specs=pl.BlockSpec((n_out, cout_last), lambda i: (0, 0)),
        compiler_params=pltpu.CompilerParams(dimension_semantics=("arbitrary",)),
    )(*args)


def linear_sigmoid(x, w_mat, bias, *, block_k=2048, block_n=384):
    """x: (B, K) @ w_mat: (K, Nout) + bias -> sigmoid.  Weight is pre-transposed/permuted."""
    B, K = x.shape
    _, Nout = w_mat.shape
    # Static constraint of this architecture (K=4096, Nout=768); change block sizes if shapes change.
    assert K % block_k == 0 and Nout % block_n == 0, (K, Nout, block_k, block_n)
    nk, nj = K // block_k, Nout // block_n
    return pl.pallas_call(
        linear_sigmoid_kernel,
        out_shape=jax.ShapeDtypeStruct((B, Nout), jnp.float32),
        grid=(nj, nk),
        in_specs=[
            pl.BlockSpec((B, block_k), lambda j, k: (0, k)),
            pl.BlockSpec((block_k, block_n), lambda j, k: (k, j)),
            pl.BlockSpec((1, block_n), lambda j, k: (0, j)),
        ],
        out_specs=pl.BlockSpec((B, block_n), lambda j, k: (0, j)),
        scratch_shapes=[pltpu.VMEM((B, block_n), jnp.float32)],
        compiler_params=pltpu.CompilerParams(
            dimension_semantics=("parallel", "arbitrary"),   # Nout split feeds v7x's 2 TCs
            vmem_limit_bytes=32 * 1024 * 1024),
    )(x, w_mat, bias)


# ----------------------------------------------------------------------------
# Parameters (PyTorch layout) + one-time preprocessing into kernel layout
# ----------------------------------------------------------------------------
def init_decoder_params(key, z_dim=128):
    conv_specs = [(z_dim, 64), (64, 32), (32, 16), (16, 16)]   # (Cin, Cout)
    params = {"convs": []}
    for cin, cout in conv_specs:
        key, kw, kb, kg, kbt = jax.random.split(key, 5)
        w = 0.05 * jax.random.normal(kw, (cout, cin, 2, 2), jnp.float32)   # torch Conv2d weight
        b = 0.05 * jax.random.normal(kb, (cout,), jnp.float32)             # torch Conv2d bias
        gamma = 1.0 + 0.1 * jax.random.normal(kg, (cout,), jnp.float32)    # BN weight
        beta = 0.1 * jax.random.normal(kbt, (cout,), jnp.float32)          # BN bias
        params["convs"].append((w, b, gamma, beta))
    key, kw, kb = jax.random.split(key, 3)
    params["lin_w"] = 0.02 * jax.random.normal(
        kw, (3 * 16 * 16, 16 * 16 * 16), jnp.float32)                      # torch Linear (out, in)
    params["lin_b"] = 0.02 * jax.random.normal(kb, (3 * 16 * 16,), jnp.float32)
    return params


def prepare_params(params, batch_size):
    """One-time, outside the hot path: reshape weights into kernel layout, build gather mats."""
    prep = {"layers": []}
    spatial = [(1, 1), (2, 2), (4, 4), (8, 8)]          # pre-upsample (H, W) per layer
    for (w, _bias, gamma, beta), (H, W) in zip(params["convs"], spatial):
        cout, cin = w.shape[0], w.shape[1]
        # (Cout, Cin, KH, KW) -> (KH, KW, Cin, Cout) -> (4*Cin, Cout): rows in (kh, kw, ci) order.
        w_mat = jnp.transpose(w, (2, 3, 1, 0)).reshape(4 * cin, cout)
        prep["layers"].append(dict(
            S=jnp.asarray(build_upsample_conv_gather(batch_size, H, W)),
            w=w_mat,
            gamma=gamma.reshape(1, cout),
            beta=beta.reshape(1, cout)))
        # Conv bias is dropped on purpose: training-mode BN subtracts the batch mean,
        # which cancels the constant bias exactly (dead parameter in this graph).
    # Linear weight: fold the NCHW-flatten permutation into the weight and pre-transpose so the
    # kernel consumes the conv stack's NHWC-flattened activations with a FREE reshape and no
    # runtime 12.6 MB transpose.  (768, c*256+h*16+w) -> ((h*16+w)*16+c, 768).
    wl = params["lin_w"].reshape(3 * 16 * 16, 16, 16, 16)          # (out, c, h, w)
    prep["lin_w"] = jnp.transpose(wl, (2, 3, 1, 0)).reshape(16 * 16 * 16, 3 * 16 * 16)
    prep["lin_b"] = params["lin_b"].reshape(1, -1)
    # TODO(synk): optional further win: store lin_w as bfloat16 (halves the dominant HBM stream);
    # kept f32 to stay comfortably inside the 2e-3 tolerance vs. the f32 PyTorch module.
    return prep


# ----------------------------------------------------------------------------
# Full forward pass (2 pallas_calls total: fused conv stack + fused linear/sigmoid)
# ----------------------------------------------------------------------------
def decoder_forward_pallas(noise, prep):
    B = noise.shape[0]
    x = conv_stack(noise, prep["layers"])            # (B*256, 16) NHWC-flattened, VMEM-fused
    x_flat = x.reshape(B, 16 * 16 * 16)              # free row-major reshape (no transpose needed)
    y = linear_sigmoid(x_flat, prep["lin_w"], prep["lin_b"])
    return y.reshape(B, 3, 16, 16)                   # NCHW output, like PyTorch


# ----------------------------------------------------------------------------
# Pure-JAX reference (faithful to the PyTorch module; for correctness check)
# ----------------------------------------------------------------------------
def decoder_forward_ref(noise, params):
    B, z = noise.shape
    x = noise.reshape(B, 1, 1, z)
    for (w, b, gamma, beta) in params["convs"]:
        x = jnp.repeat(jnp.repeat(x, 2, axis=1), 2, axis=2)              # nearest upsample x2
        xp = jnp.pad(x, ((0, 0), (0, 1), (0, 1), (0, 0)))                # 'same' pad: bottom/right
        y = jax.lax.conv_general_dilated(
            xp, jnp.transpose(w, (2, 3, 1, 0)),                          # HWIO
            window_strides=(1, 1), padding="VALID",
            dimension_numbers=("NHWC", "HWIO", "NHWC"),
            precision=jax.lax.Precision.HIGHEST)
        y = y + b
        mean = jnp.mean(y, axis=(0, 1, 2), keepdims=True)
        var = jnp.mean((y - mean) ** 2, axis=(0, 1, 2), keepdims=True)   # biased (training mode)
        x = (y - mean) / jnp.sqrt(var + BN_EPS) * gamma + beta
    B_, H, W, C = x.shape
    x_flat = jnp.transpose(x, (0, 3, 1, 2)).reshape(B_, C * H * W)       # NCHW flatten
    y = jnp.dot(x_flat, params["lin_w"].T,
                precision=jax.lax.Precision.HIGHEST) + params["lin_b"]
    y = jax.nn.sigmoid(y)
    return y.reshape(B_, 3, 16, 16)


if __name__ == "__main__":
    key = jax.random.PRNGKey(0)
    kp, kn = jax.random.split(key)
    params = init_decoder_params(kp, z_dim=128)
    # noise: (batch_size, z_dim); z_dim must be 128 (first conv expects 128 channels)
    noise = jax.random.normal(kn, (2, 128), jnp.float32)

    prep = prepare_params(params, batch_size=noise.shape[0])
    fwd = jax.jit(lambda n: decoder_forward_pallas(n, prep))
    out = jax.block_until_ready(fwd(noise))

    assert out.shape == (2, 3, 16, 16), out.shape
    assert bool(jnp.all(jnp.isfinite(out)))

    ref = decoder_forward_ref(noise, params)
    max_err = float(jnp.max(jnp.abs(out - ref)))
    assert max_err < 2e-3, f"max abs error vs reference: {max_err}"

    print("KERNEL_OK")
</pallas_src>

<mosaic_0001>
module attributes {stable_mosaic.version = 11 : i64} {
  func.func @conv_stack_kernel(%arg0: i32, %arg1: memref<2x128xf32, #tpu.memory_space<vmem>>, %arg2: memref<4x8x2xf32, #tpu.memory_space<vmem>>, %arg3: memref<512x64xf32, #tpu.memory_space<vmem>>, %arg4: memref<1x64xf32, #tpu.memory_space<vmem>>, %arg5: memref<1x64xf32, #tpu.memory_space<vmem>>, %arg6: memref<4x32x8xf32, #tpu.memory_space<vmem>>, %arg7: memref<256x32xf32, #tpu.memory_space<vmem>>, %arg8: memref<1x32xf32, #tpu.memory_space<vmem>>, %arg9: memref<1x32xf32, #tpu.memory_space<vmem>>, %arg10: memref<4x128x32xf32, #tpu.memory_space<vmem>>, %arg11: memref<128x16xf32, #tpu.memory_space<vmem>>, %arg12: memref<1x16xf32, #tpu.memory_space<vmem>>, %arg13: memref<1x16xf32, #tpu.memory_space<vmem>>, %arg14: memref<4x512x128xf32, #tpu.memory_space<vmem>>, %arg15: memref<64x16xf32, #tpu.memory_space<vmem>>, %arg16: memref<1x16xf32, #tpu.memory_space<vmem>>, %arg17: memref<1x16xf32, #tpu.memory_space<vmem>>, %arg18: memref<512x16xf32, #tpu.memory_space<vmem>>) attributes {dimension_semantics = [#tpu.dimension_semantics<arbitrary>], iteration_bounds = array<i64: 1>, scalar_prefetch = 0 : i64, scratch_operands = 0 : i64, tpu.core_type = #tpu.core_type<tc>, window_params = [{pipeline_mode = #tpu.pipeline_mode<synchronous>, transform_indices = @transform_0, window_bounds = array<i64: 2, 128>}, {pipeline_mode = #tpu.pipeline_mode<synchronous>, transform_indices = @transform_1, window_bounds = array<i64: 4, 8, 2>}, {pipeline_mode = #tpu.pipeline_mode<synchronous>, transform_indices = @transform_2, window_bounds = array<i64: 512, 64>}, {pipeline_mode = #tpu.pipeline_mode<synchronous>, transform_indices = @transform_3, window_bounds = array<i64: 1, 64>}, {pipeline_mode = #tpu.pipeline_mode<synchronous>, transform_indices = @transform_4, window_bounds = array<i64: 1, 64>}, {pipeline_mode = #tpu.pipeline_mode<synchronous>, transform_indices = @transform_5, window_bounds = array<i64: 4, 32, 8>}, {pipeline_mode = #tpu.pipeline_mode<synchronous>, transform_indices = @transform_6, window_bounds = array<i64: 256, 32>}, {pipeline_mode = #tpu.pipeline_mode<synchronous>, transform_indices = @transform_7, window_bounds = array<i64: 1, 32>}, {pipeline_mode = #tpu.pipeline_mode<synchronous>, transform_indices = @transform_8, window_bounds = array<i64: 1, 32>}, {pipeline_mode = #tpu.pipeline_mode<synchronous>, transform_indices = @transform_9, window_bounds = array<i64: 4, 128, 32>}, {pipeline_mode = #tpu.pipeline_mode<synchronous>, transform_indices = @transform_10, window_bounds = array<i64: 128, 16>}, {pipeline_mode = #tpu.pipeline_mode<synchronous>, transform_indices = @transform_11, window_bounds = array<i64: 1, 16>}, {pipeline_mode = #tpu.pipeline_mode<synchronous>, transform_indices = @transform_12, window_bounds = array<i64: 1, 16>}, {pipeline_mode = #tpu.pipeline_mode<synchronous>, transform_indices = @transform_13, window_bounds = array<i64: 4, 512, 128>}, {pipeline_mode = #tpu.pipeline_mode<synchronous>, transform_indices = @transform_14, window_bounds = array<i64: 64, 16>}, {pipeline_mode = #tpu.pipeline_mode<synchronous>, transform_indices = @transform_15, window_bounds = array<i64: 1, 16>}, {pipeline_mode = #tpu.pipeline_mode<synchronous>, transform_indices = @transform_16, window_bounds = array<i64: 1, 16>}, {pipeline_mode = #tpu.pipeline_mode<synchronous>, transform_indices = @transform_17, window_bounds = array<i64: 512, 16>}]} {
    %c0 = arith.constant 0 : index
    %c0_0 = arith.constant 0 : index
    %0 = vector.load %arg1[%c0, %c0_0] : memref<2x128xf32, #tpu.memory_space<vmem>>, vector<2x128xf32>
    %c0_1 = arith.constant 0 : index
    %c0_2 = arith.constant 0 : index
    %1 = vector.load %arg3[%c0_1, %c0_2] : memref<512x64xf32, #tpu.memory_space<vmem>>, vector<128x64xf32>
    %cst = arith.constant dense<0.000000e+00> : vector<2x64xf32>
    %2 = tpu.matmul %0, %1, %cst {dimension_numbers = #tpu.dot_dimension_numbers<[1], [0], [0], [1], [0, 0, 1, 1], [], []>} : vector<2x128xf32>, vector<128x64xf32>, vector<2x64xf32> -> vector<2x64xf32>
    %c0_3 = arith.constant 0 : index
    %c0_4 = arith.constant 0 : index
    %c0_5 = arith.constant 0 : index
    %3 = vector.load %arg2[%c0_3, %c0_4, %c0_5] : memref<4x8x2xf32, #tpu.memory_space<vmem>>, vector<1x8x2xf32>
    %4 = vector.shape_cast %3 : vector<1x8x2xf32> to vector<8x2xf32>
    %cst_6 = arith.constant dense<0.000000e+00> : vector<8x64xf32>
    %5 = tpu.matmul %4, %2, %cst_6 {dimension_numbers = #tpu.dot_dimension_numbers<[1], [0], [0], [1], [0, 0, 1, 1], [], []>} : vector<8x2xf32>, vector<2x64xf32>, vector<8x64xf32> -> vector<8x64xf32>
    %c128 = arith.constant 128 : index
    %c0_7 = arith.constant 0 : index
    %6 = vector.load %arg3[%c128, %c0_7] : memref<512x64xf32, #tpu.memory_space<vmem>>, vector<128x64xf32>
    %cst_8 = arith.constant dense<0.000000e+00> : vector<2x64xf32>
    %7 = tpu.matmul %0, %6, %cst_8 {dimension_numbers = #tpu.dot_dimension_numbers<[1], [0], [0], [1], [0, 0, 1, 1], [], []>} : vector<2x128xf32>, vector<128x64xf32>, vector<2x64xf32> -> vector<2x64xf32>
    %c1 = arith.constant 1 : index
    %c0_9 = arith.constant 0 : index
    %c0_10 = arith.constant 0 : index
    %8 = vector.load %arg2[%c1, %c0_9, %c0_10] : memref<4x8x2xf32, #tpu.memory_space<vmem>>, vector<1x8x2xf32>
    %9 = vector.shape_cast %8 : vector<1x8x2xf32> to vector<8x2xf32>
    %cst_11 = arith.constant dense<0.000000e+00> : vector<8x64xf32>
    %10 = tpu.matmul %9, %7, %cst_11 {dimension_numbers = #tpu.dot_dimension_numbers<[1], [0], [0], [1], [0, 0, 1, 1], [], []>} : vector<8x2xf32>, vector<2x64xf32>, vector<8x64xf32> -> vector<8x64xf32>
    %11 = arith.addf %5, %10 : vector<8x64xf32>
    %c256 = arith.constant 256 : index
    %c0_12 = arith.constant 0 : index
    %12 = vector.load %arg3[%c256, %c0_12] : memref<512x64xf32, #tpu.memory_space<vmem>>, vector<128x64xf32>
    %cst_13 = arith.constant dense<0.000000e+00> : vector<2x64xf32>
    %13 = tpu.matmul %0, %12, %cst_13 {dimension_numbers = #tpu.dot_dimension_numbers<[1], [0], [0], [1], [0, 0, 1, 1], [], []>} : vector<2x128xf32>, vector<128x64xf32>, vector<2x64xf32> -> vector<2x64xf32>
    %c2 = arith.constant 2 : index
    %c0_14 = arith.constant 0 : index
    %c0_15 = arith.constant 0 : index
    %14 = vector.load %arg2[%c2, %c0_14, %c0_15] : memref<4x8x2xf32, #tpu.memory_space<vmem>>, vector<1x8x2xf32>
    %15 = vector.shape_cast %14 : vector<1x8x2xf32> to vector<8x2xf32>
    %cst_16 = arith.constant dense<0.000000e+00> : vector<8x64xf32>
    %16 = tpu.matmul %15, %13, %cst_16 {dimension_numbers = #tpu.dot_dimension_numbers<[1], [0], [0], [1], [0, 0, 1, 1], [], []>} : vector<8x2xf32>, vector<2x64xf32>, vector<8x64xf32> -> vector<8x64xf32>
    %17 = arith.addf %11, %16 : vector<8x64xf32>
    %c384 = arith.constant 384 : index
    %c0_17 = arith.constant 0 : index
    %18 = vector.load %arg3[%c384, %c0_17] : memref<512x64xf32, #tpu.memory_space<vmem>>, vector<128x64xf32>
    %cst_18 = arith.constant dense<0.000000e+00> : vector<2x64xf32>
    %19 = tpu.matmul %0, %18, %cst_18 {dimension_numbers = #tpu.dot_dimension_numbers<[1], [0], [0], [1], [0, 0, 1, 1], [], []>} : vector<2x128xf32>, vector<128x64xf32>, vector<2x64xf32> -> vector<2x64xf32>
    %c3 = arith.constant 3 : index
    %c0_19 = arith.constant 0 : index
    %c0_20 = arith.constant 0 : index
    %20 = vector.load %arg2[%c3, %c0_19, %c0_20] : memref<4x8x2xf32, #tpu.memory_space<vmem>>, vector<1x8x2xf32>
    %21 = vector.shape_cast %20 : vector<1x8x2xf32> to vector<8x2xf32>
    %cst_21 = arith.constant dense<0.000000e+00> : vector<8x64xf32>
    %22 = tpu.matmul %21, %19, %cst_21 {dimension_numbers = #tpu.dot_dimension_numbers<[1], [0], [0], [1], [0, 0, 1, 1], [], []>} : vector<8x2xf32>, vector<2x64xf32>, vector<8x64xf32> -> vector<8x64xf32>
    %23 = arith.addf %17, %22 : vector<8x64xf32>
    %cst_22 = arith.constant dense<0.000000e+00> : vector<64xf32>
    %24 = vector.multi_reduction <add>, %23, %cst_22 [0] : vector<8x64xf32> to vector<64xf32>
    %25 = vector.shape_cast %24 : vector<64xf32> to vector<1x64xf32>
    %cst_23 = arith.constant 8.000000e+00 : f32
    %26 = vector.broadcast %cst_23 : f32 to vector<1x64xf32>
    %27 = arith.divf %25, %26 : vector<1x64xf32>
    %28 = vector.broadcast %27 : vector<1x64xf32> to vector<8x64xf32>
    %29 = arith.subf %23, %28 : vector<8x64xf32>
    %30 = arith.mulf %29, %29 : vector<8x64xf32>
    %cst_24 = arith.constant dense<0.000000e+00> : vector<64xf32>
    %31 = vector.multi_reduction <add>, %30, %cst_24 [0] : vector<8x64xf32> to vector<64xf32>
    %32 = vector.shape_cast %31 : vector<64xf32> to vector<1x64xf32>
    %cst_25 = arith.constant 8.000000e+00 : f32
    %33 = vector.broadcast %cst_25 : f32 to vector<1x64xf32>
    %34 = arith.divf %32, %33 : vector<1x64xf32>
    %c0_26 = arith.constant 0 : index
    %c0_27 = arith.constant 0 : index
    %35 = vector.load %arg4[%c0_26, %c0_27] : memref<1x64xf32, #tpu.memory_space<vmem>>, vector<1x64xf32>
    %cst_28 = arith.constant 9.99999974E-6 : f32
    %36 = vector.broadcast %cst_28 : f32 to vector<1x64xf32>
    %37 = arith.addf %34, %36 : vector<1x64xf32>
    %38 = math.rsqrt %37 : vector<1x64xf32>
    %39 = arith.mulf %35, %38 : vector<1x64xf32>
    %40 = vector.broadcast %39 : vector<1x64xf32> to vector<8x64xf32>
    %41 = arith.mulf %29, %40 : vector<8x64xf32>
    %c0_29 = arith.constant 0 : index
    %c0_30 = arith.constant 0 : index
    %42 = vector.load %arg5[%c0_29, %c0_30] : memref<1x64xf32, #tpu.memory_space<vmem>>, vector<1x64xf32>
    %43 = vector.broadcast %42 : vector<1x64xf32> to vector<8x64xf32>
    %44 = arith.addf %41, %43 : vector<8x64xf32>
    %c0_31 = arith.constant 0 : index
    %c0_32 = arith.constant 0 : index
    %45 = vector.load %arg7[%c0_31, %c0_32] : memref<256x32xf32, #tpu.memory_space<vmem>>, vector<64x32xf32>
    %cst_33 = arith.constant dense<0.000000e+00> : vector<8x32xf32>
    %46 = tpu.matmul %44, %45, %cst_33 {dimension_numbers = #tpu.dot_dimension_numbers<[1], [0], [0], [1], [0, 0, 1, 1], [], []>} : vector<8x64xf32>, vector<64x32xf32>, vector<8x32xf32> -> vector<8x32xf32>
    %c0_34 = arith.constant 0 : index
    %c0_35 = arith.constant 0 : index
    %c0_36 = arith.constant 0 : index
    %47 = vector.load %arg6[%c0_34, %c0_35, %c0_36] : memref<4x32x8xf32, #tpu.memory_space<vmem>>, vector<1x32x8xf32>
    %48 = vector.shape_cast %47 : vector<1x32x8xf32> to vector<32x8xf32>
    %cst_37 = arith.constant dense<0.000000e+00> : vector<32x32xf32>
    %49 = tpu.matmul %48, %46, %cst_37 {dimension_numbers = #tpu.dot_dimension_numbers<[1], [0], [0], [1], [0, 0, 1, 1], [], []>} : vector<32x8xf32>, vector<8x32xf32>, vector<32x32xf32> -> vector<32x32xf32>
    %c64 = arith.constant 64 : index
    %c0_38 = arith.constant 0 : index
    %50 = vector.load %arg7[%c64, %c0_38] : memref<256x32xf32, #tpu.memory_space<vmem>>, vector<64x32xf32>
    %cst_39 = arith.constant dense<0.000000e+00> : vector<8x32xf32>
    %51 = tpu.matmul %44, %50, %cst_39 {dimension_numbers = #tpu.dot_dimension_numbers<[1], [0], [0], [1], [0, 0, 1, 1], [], []>} : vector<8x64xf32>, vector<64x32xf32>, vector<8x32xf32> -> vector<8x32xf32>
    %c1_40 = arith.constant 1 : index
    %c0_41 = arith.constant 0 : index
    %c0_42 = arith.constant 0 : index
    %52 = vector.load %arg6[%c1_40, %c0_41, %c0_42] : memref<4x32x8xf32, #tpu.memory_space<vmem>>, vector<1x32x8xf32>
    %53 = vector.shape_cast %52 : vector<1x32x8xf32> to vector<32x8xf32>
    %cst_43 = arith.constant dense<0.000000e+00> : vector<32x32xf32>
    %54 = tpu.matmul %53, %51, %cst_43 {dimension_numbers = #tpu.dot_dimension_numbers<[1], [0], [0], [1], [0, 0, 1, 1], [], []>} : vector<32x8xf32>, vector<8x32xf32>, vector<32x32xf32> -> vector<32x32xf32>
    %55 = arith.addf %49, %54 : vector<32x32xf32>
    %c128_44 = arith.constant 128 : index
    %c0_45 = arith.constant 0 : index
    %56 = vector.load %arg7[%c128_44, %c0_45] : memref<256x32xf32, #tpu.memory_space<vmem>>, vector<64x32xf32>
    %cst_46 = arith.constant dense<0.000000e+00> : vector<8x32xf32>
    %57 = tpu.matmul %44, %56, %cst_46 {dimension_numbers = #tpu.dot_dimension_numbers<[1], [0], [0], [1], [0, 0, 1, 1], [], []>} : vector<8x64xf32>, vector<64x32xf32>, vector<8x32xf32> -> vector<8x32xf32>
    %c2_47 = arith.constant 2 : index
    %c0_48 = arith.constant 0 : index
    %c0_49 = arith.constant 0 : index
    %58 = vector.load %arg6[%c2_47, %c0_48, %c0_49] : memref<4x32x8xf32, #tpu.memory_space<vmem>>, vector<1x32x8xf32>
    %59 = vector.shape_cast %58 : vector<1x32x8xf32> to vector<32x8xf32>
    %cst_50 = arith.constant dense<0.000000e+00> : vector<32x32xf32>
    %60 = tpu.matmul %59, %57, %cst_50 {dimension_numbers = #tpu.dot_dimension_numbers<[1], [0], [0], [1], [0, 0, 1, 1], [], []>} : vector<32x8xf32>, vector<8x32xf32>, vector<32x32xf32> -> vector<32x32xf32>
    %61 = arith.addf %55, %60 : vector<32x32xf32>
    %c192 = arith.constant 192 : index
    %c0_51 = arith.constant 0 : index
    %62 = vector.load %arg7[%c192, %c0_51] : memref<256x32xf32, #tpu.memory_space<vmem>>, vector<64x32xf32>
    %cst_52 = arith.constant dense<0.000000e+00> : vector<8x32xf32>
    %63 = tpu.matmul %44, %62, %cst_52 {dimension_numbers = #tpu.dot_dimension_numbers<[1], [0], [0], [1], [0, 0, 1, 1], [], []>} : vector<8x64xf32>, vector<64x32xf32>, vector<8x32xf32> -> vector<8x32xf32>
    %c3_53 = arith.constant 3 : index
    %c0_54 = arith.constant 0 : index
    %c0_55 = arith.constant 0 : index
    %64 = vector.load %arg6[%c3_53, %c0_54, %c0_55] : memref<4x32x8xf32, #tpu.memory_space<vmem>>, vector<1x32x8xf32>
    %65 = vector.shape_cast %64 : vector<1x32x8xf32> to vector<32x8xf32>
    %cst_56 = arith.constant dense<0.000000e+00> : vector<32x32xf32>
    %66 = tpu.matmul %65, %63, %cst_56 {dimension_numbers = #tpu.dot_dimension_numbers<[1], [0], [0], [1], [0, 0, 1, 1], [], []>} : vector<32x8xf32>, vector<8x32xf32>, vector<32x32xf32> -> vector<32x32xf32>
    %67 = arith.addf %61, %66 : vector<32x32xf32>
    %cst_57 = arith.constant dense<0.000000e+00> : vector<32xf32>
    %68 = vector.multi_reduction <add>, %67, %cst_57 [0] : vector<32x32xf32> to vector<32xf32>
    %69 = vector.shape_cast %68 : vector<32xf32> to vector<1x32xf32>
    %cst_58 = arith.constant 3.200000e+01 : f32
    %70 = vector.broadcast %cst_58 : f32 to vector<1x32xf32>
    %71 = arith.divf %69, %70 : vector<1x32xf32>
    %72 = vector.broadcast %71 : vector<1x32xf32> to vector<32x32xf32>
    %73 = arith.subf %67, %72 : vector<32x32xf32>
    %74 = arith.mulf %73, %73 : vector<32x32xf32>
    %cst_59 = arith.constant dense<0.000000e+00> : vector<32xf32>
    %75 = vector.multi_reduction <add>, %74, %cst_59 [0] : vector<32x32xf32> to vector<32xf32>
    %76 = vector.shape_cast %75 : vector<32xf32> to vector<1x32xf32>
    %cst_60 = arith.constant 3.200000e+01 : f32
    %77 = vector.broadcast %cst_60 : f32 to vector<1x32xf32>
    %78 = arith.divf %76, %77 : vector<1x32xf32>
    %c0_61 = arith.constant 0 : index
    %c0_62 = arith.constant 0 : index
    %79 = vector.load %arg8[%c0_61, %c0_62] : memref<1x32xf32, #tpu.memory_space<vmem>>, vector<1x32xf32>
    %cst_63 = arith.constant 9.99999974E-6 : f32
    %80 = vector.broadcast %cst_63 : f32 to vector<1x32xf32>
    %81 = arith.addf %78, %80 : vector<1x32xf32>
    %82 = math.rsqrt %81 : vector<1x32xf32>
    %83 = arith.mulf %79, %82 : vector<1x32xf32>
    %84 = vector.broadcast %83 : vector<1x32xf32> to vector<32x32xf32>
    %85 = arith.mulf %73, %84 : vector<32x32xf32>
    %c0_64 = arith.constant 0 : index
    %c0_65 = arith.constant 0 : index
    %86 = vector.load %arg9[%c0_64, %c0_65] : memref<1x32xf32, #tpu.memory_space<vmem>>, vector<1x32xf32>
    %87 = vector.broadcast %86 : vector<1x32xf32> to vector<32x32xf32>
    %88 = arith.addf %85, %87 : vector<32x32xf32>
    %c0_66 = arith.constant 0 : index
    %c0_67 = arith.constant 0 : index
    %89 = vector.load %arg11[%c0_66, %c0_67] : memref<128x16xf32, #tpu.memory_space<vmem>>, vector<32x16xf32>
    %cst_68 = arith.constant dense<0.000000e+00> : vector<32x16xf32>
    %90 = tpu.matmul %88, %89, %cst_68 {dimension_numbers = #tpu.dot_dimension_numbers<[1], [0], [0], [1], [0, 0, 1, 1], [], []>} : vector<32x32xf32>, vector<32x16xf32>, vector<32x16xf32> -> vector<32x16xf32>
    %c0_69 = arith.constant 0 : index
    %c0_70 = arith.constant 0 : index
    %c0_71 = arith.constant 0 : index
    %91 = vector.load %arg10[%c0_69, %c0_70, %c0_71] : memref<4x128x32xf32, #tpu.memory_space<vmem>>, vector<1x128x32xf32>
    %92 = vector.shape_cast %91 : vector<1x128x32xf32> to vector<128x32xf32>
    %cst_72 = arith.constant dense<0.000000e+00> : vector<128x16xf32>
    %93 = tpu.matmul %92, %90, %cst_72 {dimension_numbers = #tpu.dot_dimension_numbers<[1], [0], [0], [1], [0, 0, 1, 1], [], []>} : vector<128x32xf32>, vector<32x16xf32>, vector<128x16xf32> -> vector<128x16xf32>
    %c32 = arith.constant 32 : index
    %c0_73 = arith.constant 0 : index
    %94 = vector.load %arg11[%c32, %c0_73] : memref<128x16xf32, #tpu.memory_space<vmem>>, vector<32x16xf32>
    %cst_74 = arith.constant dense<0.000000e+00> : vector<32x16xf32>
    %95 = tpu.matmul %88, %94, %cst_74 {dimension_numbers = #tpu.dot_dimension_numbers<[1], [0], [0], [1], [0, 0, 1, 1], [], []>} : vector<32x32xf32>, vector<32x16xf32>, vector<32x16xf32> -> vector<32x16xf32>
    %c1_75 = arith.constant 1 : index
    %c0_76 = arith.constant 0 : index
    %c0_77 = arith.constant 0 : index
    %96 = vector.load %arg10[%c1_75, %c0_76, %c0_77] : memref<4x128x32xf32, #tpu.memory_space<vmem>>, vector<1x128x32xf32>
    %97 = vector.shape_cast %96 : vector<1x128x32xf32> to vector<128x32xf32>
    %cst_78 = arith.constant dense<0.000000e+00> : vector<128x16xf32>
    %98 = tpu.matmul %97, %95, %cst_78 {dimension_numbers = #tpu.dot_dimension_numbers<[1], [0], [0], [1], [0, 0, 1, 1], [], []>} : vector<128x32xf32>, vector<32x16xf32>, vector<128x16xf32> -> vector<128x16xf32>
    %99 = arith.addf %93, %98 : vector<128x16xf32>
    %c64_79 = arith.constant 64 : index
    %c0_80 = arith.constant 0 : index
    %100 = vector.load %arg11[%c64_79, %c0_80] : memref<128x16xf32, #tpu.memory_space<vmem>>, vector<32x16xf32>
    %cst_81 = arith.constant dense<0.000000e+00> : vector<32x16xf32>
    %101 = tpu.matmul %88, %100, %cst_81 {dimension_numbers = #tpu.dot_dimension_numbers<[1], [0], [0], [1], [0, 0, 1, 1], [], []>} : vector<32x32xf32>, vector<32x16xf32>, vector<32x16xf32> -> vector<32x16xf32>
    %c2_82 = arith.constant 2 : index
    %c0_83 = arith.constant 0 : index
    %c0_84 = arith.constant 0 : index
    %102 = vector.load %arg10[%c2_82, %c0_83, %c0_84] : memref<4x128x32xf32, #tpu.memory_space<vmem>>, vector<1x128x32xf32>
    %103 = vector.shape_cast %102 : vector<1x128x32xf32> to vector<128x32xf32>
    %cst_85 = arith.constant dense<0.000000e+00> : vector<128x16xf32>
    %104 = tpu.matmul %103, %101, %cst_85 {dimension_numbers = #tpu.dot_dimension_numbers<[1], [0], [0], [1], [0, 0, 1, 1], [], []>} : vector<128x32xf32>, vector<32x16xf32>, vector<128x16xf32> -> vector<128x16xf32>
    %105 = arith.addf %99, %104 : vector<128x16xf32>
    %c96 = arith.constant 96 : index
    %c0_86 = arith.constant 0 : index
    %106 = vector.load %arg11[%c96, %c0_86] : memref<128x16xf32, #tpu.memory_space<vmem>>, vector<32x16xf32>
    %cst_87 = arith.constant dense<0.000000e+00> : vector<32x16xf32>
    %107 = tpu.matmul %88, %106, %cst_87 {dimension_numbers = #tpu.dot_dimension_numbers<[1], [0], [0], [1], [0, 0, 1, 1], [], []>} : vector<32x32xf32>, vector<32x16xf32>, vector<32x16xf32> -> vector<32x16xf32>
    %c3_88 = arith.constant 3 : index
    %c0_89 = arith.constant 0 : index
    %c0_90 = arith.constant 0 : index
    %108 = vector.load %arg10[%c3_88, %c0_89, %c0_90] : memref<4x128x32xf32, #tpu.memory_space<vmem>>, vector<1x128x32xf32>
    %109 = vector.shape_cast %108 : vector<1x128x32xf32> to vector<128x32xf32>
    %cst_91 = arith.constant dense<0.000000e+00> : vector<128x16xf32>
    %110 = tpu.matmul %109, %107, %cst_91 {dimension_numbers = #tpu.dot_dimension_numbers<[1], [0], [0], [1], [0, 0, 1, 1], [], []>} : vector<128x32xf32>, vector<32x16xf32>, vector<128x16xf32> -> vector<128x16xf32>
    %111 = arith.addf %105, %110 : vector<128x16xf32>
    %cst_92 = arith.constant dense<0.000000e+00> : vector<16xf32>
    %112 = vector.multi_reduction <add>, %111, %cst_92 [0] : vector<128x16xf32> to vector<16xf32>
    %113 = vector.shape_cast %112 : vector<16xf32> to vector<1x16xf32>
    %cst_93 = arith.constant 1.280000e+02 : f32
    %114 = vector.broadcast %cst_93 : f32 to vector<1x16xf32>
    %115 = arith.divf %113, %114 : vector<1x16xf32>
    %116 = vector.broadcast %115 : vector<1x16xf32> to vector<128x16xf32>
    %117 = arith.subf %111, %116 : vector<128x16xf32>
    %118 = arith.mulf %117, %117 : vector<128x16xf32>
    %cst_94 = arith.constant dense<0.000000e+00> : vector<16xf32>
    %119 = vector.multi_reduction <add>, %118, %cst_94 [0] : vector<128x16xf32> to vector<16xf32>
    %120 = vector.shape_cast %119 : vector<16xf32> to vector<1x16xf32>
    %cst_95 = arith.constant 1.280000e+02 : f32
    %121 = vector.broadcast %cst_95 : f32 to vector<1x16xf32>
    %122 = arith.divf %120, %121 : vector<1x16xf32>
    %c0_96 = arith.constant 0 : index
    %c0_97 = arith.constant 0 : index
    %123 = vector.load %arg12[%c0_96, %c0_97] : memref<1x16xf32, #tpu.memory_space<vmem>>, vector<1x16xf32>
    %cst_98 = arith.constant 9.99999974E-6 : f32
    %124 = vector.broadcast %cst_98 : f32 to vector<1x16xf32>
    %125 = arith.addf %122, %124 : vector<1x16xf32>
    %126 = math.rsqrt %125 : vector<1x16xf32>
    %127 = arith.mulf %123, %126 : vector<1x16xf32>
    %128 = vector.broadcast %127 : vector<1x16xf32> to vector<128x16xf32>
    %129 = arith.mulf %117, %128 : vector<128x16xf32>
    %c0_99 = arith.constant 0 : index
    %c0_100 = arith.constant 0 : index
    %130 = vector.load %arg13[%c0_99, %c0_100] : memref<1x16xf32, #tpu.memory_space<vmem>>, vector<1x16xf32>
    %131 = vector.broadcast %130 : vector<1x16xf32> to vector<128x16xf32>
    %132 = arith.addf %129, %131 : vector<128x16xf32>
    %c0_101 = arith.constant 0 : index
    %c0_102 = arith.constant 0 : index
    %133 = vector.load %arg15[%c0_101, %c0_102] : memref<64x16xf32, #tpu.memory_space<vmem>>, vector<16x16xf32>
    %cst_103 = arith.constant dense<0.000000e+00> : vector<128x16xf32>
    %134 = tpu.matmul %132, %133, %cst_103 {dimension_numbers = #tpu.dot_dimension_numbers<[1], [0], [0], [1], [0, 0, 1, 1], [], []>} : vector<128x16xf32>, vector<16x16xf32>, vector<128x16xf32> -> vector<128x16xf32>
    %c0_104 = arith.constant 0 : index
    %c0_105 = arith.constant 0 : index
    %c0_106 = arith.constant 0 : index
    %135 = vector.load %arg14[%c0_104, %c0_105, %c0_106] : memref<4x512x128xf32, #tpu.memory_space<vmem>>, vector<1x512x128xf32>
    %136 = vector.shape_cast %135 : vector<1x512x128xf32> to vector<512x128xf32>
    %cst_107 = arith.constant dense<0.000000e+00> : vector<512x16xf32>
    %137 = tpu.matmul %136, %134, %cst_107 {dimension_numbers = #tpu.dot_dimension_numbers<[1], [0], [0], [1], [0, 0, 1, 1], [], []>} : vector<512x128xf32>, vector<128x16xf32>, vector<512x16xf32> -> vector<512x16xf32>
    %c16 = arith.constant 16 : index
    %c0_108 = arith.constant 0 : index
    %138 = vector.load %arg15[%c16, %c0_108] : memref<64x16xf32, #tpu.memory_space<vmem>>, vector<16x16xf32>
    %cst_109 = arith.constant dense<0.000000e+00> : vector<128x16xf32>
    %139 = tpu.matmul %132, %138, %cst_109 {dimension_numbers = #tpu.dot_dimension_numbers<[1], [0], [0], [1], [0, 0, 1, 1], [], []>} : vector<128x16xf32>, vector<16x16xf32>, vector<128x16xf32> -> vector<128x16xf32>
    %c1_110 = arith.constant 1 : index
    %c0_111 = arith.constant 0 : index
    %c0_112 = arith.constant 0 : index
    %140 = vector.load %arg14[%c1_110, %c0_111, %c0_112] : memref<4x512x128xf32, #tpu.memory_space<vmem>>, vector<1x512x128xf32>
    %141 = vector.shape_cast %140 : vector<1x512x128xf32> to vector<512x128xf32>
    %cst_113 = arith.constant dense<0.000000e+00> : vector<512x16xf32>
    %142 = tpu.matmul %141, %139, %cst_113 {dimension_numbers = #tpu.dot_dimension_numbers<[1], [0], [0], [1], [0, 0, 1, 1], [], []>} : vector<512x128xf32>, vector<128x16xf32>, vector<512x16xf32> -> vector<512x16xf32>
    %143 = arith.addf %137, %142 : vector<512x16xf32>
    %c32_114 = arith.constant 32 : index
    %c0_115 = arith.constant 0 : index
    %144 = vector.load %arg15[%c32_114, %c0_115] : memref<64x16xf32, #tpu.memory_space<vmem>>, vector<16x16xf32>
    %cst_116 = arith.constant dense<0.000000e+00> : vector<128x16xf32>
    %145 = tpu.matmul %132, %144, %cst_116 {dimension_numbers = #tpu.dot_dimension_numbers<[1], [0], [0], [1], [0, 0, 1, 1], [], []>} : vector<128x16xf32>, vector<16x16xf32>, vector<128x16xf32> -> vector<128x16xf32>
    %c2_117 = arith.constant 2 : index
    %c0_118 = arith.constant 0 : index
    %c0_119 = arith.constant 0 : index
    %146 = vector.load %arg14[%c2_117, %c0_118, %c0_119] : memref<4x512x128xf32, #tpu.memory_space<vmem>>, vector<1x512x128xf32>
    %147 = vector.shape_cast %146 : vector<1x512x128xf32> to vector<512x128xf32>
    %cst_120 = arith.constant dense<0.000000e+00> : vector<512x16xf32>
    %148 = tpu.matmul %147, %145, %cst_120 {dimension_numbers = #tpu.dot_dimension_numbers<[1], [0], [0], [1], [0, 0, 1, 1], [], []>} : vector<512x128xf32>, vector<128x16xf32>, vector<512x16xf32> -> vector<512x16xf32>
    %149 = arith.addf %143, %148 : vector<512x16xf32>
    %c48 = arith.constant 48 : index
    %c0_121 = arith.constant 0 : index
    %150 = vector.load %arg15[%c48, %c0_121] : memref<64x16xf32, #tpu.memory_space<vmem>>, vector<16x16xf32>
    %cst_122 = arith.constant dense<0.000000e+00> : vector<128x16xf32>
    %151 = tpu.matmul %132, %150, %cst_122 {dimension_numbers = #tpu.dot_dimension_numbers<[1], [0], [0], [1], [0, 0, 1, 1], [], []>} : vector<128x16xf32>, vector<16x16xf32>, vector<128x16xf32> -> vector<128x16xf32>
    %c3_123 = arith.constant 3 : index
    %c0_124 = arith.constant 0 : index
    %c0_125 = arith.constant 0 : index
    %152 = vector.load %arg14[%c3_123, %c0_124, %c0_125] : memref<4x512x128xf32, #tpu.memory_space<vmem>>, vector<1x512x128xf32>
    %153 = vector.shape_cast %152 : vector<1x512x128xf32> to vector<512x128xf32>
    %cst_126 = arith.constant dense<0.000000e+00> : vector<512x16xf32>
    %154 = tpu.matmul %153, %151, %cst_126 {dimension_numbers = #tpu.dot_dimension_numbers<[1], [0], [0], [1], [0, 0, 1, 1], [], []>} : vector<512x128xf32>, vector<128x16xf32>, vector<512x16xf32> -> vector<512x16xf32>
    %155 = arith.addf %149, %154 : vector<512x16xf32>
    %cst_127 = arith.constant dense<0.000000e+00> : vector<16xf32>
    %156 = vector.multi_reduction <add>, %155, %cst_127 [0] : vector<512x16xf32> to vector<16xf32>
    %157 = vector.shape_cast %156 : vector<16xf32> to vector<1x16xf32>
    %cst_128 = arith.constant 5.120000e+02 : f32
    %158 = vector.broadcast %cst_128 : f32 to vector<1x16xf32>
    %159 = arith.divf %157, %158 : vector<1x16xf32>
    %160 = vector.broadcast %159 : vector<1x16xf32> to vector<512x16xf32>
    %161 = arith.subf %155, %160 : vector<512x16xf32>
    %162 = arith.mulf %161, %161 : vector<512x16xf32>
    %cst_129 = arith.constant dense<0.000000e+00> : vector<16xf32>
    %163 = vector.multi_reduction <add>, %162, %cst_129 [0] : vector<512x16xf32> to vector<16xf32>
    %164 = vector.shape_cast %163 : vector<16xf32> to vector<1x16xf32>
    %cst_130 = arith.constant 5.120000e+02 : f32
    %165 = vector.broadcast %cst_130 : f32 to vector<1x16xf32>
    %166 = arith.divf %164, %165 : vector<1x16xf32>
    %c0_131 = arith.constant 0 : index
    %c0_132 = arith.constant 0 : index
    %167 = vector.load %arg16[%c0_131, %c0_132] : memref<1x16xf32, #tpu.memory_space<vmem>>, vector<1x16xf32>
    %cst_133 = arith.constant 9.99999974E-6 : f32
    %168 = vector.broadcast %cst_133 : f32 to vector<1x16xf32>
    %169 = arith.addf %166, %168 : vector<1x16xf32>
    %170 = math.rsqrt %169 : vector<1x16xf32>
    %171 = arith.mulf %167, %170 : vector<1x16xf32>
    %172 = vector.broadcast %171 : vector<1x16xf32> to vector<512x16xf32>
    %173 = arith.mulf %161, %172 : vector<512x16xf32>
    %c0_134 = arith.constant 0 : index
    %c0_135 = arith.constant 0 : index
    %174 = vector.load %arg17[%c0_134, %c0_135] : memref<1x16xf32, #tpu.memory_space<vmem>>, vector<1x16xf32>
    %175 = vector.broadcast %174 : vector<1x16xf32> to vector<512x16xf32>
    %176 = arith.addf %173, %175 : vector<512x16xf32>
    %c0_136 = arith.constant 0 : index
    %c0_137 = arith.constant 0 : index
    %177 = vector.load %arg18[%c0_136, %c0_137] : memref<512x16xf32, #tpu.memory_space<vmem>>, vector<512x16xf32>
    tpu.vector_store %arg18[%c0_136, %c0_137], %176 {strides = array<i32>} : memref<512x16xf32, #tpu.memory_space<vmem>>, vector<512x16xf32>,
    return
  }
  func.func @transform_0(%arg0: i32) -> (i32, i32) {
    %c0_i32 = arith.constant 0 : i32
    %c0_i32_0 = arith.constant 0 : i32
    %c0_i32_1 = arith.constant 0 : i32
    return %c0_i32, %c0_i32_0 : i32, i32
  }
  func.func @transform_1(%arg0: i32) -> (i32, i32, i32) {
    %c0_i32 = arith.constant 0 : i32
    %c0_i32_0 = arith.constant 0 : i32
    %c0_i32_1 = arith.constant 0 : i32
    %c0_i32_2 = arith.constant 0 : i32
    return %c0_i32, %c0_i32_0, %c0_i32_1 : i32, i32, i32
  }
  func.func @transform_2(%arg0: i32) -> (i32, i32) {
    %c0_i32 = arith.constant 0 : i32
    %c0_i32_0 = arith.constant 0 : i32
    %c0_i32_1 = arith.constant 0 : i32
    return %c0_i32, %c0_i32_0 : i32, i32
  }
  func.func @transform_3(%arg0: i32) -> (i32, i32) {
    %c0_i32 = arith.constant 0 : i32
    %c0_i32_0 = arith.constant 0 : i32
    %c0_i32_1 = arith.constant 0 : i32
    return %c0_i32, %c0_i32_0 : i32, i32
  }
  func.func @transform_4(%arg0: i32) -> (i32, i32) {
    %c0_i32 = arith.constant 0 : i32
    %c0_i32_0 = arith.constant 0 : i32
    %c0_i32_1 = arith.constant 0 : i32
    return %c0_i32, %c0_i32_0 : i32, i32
  }
  func.func @transform_5(%arg0: i32) -> (i32, i32, i32) {
    %c0_i32 = arith.constant 0 : i32
    %c0_i32_0 = arith.constant 0 : i32
    %c0_i32_1 = arith.constant 0 : i32
    %c0_i32_2 = arith.constant 0 : i32
    return %c0_i32, %c0_i32_0, %c0_i32_1 : i32, i32, i32
  }
  func.func @transform_6(%arg0: i32) -> (i32, i32) {
    %c0_i32 = arith.constant 0 : i32
    %c0_i32_0 = arith.constant 0 : i32
    %c0_i32_1 = arith.constant 0 : i32
    return %c0_i32, %c0_i32_0 : i32, i32
  }
  func.func @transform_7(%arg0: i32) -> (i32, i32) {
    %c0_i32 = arith.constant 0 : i32
    %c0_i32_0 = arith.constant 0 : i32
    %c0_i32_1 = arith.constant 0 : i32
    return %c0_i32, %c0_i32_0 : i32, i32
  }
  func.func @transform_8(%arg0: i32) -> (i32, i32) {
    %c0_i32 = arith.constant 0 : i32
    %c0_i32_0 = arith.constant 0 : i32
    %c0_i32_1 = arith.constant 0 : i32
    return %c0_i32, %c0_i32_0 : i32, i32
  }
  func.func @transform_9(%arg0: i32) -> (i32, i32, i32) {
    %c0_i32 = arith.constant 0 : i32
    %c0_i32_0 = arith.constant 0 : i32
    %c0_i32_1 = arith.constant 0 : i32
    %c0_i32_2 = arith.constant 0 : i32
    return %c0_i32, %c0_i32_0, %c0_i32_1 : i32, i32, i32
  }
  func.func @transform_10(%arg0: i32) -> (i32, i32) {
    %c0_i32 = arith.constant 0 : i32
    %c0_i32_0 = arith.constant 0 : i32
    %c0_i32_1 = arith.constant 0 : i32
    return %c0_i32, %c0_i32_0 : i32, i32
  }
  func.func @transform_11(%arg0: i32) -> (i32, i32) {
    %c0_i32 = arith.constant 0 : i32
    %c0_i32_0 = arith.constant 0 : i32
    %c0_i32_1 = arith.constant 0 : i32
    return %c0_i32, %c0_i32_0 : i32, i32
  }
  func.func @transform_12(%arg0: i32) -> (i32, i32) {
    %c0_i32 = arith.constant 0 : i32
    %c0_i32_0 = arith.constant 0 : i32
    %c0_i32_1 = arith.constant 0 : i32
    return %c0_i32, %c0_i32_0 : i32, i32
  }
  func.func @transform_13(%arg0: i32) -> (i32, i32, i32) {
    %c0_i32 = arith.constant 0 : i32
    %c0_i32_0 = arith.constant 0 : i32
    %c0_i32_1 = arith.constant 0 : i32
    %c0_i32_2 = arith.constant 0 : i32
    return %c0_i32, %c0_i32_0, %c0_i32_1 : i32, i32, i32
  }
  func.func @transform_14(%arg0: i32) -> (i32, i32) {
    %c0_i32 = arith.constant 0 : i32
    %c0_i32_0 = arith.constant 0 : i32
    %c0_i32_1 = arith.constant 0 : i32
    return %c0_i32, %c0_i32_0 : i32, i32
  }
  func.func @transform_15(%arg0: i32) -> (i32, i32) {
    %c0_i32 = arith.constant 0 : i32
    %c0_i32_0 = arith.constant 0 : i32
    %c0_i32_1 = arith.constant 0 : i32
    return %c0_i32, %c0_i32_0 : i32, i32
  }
  func.func @transform_16(%arg0: i32) -> (i32, i32) {
    %c0_i32 = arith.constant 0 : i32
    %c0_i32_0 = arith.constant 0 : i32
    %c0_i32_1 = arith.constant 0 : i32
    return %c0_i32, %c0_i32_0 : i32, i32
  }
  func.func @transform_17(%arg0: i32) -> (i32, i32) {
    %c0_i32 = arith.constant 0 : i32
    %c0_i32_0 = arith.constant 0 : i32
    %c0_i32_1 = arith.constant 0 : i32
    return %c0_i32, %c0_i32_0 : i32, i32
  }
}

module attributes {stable_mosaic.version = 11 : i64} {
  func.func @linear_sigmoid_kernel(%arg0: i32, %arg1: i32, %arg2: memref<2x2048xf32, #tpu.memory_space<vmem>>, %arg3: memref<2048x384xf32, #tpu.memory_space<vmem>>, %arg4: memref<1x384xf32, #tpu.memory_space<vmem>>, %arg5: memref<2x384xf32, #tpu.memory_space<vmem>>, %arg6: memref<2x384xf32, #tpu.memory_space<vmem>>) attributes {dimension_semantics = [#tpu.dimension_semantics<parallel>, #tpu.dimension_semantics<arbitrary>], iteration_bounds = array<i64: 2, 2>, scalar_prefetch = 0 : i64, scratch_operands = 1 : i64, tpu.core_type = #tpu.core_type<tc>, window_params = [{transform_indices = @transform_0, window_bounds = array<i64: 2, 2048>}, {transform_indices = @transform_1, window_bounds = array<i64: 2048, 384>}, {transform_indices = @transform_2, window_bounds = array<i64: 1, 384>}, {transform_indices = @transform_3, window_bounds = array<i64: 2, 384>}]} {
    %c0_i32 = arith.constant 0 : i32
    %0 = arith.cmpi eq, %arg1, %c0_i32 : i32
    %1 = arith.extui %0 : i1 to i32
    %c0_i32_0 = arith.constant 0 : i32
    %2 = arith.cmpi ne, %1, %c0_i32_0 : i32
    scf.if %2 {
      %cst_9 = arith.constant 0.000000e+00 : f32
      %12 = vector.broadcast %cst_9 : f32 to vector<2x384xf32>
      %c0_10 = arith.constant 0 : index
      %c0_11 = arith.constant 0 : index
      %13 = vector.load %arg6[%c0_10, %c0_11] : memref<2x384xf32, #tpu.memory_space<vmem>>, vector<2x384xf32>
      tpu.vector_store %arg6[%c0_10, %c0_11], %12 {strides = array<i32>} : memref<2x384xf32, #tpu.memory_space<vmem>>, vector<2x384xf32>,
    } else {
    }
    %c0 = arith.constant 0 : index
    %c0_1 = arith.constant 0 : index
    %3 = vector.load %arg6[%c0, %c0_1] : memref<2x384xf32, #tpu.memory_space<vmem>>, vector<2x384xf32>
    %c0_2 = arith.constant 0 : index
    %c0_3 = arith.constant 0 : index
    %4 = vector.load %arg2[%c0_2, %c0_3] : memref<2x2048xf32, #tpu.memory_space<vmem>>, vector<2x2048xf32>
    %c0_4 = arith.constant 0 : index
    %c0_5 = arith.constant 0 : index
    %5 = vector.load %arg3[%c0_4, %c0_5] : memref<2048x384xf32, #tpu.memory_space<vmem>>, vector<2048x384xf32>
    %cst = arith.constant dense<0.000000e+00> : vector<2x384xf32>
    %6 = tpu.matmul %4, %5, %cst {dimension_numbers = #tpu.dot_dimension_numbers<[1], [0], [0], [1], [0, 0, 1, 1], [], []>} : vector<2x2048xf32>, vector<2048x384xf32>, vector<2x384xf32> -> vector<2x384xf32>
    %7 = arith.addf %3, %6 : vector<2x384xf32>
    %c0_6 = arith.constant 0 : index
    %c0_7 = arith.constant 0 : index
    %8 = vector.load %arg6[%c0_6, %c0_7] : memref<2x384xf32, #tpu.memory_space<vmem>>, vector<2x384xf32>
    tpu.vector_store %arg6[%c0_6, %c0_7], %7 {strides = array<i32>} : memref<2x384xf32, #tpu.memory_space<vmem>>, vector<2x384xf32>,
    %c1_i32 = arith.constant 1 : i32
    %9 = arith.cmpi eq, %arg1, %c1_i32 : i32
    %10 = arith.extui %9 : i1 to i32
    %c0_i32_8 = arith.constant 0 : i32
    %11 = arith.cmpi ne, %10, %c0_i32_8 : i32
    scf.if %11 {
      %c0_9 = arith.constant 0 : index
      %c0_10 = arith.constant 0 : index
      %12 = vector.load %arg6[%c0_9, %c0_10] : memref<2x384xf32, #tpu.memory_space<vmem>>, vector<2x384xf32>
      %c0_11 = arith.constant 0 : index
      %c0_12 = arith.constant 0 : index
      %13 = vector.load %arg4[%c0_11, %c0_12] : memref<1x384xf32, #tpu.memory_space<vmem>>, vector<1x384xf32>
      %14 = vector.broadcast %13 : vector<1x384xf32> to vector<2x384xf32>
      %15 = arith.addf %12, %14 : vector<2x384xf32>
      %cst_13 = arith.constant 0.000000e+00 : f32
      %16 = vector.broadcast %cst_13 : f32 to vector<2x384xf32>
      %17 = arith.subf %16, %15 : vector<2x384xf32>
      %18 = math.exp %17 : vector<2x384xf32>
      %cst_14 = arith.constant 1.000000e+00 : f32
      %19 = vector.broadcast %cst_14 : f32 to vector<2x384xf32>
      %20 = arith.addf %19, %18 : vector<2x384xf32>
      %cst_15 = arith.constant 1.000000e+00 : f32
      %21 = vector.broadcast %cst_15 : f32 to vector<2x384xf32>
      %22 = arith.divf %21, %20 : vector<2x384xf32>
      %c0_16 = arith.constant 0 : index
      %c0_17 = arith.constant 0 : index
      %23 = vector.load %arg5[%c0_16, %c0_17] : memref<2x384xf32, #tpu.memory_space<vmem>>, vector<2x384xf32>
      tpu.vector_store %arg5[%c0_16, %c0_17], %22 {strides = array<i32>} : memref<2x384xf32, #tpu.memory_space<vmem>>, vector<2x384xf32>,
    } else {
    }
    return
  }
  func.func @transform_0(%arg0: i32, %arg1: i32) -> (i32, i32) {
    %c0_i32 = arith.constant 0 : i32
    %c0_i32_0 = arith.constant 0 : i32
    return %c0_i32, %arg1 : i32, i32
  }
  func.func @transform_1(%arg0: i32, %arg1: i32) -> (i32, i32) {
    %c0_i32 = arith.constant 0 : i32
    return %arg1, %arg0 : i32, i32
  }
  func.func @transform_2(%arg0: i32, %arg1: i32) -> (i32, i32) {
    %c0_i32 = arith.constant 0 : i32
    %c0_i32_0 = arith.constant 0 : i32
    return %c0_i32, %arg0 : i32, i32
  }
  func.func @transform_3(%arg0: i32, %arg1: i32) -> (i32, i32) {
    %c0_i32 = arith.constant 0 : i32
    %c0_i32_0 = arith.constant 0 : i32
    return %c0_i32, %arg0 : i32, i32
  }
}

</mosaic_0001>

<bundles_post_ra>
// kernel: _lambda_.3
= control target key start
LH: loop header
LB: loop body
LE: loop exit
PB: predicated region body
PF: predicated region fallthrough
CT: control target
= control target key end

     0   :  { %s5004_s0 = inlined_call_operand.vmem [shape: f32[2,4096], index: 0, kind: input, shape index: {}]   ;;  %s5005_s1 = inlined_call_operand.hbm [shape: f32[4096,768], index: 1, kind: input, shape index: {}]   ;;  %s5006_s2 = inlined_call_operand.hbm [shape: f32[1,768], index: 2, kind: input, shape index: {}]   ;;  %s5007_s3 = inlined_call_operand.vmem [shape: f32[2,768], index: 3, kind: output, shape index: {}]  }
   0x1   :  { %5013 = sst [smem:[#allocation10_spill]] %s5005_s1 }
   0x2   :  { %8 = vsyncpa [#allocation4], 0 }
   0x3   :  { %10 = vsyncpa [#allocation4 + $0x1], 0 }
   0x4   :  { %11 = vsyncpa [#allocation6], 0 }
   0x5   :  { %13 = vsyncpa [#allocation6 + $0x1], 0  ;;  %s3829_s12 = smov 0   ;;  %s3831_s13 = smov 0  }
   0x6   :  { %s3833_s14 = smov 0   ;;  %s3835_s15 = smov 0  }
   0x7   :  { %s3837_s16 = smov 0   ;;  %s3839_s17 = smov 0  }
   0x8   :  { %s3841_s18 = smov 0   ;;  %s3843_s19 = smov 0  }
   0x9   :  { %s3845_s20 = smov 0   ;;  %s3847_s21 = smov 0  }
   0xa   :  { %s3849_s22 = smov 0  }
   0xb LB: > { %s28_s23 = sadd.s32 1, %s3792_s20  ;;  %p73_p1 = scmp.ne.s32.totalorder %s3780_s17, %s3776_s16  ;;  %s3800_s22 = sphi %s3849_s22, %s19_s22   ;;  %s3796_s21 = sphi %s3847_s21, %s5040_s21   ;;  %s3792_s20 = sphi %s3845_s20, %s5039_s20   ;;  %s3788_s19 = sphi %s3843_s19, %s5038_s19   ;;  %s3784_s18 = sphi %s3841_s18, %s5037_s18   ;;  %s3780_s17 = sphi %s3839_s17, %s5036_s17   ;;  %s3776_s16 = sphi %s3837_s16, %s5035_s16   ;;  %s3772_s15 = sphi %s3835_s15, %s5034_s15   ;;  %s3768_s14 = sphi %s3833_s14, %s5033_s14   ;;  %s3764_s13 = sphi %s3831_s13, %s5032_s13   ;;  %s3760_s12 = sphi %s3829_s12, %s5031_s12  }
   0xc   : > { %p3886_p0 = scmp.ge.s32.totalorder %s28_s23, 2  ;;  %p5009_p2 = scmp.eq.s32.totalorder %s3800_s22, 0 }
   0xd   : > { %p5008_p4 = scmp.lt.s32.totalorder %s3800_s22, 4  ;;  %s164_s27 = sand.u32 1, %s3780_s17  }
   0xe   : > { %s5042_s23 = smov (%p3886_p0, %s28_s23), 0  ;;  %p75_p3 = por %p5009_p2, %p73_p1 }
   0xf   : > { %s3528_s28 = smul.u32 6144, %s164_s27  ;;  %s5016_s1 = sld [smem:[#allocation10_spill]] }
  0x10   : > { %s170_s29 = smul.u32 3, %s3796_s21  ;;  %p3906_p5 = pnand %p5008_p4, %p75_p3 }
  0x11   : > { %s3529_s4 = smul.u32 1536, %s3792_s20  ;;  %s168_s5 = scalar_lea.vmem [#allocation3], %s3528_s28 }
  0x12   : > { %s178_s6 = sshll.u32 %s168_s5, 4  ;;  %s3919_s24 = scalar_lea.sflag [#allocation4], %s164_s27  ;;  %s3911_s6 = int_to_ptr.vmem [resolvable:$true] %s178_s6 }
  0x13   : > { %s175_s7 = sadd.s32 %s3529_s4, %s170_s29  ;;  %p3648_p8 = pneg %p3906_p5 }
  0x14   : > { %s2455_s8 = sshll.u32 %s175_s7, 7 }
  0x15   : > { %s3916_s11 = scalar_lea.hbm %s5016_s1, %s2455_s8  ;;  %s3651_s4 = scalar_lea.hbm %s5016_s1, 393216 }
  0x16   : > { %s3646_s26 = scalar_lea.hbm %s3916_s11, 98304  ;;  %p3652_p11 = scmp.lt.u32.totalorder %s3916_s11, %s5016_s1 }
  0x17   : > { %p3647_p7 = scmp.ne.s32.totalorder %s3916_s11, %s3646_s26  ;;  %p3653_p12 = scmp.lt.u32.totalorder %s3651_s4, %s3646_s26 }
  0x18   : > { %p3655_p1 = scmp.lt.u32.totalorder %s3646_s26, %s3916_s11 }
  0x19   : > { %p3649_p9 = pnand %p3648_p8, %p3647_p7  ;;  %p3654_p13 = por %p3653_p12, %p3652_p11 }
  0x1b   : > { %p3650_p10 = pneg %p3649_p9  ;;  %p3656_p3 = por %p3655_p1, %p3654_p13 }
  0x1d   : > { %p3657_p4 = pnand %p3656_p3, %p3650_p10 }
  0x1f   : > { %3660 = shalt.err (!%p3657_p4)
}
  0x20   : > { %s3661_s27 = scalar_lea.vmem %s3911_s6, 98304  ;;  %s3802_s8 = smov [#allocation3]  }
  0x21   : > { %p3662_p7 = scmp.ne.s32.totalorder %s3911_s6, %s3661_s27  ;;  %s3666_s9 = sshll.u32 %s3802_s8, 4  ;;  %s3667_s9 = int_to_ptr.vmem [resolvable:$false] %s3666_s9 }
  0x22   : > { %s3668_s10 = scalar_lea.vmem %s3667_s9, 196608  ;;  %p3669_p6 = scmp.lt.s32.totalorder %s3911_s6, %s3667_s9 }
  0x23   : > { %p3664_p9 = pnand %p3662_p7, %p3648_p8  ;;  %p3670_p11 = scmp.lt.s32.totalorder %s3668_s10, %s3661_s27 }
  0x25   : > { %p3665_p2 = pneg %p3664_p9  ;;  %p3671_p12 = por %p3670_p11, %p3669_p6 }
  0x27   : > { %p3672_p13 = pnand %p3671_p12, %p3665_p2 }
  0x29   : > { %3675 = shalt.err (!%p3672_p13)
}
  0x2a   : > { %s3803_s26 = smov 768   ;;  %s3804_s28 = smov 384  }
  0x2b   : > { %s3805_s29 = smov 24   ;;  %p205_p2 = scmp.lt.s32.totalorder %s3800_s22, 5 }
  0x2c   : > { %3540 = dma.hbm_to_vmem [thread:$0]  (!%p3906_p5), %s3916_s11, 98304, %s3911_s6, %s3919_s24, %s3803_s26, %s3804_s28, %s3805_s29  }
  0x2d   : > { %p5017_p4 = scmp.ge.s32.totalorder %s3800_s22, 1  ;;  %s2449_s5 = sadd.s32 4294967295, %s3800_s22  }
  0x2e   : > { %s31_s7 = sadd.s32 1, %s3796_s21  ;;  %p79_p8 = scmp.ne.s32.totalorder %s3776_s16, %s3772_s15 }
  0x2f   : > { %p3950_p6 = pnand %p5017_p4, %p205_p2  ;;  %s5044_s7 = smov (!%p3886_p0, %s31_s7), %s3796_s21 }
  0x30   : > { %p3961_p10 = scmp.eq.s32.totalorder %s2449_s5, 0  ;;  %p33_p5 = scmp.ge.s32.totalorder %s5044_s7, 2 }
  0x31   : > { %s92_s24 = sadd.s32 1, %s3768_s14  ;;  %p99_p0 = scmp.ne.s32.totalorder %s3768_s14, %s3764_s13 }
  0x32   : > { %p3968_p1 = por %p3961_p10, %p79_p8  ;;  %s5046_s7 = smov (%p33_p5, %s5044_s7), 0 }
  0x33   : > { %5021 = sst [smem:[#allocation9_spill]] %s5046_s7  ;;  %p5022_p3 = scmp.eq.s32.totalorder %s3800_s22, 0 }
  0x34   : > { %s5020_s6 = scalar_select %p3968_p1, 1, 0 }
  0x35   : > { %p101_p7 = por %p99_p0, %p5022_p3  ;;  %p105_p9 = scmp.ne.s32.totalorder %s3764_s13, %s3760_s12 }
  0x36   : > { %s62_s15 = ssub.s32 %s3796_s21, %s5046_s7  ;;  %s188_s25 = sand.u32 1, %s3768_s14  }
  0x37   : > { %s5023_s11 = ssub.s32 %s3792_s20, %s5042_s23  ;;  %p90_p11 = scmp.eq.s32.totalorder %s62_s15, 0 }
  0x38   : > { %s63_s27 = sor.u32 %s62_s15, %s5023_s11  ;;  %p3988_p13 = por %p105_p9, %p3961_p10 }
  0x39   : > { %p64_p12 = scmp.eq.s32.totalorder %s63_s27, 0  ;;  %s5025_s10 = sadd.s32 1, %s3780_s17 }
  0x3a   : > { %s5024_s8 = scalar_select %p3988_p13, 1, 0 }
  0x3b   : > { %s3993_s9 = scalar_select %p90_p11, %s3768_s14, %s92_s24  }
  0x3c   : > { %s3998_s26 = scalar_select %p64_p12, %s3780_s17, %s5025_s10  }
  0x3d   : > { %s3530_s28 = smul.u32 3, %s188_s25  ;;  %p5026_p2 = scmp.lt.s32.totalorder %s3800_s22, 4 }
  0x3e   : > { %s2465_s29 = smul.u32 48, %s3796_s21  ;;  %s189_s27 = scalar_lea.sflag [#allocation6], %s188_s25 }
  0x3f   : > { %p4003_p4 = pnand %p5026_p2, %p101_p7  ;;  %s192_s24 = scalar_lea.vmem [#allocation5], %s3530_s28 }
  0x40   : > { %s4010_s30 = scalar_lea.hbm %s5006_s2, %s2465_s29  ;;  %s200_s11 = sshll.u32 %s192_s24, 4  ;;  %s4012_s11 = int_to_ptr.vmem [resolvable:$true] %s200_s11 }
  0x41   : > { %s3676_s10 = scalar_lea.hbm %s4010_s30, 48  ;;  %p3678_p10 = pneg %p4003_p4 }
  0x42   : > { %p3677_p8 = scmp.ne.s32.totalorder %s4010_s30, %s3676_s10  ;;  %s3681_s15 = scalar_lea.hbm %s5006_s2, 96 }
  0x43   : > { %p3682_p3 = scmp.lt.u32.totalorder %s4010_s30, %s5006_s2  ;;  %p3683_p7 = scmp.lt.u32.totalorder %s3681_s15, %s3676_s10 }
  0x44   : > { %p3679_p5 = pnand %p3678_p10, %p3677_p8  ;;  %p3685_p11 = scmp.lt.u32.totalorder %s3676_s10, %s4010_s30 }
  0x45   : > { %p3684_p9 = por %p3683_p7, %p3682_p3 }
  0x46   : > { %p3680_p0 = pneg %p3679_p5 }
  0x47   : > { %p3686_p12 = por %p3685_p11, %p3684_p9 }
  0x49   : > { %p3687_p2 = pnand %p3686_p12, %p3680_p0 }
  0x4b   : > { %3690 = shalt.err (!%p3687_p2)
}
  0x4c   : > { %s3691_s25 = scalar_lea.vmem %s4012_s11, 48  ;;  %s3806_s28 = smov [#allocation5]  }
  0x4d   : > { %p3692_p8 = scmp.ne.s32.totalorder %s4012_s11, %s3691_s25  ;;  %s3696_s24 = sshll.u32 %s3806_s28, 4  ;;  %s3697_s24 = int_to_ptr.vmem [resolvable:$false] %s3696_s24 }
  0x4e   : > { %s3698_s1 = scalar_lea.vmem %s3697_s24, 96  ;;  %p3699_p1 = scmp.lt.s32.totalorder %s4012_s11, %s3697_s24 }
  0x4f   : > { %p3694_p5 = pnand %p3692_p8, %p3678_p10  ;;  %p3700_p3 = scmp.lt.s32.totalorder %s3698_s1, %s3691_s25 }
  0x51   : > { %p3695_p13 = pneg %p3694_p5  ;;  %p3701_p7 = por %p3700_p3, %p3699_p1 }
  0x53   : > { %p3702_p9 = pnand %p3701_p7, %p3695_p13 }
  0x55   : > { %3705 = shalt.err (!%p3702_p9)
}
  0x56   : > { %3543 = dma.hbm_to_vmem [thread:$0]  (!%p4003_p4), %s4010_s30, 48, %s4012_s11, %s189_s27  }
  0x57   : > { %209 = sbr.rel (%p3950_p6) target bundleno = 761 (0x2f9), region = 32  ;;  %s211_s7 = sand.u32 (!%p3950_p6), 1, %s3776_s16  }
  0x58   : > { %s3531_s10 = smul.u32 (!%p3950_p6), 6144, %s211_s7  ;;  %s212_s5 = scalar_lea.sflag (!%p3950_p6), [#allocation4], %s211_s7 }
  0x59   : > { %p5028_p10 = scmp.ne.s32.totalorder (!%p3950_p6), %s5020_s6, 0 }
  0x5a   : > { %s4042_s29 = scalar_lea.vmem (!%p3950_p6), [#allocation3], %s3531_s10 }
  0x5e   : > { %3751 = dma.done.wait (%p5028_p10), %s212_s5, 98304  }
  0x5f   : > { %3753 = vsyncadd (%p5028_p10), %s212_s5, 4294868992  ;;  %s220_s12 = sand.u32 1, %s3764_s13   ;;  %p5029_p6 = scmp.ne.s32.totalorder %s5024_s8, 0 }
  0x60   : > { %s4049_s15 = smul.u32 3, %s220_s12  ;;  %s221_s4 = scalar_lea.sflag [#allocation6], %s220_s12 }
  0x62   : > { %s224_s30 = scalar_lea.vmem [#allocation5], %s4049_s15 }
  0x63   : > { %3755 = dma.done.wait (%p5029_p6), %s221_s4, 48  }
  0x64   : > { %3757 = vsyncadd (%p5029_p6), %s221_s4, 4294967248  ;;  %s2458_s11 = sshll.u32 %s3784_s18, 4  ;;  %s266_s27 = smul.u32 3, %s3788_s19 }
  0x65   : > { %p258_p1 = scmp.lt.s32.totalorder %s2458_s11, 31  ;;  %p2461_p4 = scmp.ne.s32.totalorder %s3784_s18, 0 }
  0x66   : > { %p267_p13 = scmp.lt.s32.totalorder %s266_s27, 5  ;;  %v3807_v0 = vmov (!%p2461_p4), 0.0  }
  0x67   : > { %s5048_s11 = smov (!%p258_p1, %s2458_s11), 31  ;;  %275 = sbr.rel (%p2461_p4) target bundleno = 110 (0x6e), region = 44 }
  0x68   : > { %s5050_s27 = smov (!%p267_p13, %s266_s27), 5  ;;  %s2459_s6 = sshll.u32 %s5048_s11, 1  ;;  %276 = vst [vmem:[#allocation2] sm:$0x3f] (!%p2461_p4), %v3807_v0 }
  0x69   : > { %s4061_s24 = scalar_lea.vmem %s5004_s0, %s2459_s6  ;;  %s2460_s1 = sshll.u32 %s5050_s27, 1 }
  0x6a   : > { %s4066_s8 = scalar_lea.vmem %s5007_s3, %s2460_s1 }
  0x6e PF: > { %v283_v1 = vld [vmem:[%s4042_s29 + $0x8] sm:$0xff]  ;;  %v286_v2 = vld [vmem:[%s4042_s29 + $0x20] sm:$0xff]  ;;  %v285_v7 = vld [vmem:[%s4042_s29 + $0x18] sm:$0xff]  ;;  %p2462_p0 = scmp.ne.s32.totalorder %s3784_s18, 1 }
  0x6f   : > { %v475_v3 = vld [vmem:[%s4042_s29 + $0x608] sm:$0xff]  ;;  %v2746_v4 = vpack.c.bf16 %v286_v2, %v283_v1  ;;  %v478_v5 = vld [vmem:[%s4042_s29 + $0x620] sm:$0xff]  ;;  %v477_v11 = vld [vmem:[%s4042_s29 + $0x618] sm:$0xff] }
  0x70   : > { %v282_v6 = vld [vmem:[%s4042_s29] sm:$0xff]  ;;  %v2874_v8 = vpack.c.bf16 %v478_v5, %v475_v3  ;;  %v289_v12 = vld [vmem:[%s4042_s29 + $0x38] sm:$0xff]  ;;  %v292_v14 = vld [vmem:[%s4042_s29 + $0x50] sm:$0xff] }
  0x71   : > { %v2748_v9 = vpack.c.bf16 %v285_v7, %v282_v6  ;;  %v474_v10 = vld [vmem:[%s4042_s29 + $0x600] sm:$0xff]  ;;  %2747 = vmatprep.subr.bf16.mxu1 %v2746_v4  ;;  %v481_v15 = vld [vmem:[%s4042_s29 + $0x638] sm:$0xff]  ;;  %v484_v16 = vld [vmem:[%s4042_s29 + $0x650] sm:$0xff]  ;;  %v2750_v17 = vpack.c.bf16 %v292_v14, %v289_v12 }
  0x72   : > { %v2876_v13 = vpack.c.bf16 %v477_v11, %v474_v10  ;;  %2875 = vmatprep.subr.bf16.mxu0 %v2874_v8  ;;  %v2878_v18 = vpack.c.bf16 %v484_v16, %v481_v15  ;;  %v288_v19 = vld [vmem:[%s4042_s29 + $0x30] sm:$0xff]  ;;  %v291_v20 = vld [vmem:[%s4042_s29 + $0x48] sm:$0xff]  ;;  %v298_v25 = vld [vmem:[%s4042_s29 + $0x80] sm:$0xff] }
  0x73   : > { %2749 = vmatpush1.bf16.msra.mxu1 %v2748_v9  ;;  %v480_v21 = vld [vmem:[%s4042_s29 + $0x630] sm:$0xff]  ;;  %v2752_v22 = vpack.c.bf16 %v291_v20, %v288_v19  ;;  %v483_v23 = vld [vmem:[%s4042_s29 + $0x648] sm:$0xff]  ;;  %v490_v29 = vld [vmem:[%s4042_s29 + $0x680] sm:$0xff] }
  0x74   : > { %2877 = vmatpush1.bf16.msra.mxu0 %v2876_v13  ;;  %v295_v24 = vld [vmem:[%s4042_s29 + $0x68] sm:$0xff]  ;;  %2751 = vmatprep.subr.bf16.mxu1 %v2750_v17  ;;  %v2880_v26 = vpack.c.bf16 %v483_v23, %v480_v21  ;;  %v294_v30 = vld [vmem:[%s4042_s29 + $0x60] sm:$0xff]  ;;  %v297_v32 = vld [vmem:[%s4042_s29 + $0x78] sm:$0xff] }
  0x75   : > { %2879 = vmatprep.subr.bf16.mxu0 %v2878_v18  ;;  %v2754_v27 = vpack.c.bf16 %v298_v25, %v295_v24  ;;  %v487_v28 = vld [vmem:[%s4042_s29 + $0x668] sm:$0xff]  ;;  %v486_v33 = vld [vmem:[%s4042_s29 + $0x660] sm:$0xff]  ;;  %v489_v34 = vld [vmem:[%s4042_s29 + $0x678] sm:$0xff]  ;;  %v2756_v35 = vpack.c.bf16 %v297_v32, %v294_v30 }
  0x76   : > { %v2882_v31 = vpack.c.bf16 %v490_v29, %v487_v28  ;;  %v301_v36 = vld [vmem:[%s4042_s29 + $0x98] sm:$0xff]  ;;  %v304_v37 = vld [vmem:[%s4042_s29 + $0xb0] sm:$0xff]  ;;  %v2884_v39 = vpack.c.bf16 %v489_v34, %v486_v33  ;;  %v303_v43 = vld [vmem:[%s4042_s29 + $0xa8] sm:$0xff] }
  0x77   : > { %2753 = vmatpush1.bf16.msra.mxu1 %v2752_v22  ;;  %v493_v38 = vld [vmem:[%s4042_s29 + $0x698] sm:$0xff]  ;;  %v2758_v40 = vpack.c.bf16 %v304_v37, %v301_v36  ;;  %v496_v41 = vld [vmem:[%s4042_s29 + $0x6b0] sm:$0xff]  ;;  %v495_v46 = vld [vmem:[%s4042_s29 + $0x6a8] sm:$0xff] }
  0x78   : > { %2881 = vmatpush1.bf16.msra.mxu0 %v2880_v26  ;;  %2755 = vmatprep.subr.bf16.mxu1 %v2754_v27  ;;  %v300_v42 = vld [vmem:[%s4042_s29 + $0x90] sm:$0xff]  ;;  %v2886_v44 = vpack.c.bf16 %v496_v41, %v493_v38  ;;  %v307_v47 = vld [vmem:[%s4042_s29 + $0xc8] sm:$0xff]  ;;  %v310_v48 = vld [vmem:[%s4042_s29 + $0xe0] sm:$0xff] }
  0x79   : > { %2883 = vmatprep.subr.bf16.mxu0 %v2882_v31  ;;  %v492_v45 = vld [vmem:[%s4042_s29 + $0x690] sm:$0xff]  ;;  %v499_v49 = vld [vmem:[%s4042_s29 + $0x6c8] sm:$0xff]  ;;  %v502_v50 = vld [vmem:[%s4042_s29 + $0x6e0] sm:$0xff]  ;;  %v2760_v51 = vpack.c.bf16 %v303_v43, %v300_v42  ;;  %v2762_v53 = vpack.c.bf16 %v310_v48, %v307_v47  ;;  %v3808_v47 = vmov 1983009808  }
  0x7a   : > { %v2888_v52 = vpack.c.bf16 %v495_v46, %v492_v45  ;;  %v306_v54 = vld [vmem:[%s4042_s29 + $0xc0] sm:$0xff]  ;;  %v309_v55 = vld [vmem:[%s4042_s29 + $0xd8] sm:$0xff]  ;;  %v2890_v57 = vpack.c.bf16 %v502_v50, %v499_v49  ;;  %v316_v60 = vld [vmem:[%s4042_s29 + $0x110] sm:$0xff]  ;;  %v1056_v48 = vunpack.c.l.s4 %v3808_v47  ;;  %v1058_v49 = vlaneseq }
  0x7b   : > { %2757 = vmatpush1.bf16.msra.mxu1 %v2756_v35  ;;  %v498_v56 = vld [vmem:[%s4042_s29 + $0x6c0] sm:$0xff]  ;;  %v501_v58 = vld [vmem:[%s4042_s29 + $0x6d8] sm:$0xff]  ;;  %v508_v62 = vld [vmem:[%s4042_s29 + $0x710] sm:$0xff]  ;;  %v2764_v63 = vpack.c.bf16 %v309_v55, %v306_v54 }
  0x7c   : > { %2885 = vmatpush1.bf16.msra.mxu0 %v2884_v39  ;;  %2759 = vmatprep.subr.bf16.mxu1 %v2758_v40  ;;  %v313_v59 = vld [vmem:[%s4042_s29 + $0xf8] sm:$0xff]  ;;  %v2892_v0 = vpack.c.bf16 %v501_v58, %v498_v56  ;;  %v312_v2 = vld [vmem:[%s4042_s29 + $0xf0] sm:$0xff]  ;;  %v315_v3 = vld [vmem:[%s4042_s29 + $0x108] sm:$0xff] }
  0x7d   : > { %2887 = vmatprep.subr.bf16.mxu0 %v2886_v44  ;;  %v505_v61 = vld [vmem:[%s4042_s29 + $0x6f8] sm:$0xff]  ;;  %v2766_v1 = vpack.c.bf16 %v316_v60, %v313_v59  ;;  %v504_v4 = vld [vmem:[%s4042_s29 + $0x6f0] sm:$0xff]  ;;  %v507_v6 = vld [vmem:[%s4042_s29 + $0x708] sm:$0xff]  ;;  %v2768_v11 = vpack.c.bf16 %v315_v3, %v312_v2 }
  0x7e   : > { %v2894_v5 = vpack.c.bf16 %v508_v62, %v505_v61  ;;  %v319_v7 = vld [vmem:[%s4042_s29 + $0x128] sm:$0xff]  ;;  %v322_v8 = vld [vmem:[%s4042_s29 + $0x140] sm:$0xff]  ;;  %v2896_v12 = vpack.c.bf16 %v507_v6, %v504_v4  ;;  %v321_v15 = vld [vmem:[%s4042_s29 + $0x138] sm:$0xff]  ;;  %v1057_v62 = vunpack.c.0.s8 %v1056_v48 }
  0x7f   : > { %2761 = vmatpush1.bf16.msra.mxu1 %v2760_v51  ;;  %v511_v9 = vld [vmem:[%s4042_s29 + $0x728] sm:$0xff]  ;;  %v514_v10 = vld [vmem:[%s4042_s29 + $0x740] sm:$0xff]  ;;  %v2770_v13 = vpack.c.bf16 %v322_v8, %v319_v7  ;;  %v513_v18 = vld [vmem:[%s4042_s29 + $0x738] sm:$0xff] }
  0x80   : > { %2889 = vmatpush1.bf16.msra.mxu0 %v2888_v52  ;;  %2763 = vmatprep.subr.bf16.mxu1 %v2762_v53  ;;  %v318_v14 = vld [vmem:[%s4042_s29 + $0x120] sm:$0xff]  ;;  %v2898_v17 = vpack.c.bf16 %v514_v10, %v511_v9  ;;  %v325_v19 = vld [vmem:[%s4042_s29 + $0x158] sm:$0xff]  ;;  %v328_v20 = vld [vmem:[%s4042_s29 + $0x170] sm:$0xff] }
  0x81   : > { %2891 = vmatprep.subr.bf16.mxu0 %v2890_v57  ;;  %v510_v16 = vld [vmem:[%s4042_s29 + $0x720] sm:$0xff]  ;;  %v517_v21 = vld [vmem:[%s4042_s29 + $0x758] sm:$0xff]  ;;  %v520_v22 = vld [vmem:[%s4042_s29 + $0x770] sm:$0xff]  ;;  %v2772_v23 = vpack.c.bf16 %v321_v15, %v318_v14  ;;  %v2774_v25 = vpack.c.bf16 %v328_v20, %v325_v19 }
  0x82   : > { %v2900_v24 = vpack.c.bf16 %v513_v18, %v510_v16  ;;  %v324_v26 = vld [vmem:[%s4042_s29 + $0x150] sm:$0xff]  ;;  %v327_v27 = vld [vmem:[%s4042_s29 + $0x168] sm:$0xff]  ;;  %v2902_v29 = vpack.c.bf16 %v520_v22, %v517_v21  ;;  %v334_v32 = vld [vmem:[%s4042_s29 + $0x1a0] sm:$0xff] }
  0x83   : > { %2765 = vmatpush1.bf16.msra.mxu1 %v2764_v63  ;;  %v516_v28 = vld [vmem:[%s4042_s29 + $0x750] sm:$0xff]  ;;  %v519_v30 = vld [vmem:[%s4042_s29 + $0x768] sm:$0xff]  ;;  %v526_v34 = vld [vmem:[%s4042_s29 + $0x7a0] sm:$0xff]  ;;  %v2776_v35 = vpack.c.bf16 %v327_v27, %v324_v26  ;;  %v4153_v63 = vshrl.u32 %v1058_v49, 7 }
  0x84   : > { %2893 = vmatpush1.bf16.msra.mxu0 %v2892_v0  ;;  %2767 = vmatprep.subr.bf16.mxu1 %v2766_v1  ;;  %v331_v31 = vld [vmem:[%s4042_s29 + $0x188] sm:$0xff]  ;;  %v2904_v36 = vpack.c.bf16 %v519_v30, %v516_v28  ;;  %v330_v38 = vld [vmem:[%s4042_s29 + $0x180] sm:$0xff]  ;;  %v333_v39 = vld [vmem:[%s4042_s29 + $0x198] sm:$0xff] }
  0x85   : > { %2895 = vmatprep.subr.bf16.mxu0 %v2894_v5  ;;  %v523_v33 = vld [vmem:[%s4042_s29 + $0x788] sm:$0xff]  ;;  %v2778_v37 = vpack.c.bf16 %v334_v32, %v331_v31  ;;  %v522_v40 = vld [vmem:[%s4042_s29 + $0x780] sm:$0xff]  ;;  %v525_v42 = vld [vmem:[%s4042_s29 + $0x798] sm:$0xff]  ;;  %v2780_v50 = vpack.c.bf16 %v333_v39, %v330_v38 }
  0x86   : > { %v2906_v41 = vpack.c.bf16 %v526_v34, %v523_v33  ;;  %v337_v43 = vld [vmem:[%s4042_s29 + $0x1b8] sm:$0xff]  ;;  %v340_v44 = vld [vmem:[%s4042_s29 + $0x1d0] sm:$0xff]  ;;  %v2908_v51 = vpack.c.bf16 %v525_v42, %v522_v40  ;;  %v339_v54 = vld [vmem:[%s4042_s29 + $0x1c8] sm:$0xff] }
  0x87   : > { %2769 = vmatpush1.bf16.msra.mxu1 %v2768_v11  ;;  %v529_v45 = vld [vmem:[%s4042_s29 + $0x7b8] sm:$0xff]  ;;  %v532_v46 = vld [vmem:[%s4042_s29 + $0x7d0] sm:$0xff]  ;;  %v2782_v52 = vpack.c.bf16 %v340_v44, %v337_v43  ;;  %v531_v57 = vld [vmem:[%s4042_s29 + $0x7c8] sm:$0xff] }
  0x88   : > { %2897 = vmatpush1.bf16.msra.mxu0 %v2896_v12  ;;  %2771 = vmatprep.subr.bf16.mxu1 %v2770_v13  ;;  %v336_v53 = vld [vmem:[%s4042_s29 + $0x1b0] sm:$0xff]  ;;  %v2910_v56 = vpack.c.bf16 %v532_v46, %v529_v45  ;;  %v343_v58 = vld [vmem:[%s4042_s29 + $0x1e8] sm:$0xff]  ;;  %v346_v59 = vld [vmem:[%s4042_s29 + $0x200] sm:$0xff]  ;;  %v4164_v12 = vsub.s32 %v1057_v62, %v4153_v63 }
  0x89   : > { %2899 = vmatprep.subr.bf16.mxu0 %v2898_v17  ;;  %v528_v55 = vld [vmem:[%s4042_s29 + $0x7b0] sm:$0xff]  ;;  %v535_v60 = vld [vmem:[%s4042_s29 + $0x7e8] sm:$0xff]  ;;  %v538_v61 = vld [vmem:[%s4042_s29 + $0x800] sm:$0xff]  ;;  %v2784_v0 = vpack.c.bf16 %v339_v54, %v336_v53  ;;  %v2786_v2 = vpack.c.bf16 %v346_v59, %v343_v58 }
  0x8a   : > { %v2912_v1 = vpack.c.bf16 %v531_v57, %v528_v55  ;;  %v342_v3 = vld [vmem:[%s4042_s29 + $0x1e0] sm:$0xff]  ;;  %v345_v4 = vld [vmem:[%s4042_s29 + $0x1f8] sm:$0xff]  ;;  %v2914_v6 = vpack.c.bf16 %v538_v61, %v535_v60  ;;  %v352_v9 = vld [vmem:[%s4042_s29 + $0x230] sm:$0xff] }
  0x8b   : > { %2773 = vmatpush1.bf16.msra.mxu1 %v2772_v23  ;;  %v534_v5 = vld [vmem:[%s4042_s29 + $0x7e0] sm:$0xff]  ;;  %v537_v7 = vld [vmem:[%s4042_s29 + $0x7f8] sm:$0xff]  ;;  %v544_v11 = vld [vmem:[%s4042_s29 + $0x830] sm:$0xff]  ;;  %v2788_v13 = vpack.c.bf16 %v345_v4, %v342_v3 }
  0x8c   : > { %2901 = vmatpush1.bf16.msra.mxu0 %v2900_v24  ;;  %2775 = vmatprep.subr.bf16.mxu1 %v2774_v25  ;;  %v349_v8 = vld [vmem:[%s4042_s29 + $0x218] sm:$0xff]  ;;  %v348_v14 = vld [vmem:[%s4042_s29 + $0x210] sm:$0xff]  ;;  %v2916_v15 = vpack.c.bf16 %v537_v7, %v534_v5  ;;  %v351_v17 = vld [vmem:[%s4042_s29 + $0x228] sm:$0xff] }
  0x8d   : > { %2903 = vmatprep.subr.bf16.mxu0 %v2902_v29  ;;  %v541_v10 = vld [vmem:[%s4042_s29 + $0x818] sm:$0xff]  ;;  %v2790_v16 = vpack.c.bf16 %v352_v9, %v349_v8  ;;  %v540_v18 = vld [vmem:[%s4042_s29 + $0x810] sm:$0xff]  ;;  %v543_v19 = vld [vmem:[%s4042_s29 + $0x828] sm:$0xff]  ;;  %v2792_v28 = vpack.c.bf16 %v351_v17, %v348_v14 }
  0x8e   : > { %v2918_v20 = vpack.c.bf16 %v544_v11, %v541_v10  ;;  %v355_v21 = vld [vmem:[%s4042_s29 + $0x248] sm:$0xff]  ;;  %v358_v22 = vld [vmem:[%s4042_s29 + $0x260] sm:$0xff]  ;;  %v2920_v30 = vpack.c.bf16 %v543_v19, %v540_v18  ;;  %v357_v33 = vld [vmem:[%s4042_s29 + $0x258] sm:$0xff] }
  0x8f   : > { %2777 = vmatpush1.bf16.msra.mxu1 %v2776_v35  ;;  %v4173_v23 = vld [vmem:[%s4061_s24] sm:$0xff]  ;;  %v547_v24 = vld [vmem:[%s4042_s29 + $0x848] sm:$0xff]  ;;  %v2794_v31 = vpack.c.bf16 %v358_v22, %v355_v21  ;;  %v364_v39 = vld [vmem:[%s4042_s29 + $0x290] sm:$0xff] }
  0x90   : > { %2905 = vmatpush1.bf16.msra.mxu0 %v2904_v36  ;;  %2779 = vmatprep.subr.bf16.mxu1 %v2778_v37  ;;  %v550_v25 = vld [vmem:[%s4042_s29 + $0x860] sm:$0xff]  ;;  %v4179_v26 = vrot.slane %v4173_v23, %v4164_v12  ;;  %v549_v37 = vld [vmem:[%s4042_s29 + $0x858] sm:$0xff]  ;;  %v556_v42 = vld [vmem:[%s4042_s29 + $0x890] sm:$0xff] }
  0x91   : > { %2907 = vmatprep.subr.bf16.mxu0 %v2906_v41  ;;  %v4182_v27 = vld [vmem:[%s4061_s24 + $0x8] sm:$0xff]  ;;  %v2922_v36 = vpack.c.bf16 %v550_v25, %v547_v24  ;;  %v361_v38 = vld [vmem:[%s4042_s29 + $0x278] sm:$0xff]  ;;  %v360_v46 = vld [vmem:[%s4042_s29 + $0x270] sm:$0xff] }
  0x92   : > { %v4186_v29 = vrot.slane %v4182_v27, %v4164_v12  ;;  %v354_v32 = vld [vmem:[%s4042_s29 + $0x240] sm:$0xff]  ;;  %v4193_v35 = vcombine.high %v4179_v26, %v4179_v26  ;;  %v553_v41 = vld [vmem:[%s4042_s29 + $0x878] sm:$0xff]  ;;  %v2798_v45 = vpack.c.bf16 %v364_v39, %v361_v38  ;;  %v363_v47 = vld [vmem:[%s4042_s29 + $0x288] sm:$0xff] }
  0x93   : > { %2781 = vmatpush1.bf16.msra.mxu1 %v2780_v50  ;;  %v546_v34 = vld [vmem:[%s4042_s29 + $0x840] sm:$0xff]  ;;  %v2796_v43 = vpack.c.bf16 %v357_v33, %v354_v32  ;;  %v552_v48 = vld [vmem:[%s4042_s29 + $0x870] sm:$0xff]  ;;  %v2926_v49 = vpack.c.bf16 %v556_v42, %v553_v41  ;;  %v555_v50 = vld [vmem:[%s4042_s29 + $0x888] sm:$0xff]  ;;  %v2800_v55 = vpack.c.bf16 %v363_v47, %v360_v46 }
  0x94   : > { %2909 = vmatpush1.bf16.msra.mxu0 %v2908_v51  ;;  %2783 = vmatprep.subr.bf16.mxu1 %v2782_v52  ;;  %v4200_v40 = vcombine.high %v4186_v29, %v4186_v29  ;;  %v2924_v44 = vpack.c.bf16 %v549_v37, %v546_v34  ;;  %v367_v51 = vld [vmem:[%s4042_s29 + $0x2a8] sm:$0xff]  ;;  %v370_v52 = vld [vmem:[%s4042_s29 + $0x2c0] sm:$0xff]  ;;  %v369_v59 = vld [vmem:[%s4042_s29 + $0x2b8] sm:$0xff] }
  0x95   : > { %2911 = vmatprep.subr.bf16.mxu0 %v2910_v56  ;;  %1202 = vmatprep.mubr.f32.mxu1 %v4193_v35  ;;  %v559_v53 = vld [vmem:[%s4042_s29 + $0x8a8] sm:$0xff]  ;;  %v562_v54 = vld [vmem:[%s4042_s29 + $0x8c0] sm:$0xff]  ;;  %v2928_v56 = vpack.c.bf16 %v555_v50, %v552_v48  ;;  %v2802_v57 = vpack.c.bf16 %v370_v52, %v367_v51  ;;  %v561_v62 = vld [vmem:[%s4042_s29 + $0x8b8] sm:$0xff] }
  0x96   : > { %1344 = vmatprep.mubr.f32.mxu0 %v4200_v40  ;;  %v366_v58 = vld [vmem:[%s4042_s29 + $0x2a0] sm:$0xff]  ;;  %v2930_v61 = vpack.c.bf16 %v562_v54, %v559_v53  ;;  %v568_v3 = vld [vmem:[%s4042_s29 + $0x8f0] sm:$0xff]  ;;  %v375_v8 = vld [vmem:[%s4042_s29 + $0x2e8] sm:$0xff] }
  0x97   : > { %2785 = vmatpush1.bf16.msra.mxu1 %v2784_v0  ;;  %v558_v60 = vld [vmem:[%s4042_s29 + $0x8a0] sm:$0xff]  ;;  %v373_v0 = vld [vmem:[%s4042_s29 + $0x2d8] sm:$0xff]  ;;  %v2804_v4 = vpack.c.bf16 %v369_v59, %v366_v58  ;;  %v372_v7 = vld [vmem:[%s4042_s29 + $0x2d0] sm:$0xff] }
  0x98   : > { %2913 = vmatpush1.bf16.msra.mxu0 %v2912_v1  ;;  %2787 = vmatprep.subr.bf16.mxu1 %v2786_v2  ;;  %v376_v1 = vld [vmem:[%s4042_s29 + $0x2f0] sm:$0xff]  ;;  %v565_v2 = vld [vmem:[%s4042_s29 + $0x8d8] sm:$0xff]  ;;  %v2932_v5 = vpack.c.bf16 %v561_v62, %v558_v60  ;;  %v567_v11 = vld [vmem:[%s4042_s29 + $0x8e8] sm:$0xff]  ;;  %v2808_v19 = vpack.c.bf16 %v375_v8, %v372_v7 }
  0x99   : > { %2915 = vmatprep.subr.bf16.mxu0 %v2914_v6  ;;  %v2806_v6 = vpack.c.bf16 %v376_v1, %v373_v0  ;;  %v564_v9 = vld [vmem:[%s4042_s29 + $0x8d0] sm:$0xff]  ;;  %v2934_v10 = vpack.c.bf16 %v568_v3, %v565_v2  ;;  %v379_v14 = vld [vmem:[%s4042_s29 + $0x308] sm:$0xff]  ;;  %v574_v18 = vld [vmem:[%s4042_s29 + $0x920] sm:$0xff] }
  0x9a   : > { %v571_v17 = vld [vmem:[%s4042_s29 + $0x908] sm:$0xff]  ;;  %v378_v22 = vld [vmem:[%s4042_s29 + $0x300] sm:$0xff]  ;;  %v577_v32 = vld [vmem:[%s4042_s29 + $0x938] sm:$0xff] }
  0x9b   : > { %2789 = vmatpush1.bf16.msra.mxu1 %v2788_v13  ;;  %v1054_v13 = vcombine.high %v4173_v23, %v4173_v23  ;;  %v381_v23 = vld [vmem:[%s4042_s29 + $0x318] sm:$0xff]  ;;  %v570_v24 = vld [vmem:[%s4042_s29 + $0x900] sm:$0xff]  ;;  %v2938_v25 = vpack.c.bf16 %v574_v18, %v571_v17  ;;  %v580_v33 = vld [vmem:[%s4042_s29 + $0x950] sm:$0xff] }
  0x9c   : > { %2917 = vmatpush1.bf16.msra.mxu0 %v2916_v15  ;;  %2791 = vmatprep.subr.bf16.mxu1 %v2790_v16  ;;  %v382_v15 = vld [vmem:[%s4042_s29 + $0x320] sm:$0xff]  ;;  %v1071_v16 = vcombine.high %v4182_v27, %v4182_v27  ;;  %v573_v27 = vld [vmem:[%s4042_s29 + $0x918] sm:$0xff]  ;;  %v384_v39 = vld [vmem:[%s4042_s29 + $0x330] sm:$0xff] }
  0x9d   : > { %2919 = vmatprep.subr.bf16.mxu0 %v2918_v20  ;;  %v2936_v20 = vpack.c.bf16 %v567_v11, %v564_v9  ;;  %v2810_v21 = vpack.c.bf16 %v382_v15, %v379_v14  ;;  %v2940_v37 = vpack.c.bf16 %v573_v27, %v570_v24  ;;  %v387_v41 = vld [vmem:[%s4042_s29 + $0x348] sm:$0xff]  ;;  %v576_v42 = vld [vmem:[%s4042_s29 + $0x930] sm:$0xff]  ;;  %v394_v46 = vld [vmem:[%s4042_s29 + $0x380] sm:$0xff] }
  0x9e   : > { %v4246_v34 = vrot.slane %v1071_v16, %v4164_v12  ;;  %v583_v48 = vld [vmem:[%s4042_s29 + $0x968] sm:$0xff]  ;;  %v2816_v51 = vpack.c.bf16 %v387_v41, %v384_v39  ;;  %v390_v54 = vld [vmem:[%s4042_s29 + $0x360] sm:$0xff]  ;;  %v585_v58 = vld [vmem:[%s4042_s29 + $0x978] sm:$0xff] }
  0x9f   : > { %2793 = vmatpush1.bf16.msra.mxu1 %v2792_v28  ;;  %v385_v28 = vld [vmem:[%s4042_s29 + $0x338] sm:$0xff]  ;;  %v400_v60 = vld [vmem:[%s4042_s29 + $0x3b0] sm:$0xff]  ;;  %v591_v7 = vld [vmem:[%s4042_s29 + $0x9a8] sm:$0xff] }
  0xa0   : > { %2921 = vmatpush1.bf16.msra.mxu0 %v2920_v30  ;;  %2795 = vmatprep.subr.bf16.mxu1 %v2794_v31  ;;  %v388_v30 = vld [vmem:[%s4042_s29 + $0x350] sm:$0xff]  ;;  %v4241_v31 = vrot.slane %v1054_v13, %v4164_v12  ;;  %v4263_v50 = vcombine.high %v4246_v34, %v4246_v34  ;;  %v397_v59 = vld [vmem:[%s4042_s29 + $0x398] sm:$0xff]  ;;  %v403_v8 = vld [vmem:[%s4042_s29 + $0x3c8] sm:$0xff] }
  0xa1   : > { %2923 = vmatprep.subr.bf16.mxu0 %v2922_v36  ;;  %v2812_v36 = vpack.c.bf16 %v381_v23, %v378_v22  ;;  %v2814_v38 = vpack.c.bf16 %v388_v30, %v385_v28  ;;  %v592_v62 = vld [vmem:[%s4042_s29 + $0x9b0] sm:$0xff]  ;;  %v2822_v2 = vpack.c.bf16 %v400_v60, %v397_v59  ;;  %v406_v9 = vld [vmem:[%s4042_s29 + $0x3e0] sm:$0xff]  ;;  %v405_v17 = vld [vmem:[%s4042_s29 + $0x3d8] sm:$0xff] }
  0xa2   : > { %v4256_v47 = vcombine.high %v4241_v31, %v4241_v31  ;;  %v396_v3 = vld [vmem:[%s4042_s29 + $0x390] sm:$0xff]  ;;  %v598_v11 = vld [vmem:[%s4042_s29 + $0x9e0] sm:$0xff]  ;;  %v2826_v15 = vpack.c.bf16 %v406_v9, %v403_v8  ;;  %v601_v23 = vld [vmem:[%s4042_s29 + $0x9f8] sm:$0xff] }
  0xa3   : > { %2797 = vmatpush1.bf16.msra.mxu1 %v2796_v43  ;;  %v2942_v43 = vpack.c.bf16 %v580_v33, %v577_v32  ;;  %v402_v16 = vld [vmem:[%s4042_s29 + $0x3c0] sm:$0xff]  ;;  %v412_v22 = vld [vmem:[%s4042_s29 + $0x410] sm:$0xff]  ;;  %v411_v32 = vld [vmem:[%s4042_s29 + $0x408] sm:$0xff] }
  0xa4   : > { %2925 = vmatpush1.bf16.msra.mxu0 %v2924_v44  ;;  %2799 = vmatprep.subr.bf16.mxu1 %v2798_v45  ;;  %v579_v44 = vld [vmem:[%s4042_s29 + $0x948] sm:$0xff]  ;;  %v594_v18 = vld [vmem:[%s4042_s29 + $0x9c0] sm:$0xff]  ;;  %v604_v24 = vld [vmem:[%s4042_s29 + $0xa10] sm:$0xff] }
  0xa5   : > { %2927 = vmatprep.subr.bf16.mxu0 %v2926_v49  ;;  %v391_v45 = vld [vmem:[%s4042_s29 + $0x368] sm:$0xff]  ;;  %v586_v49 = vld [vmem:[%s4042_s29 + $0x980] sm:$0xff]  ;;  %v2944_v52 = vpack.c.bf16 %v579_v44, %v576_v42  ;;  %v408_v30 = vld [vmem:[%s4042_s29 + $0x3f0] sm:$0xff] }
  0xa6   : > { %v2818_v53 = vpack.c.bf16 %v394_v46, %v391_v45  ;;  %v600_v33 = vld [vmem:[%s4042_s29 + $0x9f0] sm:$0xff]  ;;  %v418_v39 = vld [vmem:[%s4042_s29 + $0x440] sm:$0xff]  ;;  %v607_v41 = vld [vmem:[%s4042_s29 + $0xa28] sm:$0xff] }
  0xa7   : > { %2801 = vmatpush1.bf16.msra.mxu1 %v2800_v55  ;;  %v393_v55 = vld [vmem:[%s4042_s29 + $0x378] sm:$0xff]  ;;  %v610_v42 = vld [vmem:[%s4042_s29 + $0xa40] sm:$0xff]  ;;  %v420_v60 = vld [vmem:[%s4042_s29 + $0x450] sm:$0xff] }
  0xa8   : > { %2929 = vmatpush1.bf16.msra.mxu0 %v2928_v56  ;;  %2803 = vmatprep.subr.bf16.mxu1 %v2802_v57  ;;  %v582_v56 = vld [vmem:[%s4042_s29 + $0x960] sm:$0xff]  ;;  %v2946_v57 = vpack.c.bf16 %v586_v49, %v583_v48  ;;  %v2820_v0 = vpack.c.bf16 %v393_v55, %v390_v54  ;;  %v417_v48 = vld [vmem:[%s4042_s29 + $0x438] sm:$0xff]  ;;  %v424_v54 = vld [vmem:[%s4042_s29 + $0x470] sm:$0xff] }
  0xa9   : > { %2931 = vmatprep.subr.bf16.mxu0 %v2930_v61  ;;  %v589_v61 = vld [vmem:[%s4042_s29 + $0x998] sm:$0xff]  ;;  %v2948_v1 = vpack.c.bf16 %v585_v58, %v582_v56  ;;  %v414_v46 = vld [vmem:[%s4042_s29 + $0x420] sm:$0xff]  ;;  %v616_v56 = vld [vmem:[%s4042_s29 + $0xa70] sm:$0xff] }
  0xaa   : > { %v606_v49 = vld [vmem:[%s4042_s29 + $0xa20] sm:$0xff]  ;;  %v613_v55 = vld [vmem:[%s4042_s29 + $0xa58] sm:$0xff] }
  0xab   : > { %2805 = vmatpush1.bf16.msra.mxu1 %v2804_v4  ;;  %v399_v4 = vld [vmem:[%s4042_s29 + $0x3a8] sm:$0xff]  ;;  %v426_v9 = vld [vmem:[%s4042_s29 + $0x480] sm:$0xff] }
  0xac   : > { %2933 = vmatpush1.bf16.msra.mxu0 %v2932_v5  ;;  %2807 = vmatprep.subr.bf16.mxu1 %v2806_v6  ;;  %v588_v5 = vld [vmem:[%s4042_s29 + $0x990] sm:$0xff]  ;;  %v2950_v6 = vpack.c.bf16 %v592_v62, %v589_v61  ;;  %v2824_v13 = vpack.c.bf16 %v399_v4, %v396_v3  ;;  %v423_v61 = vld [vmem:[%s4042_s29 + $0x468] sm:$0xff]  ;;  %v430_v3 = vld [vmem:[%s4042_s29 + $0x4a0] sm:$0xff] }
  0xad   : > { %2935 = vmatprep.subr.bf16.mxu0 %v2934_v10  ;;  %v595_v10 = vld [vmem:[%s4042_s29 + $0x9c8] sm:$0xff]  ;;  %v2952_v14 = vpack.c.bf16 %v591_v7, %v588_v5  ;;  %v612_v62 = vld [vmem:[%s4042_s29 + $0xa50] sm:$0xff]  ;;  %v622_v5 = vld [vmem:[%s4042_s29 + $0xaa0] sm:$0xff] }
  0xae   : > { %v619_v4 = vld [vmem:[%s4042_s29 + $0xa88] sm:$0xff] }
  0xaf   : > { %2809 = vmatpush1.bf16.msra.mxu1 %v2808_v19  ;;  %v2954_v19 = vpack.c.bf16 %v598_v11, %v595_v10  ;;  %v429_v10 = vld [vmem:[%s4042_s29 + $0x498] sm:$0xff]  ;;  %v618_v11 = vld [vmem:[%s4042_s29 + $0xa80] sm:$0xff] }
  0xb0   : > { %2937 = vmatpush1.bf16.msra.mxu0 %v2936_v20  ;;  %2811 = vmatprep.subr.bf16.mxu1 %v2810_v21  ;;  %v597_v20 = vld [vmem:[%s4042_s29 + $0x9d8] sm:$0xff] }
  0xb1   : > { %2939 = vmatprep.subr.bf16.mxu0 %v2938_v25  ;;  %v409_v21 = vld [vmem:[%s4042_s29 + $0x3f8] sm:$0xff]  ;;  %v2828_v25 = vpack.c.bf16 %v405_v17, %v402_v16  ;;  %v2956_v27 = vpack.c.bf16 %v597_v20, %v594_v18  ;;  %v436_v16 = vld [vmem:[%s4042_s29 + $0x4d0] sm:$0xff] }
  0xb2   : > { %1203 = vmatmul.mubr.f32.vlgmr.msra.gmra.mrb[0].mxu1 %v4179_v26  ;;  %v2830_v28 = vpack.c.bf16 %v412_v22, %v409_v21  ;;  %v625_v17 = vld [vmem:[%s4042_s29 + $0xab8] sm:$0xff]  ;;  %v628_v18 = vld [vmem:[%s4042_s29 + $0xad0] sm:$0xff] }
  0xb3   : > { %2813 = vmatpush1.bf16.msra.mxu1 %v2812_v36  ;;  %1345 = vmatmul.mubr.f32.vlgmr.msra.gmra.mrb[0].mxu0 %v4186_v29  ;;  %v2958_v36 = vpack.c.bf16 %v604_v24, %v601_v23  ;;  %v432_v22 = vld [vmem:[%s4042_s29 + $0x4b0] sm:$0xff]  ;;  %v435_v23 = vld [vmem:[%s4042_s29 + $0x4c8] sm:$0xff] }
  0xb4   : > { %2941 = vmatpush1.bf16.msra.mxu0 %v2940_v37  ;;  %2815 = vmatprep.subr.bf16.mxu1 %v2814_v38  ;;  %v603_v37 = vld [vmem:[%s4042_s29 + $0xa08] sm:$0xff]  ;;  %v624_v24 = vld [vmem:[%s4042_s29 + $0xab0] sm:$0xff] }
  0xb5   : > { %2943 = vmatprep.subr.bf16.mxu0 %v2942_v43  ;;  %1273 = vmatprep.mubr.f32.mxu1 %v4256_v47  ;;  %v415_v38 = vld [vmem:[%s4042_s29 + $0x428] sm:$0xff]  ;;  %v2832_v43 = vpack.c.bf16 %v411_v32, %v408_v30  ;;  %v2960_v44 = vpack.c.bf16 %v603_v37, %v600_v33  ;;  %v442_v30 = vld [vmem:[%s4042_s29 + $0x500] sm:$0xff] }
  0xb6   : > { %1415 = vmatprep.mubr.f32.mxu0 %v4263_v50  ;;  %v2834_v45 = vpack.c.bf16 %v418_v39, %v415_v38  ;;  %v631_v32 = vld [vmem:[%s4042_s29 + $0xae8] sm:$0xff]  ;;  %v634_v33 = vld [vmem:[%s4042_s29 + $0xb00] sm:$0xff] }
  0xb7   : > { %2817 = vmatpush1.bf16.msra.mxu1 %v2816_v51  ;;  %v2962_v51 = vpack.c.bf16 %v610_v42, %v607_v41  ;;  %v438_v39 = vld [vmem:[%s4042_s29 + $0x4e0] sm:$0xff]  ;;  %v441_v41 = vld [vmem:[%s4042_s29 + $0x4f8] sm:$0xff] }
  0xb8   : > { %2945 = vmatpush1.bf16.msra.mxu0 %v2944_v52  ;;  %2819 = vmatprep.subr.bf16.mxu1 %v2818_v53  ;;  %v609_v52 = vld [vmem:[%s4042_s29 + $0xa38] sm:$0xff]  ;;  %v630_v42 = vld [vmem:[%s4042_s29 + $0xae0] sm:$0xff] }
  0xb9   : > { %2947 = vmatprep.subr.bf16.mxu0 %v2946_v57  ;;  %v421_v53 = vld [vmem:[%s4042_s29 + $0x458] sm:$0xff]  ;;  %v2836_v57 = vpack.c.bf16 %v417_v48, %v414_v46  ;;  %v2964_v58 = vpack.c.bf16 %v609_v52, %v606_v49  ;;  %v448_v46 = vld [vmem:[%s4042_s29 + $0x530] sm:$0xff] }
  0xba   : > { %v2838_v59 = vpack.c.bf16 %v424_v54, %v421_v53  ;;  %v637_v48 = vld [vmem:[%s4042_s29 + $0xb18] sm:$0xff]  ;;  %v640_v49 = vld [vmem:[%s4042_s29 + $0xb30] sm:$0xff] }
  0xbb   : > { %2821 = vmatpush1.bf16.msra.mxu1 %v2820_v0  ;;  %v2966_v0 = vpack.c.bf16 %v616_v56, %v613_v55  ;;  %v444_v54 = vld [vmem:[%s4042_s29 + $0x510] sm:$0xff]  ;;  %v447_v55 = vld [vmem:[%s4042_s29 + $0x528] sm:$0xff] }
  0xbc   : > { %2949 = vmatpush1.bf16.msra.mxu0 %v2948_v1  ;;  %2823 = vmatprep.subr.bf16.mxu1 %v2822_v2  ;;  %v615_v1 = vld [vmem:[%s4042_s29 + $0xa68] sm:$0xff]  ;;  %v636_v56 = vld [vmem:[%s4042_s29 + $0xb10] sm:$0xff] }
  0xbd   : > { %2951 = vmatprep.subr.bf16.mxu0 %v2950_v6  ;;  %v427_v2 = vld [vmem:[%s4042_s29 + $0x488] sm:$0xff]  ;;  %v2840_v6 = vpack.c.bf16 %v423_v61, %v420_v60  ;;  %v2968_v7 = vpack.c.bf16 %v615_v1, %v612_v62  ;;  %v454_v60 = vld [vmem:[%s4042_s29 + $0x560] sm:$0xff] }
  0xbe   : > { %v2842_v8 = vpack.c.bf16 %v430_v3, %v427_v2  ;;  %v643_v61 = vld [vmem:[%s4042_s29 + $0xb48] sm:$0xff]  ;;  %v646_v62 = vld [vmem:[%s4042_s29 + $0xb60] sm:$0xff] }
  0xbf   : > { %2825 = vmatpush1.bf16.msra.mxu1 %v2824_v13  ;;  %v2970_v13 = vpack.c.bf16 %v622_v5, %v619_v4  ;;  %v450_v3 = vld [vmem:[%s4042_s29 + $0x540] sm:$0xff]  ;;  %v453_v4 = vld [vmem:[%s4042_s29 + $0x558] sm:$0xff] }
  0xc0   : > { %2953 = vmatpush1.bf16.msra.mxu0 %v2952_v14  ;;  %2827 = vmatprep.subr.bf16.mxu1 %v2826_v15  ;;  %v621_v14 = vld [vmem:[%s4042_s29 + $0xa98] sm:$0xff]  ;;  %v642_v5 = vld [vmem:[%s4042_s29 + $0xb40] sm:$0xff] }
  0xc1   : > { %2955 = vmatprep.subr.bf16.mxu0 %v2954_v19  ;;  %v433_v15 = vld [vmem:[%s4042_s29 + $0x4b8] sm:$0xff]  ;;  %v2844_v19 = vpack.c.bf16 %v429_v10, %v426_v9  ;;  %v2972_v20 = vpack.c.bf16 %v621_v14, %v618_v11  ;;  %v460_v9 = vld [vmem:[%s4042_s29 + $0x590] sm:$0xff] }
  0xc2   : > { %v2846_v21 = vpack.c.bf16 %v436_v16, %v433_v15  ;;  %v649_v10 = vld [vmem:[%s4042_s29 + $0xb78] sm:$0xff]  ;;  %v652_v11 = vld [vmem:[%s4042_s29 + $0xb90] sm:$0xff] }
  0xc3   : > { %2829 = vmatpush1.bf16.msra.mxu1 %v2828_v25  ;;  %v2974_v25 = vpack.c.bf16 %v628_v18, %v625_v17  ;;  %v456_v16 = vld [vmem:[%s4042_s29 + $0x570] sm:$0xff]  ;;  %v459_v17 = vld [vmem:[%s4042_s29 + $0x588] sm:$0xff] }
  0xc4   : > { %2957 = vmatpush1.bf16.msra.mxu0 %v2956_v27  ;;  %2831 = vmatprep.subr.bf16.mxu1 %v2830_v28  ;;  %v627_v27 = vld [vmem:[%s4042_s29 + $0xac8] sm:$0xff]  ;;  %v648_v18 = vld [vmem:[%s4042_s29 + $0xb70] sm:$0xff] }
  0xc5   : > { %2959 = vmatprep.subr.bf16.mxu0 %v2958_v36  ;;  %v439_v28 = vld [vmem:[%s4042_s29 + $0x4e8] sm:$0xff]  ;;  %v2848_v36 = vpack.c.bf16 %v435_v23, %v432_v22  ;;  %v2976_v37 = vpack.c.bf16 %v627_v27, %v624_v24  ;;  %v466_v22 = vld [vmem:[%s4042_s29 + $0x5c0] sm:$0xff] }
  0xc6   : > { %v2850_v38 = vpack.c.bf16 %v442_v30, %v439_v28  ;;  %v655_v23 = vld [vmem:[%s4042_s29 + $0xba8] sm:$0xff]  ;;  %v658_v24 = vld [vmem:[%s4042_s29 + $0xbc0] sm:$0xff] }
  0xc7   : > { %2833 = vmatpush1.bf16.msra.mxu1 %v2832_v43  ;;  %v2978_v43 = vpack.c.bf16 %v634_v33, %v631_v32  ;;  %v462_v30 = vld [vmem:[%s4042_s29 + $0x5a0] sm:$0xff]  ;;  %v465_v32 = vld [vmem:[%s4042_s29 + $0x5b8] sm:$0xff] }
  0xc8   : > { %2961 = vmatpush1.bf16.msra.mxu0 %v2960_v44  ;;  %2835 = vmatprep.subr.bf16.mxu1 %v2834_v45  ;;  %v633_v44 = vld [vmem:[%s4042_s29 + $0xaf8] sm:$0xff]  ;;  %v654_v33 = vld [vmem:[%s4042_s29 + $0xba0] sm:$0xff] }
  0xc9   : > { %2963 = vmatprep.subr.bf16.mxu0 %v2962_v51  ;;  %v445_v45 = vld [vmem:[%s4042_s29 + $0x518] sm:$0xff]  ;;  %v2852_v51 = vpack.c.bf16 %v441_v41, %v438_v39  ;;  %v2980_v52 = vpack.c.bf16 %v633_v44, %v630_v42  ;;  %v472_v39 = vld [vmem:[%s4042_s29 + $0x5f0] sm:$0xff] }
  0xca   : > { %v2854_v53 = vpack.c.bf16 %v448_v46, %v445_v45  ;;  %v661_v41 = vld [vmem:[%s4042_s29 + $0xbd8] sm:$0xff]  ;;  %v664_v42 = vld [vmem:[%s4042_s29 + $0xbf0] sm:$0xff] }
  0xcb   : > { %2837 = vmatpush1.bf16.msra.mxu1 %v2836_v57  ;;  %v2982_v57 = vpack.c.bf16 %v640_v49, %v637_v48  ;;  %v468_v46 = vld [vmem:[%s4042_s29 + $0x5d0] sm:$0xff]  ;;  %v471_v48 = vld [vmem:[%s4042_s29 + $0x5e8] sm:$0xff] }
  0xcc   : > { %2965 = vmatpush1.bf16.msra.mxu0 %v2964_v58  ;;  %2839 = vmatprep.subr.bf16.mxu1 %v2838_v59  ;;  %v639_v58 = vld [vmem:[%s4042_s29 + $0xb28] sm:$0xff]  ;;  %v660_v49 = vld [vmem:[%s4042_s29 + $0xbd0] sm:$0xff] }
  0xcd   : > { %2967 = vmatprep.subr.bf16.mxu0 %v2966_v0  ;;  %v451_v59 = vld [vmem:[%s4042_s29 + $0x548] sm:$0xff]  ;;  %v2856_v0 = vpack.c.bf16 %v447_v55, %v444_v54  ;;  %v2984_v1 = vpack.c.bf16 %v639_v58, %v636_v56  ;;  %v670_v56 = vld [vmem:[%s4042_s29 + $0xc20] sm:$0xff] }
  0xce   : > { %v2858_v2 = vpack.c.bf16 %v454_v60, %v451_v59  ;;  %v335_v54 = vld [vmem:[%s4042_s29 + $0x1a8] sm:$0xff]  ;;  %v666_v60 = vld [vmem:[%s4042_s29 + $0xc00] sm:$0xff] }
  0xcf   : > { %2841 = vmatpush1.bf16.msra.mxu1 %v2840_v6  ;;  %v2986_v6 = vpack.c.bf16 %v646_v62, %v643_v61  ;;  %v667_v55 = vld [vmem:[%s4042_s29 + $0xc08] sm:$0xff]  ;;  %v284_v61 = vld [vmem:[%s4042_s29 + $0x10] sm:$0xff] }
  0xd0   : > { %2969 = vmatpush1.bf16.msra.mxu0 %v2968_v7  ;;  %2843 = vmatprep.subr.bf16.mxu1 %v2842_v8  ;;  %v645_v7 = vld [vmem:[%s4042_s29 + $0xb58] sm:$0xff]  ;;  %v287_v62 = vld [vmem:[%s4042_s29 + $0x28] sm:$0xff] }
  0xd1   : > { %2971 = vmatprep.subr.bf16.mxu0 %v2970_v13  ;;  %v457_v8 = vld [vmem:[%s4042_s29 + $0x578] sm:$0xff]  ;;  %v2860_v13 = vpack.c.bf16 %v453_v4, %v450_v3  ;;  %v2988_v14 = vpack.c.bf16 %v645_v7, %v642_v5  ;;  %v676_v5 = vld [vmem:[%s4042_s29 + $0xc50] sm:$0xff] }
  0xd2   : > { %v2862_v15 = vpack.c.bf16 %v460_v9, %v457_v8  ;;  %v341_v3 = vld [vmem:[%s4042_s29 + $0x1d8] sm:$0xff]  ;;  %v4389_v7 = vld [vmem:[%s4061_s24 + $0x10] sm:$0xff] }
  0xd3   : > { %2845 = vmatpush1.bf16.msra.mxu1 %v2844_v19  ;;  %v2990_v19 = vpack.c.bf16 %v652_v11, %v649_v10  ;;  %v673_v4 = vld [vmem:[%s4042_s29 + $0xc38] sm:$0xff]  ;;  %v672_v10 = vld [vmem:[%s4042_s29 + $0xc30] sm:$0xff]  ;;  %v290_v11 = vld [vmem:[%s4042_s29 + $0x40] sm:$0xff] }
  0xd4   : > { %2973 = vmatpush1.bf16.msra.mxu0 %v2972_v20  ;;  %2847 = vmatprep.subr.bf16.mxu1 %v2846_v21  ;;  %v651_v20 = vld [vmem:[%s4042_s29 + $0xb88] sm:$0xff] }
  0xd5   : > { %2975 = vmatprep.subr.bf16.mxu0 %v2974_v25  ;;  %v463_v21 = vld [vmem:[%s4042_s29 + $0x5a8] sm:$0xff]  ;;  %v2864_v25 = vpack.c.bf16 %v459_v17, %v456_v16  ;;  %v2992_v27 = vpack.c.bf16 %v651_v20, %v648_v18  ;;  %v344_v17 = vld [vmem:[%s4042_s29 + $0x1f0] sm:$0xff]  ;;  %v682_v20 = vld [vmem:[%s4042_s29 + $0xc80] sm:$0xff] }
  0xd6   : > { %v2866_v28 = vpack.c.bf16 %v466_v22, %v463_v21  ;;  %v675_v16 = vld [vmem:[%s4042_s29 + $0xc48] sm:$0xff] }
  0xd7   : > { %2849 = vmatpush1.bf16.msra.mxu1 %v2848_v36  ;;  %v2994_v36 = vpack.c.bf16 %v658_v24, %v655_v23  ;;  %v347_v18 = vld [vmem:[%s4042_s29 + $0x208] sm:$0xff]  ;;  %v3008_v23 = vpack.c.bf16 %v675_v16, %v672_v10  ;;  %v706_v16 = vld [vmem:[%s4042_s29 + $0xd40] sm:$0xff] }
  0xd8   : > { %2977 = vmatpush1.bf16.msra.mxu0 %v2976_v37  ;;  %2851 = vmatprep.subr.bf16.mxu1 %v2850_v38  ;;  %v657_v37 = vld [vmem:[%s4042_s29 + $0xbb8] sm:$0xff]  ;;  %v3266_v24 = vpack.c.bf16 %v347_v18, %v344_v17  ;;  %v699_v10 = vld [vmem:[%s4042_s29 + $0xd08] sm:$0xff] }
  0xd9   : > { %2979 = vmatprep.subr.bf16.mxu0 %v2978_v43  ;;  %v469_v38 = vld [vmem:[%s4042_s29 + $0x5d8] sm:$0xff]  ;;  %v2868_v43 = vpack.c.bf16 %v465_v32, %v462_v30  ;;  %v2996_v44 = vpack.c.bf16 %v657_v37, %v654_v33  ;;  %v350_v33 = vld [vmem:[%s4042_s29 + $0x220] sm:$0xff] }
  0xda   : > { %v2870_v45 = vpack.c.bf16 %v472_v39, %v469_v38  ;;  %v681_v32 = vld [vmem:[%s4042_s29 + $0xc78] sm:$0xff]  ;;  %v688_v38 = vld [vmem:[%s4042_s29 + $0xcb0] sm:$0xff] }
  0xdb   : > { %2853 = vmatpush1.bf16.msra.mxu1 %v2852_v51  ;;  %v2998_v51 = vpack.c.bf16 %v664_v42, %v661_v41  ;;  %v685_v37 = vld [vmem:[%s4042_s29 + $0xc98] sm:$0xff] }
  0xdc   : > { %2981 = vmatpush1.bf16.msra.mxu0 %v2980_v52  ;;  %2855 = vmatprep.subr.bf16.mxu1 %v2854_v53  ;;  %v663_v52 = vld [vmem:[%s4042_s29 + $0xbe8] sm:$0xff]  ;;  %v332_v53 = vld [vmem:[%s4042_s29 + $0x190] sm:$0xff] }
  0xdd   : > { %2983 = vmatprep.subr.bf16.mxu0 %v2982_v57  ;;  %v2872_v57 = vpack.c.bf16 %v471_v48, %v468_v46  ;;  %v3000_v58 = vpack.c.bf16 %v663_v52, %v660_v49  ;;  %v3258_v59 = vpack.c.bf16 %v335_v54, %v332_v53  ;;  %v687_v46 = vld [vmem:[%s4042_s29 + $0xca8] sm:$0xff]  ;;  %v356_v48 = vld [vmem:[%s4042_s29 + $0x250] sm:$0xff]  ;;  %v694_v52 = vld [vmem:[%s4042_s29 + $0xce0] sm:$0xff] }
  0xde   : > { %v359_v49 = vld [vmem:[%s4042_s29 + $0x268] sm:$0xff] }
  0xdf   : > { %2857 = vmatpush1.bf16.msra.mxu1 %v2856_v0  ;;  %v3002_v0 = vpack.c.bf16 %v670_v56, %v667_v55  ;;  %v3274_v55 = vpack.c.bf16 %v359_v49, %v356_v48  ;;  %v690_v56 = vld [vmem:[%s4042_s29 + $0xcc0] sm:$0xff] }
  0xe0   : > { %2985 = vmatpush1.bf16.msra.mxu0 %v2984_v1  ;;  %2859 = vmatprep.subr.bf16.mxu1 %v2858_v2  ;;  %v669_v1 = vld [vmem:[%s4042_s29 + $0xc18] sm:$0xff]  ;;  %v338_v2 = vld [vmem:[%s4042_s29 + $0x1c0] sm:$0xff] }
  0xe1   : > { %2987 = vmatprep.subr.bf16.mxu0 %v2986_v6  ;;  %v3260_v6 = vpack.c.bf16 %v287_v62, %v284_v61  ;;  %v3004_v8 = vpack.c.bf16 %v669_v1, %v666_v60  ;;  %v3262_v9 = vpack.c.bf16 %v341_v3, %v338_v2  ;;  %v693_v60 = vld [vmem:[%s4042_s29 + $0xcd8] sm:$0xff]  ;;  %v362_v61 = vld [vmem:[%s4042_s29 + $0x280] sm:$0xff]  ;;  %v700_v1 = vld [vmem:[%s4042_s29 + $0xd10] sm:$0xff] }
  0xe2   : > { %v365_v62 = vld [vmem:[%s4042_s29 + $0x298] sm:$0xff]  ;;  %v3020_v3 = vpack.c.bf16 %v693_v60, %v690_v56  ;;  %v724_v60 = vld [vmem:[%s4042_s29 + $0xdd0] sm:$0xff] }
  0xe3   : > { %2861 = vmatpush1.bf16.msra.mxu1 %v2860_v13  ;;  %v293_v13 = vld [vmem:[%s4042_s29 + $0x58] sm:$0xff] }
  0xe4   : > { %2989 = vmatpush1.bf16.msra.mxu0 %v2988_v14  ;;  %2863 = vmatprep.subr.bf16.mxu1 %v2862_v15  ;;  %v4396_v14 = vrot.slane %v4389_v7, %v4164_v12  ;;  %v3006_v15 = vpack.c.bf16 %v676_v5, %v673_v4  ;;  %v3264_v22 = vpack.c.bf16 %v293_v13, %v290_v11  ;;  %v696_v5 = vld [vmem:[%s4042_s29 + $0xcf0] sm:$0xff]  ;;  %v371_v13 = vld [vmem:[%s4042_s29 + $0x2c8] sm:$0xff]  ;;  %v717_v56 = vld [vmem:[%s4042_s29 + $0xd98] sm:$0xff] }
  0xe5   : > { %2991 = vmatprep.subr.bf16.mxu0 %v2990_v19  ;;  %v679_v19 = vld [vmem:[%s4042_s29 + $0xc68] sm:$0xff]  ;;  %v3278_v4 = vpack.c.bf16 %v365_v62, %v362_v61  ;;  %v368_v11 = vld [vmem:[%s4042_s29 + $0x2b0] sm:$0xff]  ;;  %v3024_v18 = vpack.c.bf16 %v699_v10, %v696_v5  ;;  %v730_v10 = vld [vmem:[%s4042_s29 + $0xe00] sm:$0xff] }
  0xe6   : > { %v4406_v21 = vcombine.high %v4396_v14, %v4396_v14  ;;  %v3010_v30 = vpack.c.bf16 %v682_v20, %v679_v19  ;;  %v3282_v19 = vpack.c.bf16 %v371_v13, %v368_v11  ;;  %v702_v20 = vld [vmem:[%s4042_s29 + $0xd20] sm:$0xff]  ;;  %v723_v5 = vld [vmem:[%s4042_s29 + $0xdc8] sm:$0xff] }
  0xe7   : > { %2865 = vmatpush1.bf16.msra.mxu1 %v2864_v25  ;;  %v678_v25 = vld [vmem:[%s4042_s29 + $0xc60] sm:$0xff] }
  0xe8   : > { %2993 = vmatpush1.bf16.msra.mxu0 %v2992_v27  ;;  %2867 = vmatprep.subr.bf16.mxu1 %v2866_v28  ;;  %v296_v27 = vld [vmem:[%s4042_s29 + $0x70] sm:$0xff]  ;;  %v299_v28 = vld [vmem:[%s4042_s29 + $0x88] sm:$0xff]  ;;  %v3012_v41 = vpack.c.bf16 %v681_v32, %v678_v25  ;;  %v705_v25 = vld [vmem:[%s4042_s29 + $0xd38] sm:$0xff] }
  0xe9   : > { %2995 = vmatprep.subr.bf16.mxu0 %v2994_v36  ;;  %v353_v36 = vld [vmem:[%s4042_s29 + $0x238] sm:$0xff]  ;;  %v3268_v39 = vpack.c.bf16 %v299_v28, %v296_v27  ;;  %v374_v27 = vld [vmem:[%s4042_s29 + $0x2e0] sm:$0xff]  ;;  %v712_v32 = vld [vmem:[%s4042_s29 + $0xd70] sm:$0xff] }
  0xea   : > { %v3270_v42 = vpack.c.bf16 %v353_v36, %v350_v33  ;;  %v377_v28 = vld [vmem:[%s4042_s29 + $0x2f8] sm:$0xff]  ;;  %v3028_v36 = vpack.c.bf16 %v705_v25, %v702_v20  ;;  %v446_v20 = vld [vmem:[%s4042_s29 + $0x520] sm:$0xff] }
  0xeb   : > { %2869 = vmatpush1.bf16.msra.mxu1 %v2868_v43  ;;  %v684_v43 = vld [vmem:[%s4042_s29 + $0xc90] sm:$0xff] }
  0xec   : > { %2997 = vmatpush1.bf16.msra.mxu0 %v2996_v44  ;;  %2871 = vmatprep.subr.bf16.mxu1 %v2870_v45  ;;  %v302_v44 = vld [vmem:[%s4042_s29 + $0xa0] sm:$0xff]  ;;  %v305_v45 = vld [vmem:[%s4042_s29 + $0xb8] sm:$0xff]  ;;  %v3016_v54 = vpack.c.bf16 %v687_v46, %v684_v43  ;;  %v711_v43 = vld [vmem:[%s4042_s29 + $0xd68] sm:$0xff] }
  0xed   : > { %2999 = vmatprep.subr.bf16.mxu0 %v2998_v51  ;;  %v691_v51 = vld [vmem:[%s4042_s29 + $0xcc8] sm:$0xff]  ;;  %v3272_v53 = vpack.c.bf16 %v305_v45, %v302_v44  ;;  %v428_v44 = vld [vmem:[%s4042_s29 + $0x490] sm:$0xff]  ;;  %v718_v46 = vld [vmem:[%s4042_s29 + $0xda0] sm:$0xff] }
  0xee   : > { %v431_v45 = vld [vmem:[%s4042_s29 + $0x4a8] sm:$0xff] }
  0xef   : > { %2873 = vmatpush1.bf16.msra.mxu1 %v2872_v57  ;;  %v308_v57 = vld [vmem:[%s4042_s29 + $0xd0] sm:$0xff] }
  0xf0   : > { %3001 = vmatpush1.bf16.msra.mxu0 %v3000_v58  ;;  %3259 = vmatprep.subr.bf16.mxu1 %v3258_v59  ;;  %v311_v58 = vld [vmem:[%s4042_s29 + $0xe8] sm:$0xff]  ;;  %v3018_v59 = vpack.c.bf16 %v694_v52, %v691_v51  ;;  %v3290_v51 = vpack.c.bf16 %v431_v45, %v428_v44  ;;  %v714_v52 = vld [vmem:[%s4042_s29 + $0xd80] sm:$0xff] }
  0xf1   : > { %3003 = vmatprep.subr.bf16.mxu0 %v3002_v0  ;;  %v697_v0 = vld [vmem:[%s4042_s29 + $0xcf8] sm:$0xff]  ;;  %v3276_v2 = vpack.c.bf16 %v311_v58, %v308_v57  ;;  %v434_v57 = vld [vmem:[%s4042_s29 + $0x4c0] sm:$0xff]  ;;  %v3036_v62 = vpack.c.bf16 %v717_v56, %v714_v52 }
  0xf2   : > { %1274 = vmatmul.mubr.f32.vlgmr.msra.gmra.mrb[0].mxu1 %v4241_v31  ;;  %v437_v58 = vld [vmem:[%s4042_s29 + $0x4d8] sm:$0xff]  ;;  %v738_v45 = vld [vmem:[%s4042_s29 + $0xe40] sm:$0xff] }
  0xf3   : > { %1416 = vmatmul.mubr.f32.vlgmr.msra.gmra.mrb[0].mxu0 %v4246_v34  ;;  %3261 = vmatpush3.bf16.msra.mxu1 %v3260_v6  ;;  %v314_v6 = vld [vmem:[%s4042_s29 + $0x100] sm:$0xff]  ;;  %v461_v52 = vld [vmem:[%s4042_s29 + $0x598] sm:$0xff] }
  0xf4   : > { %3005 = vmatpush1.bf16.msra.mxu0 %v3004_v8  ;;  %3263 = vmatprep.subr.bf16.mxu1 %v3262_v9  ;;  %v317_v8 = vld [vmem:[%s4042_s29 + $0x118] sm:$0xff]  ;;  %v3022_v9 = vpack.c.bf16 %v700_v1, %v697_v0  ;;  %v3294_v0 = vpack.c.bf16 %v437_v58, %v434_v57  ;;  %v720_v1 = vld [vmem:[%s4042_s29 + $0xdb0] sm:$0xff] }
  0xf5   : > { %3007 = vmatprep.subr.bf16.mxu0 %v3006_v15  ;;  %1770 = vmatprep.mubr.f32.mxu1 %v4193_v35  ;;  %v3014_v35 = vpack.c.bf16 %v688_v38, %v685_v37  ;;  %v703_v15 = vld [vmem:[%s4042_s29 + $0xd28] sm:$0xff]  ;;  %v3280_v17 = vpack.c.bf16 %v317_v8, %v314_v6  ;;  %v3286_v37 = vpack.c.bf16 %v377_v28, %v374_v27  ;;  %v708_v38 = vld [vmem:[%s4042_s29 + $0xd50] sm:$0xff] }
  0xf6   : > { %1486 = vmatprep.mubr.f32.mxu0 %v4406_v21  ;;  %v3032_v49 = vpack.c.bf16 %v711_v43, %v708_v38  ;;  %v440_v6 = vld [vmem:[%s4042_s29 + $0x4f0] sm:$0xff]  ;;  %v443_v8 = vld [vmem:[%s4042_s29 + $0x508] sm:$0xff]  ;;  %v3040_v13 = vpack.c.bf16 %v723_v5, %v720_v1 }
  0xf7   : > { %3265 = vmatpush3.bf16.msra.mxu1 %v3264_v22  ;;  %v320_v22 = vld [vmem:[%s4042_s29 + $0x130] sm:$0xff]  ;;  %v455_v38 = vld [vmem:[%s4042_s29 + $0x568] sm:$0xff] }
  0xf8   : > { %3009 = vmatpush1.bf16.msra.mxu0 %v3008_v23  ;;  %3267 = vmatprep.subr.bf16.mxu1 %v3266_v24  ;;  %v323_v23 = vld [vmem:[%s4042_s29 + $0x148] sm:$0xff]  ;;  %v3026_v24 = vpack.c.bf16 %v706_v16, %v703_v15  ;;  %v3298_v15 = vpack.c.bf16 %v443_v8, %v440_v6  ;;  %v726_v16 = vld [vmem:[%s4042_s29 + $0xde0] sm:$0xff]  ;;  %v732_v28 = vld [vmem:[%s4042_s29 + $0xe10] sm:$0xff] }
  0xf9   : > { %3011 = vmatprep.subr.bf16.mxu0 %v3010_v30  ;;  %v709_v30 = vld [vmem:[%s4042_s29 + $0xd58] sm:$0xff]  ;;  %v3284_v33 = vpack.c.bf16 %v323_v23, %v320_v22  ;;  %v744_v58 = vld [vmem:[%s4042_s29 + $0xe70] sm:$0xff]  ;;  %v467_v1 = vld [vmem:[%s4042_s29 + $0x5c8] sm:$0xff] }
  0xfa   : > { %v449_v22 = vld [vmem:[%s4042_s29 + $0x538] sm:$0xff]  ;;  %v750_v8 = vld [vmem:[%s4042_s29 + $0xea0] sm:$0xff] }
  0xfb   : > { %3269 = vmatpush3.bf16.msra.mxu1 %v3268_v39  ;;  %v326_v39 = vld [vmem:[%s4042_s29 + $0x160] sm:$0xff]  ;;  %v733_v23 = vld [vmem:[%s4042_s29 + $0xe18] sm:$0xff]  ;;  %v3302_v27 = vpack.c.bf16 %v449_v22, %v446_v20  ;;  %v756_v22 = vld [vmem:[%s4042_s29 + $0xed0] sm:$0xff] }
  0xfc   : > { %3013 = vmatpush1.bf16.msra.mxu0 %v3012_v41  ;;  %3271 = vmatprep.subr.bf16.mxu1 %v3270_v42  ;;  %v329_v41 = vld [vmem:[%s4042_s29 + $0x178] sm:$0xff]  ;;  %v3030_v42 = vpack.c.bf16 %v712_v32, %v709_v30  ;;  %v398_v30 = vld [vmem:[%s4042_s29 + $0x3a0] sm:$0xff] }
  0xfd   : > { %3015 = vmatprep.subr.bf16.mxu0 %v3014_v35  ;;  %v715_v35 = vld [vmem:[%s4042_s29 + $0xd88] sm:$0xff]  ;;  %v3288_v48 = vpack.c.bf16 %v329_v41, %v326_v39  ;;  %v401_v32 = vld [vmem:[%s4042_s29 + $0x3b8] sm:$0xff]  ;;  %v742_v41 = vld [vmem:[%s4042_s29 + $0xe60] sm:$0xff] }
  0xfe   : > { %v739_v39 = vld [vmem:[%s4042_s29 + $0xe48] sm:$0xff] }
  0xff   : > { %3273 = vmatpush3.bf16.msra.mxu1 %v3272_v53  ;;  %v380_v53 = vld [vmem:[%s4042_s29 + $0x310] sm:$0xff] }
 0x100   : > { %3017 = vmatpush1.bf16.msra.mxu0 %v3016_v54  ;;  %3275 = vmatprep.subr.bf16.mxu1 %v3274_v55  ;;  %v383_v54 = vld [vmem:[%s4042_s29 + $0x328] sm:$0xff]  ;;  %v3034_v55 = vpack.c.bf16 %v718_v46, %v715_v35  ;;  %v404_v35 = vld [vmem:[%s4042_s29 + $0x3d0] sm:$0xff] }
 0x101   : > { %3019 = vmatprep.subr.bf16.mxu0 %v3018_v59  ;;  %v721_v59 = vld [vmem:[%s4042_s29 + $0xdb8] sm:$0xff]  ;;  %v3292_v61 = vpack.c.bf16 %v383_v54, %v380_v53  ;;  %v407_v46 = vld [vmem:[%s4042_s29 + $0x3e8] sm:$0xff]  ;;  %v748_v54 = vld [vmem:[%s4042_s29 + $0xe90] sm:$0xff] }
 0x102   : > { %v745_v53 = vld [vmem:[%s4042_s29 + $0xe78] sm:$0xff] }
 0x103   : > { %3277 = vmatpush3.bf16.msra.mxu1 %v3276_v2  ;;  %v386_v2 = vld [vmem:[%s4042_s29 + $0x340] sm:$0xff] }
 0x104   : > { %3021 = vmatpush1.bf16.msra.mxu0 %v3020_v3  ;;  %3279 = vmatprep.subr.bf16.mxu1 %v3278_v4  ;;  %v389_v3 = vld [vmem:[%s4042_s29 + $0x358] sm:$0xff]  ;;  %v3038_v4 = vpack.c.bf16 %v724_v60, %v721_v59  ;;  %v410_v59 = vld [vmem:[%s4042_s29 + $0x400] sm:$0xff] }
 0x105   : > { %3023 = vmatprep.subr.bf16.mxu0 %v3022_v9  ;;  %v727_v9 = vld [vmem:[%s4042_s29 + $0xde8] sm:$0xff]  ;;  %v3296_v11 = vpack.c.bf16 %v389_v3, %v386_v2  ;;  %v413_v60 = vld [vmem:[%s4042_s29 + $0x418] sm:$0xff]  ;;  %v754_v3 = vld [vmem:[%s4042_s29 + $0xec0] sm:$0xff] }
 0x106   : > { %v751_v2 = vld [vmem:[%s4042_s29 + $0xea8] sm:$0xff] }
 0x107   : > { %3281 = vmatpush3.bf16.msra.mxu1 %v3280_v17  ;;  %v392_v17 = vld [vmem:[%s4042_s29 + $0x370] sm:$0xff] }
 0x108   : > { %3025 = vmatpush1.bf16.msra.mxu0 %v3024_v18  ;;  %3283 = vmatprep.subr.bf16.mxu1 %v3282_v19  ;;  %v395_v18 = vld [vmem:[%s4042_s29 + $0x388] sm:$0xff]  ;;  %v729_v19 = vld [vmem:[%s4042_s29 + $0xdf8] sm:$0xff] }
 0x109   : > { %3027 = vmatprep.subr.bf16.mxu0 %v3026_v24  ;;  %v3300_v24 = vpack.c.bf16 %v395_v18, %v392_v17  ;;  %v3044_v25 = vpack.c.bf16 %v729_v19, %v726_v16  ;;  %v473_v16 = vld [vmem:[%s4042_s29 + $0x5f8] sm:$0xff]  ;;  %v760_v18 = vld [vmem:[%s4042_s29 + $0xef0] sm:$0xff] }
 0x10a   : > { %v757_v17 = vld [vmem:[%s4042_s29 + $0xed8] sm:$0xff] }
 0x10b   : > { %3285 = vmatpush3.bf16.msra.mxu1 %v3284_v33 }
 0x10c   : > { %3029 = vmatpush1.bf16.msra.mxu0 %v3028_v36  ;;  %3287 = vmatprep.subr.bf16.mxu1 %v3286_v37  ;;  %v735_v36 = vld [vmem:[%s4042_s29 + $0xe28] sm:$0xff]  ;;  %v452_v37 = vld [vmem:[%s4042_s29 + $0x550] sm:$0xff] }
 0x10d   : > { %3031 = vmatprep.subr.bf16.mxu0 %v3030_v42  ;;  %v3304_v42 = vpack.c.bf16 %v401_v32, %v398_v30  ;;  %v3048_v43 = vpack.c.bf16 %v735_v36, %v732_v28  ;;  %v3306_v44 = vpack.c.bf16 %v455_v38, %v452_v37  ;;  %v527_v28 = vld [vmem:[%s4042_s29 + $0x7a8] sm:$0xff]  ;;  %v766_v32 = vld [vmem:[%s4042_s29 + $0xf20] sm:$0xff] }
 0x10e   : > { %v763_v30 = vld [vmem:[%s4042_s29 + $0xf08] sm:$0xff] }
 0x10f   : > { %3289 = vmatpush3.bf16.msra.mxu1 %v3288_v48  ;;  %v3050_v48 = vpack.c.bf16 %v742_v41, %v739_v39  ;;  %v762_v39 = vld [vmem:[%s4042_s29 + $0xf00] sm:$0xff]  ;;  %v476_v41 = vld [vmem:[%s4042_s29 + $0x610] sm:$0xff] }
 0x110   : > { %3033 = vmatpush1.bf16.msra.mxu0 %v3032_v49  ;;  %3291 = vmatprep.subr.bf16.mxu1 %v3290_v51  ;;  %v741_v49 = vld [vmem:[%s4042_s29 + $0xe58] sm:$0xff]  ;;  %v458_v51 = vld [vmem:[%s4042_s29 + $0x580] sm:$0xff] }
 0x111   : > { %3035 = vmatprep.subr.bf16.mxu0 %v3034_v55  ;;  %v3308_v55 = vpack.c.bf16 %v407_v46, %v404_v35  ;;  %v3052_v56 = vpack.c.bf16 %v741_v49, %v738_v45  ;;  %v3310_v57 = vpack.c.bf16 %v461_v52, %v458_v51  ;;  %v530_v45 = vld [vmem:[%s4042_s29 + $0x7c0] sm:$0xff]  ;;  %v533_v35 = vld [vmem:[%s4042_s29 + $0x7d8] sm:$0xff]  ;;  %v772_v46 = vld [vmem:[%s4042_s29 + $0xf50] sm:$0xff] }
 0x112   : > { %1771 = vmatmul.mubr.f32.vlgmr.msra.gmra.mrb[2].mxu1 %v4179_v26  ;;  %v3042_v26 = vpack.c.bf16 %v730_v10, %v727_v9  ;;  %v416_v9 = vld [vmem:[%s4042_s29 + $0x430] sm:$0xff]  ;;  %v419_v10 = vld [vmem:[%s4042_s29 + $0x448] sm:$0xff]  ;;  %v3326_v52 = vpack.c.bf16 %v533_v35, %v530_v45  ;;  %v506_v35 = vld [vmem:[%s4042_s29 + $0x700] sm:$0xff] }
 0x113   : > { %3293 = vmatpush3.bf16.msra.mxu1 %v3292_v61  ;;  %1840 = vmatprep.mubr.f32.mxu1 %v4256_v47  ;;  %v736_v47 = vld [vmem:[%s4042_s29 + $0xe30] sm:$0xff]  ;;  %v3054_v61 = vpack.c.bf16 %v748_v54, %v745_v53  ;;  %v482_v54 = vld [vmem:[%s4042_s29 + $0x640] sm:$0xff] }
 0x114   : > { %3037 = vmatpush1.bf16.msra.mxu0 %v3036_v62  ;;  %3295 = vmatprep.subr.bf16.mxu1 %v3294_v0  ;;  %v3046_v33 = vpack.c.bf16 %v736_v47, %v733_v23  ;;  %v747_v62 = vld [vmem:[%s4042_s29 + $0xe88] sm:$0xff]  ;;  %v464_v0 = vld [vmem:[%s4042_s29 + $0x5b0] sm:$0xff]  ;;  %v422_v23 = vld [vmem:[%s4042_s29 + $0x460] sm:$0xff] }
 0x115   : > { %3039 = vmatprep.subr.bf16.mxu0 %v3038_v4  ;;  %v3312_v4 = vpack.c.bf16 %v413_v60, %v410_v59  ;;  %v3056_v5 = vpack.c.bf16 %v747_v62, %v744_v58  ;;  %v3314_v6 = vpack.c.bf16 %v467_v1, %v464_v0  ;;  %v425_v47 = vld [vmem:[%s4042_s29 + $0x478] sm:$0xff]  ;;  %v768_v53 = vld [vmem:[%s4042_s29 + $0xf30] sm:$0xff]  ;;  %v539_v59 = vld [vmem:[%s4042_s29 + $0x808] sm:$0xff] }
 0x116   : > { %v3320_v36 = vpack.c.bf16 %v425_v47, %v422_v23  ;;  %v536_v58 = vld [vmem:[%s4042_s29 + $0x7f0] sm:$0xff]  ;;  %v775_v60 = vld [vmem:[%s4042_s29 + $0xf68] sm:$0xff]  ;;  %v790_v47 = vld [vmem:[%s4042_s29 + $0xfe0] sm:$0xff] }
 0x117   : > { %3297 = vmatpush3.bf16.msra.mxu1 %v3296_v11  ;;  %v3058_v11 = vpack.c.bf16 %v754_v3, %v751_v2  ;;  %v3330_v2 = vpack.c.bf16 %v539_v59, %v536_v58  ;;  %v488_v3 = vld [vmem:[%s4042_s29 + $0x670] sm:$0xff]  ;;  %v787_v23 = vld [vmem:[%s4042_s29 + $0xfc8] sm:$0xff]  ;;  %v798_v58 = vld [vmem:[%s4042_s29 + $0x1020] sm:$0xff] }
 0x118   : > { %3041 = vmatpush1.bf16.msra.mxu0 %v3040_v13  ;;  %3299 = vmatprep.subr.bf16.mxu1 %v3298_v15  ;;  %v753_v13 = vld [vmem:[%s4042_s29 + $0xeb8] sm:$0xff]  ;;  %v470_v15 = vld [vmem:[%s4042_s29 + $0x5e0] sm:$0xff]  ;;  %v792_v45 = vld [vmem:[%s4042_s29 + $0xff0] sm:$0xff] }
 0x119   : > { %3043 = vmatprep.subr.bf16.mxu0 %v3042_v26  ;;  %v3316_v26 = vpack.c.bf16 %v419_v10, %v416_v9  ;;  %v3060_v19 = vpack.c.bf16 %v753_v13, %v750_v8  ;;  %v3318_v20 = vpack.c.bf16 %v473_v16, %v470_v15  ;;  %v542_v8 = vld [vmem:[%s4042_s29 + $0x820] sm:$0xff]  ;;  %v545_v9 = vld [vmem:[%s4042_s29 + $0x838] sm:$0xff]  ;;  %v512_v59 = vld [vmem:[%s4042_s29 + $0x730] sm:$0xff] }
 0x11a   : > { %v781_v10 = vld [vmem:[%s4042_s29 + $0xf98] sm:$0xff]  ;;  %v3334_v16 = vpack.c.bf16 %v545_v9, %v542_v8  ;;  %v804_v8 = vld [vmem:[%s4042_s29 + $0x1050] sm:$0xff]  ;;  %v518_v9 = vld [vmem:[%s4042_s29 + $0x760] sm:$0xff] }
 0x11b   : > { %3301 = vmatpush3.bf16.msra.mxu1 %v3300_v24  ;;  %v3062_v24 = vpack.c.bf16 %v760_v18, %v757_v17  ;;  %v780_v17 = vld [vmem:[%s4042_s29 + $0xf90] sm:$0xff]  ;;  %v494_v18 = vld [vmem:[%s4042_s29 + $0x6a0] sm:$0xff] }
 0x11c   : > { %3045 = vmatpush1.bf16.msra.mxu0 %v3044_v25  ;;  %3303 = vmatprep.subr.bf16.mxu1 %v3302_v27  ;;  %v759_v25 = vld [vmem:[%s4042_s29 + $0xee8] sm:$0xff]  ;;  %v524_v27 = vld [vmem:[%s4042_s29 + $0x790] sm:$0xff] }
 0x11d   : > { %3047 = vmatprep.subr.bf16.mxu0 %v3046_v33  ;;  %v1088_v33 = vcombine.high %v4389_v7, %v4389_v7  ;;  %v3064_v37 = vpack.c.bf16 %v759_v25, %v756_v22  ;;  %v3322_v38 = vpack.c.bf16 %v527_v28, %v524_v27  ;;  %v769_v7 = vld [vmem:[%s4042_s29 + $0xf38] sm:$0xff]  ;;  %v551_v22 = vld [vmem:[%s4042_s29 + $0x868] sm:$0xff]  ;;  %v786_v28 = vld [vmem:[%s4042_s29 + $0xfc0] sm:$0xff] }
 0x11f   : > { %3305 = vmatpush3.bf16.msra.mxu1 %v3304_v42  ;;  %v479_v42 = vld [vmem:[%s4042_s29 + $0x628] sm:$0xff] }
 0x120   : > { %3049 = vmatpush1.bf16.msra.mxu0 %v3048_v43  ;;  %3307 = vmatprep.subr.bf16.mxu1 %v3306_v44  ;;  %v3066_v43 = vpack.c.bf16 %v766_v32, %v763_v30  ;;  %v765_v44 = vld [vmem:[%s4042_s29 + $0xf18] sm:$0xff]  ;;  %v3324_v49 = vpack.c.bf16 %v479_v42, %v476_v41  ;;  %v500_v30 = vld [vmem:[%s4042_s29 + $0x6d0] sm:$0xff]  ;;  %v503_v32 = vld [vmem:[%s4042_s29 + $0x6e8] sm:$0xff] }
 0x121   : > { %3051 = vmatprep.subr.bf16.mxu0 %v3050_v48  ;;  %v4536_v48 = vrot.slane %v1088_v33, %v4164_v12  ;;  %v3068_v51 = vpack.c.bf16 %v765_v44, %v762_v39  ;;  %v3082_v33 = vpack.c.bf16 %v790_v47, %v787_v23  ;;  %v793_v39 = vld [vmem:[%s4042_s29 + $0xff8] sm:$0xff]  ;;  %v796_v41 = vld [vmem:[%s4042_s29 + $0x1010] sm:$0xff]  ;;  %v3340_v42 = vpack.c.bf16 %v503_v32, %v500_v30  ;;  %v575_v23 = vld [vmem:[%s4042_s29 + $0x928] sm:$0xff] }
 0x122   : > { %v820_v30 = vld [vmem:[%s4042_s29 + $0x10d0] sm:$0xff] }
 0x123   : > { %3309 = vmatpush3.bf16.msra.mxu1 %v3308_v55  ;;  %v485_v55 = vld [vmem:[%s4042_s29 + $0x658] sm:$0xff]  ;;  %v4549_v62 = vcombine.high %v4536_v48, %v4536_v48 }
 0x124   : > { %3053 = vmatpush1.bf16.msra.mxu0 %v3052_v56  ;;  %3311 = vmatprep.subr.bf16.mxu1 %v3310_v57  ;;  %v3070_v56 = vpack.c.bf16 %v772_v46, %v769_v7  ;;  %v771_v57 = vld [vmem:[%s4042_s29 + $0xf48] sm:$0xff]  ;;  %v3328_v0 = vpack.c.bf16 %v485_v55, %v482_v54  ;;  %v509_v7 = vld [vmem:[%s4042_s29 + $0x718] sm:$0xff]  ;;  %v3086_v46 = vpack.c.bf16 %v796_v41, %v793_v39  ;;  %v802_v54 = vld [vmem:[%s4042_s29 + $0x1040] sm:$0xff] }
 0x125   : > { %3055 = vmatprep.subr.bf16.mxu0 %v3054_v61  ;;  %v778_v61 = vld [vmem:[%s4042_s29 + $0xf80] sm:$0xff]  ;;  %v3072_v1 = vpack.c.bf16 %v771_v57, %v768_v53  ;;  %v799_v53 = vld [vmem:[%s4042_s29 + $0x1028] sm:$0xff]  ;;  %v3344_v55 = vpack.c.bf16 %v509_v7, %v506_v35  ;;  %v581_v39 = vld [vmem:[%s4042_s29 + $0x958] sm:$0xff] }
 0x126   : > { %v826_v35 = vld [vmem:[%s4042_s29 + $0x1100] sm:$0xff] }
 0x127   : > { %3313 = vmatpush3.bf16.msra.mxu1 %v3312_v4  ;;  %v491_v4 = vld [vmem:[%s4042_s29 + $0x688] sm:$0xff] }
 0x128   : > { %3057 = vmatpush1.bf16.msra.mxu0 %v3056_v5  ;;  %3315 = vmatprep.subr.bf16.mxu1 %v3314_v6  ;;  %v3074_v5 = vpack.c.bf16 %v778_v61, %v775_v60  ;;  %v777_v6 = vld [vmem:[%s4042_s29 + $0xf78] sm:$0xff]  ;;  %v3332_v13 = vpack.c.bf16 %v491_v4, %v488_v3  ;;  %v515_v60 = vld [vmem:[%s4042_s29 + $0x748] sm:$0xff]  ;;  %v3090_v61 = vpack.c.bf16 %v802_v54, %v799_v53  ;;  %v808_v3 = vld [vmem:[%s4042_s29 + $0x1070] sm:$0xff] }
 0x129   : > { %3059 = vmatprep.subr.bf16.mxu0 %v3058_v11  ;;  %v784_v11 = vld [vmem:[%s4042_s29 + $0xfb0] sm:$0xff]  ;;  %v3348_v4 = vpack.c.bf16 %v515_v60, %v512_v59  ;;  %v587_v53 = vld [vmem:[%s4042_s29 + $0x988] sm:$0xff]  ;;  %v825_v54 = vld [vmem:[%s4042_s29 + $0x10f8] sm:$0xff] }
 0x12b   : > { %3317 = vmatpush3.bf16.msra.mxu1 %v3316_v26  ;;  %v497_v26 = vld [vmem:[%s4042_s29 + $0x6b8] sm:$0xff] }
 0x12c   : > { %3061 = vmatpush1.bf16.msra.mxu0 %v3060_v19  ;;  %3319 = vmatprep.subr.bf16.mxu1 %v3318_v20  ;;  %v783_v19 = vld [vmem:[%s4042_s29 + $0xfa8] sm:$0xff]  ;;  %v548_v20 = vld [vmem:[%s4042_s29 + $0x850] sm:$0xff] }
 0x12d   : > { %3063 = vmatprep.subr.bf16.mxu0 %v3062_v24  ;;  %v3336_v24 = vpack.c.bf16 %v497_v26, %v494_v18  ;;  %v3080_v25 = vpack.c.bf16 %v783_v19, %v780_v17  ;;  %v3338_v27 = vpack.c.bf16 %v551_v22, %v548_v20  ;;  %v811_v17 = vld [vmem:[%s4042_s29 + $0x1088] sm:$0xff]  ;;  %v814_v18 = vld [vmem:[%s4042_s29 + $0x10a0] sm:$0xff]  ;;  %v572_v22 = vld [vmem:[%s4042_s29 + $0x910] sm:$0xff] }
 0x12e   : > { %v810_v20 = vld [vmem:[%s4042_s29 + $0x1080] sm:$0xff]  ;;  %v3098_v47 = vpack.c.bf16 %v814_v18, %v811_v17  ;;  %v3356_v32 = vpack.c.bf16 %v575_v23, %v572_v22  ;;  %v837_v17 = vld [vmem:[%s4042_s29 + $0x1158] sm:$0xff] }
 0x12f   : > { %3321 = vmatpush3.bf16.msra.mxu1 %v3320_v36  ;;  %v789_v36 = vld [vmem:[%s4042_s29 + $0xfd8] sm:$0xff]  ;;  %v650_v18 = vld [vmem:[%s4042_s29 + $0xb80] sm:$0xff] }
 0x130   : > { %3065 = vmatpush1.bf16.msra.mxu0 %v3064_v37  ;;  %3323 = vmatprep.subr.bf16.mxu1 %v3322_v38  ;;  %v554_v37 = vld [vmem:[%s4042_s29 + $0x880] sm:$0xff]  ;;  %v557_v38 = vld [vmem:[%s4042_s29 + $0x898] sm:$0xff] }
 0x131   : > { %3067 = vmatprep.subr.bf16.mxu0 %v3066_v43  ;;  %v3084_v43 = vpack.c.bf16 %v789_v36, %v786_v28  ;;  %v3342_v44 = vpack.c.bf16 %v557_v38, %v554_v37  ;;  %v817_v28 = vld [vmem:[%s4042_s29 + $0x10b8] sm:$0xff]  ;;  %v816_v37 = vld [vmem:[%s4042_s29 + $0x10b0] sm:$0xff]  ;;  %v578_v38 = vld [vmem:[%s4042_s29 + $0x940] sm:$0xff] }
 0x132   : > { %1841 = vmatmul.mubr.f32.vlgmr.msra.gmra.mrb[4].mxu1 %v4241_v31  ;;  %v774_v31 = vld [vmem:[%s4042_s29 + $0xf60] sm:$0xff]  ;;  %v3102_v41 = vpack.c.bf16 %v820_v30, %v817_v28  ;;  %v3360_v7 = vpack.c.bf16 %v581_v39, %v578_v38  ;;  %v843_v28 = vld [vmem:[%s4042_s29 + $0x1188] sm:$0xff]  ;;  %v656_v30 = vld [vmem:[%s4042_s29 + $0xbb0] sm:$0xff] }
 0x133   : > { %1487 = vmatmul.mubr.f32.vlgmr.msra.gmra.mrb[0].mxu0 %v4396_v14  ;;  %3325 = vmatpush3.bf16.msra.mxu1 %v3324_v49  ;;  %v3076_v15 = vpack.c.bf16 %v777_v6, %v774_v31  ;;  %v795_v49 = vld [vmem:[%s4042_s29 + $0x1008] sm:$0xff]  ;;  %v805_v31 = vld [vmem:[%s4042_s29 + $0x1058] sm:$0xff] }
 0x134   : > { %3069 = vmatpush1.bf16.msra.mxu0 %v3068_v51  ;;  %3327 = vmatprep.subr.bf16.mxu1 %v3326_v52  ;;  %v560_v51 = vld [vmem:[%s4042_s29 + $0x8b0] sm:$0xff]  ;;  %v563_v52 = vld [vmem:[%s4042_s29 + $0x8c8] sm:$0xff] }
 0x135   : > { %3071 = vmatprep.subr.bf16.mxu0 %v3070_v56  ;;  %1910 = vmatprep.mubr.f32.mxu1 %v4200_v40  ;;  %v3078_v40 = vpack.c.bf16 %v784_v11, %v781_v10  ;;  %v3088_v56 = vpack.c.bf16 %v795_v49, %v792_v45  ;;  %v3346_v57 = vpack.c.bf16 %v563_v52, %v560_v51  ;;  %v521_v10 = vld [vmem:[%s4042_s29 + $0x778] sm:$0xff]  ;;  %v823_v45 = vld [vmem:[%s4042_s29 + $0x10e8] sm:$0xff]  ;;  %v822_v51 = vld [vmem:[%s4042_s29 + $0x10e0] sm:$0xff] }
 0x136   : > { %1557 = vmatprep.mubr.f32.mxu0 %v4549_v62  ;;  %v3094_v11 = vpack.c.bf16 %v808_v3, %v805_v31  ;;  %v3352_v26 = vpack.c.bf16 %v521_v10, %v518_v9  ;;  %v584_v52 = vld [vmem:[%s4042_s29 + $0x970] sm:$0xff]  ;;  %v3108_v59 = vpack.c.bf16 %v825_v54, %v822_v51  ;;  %v831_v31 = vld [vmem:[%s4042_s29 + $0x1128] sm:$0xff]  ;;  %v614_v54 = vld [vmem:[%s4042_s29 + $0xa60] sm:$0xff] }
 0x137   : > { %3329 = vmatpush3.bf16.msra.mxu1 %v3328_v0  ;;  %v801_v0 = vld [vmem:[%s4042_s29 + $0x1038] sm:$0xff]  ;;  %v644_v3 = vld [vmem:[%s4042_s29 + $0xb50] sm:$0xff] }
 0x138   : > { %3073 = vmatpush1.bf16.msra.mxu0 %v3072_v1  ;;  %3331 = vmatprep.subr.bf16.mxu1 %v3330_v2  ;;  %v566_v1 = vld [vmem:[%s4042_s29 + $0x8e0] sm:$0xff]  ;;  %v569_v2 = vld [vmem:[%s4042_s29 + $0x8f8] sm:$0xff] }
 0x139   : > { %3075 = vmatprep.subr.bf16.mxu0 %v3074_v5  ;;  %v3092_v5 = vpack.c.bf16 %v801_v0, %v798_v58  ;;  %v3350_v6 = vpack.c.bf16 %v569_v2, %v566_v1  ;;  %v3364_v58 = vpack.c.bf16 %v587_v53, %v584_v52  ;;  %v590_v0 = vld [vmem:[%s4042_s29 + $0x9a0] sm:$0xff]  ;;  %v593_v1 = vld [vmem:[%s4042_s29 + $0x9b8] sm:$0xff] }
 0x13b   : > { %3333 = vmatpush3.bf16.msra.mxu1 %v3332_v13  ;;  %v807_v13 = vld [vmem:[%s4042_s29 + $0x1068] sm:$0xff] }
 0x13c   : > { %3077 = vmatpush1.bf16.msra.mxu0 %v3076_v15  ;;  %3335 = vmatprep.subr.bf16.mxu1 %v3334_v16  ;;  %v620_v15 = vld [vmem:[%s4042_s29 + $0xa90] sm:$0xff]  ;;  %v623_v16 = vld [vmem:[%s4042_s29 + $0xaa8] sm:$0xff] }
 0x13d   : > { %3079 = vmatprep.subr.bf16.mxu0 %v3078_v40  ;;  %v3096_v40 = vpack.c.bf16 %v807_v13, %v804_v8  ;;  %v3354_v19 = vpack.c.bf16 %v623_v16, %v620_v15  ;;  %v3368_v8 = vpack.c.bf16 %v593_v1, %v590_v0  ;;  %v596_v13 = vld [vmem:[%s4042_s29 + $0x9d0] sm:$0xff]  ;;  %v599_v15 = vld [vmem:[%s4042_s29 + $0x9e8] sm:$0xff] }
 0x13e   : > { %v4669_v0 = vld [vmem:[%s4061_s24 + $0x18] sm:$0xff] }
 0x13f   : > { %3337 = vmatpush3.bf16.msra.mxu1 %v3336_v24  ;;  %v813_v24 = vld [vmem:[%s4042_s29 + $0x1098] sm:$0xff] }
 0x140   : > { %3081 = vmatpush1.bf16.msra.mxu0 %v3080_v25  ;;  %3339 = vmatprep.subr.bf16.mxu1 %v3338_v27  ;;  %v626_v25 = vld [vmem:[%s4042_s29 + $0xac0] sm:$0xff]  ;;  %v629_v27 = vld [vmem:[%s4042_s29 + $0xad8] sm:$0xff] }
 0x141   : > { %3083 = vmatprep.subr.bf16.mxu0 %v3082_v33  ;;  %v3100_v33 = vpack.c.bf16 %v813_v24, %v810_v20  ;;  %v3358_v36 = vpack.c.bf16 %v629_v27, %v626_v25  ;;  %v3372_v20 = vpack.c.bf16 %v599_v15, %v596_v13  ;;  %v602_v24 = vld [vmem:[%s4042_s29 + $0xa00] sm:$0xff]  ;;  %v605_v25 = vld [vmem:[%s4042_s29 + $0xa18] sm:$0xff]  ;;  %v4681_v13 = vrot.slane %v4669_v0, %v4164_v12 }
 0x143   : > { %3341 = vmatpush3.bf16.msra.mxu1 %v3340_v42  ;;  %v819_v42 = vld [vmem:[%s4042_s29 + $0x10c8] sm:$0xff] }
 0x144   : > { %3085 = vmatpush1.bf16.msra.mxu0 %v3084_v43  ;;  %3343 = vmatprep.subr.bf16.mxu1 %v3342_v44  ;;  %v632_v43 = vld [vmem:[%s4042_s29 + $0xaf0] sm:$0xff]  ;;  %v635_v44 = vld [vmem:[%s4042_s29 + $0xb08] sm:$0xff] }
 0x145   : > { %3087 = vmatprep.subr.bf16.mxu0 %v3086_v46  ;;  %v3104_v46 = vpack.c.bf16 %v819_v42, %v816_v37  ;;  %v3362_v49 = vpack.c.bf16 %v635_v44, %v632_v43  ;;  %v3376_v37 = vpack.c.bf16 %v605_v25, %v602_v24  ;;  %v608_v42 = vld [vmem:[%s4042_s29 + $0xa30] sm:$0xff]  ;;  %v611_v43 = vld [vmem:[%s4042_s29 + $0xa48] sm:$0xff]  ;;  %v874_v24 = vld [vmem:[%s4042_s29 + $0x1280] sm:$0xff]  ;;  %v4694_v25 = vcombine.high %v4681_v13, %v4681_v13 }
 0x146   : > { %v3380_v51 = vpack.c.bf16 %v611_v43, %v608_v42  ;;  %v880_v42 = vld [vmem:[%s4042_s29 + $0x12b0] sm:$0xff] }
 0x147   : > { %3345 = vmatpush3.bf16.msra.mxu1 %v3344_v55  ;;  %v638_v55 = vld [vmem:[%s4042_s29 + $0xb20] sm:$0xff] }
 0x148   : > { %3089 = vmatpush1.bf16.msra.mxu0 %v3088_v56  ;;  %3347 = vmatprep.subr.bf16.mxu1 %v3346_v57  ;;  %v641_v56 = vld [vmem:[%s4042_s29 + $0xb38] sm:$0xff] }
 0x149   : > { %3091 = vmatprep.subr.bf16.mxu0 %v3090_v61  ;;  %v829_v57 = vld [vmem:[%s4042_s29 + $0x1118] sm:$0xff]  ;;  %v3366_v60 = vpack.c.bf16 %v641_v56, %v638_v55  ;;  %v828_v61 = vld [vmem:[%s4042_s29 + $0x1110] sm:$0xff] }
 0x14a   : > { %v3112_v9 = vpack.c.bf16 %v831_v31, %v828_v61  ;;  %v617_v55 = vld [vmem:[%s4042_s29 + $0xa78] sm:$0xff]  ;;  %v858_v31 = vld [vmem:[%s4042_s29 + $0x1200] sm:$0xff] }
 0x14b   : > { %3349 = vmatpush3.bf16.msra.mxu1 %v3348_v4  ;;  %v647_v4 = vld [vmem:[%s4042_s29 + $0xb68] sm:$0xff]  ;;  %v3384_v61 = vpack.c.bf16 %v617_v55, %v614_v54 }
 0x14c   : > { %3093 = vmatpush1.bf16.msra.mxu0 %v3092_v5  ;;  %3351 = vmatprep.subr.bf16.mxu1 %v3350_v6  ;;  %v835_v5 = vld [vmem:[%s4042_s29 + $0x1148] sm:$0xff]  ;;  %v838_v6 = vld [vmem:[%s4042_s29 + $0x1160] sm:$0xff]  ;;  %v3370_v10 = vpack.c.bf16 %v647_v4, %v644_v3  ;;  %v668_v3 = vld [vmem:[%s4042_s29 + $0xc10] sm:$0xff] }
 0x14d   : > { %3095 = vmatprep.subr.bf16.mxu0 %v3094_v11  ;;  %v834_v11 = vld [vmem:[%s4042_s29 + $0x1140] sm:$0xff]  ;;  %v3114_v16 = vpack.c.bf16 %v838_v6, %v835_v5  ;;  %v671_v4 = vld [vmem:[%s4042_s29 + $0xc28] sm:$0xff]  ;;  %v861_v6 = vld [vmem:[%s4042_s29 + $0x1218] sm:$0xff] }
 0x14e   : > { %v3116_v22 = vpack.c.bf16 %v837_v17, %v834_v11  ;;  %v868_v11 = vld [vmem:[%s4042_s29 + $0x1250] sm:$0xff]  ;;  %v3388_v15 = vpack.c.bf16 %v671_v4, %v668_v3 }
 0x14f   : > { %3353 = vmatpush3.bf16.msra.mxu1 %v3352_v26  ;;  %v653_v26 = vld [vmem:[%s4042_s29 + $0xb98] sm:$0xff] }
 0x150   : > { %3097 = vmatpush1.bf16.msra.mxu0 %v3096_v40  ;;  %3355 = vmatprep.subr.bf16.mxu1 %v3354_v19  ;;  %v841_v40 = vld [vmem:[%s4042_s29 + $0x1178] sm:$0xff]  ;;  %v844_v19 = vld [vmem:[%s4042_s29 + $0x1190] sm:$0xff]  ;;  %v3374_v23 = vpack.c.bf16 %v653_v26, %v650_v18  ;;  %v674_v26 = vld [vmem:[%s4042_s29 + $0xc40] sm:$0xff] }
 0x151   : > { %3099 = vmatprep.subr.bf16.mxu0 %v3098_v47  ;;  %v840_v47 = vld [vmem:[%s4042_s29 + $0x1170] sm:$0xff]  ;;  %v3118_v27 = vpack.c.bf16 %v844_v19, %v841_v40  ;;  %v677_v40 = vld [vmem:[%s4042_s29 + $0xc58] sm:$0xff] }
 0x152   : > { %1911 = vmatmul.mubr.f32.vlgmr.msra.gmra.mrb[6].mxu1 %v4186_v29  ;;  %v3106_v29 = vpack.c.bf16 %v826_v35, %v823_v45  ;;  %v3120_v38 = vpack.c.bf16 %v843_v28, %v840_v47  ;;  %v849_v45 = vld [vmem:[%s4042_s29 + $0x11b8] sm:$0xff]  ;;  %v662_v35 = vld [vmem:[%s4042_s29 + $0xbe0] sm:$0xff]  ;;  %v864_v18 = vld [vmem:[%s4042_s29 + $0x1230] sm:$0xff] }
 0x153   : > { %3357 = vmatpush3.bf16.msra.mxu1 %v3356_v32  ;;  %1980 = vmatprep.mubr.f32.mxu1 %v4263_v50  ;;  %v832_v50 = vld [vmem:[%s4042_s29 + $0x1130] sm:$0xff]  ;;  %v659_v32 = vld [vmem:[%s4042_s29 + $0xbc8] sm:$0xff] }
 0x154   : > { %3101 = vmatpush1.bf16.msra.mxu0 %v3100_v33  ;;  %3359 = vmatprep.subr.bf16.mxu1 %v3358_v36  ;;  %v3110_v2 = vpack.c.bf16 %v832_v50, %v829_v57  ;;  %v847_v33 = vld [vmem:[%s4042_s29 + $0x11a8] sm:$0xff]  ;;  %v850_v36 = vld [vmem:[%s4042_s29 + $0x11c0] sm:$0xff]  ;;  %v3378_v39 = vpack.c.bf16 %v659_v32, %v656_v30  ;;  %v716_v50 = vld [vmem:[%s4042_s29 + $0xd90] sm:$0xff] }
 0x155   : > { %3103 = vmatprep.subr.bf16.mxu0 %v3102_v41  ;;  %v846_v41 = vld [vmem:[%s4042_s29 + $0x11a0] sm:$0xff]  ;;  %v3122_v44 = vpack.c.bf16 %v850_v36, %v847_v33  ;;  %v855_v57 = vld [vmem:[%s4042_s29 + $0x11e8] sm:$0xff]  ;;  %v680_v32 = vld [vmem:[%s4042_s29 + $0xc70] sm:$0xff] }
 0x156   : > { %v3124_v52 = vpack.c.bf16 %v849_v45, %v846_v41  ;;  %v871_v47 = vld [vmem:[%s4042_s29 + $0x1268] sm:$0xff]  ;;  %v877_v41 = vld [vmem:[%s4042_s29 + $0x1298] sm:$0xff] }
 0x157   : > { %3361 = vmatpush3.bf16.msra.mxu1 %v3360_v7  ;;  %v665_v7 = vld [vmem:[%s4042_s29 + $0xbf8] sm:$0xff]  ;;  %v683_v33 = vld [vmem:[%s4042_s29 + $0xc88] sm:$0xff]  ;;  %v3138_v36 = vpack.c.bf16 %v874_v24, %v871_v47 }
 0x158   : > { %3105 = vmatpush1.bf16.msra.mxu0 %v3104_v46  ;;  %3363 = vmatprep.subr.bf16.mxu1 %v3362_v49  ;;  %v853_v46 = vld [vmem:[%s4042_s29 + $0x11d8] sm:$0xff]  ;;  %v856_v49 = vld [vmem:[%s4042_s29 + $0x11f0] sm:$0xff]  ;;  %v3382_v53 = vpack.c.bf16 %v665_v7, %v662_v35  ;;  %v3396_v43 = vpack.c.bf16 %v683_v33, %v680_v32  ;;  %v686_v7 = vld [vmem:[%s4042_s29 + $0xca0] sm:$0xff] }
 0x159   : > { %3107 = vmatprep.subr.bf16.mxu0 %v3106_v29  ;;  %v852_v29 = vld [vmem:[%s4042_s29 + $0x11d0] sm:$0xff]  ;;  %v3126_v56 = vpack.c.bf16 %v856_v49, %v853_v46  ;;  %v689_v46 = vld [vmem:[%s4042_s29 + $0xcb8] sm:$0xff]  ;;  %v879_v49 = vld [vmem:[%s4042_s29 + $0x12a8] sm:$0xff] }
 0x15a   : > { %v3128_v1 = vpack.c.bf16 %v855_v57, %v852_v29  ;;  %v876_v35 = vld [vmem:[%s4042_s29 + $0x1290] sm:$0xff]  ;;  %v886_v29 = vld [vmem:[%s4042_s29 + $0x12e0] sm:$0xff]  ;;  %v3400_v54 = vpack.c.bf16 %v689_v46, %v686_v7  ;;  %v897_v24 = vld [vmem:[%s4042_s29 + $0x1338] sm:$0xff] }
 0x15b   : > { %3365 = vmatpush3.bf16.msra.mxu1 %v3364_v58  ;;  %v719_v58 = vld [vmem:[%s4042_s29 + $0xda8] sm:$0xff]  ;;  %v3144_v55 = vpack.c.bf16 %v879_v49, %v876_v35  ;;  %v882_v57 = vld [vmem:[%s4042_s29 + $0x12c0] sm:$0xff] }
 0x15c   : > { %3109 = vmatpush1.bf16.msra.mxu0 %v3108_v59  ;;  %3367 = vmatprep.subr.bf16.mxu1 %v3366_v60  ;;  %v859_v59 = vld [vmem:[%s4042_s29 + $0x1208] sm:$0xff]  ;;  %v862_v60 = vld [vmem:[%s4042_s29 + $0x1220] sm:$0xff] }
 0x15d   : > { %3111 = vmatprep.subr.bf16.mxu0 %v3110_v2  ;;  %v3386_v2 = vpack.c.bf16 %v719_v58, %v716_v50  ;;  %v3130_v5 = vpack.c.bf16 %v862_v60, %v859_v59  ;;  %v692_v50 = vld [vmem:[%s4042_s29 + $0xcd0] sm:$0xff]  ;;  %v695_v58 = vld [vmem:[%s4042_s29 + $0xce8] sm:$0xff]  ;;  %v885_v60 = vld [vmem:[%s4042_s29 + $0x12d8] sm:$0xff] }
 0x15e   : > { %v3404_v3 = vpack.c.bf16 %v695_v58, %v692_v50  ;;  %v3148_v4 = vpack.c.bf16 %v885_v60, %v882_v57  ;;  %v910_v35 = vld [vmem:[%s4042_s29 + $0x13a0] sm:$0xff]  ;;  %v916_v57 = vld [vmem:[%s4042_s29 + $0x13d0] sm:$0xff] }
 0x15f   : > { %3369 = vmatpush3.bf16.msra.mxu1 %v3368_v8  ;;  %v722_v8 = vld [vmem:[%s4042_s29 + $0xdc0] sm:$0xff]  ;;  %v912_v60 = vld [vmem:[%s4042_s29 + $0x13b0] sm:$0xff] }
 0x160   : > { %3113 = vmatpush1.bf16.msra.mxu0 %v3112_v9  ;;  %3371 = vmatprep.subr.bf16.mxu1 %v3370_v10  ;;  %v725_v9 = vld [vmem:[%s4042_s29 + $0xdd8] sm:$0xff]  ;;  %v906_v49 = vld [vmem:[%s4042_s29 + $0x1380] sm:$0xff] }
 0x161   : > { %3115 = vmatprep.subr.bf16.mxu0 %v3114_v16  ;;  %v865_v10 = vld [vmem:[%s4042_s29 + $0x1238] sm:$0xff]  ;;  %v3132_v16 = vpack.c.bf16 %v861_v6, %v858_v31  ;;  %v3390_v17 = vpack.c.bf16 %v725_v9, %v722_v8  ;;  %v892_v31 = vld [vmem:[%s4042_s29 + $0x1310] sm:$0xff]  ;;  %v698_v8 = vld [vmem:[%s4042_s29 + $0xd00] sm:$0xff] }
 0x162   : > { %v3134_v19 = vpack.c.bf16 %v868_v11, %v865_v10  ;;  %v888_v6 = vld [vmem:[%s4042_s29 + $0x12f0] sm:$0xff]  ;;  %v701_v9 = vld [vmem:[%s4042_s29 + $0xd18] sm:$0xff]  ;;  %v891_v11 = vld [vmem:[%s4042_s29 + $0x1308] sm:$0xff] }
 0x163   : > { %3373 = vmatpush3.bf16.msra.mxu1 %v3372_v20  ;;  %v867_v20 = vld [vmem:[%s4042_s29 + $0x1248] sm:$0xff] }
 0x164   : > { %3117 = vmatpush1.bf16.msra.mxu0 %v3116_v22  ;;  %3375 = vmatprep.subr.bf16.mxu1 %v3374_v23  ;;  %v728_v22 = vld [vmem:[%s4042_s29 + $0xdf0] sm:$0xff]  ;;  %v731_v23 = vld [vmem:[%s4042_s29 + $0xe08] sm:$0xff]  ;;  %v3136_v28 = vpack.c.bf16 %v867_v20, %v864_v18  ;;  %v898_v18 = vld [vmem:[%s4042_s29 + $0x1340] sm:$0xff] }
 0x165   : > { %3119 = vmatprep.subr.bf16.mxu0 %v3118_v27  ;;  %v3392_v27 = vpack.c.bf16 %v677_v40, %v674_v26  ;;  %v3394_v30 = vpack.c.bf16 %v731_v23, %v728_v22  ;;  %v3408_v26 = vpack.c.bf16 %v701_v9, %v698_v8  ;;  %v3152_v40 = vpack.c.bf16 %v891_v11, %v888_v6  ;;  %v894_v20 = vld [vmem:[%s4042_s29 + $0x1320] sm:$0xff]  ;;  %v704_v22 = vld [vmem:[%s4042_s29 + $0xd30] sm:$0xff]  ;;  %v707_v23 = vld [vmem:[%s4042_s29 + $0xd48] sm:$0xff] }
 0x166   : > { %v3412_v32 = vpack.c.bf16 %v707_v23, %v704_v22  ;;  %v3156_v33 = vpack.c.bf16 %v897_v24, %v894_v20  ;;  %v922_v6 = vld [vmem:[%s4042_s29 + $0x1400] sm:$0xff]  ;;  %v924_v23 = vld [vmem:[%s4042_s29 + $0x1410] sm:$0xff]  ;;  %v785_v24 = vld [vmem:[%s4042_s29 + $0xfb8] sm:$0xff] }
 0x167   : > { %3377 = vmatpush3.bf16.msra.mxu1 %v3376_v37  ;;  %v873_v37 = vld [vmem:[%s4042_s29 + $0x1278] sm:$0xff]  ;;  %v918_v11 = vld [vmem:[%s4042_s29 + $0x13e0] sm:$0xff] }
 0x168   : > { %3121 = vmatpush1.bf16.msra.mxu0 %v3120_v38  ;;  %3379 = vmatprep.subr.bf16.mxu1 %v3378_v39  ;;  %v734_v38 = vld [vmem:[%s4042_s29 + $0xe20] sm:$0xff]  ;;  %v737_v39 = vld [vmem:[%s4042_s29 + $0xe38] sm:$0xff] }
 0x169   : > { %3123 = vmatprep.subr.bf16.mxu0 %v3122_v44  ;;  %v3398_v45 = vpack.c.bf16 %v737_v39, %v734_v38  ;;  %v710_v38 = vld [vmem:[%s4042_s29 + $0xd60] sm:$0xff]  ;;  %v713_v39 = vld [vmem:[%s4042_s29 + $0xd78] sm:$0xff] }
 0x16a   : > { %v3416_v7 = vpack.c.bf16 %v713_v39, %v710_v38  ;;  %v930_v39 = vld [vmem:[%s4042_s29 + $0x1440] sm:$0xff] }
 0x16b   : > { %3381 = vmatpush3.bf16.msra.mxu1 %v3380_v51  ;;  %v740_v51 = vld [vmem:[%s4042_s29 + $0xe50] sm:$0xff] }
 0x16c   : > { %3125 = vmatpush1.bf16.msra.mxu0 %v3124_v52  ;;  %3383 = vmatprep.subr.bf16.mxu1 %v3382_v53  ;;  %v743_v52 = vld [vmem:[%s4042_s29 + $0xe68] sm:$0xff] }
 0x16d   : > { %3127 = vmatprep.subr.bf16.mxu0 %v3126_v56  ;;  %v883_v53 = vld [vmem:[%s4042_s29 + $0x12c8] sm:$0xff]  ;;  %v3402_v56 = vpack.c.bf16 %v743_v52, %v740_v51  ;;  %v764_v51 = vld [vmem:[%s4042_s29 + $0xf10] sm:$0xff] }
 0x16e   : > { %v3146_v59 = vpack.c.bf16 %v886_v29, %v883_v53  ;;  %v767_v52 = vld [vmem:[%s4042_s29 + $0xf28] sm:$0xff]  ;;  %v909_v29 = vld [vmem:[%s4042_s29 + $0x1398] sm:$0xff] }
 0x16f   : > { %3385 = vmatpush3.bf16.msra.mxu1 %v3384_v61  ;;  %v746_v61 = vld [vmem:[%s4042_s29 + $0xe80] sm:$0xff]  ;;  %v3420_v50 = vpack.c.bf16 %v767_v52, %v764_v51  ;;  %v3164_v58 = vpack.c.bf16 %v909_v29, %v906_v49  ;;  %v936_v52 = vld [vmem:[%s4042_s29 + $0x1470] sm:$0xff]  ;;  %v797_v29 = vld [vmem:[%s4042_s29 + $0x1018] sm:$0xff] }
 0x170   : > { %3129 = vmatpush1.bf16.msra.mxu0 %v3128_v1  ;;  %3387 = vmatprep.subr.bf16.mxu1 %v3386_v2  ;;  %v749_v1 = vld [vmem:[%s4042_s29 + $0xe98] sm:$0xff] }
 0x171   : > { %3131 = vmatprep.subr.bf16.mxu0 %v3130_v5  ;;  %v889_v2 = vld [vmem:[%s4042_s29 + $0x12f8] sm:$0xff]  ;;  %v3406_v5 = vpack.c.bf16 %v749_v1, %v746_v61  ;;  %v770_v61 = vld [vmem:[%s4042_s29 + $0xf40] sm:$0xff] }
 0x172   : > { %1981 = vmatmul.mubr.f32.vlgmr.msra.gmra.mrb[8].mxu1 %v4246_v34  ;;  %v870_v34 = vld [vmem:[%s4042_s29 + $0x1260] sm:$0xff]  ;;  %v3150_v10 = vpack.c.bf16 %v892_v31, %v889_v2  ;;  %v773_v1 = vld [vmem:[%s4042_s29 + $0xf58] sm:$0xff]  ;;  %v915_v31 = vld [vmem:[%s4042_s29 + $0x13c8] sm:$0xff] }
 0x173   : > { %1558 = vmatmul.mubr.f32.vlgmr.msra.gmra.mrb[0].mxu0 %v4536_v48  ;;  %3389 = vmatpush3.bf16.msra.mxu1 %v3388_v15  ;;  %v3140_v44 = vpack.c.bf16 %v873_v37, %v870_v34  ;;  %v752_v15 = vld [vmem:[%s4042_s29 + $0xeb0] sm:$0xff]  ;;  %v3424_v8 = vpack.c.bf16 %v773_v1, %v770_v61  ;;  %v3168_v9 = vpack.c.bf16 %v915_v31, %v912_v60  ;;  %v942_v1 = vld [vmem:[%s4042_s29 + $0x14a0] sm:$0xff]  ;;  %v803_v31 = vld [vmem:[%s4042_s29 + $0x1048] sm:$0xff] }
 0x174   : > { %3133 = vmatpush1.bf16.msra.mxu0 %v3132_v16  ;;  %3391 = vmatprep.subr.bf16.mxu1 %v3390_v17  ;;  %v755_v16 = vld [vmem:[%s4042_s29 + $0xec8] sm:$0xff]  ;;  %v904_v34 = vld [vmem:[%s4042_s29 + $0x1370] sm:$0xff] }
 0x175   : > { %3135 = vmatprep.subr.bf16.mxu0 %v3134_v19  ;;  %2050 = vmatprep.mubr.f32.mxu1 %v4406_v21  ;;  %v3142_v21 = vpack.c.bf16 %v880_v42, %v877_v41  ;;  %v895_v17 = vld [vmem:[%s4042_s29 + $0x1328] sm:$0xff]  ;;  %v3410_v19 = vpack.c.bf16 %v755_v16, %v752_v15  ;;  %v900_v37 = vld [vmem:[%s4042_s29 + $0x1350] sm:$0xff] }
 0x176   : > { %1628 = vmatprep.mubr.f32.mxu0 %v4694_v25  ;;  %v3154_v47 = vpack.c.bf16 %v898_v18, %v895_v17  ;;  %v903_v42 = vld [vmem:[%s4042_s29 + $0x1368] sm:$0xff]  ;;  %v776_v15 = vld [vmem:[%s4042_s29 + $0xf70] sm:$0xff]  ;;  %v921_v17 = vld [vmem:[%s4042_s29 + $0x13f8] sm:$0xff] }
 0x177   : > { %3393 = vmatpush3.bf16.msra.mxu1 %v3392_v27  ;;  %v758_v27 = vld [vmem:[%s4042_s29 + $0xee0] sm:$0xff]  ;;  %v3160_v46 = vpack.c.bf16 %v903_v42, %v900_v37  ;;  %v779_v16 = vld [vmem:[%s4042_s29 + $0xf88] sm:$0xff]  ;;  %v3172_v20 = vpack.c.bf16 %v921_v17, %v918_v11  ;;  %v809_v17 = vld [vmem:[%s4042_s29 + $0x1078] sm:$0xff] }
 0x178   : > { %3137 = vmatpush1.bf16.msra.mxu0 %v3136_v28  ;;  %3395 = vmatprep.subr.bf16.mxu1 %v3394_v30  ;;  %v761_v28 = vld [vmem:[%s4042_s29 + $0xef8] sm:$0xff]  ;;  %v830_v18 = vld [vmem:[%s4042_s29 + $0x1120] sm:$0xff]  ;;  %v791_v42 = vld [vmem:[%s4042_s29 + $0xfe8] sm:$0xff] }
 0x179   : > { %3139 = vmatprep.subr.bf16.mxu0 %v3138_v36  ;;  %v901_v30 = vld [vmem:[%s4042_s29 + $0x1358] sm:$0xff]  ;;  %v3414_v36 = vpack.c.bf16 %v761_v28, %v758_v27  ;;  %v927_v28 = vld [vmem:[%s4042_s29 + $0x1428] sm:$0xff] }
 0x17a   : > { %v3158_v41 = vpack.c.bf16 %v904_v34, %v901_v30  ;;  %v836_v30 = vld [vmem:[%s4042_s29 + $0x1150] sm:$0xff]  ;;  %v839_v34 = vld [vmem:[%s4042_s29 + $0x1168] sm:$0xff]  ;;  %v3176_v37 = vpack.c.bf16 %v927_v28, %v924_v23 }
 0x17b   : > { %3397 = vmatpush3.bf16.msra.mxu1 %v3396_v43  ;;  %v812_v43 = vld [vmem:[%s4042_s29 + $0x1090] sm:$0xff]  ;;  %v3434_v38 = vpack.c.bf16 %v839_v34, %v836_v30  ;;  %v863_v30 = vld [vmem:[%s4042_s29 + $0x1228] sm:$0xff] }
 0x17c   : > { %3141 = vmatpush1.bf16.msra.mxu0 %v3140_v44  ;;  %3399 = vmatprep.subr.bf16.mxu1 %v3398_v45  ;;  %v815_v44 = vld [vmem:[%s4042_s29 + $0x10a8] sm:$0xff]  ;;  %v860_v28 = vld [vmem:[%s4042_s29 + $0x1210] sm:$0xff] }
 0x17d   : > { %3143 = vmatprep.subr.bf16.mxu0 %v3142_v21  ;;  %v907_v45 = vld [vmem:[%s4042_s29 + $0x1388] sm:$0xff]  ;;  %v3418_v21 = vpack.c.bf16 %v815_v44, %v812_v43  ;;  %v933_v44 = vld [vmem:[%s4042_s29 + $0x1458] sm:$0xff] }
 0x17e   : > { %v3162_v53 = vpack.c.bf16 %v910_v35, %v907_v45  ;;  %v842_v45 = vld [vmem:[%s4042_s29 + $0x1180] sm:$0xff]  ;;  %v845_v35 = vld [vmem:[%s4042_s29 + $0x1198] sm:$0xff]  ;;  %v3180_v49 = vpack.c.bf16 %v933_v44, %v930_v39  ;;  %v3452_v39 = vpack.c.bf16 %v863_v30, %v860_v28  ;;  %v984_v28 = vld [vmem:[%s4042_s29 + $0x15f0] sm:$0xff] }
 0x17f   : > { %3401 = vmatpush3.bf16.msra.mxu1 %v3400_v54  ;;  %v818_v54 = vld [vmem:[%s4042_s29 + $0x10c0] sm:$0xff]  ;;  %v3438_v51 = vpack.c.bf16 %v845_v35, %v842_v45  ;;  %v869_v45 = vld [vmem:[%s4042_s29 + $0x1258] sm:$0xff] }
 0x180   : > { %3145 = vmatpush1.bf16.msra.mxu0 %v3144_v55  ;;  %3403 = vmatprep.subr.bf16.mxu1 %v3402_v56  ;;  %v821_v55 = vld [vmem:[%s4042_s29 + $0x10d8] sm:$0xff]  ;;  %v866_v44 = vld [vmem:[%s4042_s29 + $0x1240] sm:$0xff] }
 0x181   : > { %3147 = vmatprep.subr.bf16.mxu0 %v3146_v59  ;;  %v913_v56 = vld [vmem:[%s4042_s29 + $0x13b8] sm:$0xff]  ;;  %v3422_v59 = vpack.c.bf16 %v821_v55, %v818_v54  ;;  %v939_v55 = vld [vmem:[%s4042_s29 + $0x1488] sm:$0xff]  ;;  %v890_v30 = vld [vmem:[%s4042_s29 + $0x1300] sm:$0xff] }
 0x182   : > { %v3166_v2 = vpack.c.bf16 %v916_v57, %v913_v56  ;;  %v848_v56 = vld [vmem:[%s4042_s29 + $0x11b0] sm:$0xff]  ;;  %v851_v57 = vld [vmem:[%s4042_s29 + $0x11c8] sm:$0xff]  ;;  %v3184_v60 = vpack.c.bf16 %v939_v55, %v936_v52 }
 0x183   : > { %3405 = vmatpush3.bf16.msra.mxu1 %v3404_v3  ;;  %v824_v3 = vld [vmem:[%s4042_s29 + $0x10f0] sm:$0xff]  ;;  %v3442_v61 = vpack.c.bf16 %v851_v57, %v848_v56  ;;  %v875_v56 = vld [vmem:[%s4042_s29 + $0x1288] sm:$0xff] }
 0x184   : > { %3149 = vmatpush1.bf16.msra.mxu0 %v3148_v4  ;;  %3407 = vmatprep.subr.bf16.mxu1 %v3406_v5  ;;  %v827_v4 = vld [vmem:[%s4042_s29 + $0x1108] sm:$0xff]  ;;  %v872_v55 = vld [vmem:[%s4042_s29 + $0x1270] sm:$0xff] }
 0x185   : > { %3151 = vmatprep.subr.bf16.mxu0 %v3150_v10  ;;  %v919_v5 = vld [vmem:[%s4042_s29 + $0x13e8] sm:$0xff]  ;;  %v3426_v10 = vpack.c.bf16 %v827_v4, %v824_v3  ;;  %v945_v4 = vld [vmem:[%s4042_s29 + $0x14b8] sm:$0xff] }
 0x186   : > { %v3188_v11 = vpack.c.bf16 %v945_v4, %v942_v1  ;;  %v3460_v1 = vpack.c.bf16 %v875_v56, %v872_v55  ;;  %v878_v4 = vld [vmem:[%s4042_s29 + $0x12a0] sm:$0xff] }
 0x187   : > { %3409 = vmatpush3.bf16.msra.mxu1 %v3408_v26  ;;  %v833_v26 = vld [vmem:[%s4042_s29 + $0x1138] sm:$0xff] }
 0x188   : > { %3153 = vmatpush1.bf16.msra.mxu0 %v3152_v40  ;;  %3411 = vmatprep.subr.bf16.mxu1 %v3410_v19  ;;  %v925_v40 = vld [vmem:[%s4042_s29 + $0x1418] sm:$0xff]  ;;  %v3428_v19 = vpack.c.bf16 %v779_v16, %v776_v15  ;;  %v3430_v22 = vpack.c.bf16 %v833_v26, %v830_v18  ;;  %v948_v16 = vld [vmem:[%s4042_s29 + $0x14d0] sm:$0xff]  ;;  %v951_v26 = vld [vmem:[%s4042_s29 + $0x14e8] sm:$0xff] }
 0x189   : > { %3155 = vmatprep.subr.bf16.mxu0 %v3154_v47  ;;  %v782_v47 = vld [vmem:[%s4042_s29 + $0xfa0] sm:$0xff] }
 0x18b   : > { %3413 = vmatpush3.bf16.msra.mxu1 %v3412_v32  ;;  %v931_v32 = vld [vmem:[%s4042_s29 + $0x1448] sm:$0xff] }
 0x18c   : > { %3157 = vmatpush1.bf16.msra.mxu0 %v3156_v33  ;;  %3415 = vmatprep.subr.bf16.mxu1 %v3414_v36  ;;  %v934_v33 = vld [vmem:[%s4042_s29 + $0x1460] sm:$0xff]  ;;  %v3432_v36 = vpack.c.bf16 %v785_v24, %v782_v47  ;;  %v3192_v47 = vpack.c.bf16 %v951_v26, %v948_v16  ;;  %v887_v26 = vld [vmem:[%s4042_s29 + $0x12e8] sm:$0xff] }
 0x18d   : > { %3159 = vmatprep.subr.bf16.mxu0 %v3158_v41  ;;  %v788_v41 = vld [vmem:[%s4042_s29 + $0xfd0] sm:$0xff]  ;;  %v3178_v43 = vpack.c.bf16 %v934_v33, %v931_v32  ;;  %v957_v32 = vld [vmem:[%s4042_s29 + $0x1518] sm:$0xff]  ;;  %v914_v33 = vld [vmem:[%s4042_s29 + $0x13c0] sm:$0xff] }
 0x18f   : > { %3417 = vmatpush3.bf16.msra.mxu1 %v3416_v7  ;;  %v937_v7 = vld [vmem:[%s4042_s29 + $0x1478] sm:$0xff] }
 0x190   : > { %3161 = vmatpush1.bf16.msra.mxu0 %v3160_v46  ;;  %3419 = vmatprep.subr.bf16.mxu1 %v3418_v21  ;;  %v940_v46 = vld [vmem:[%s4042_s29 + $0x1490] sm:$0xff]  ;;  %v3436_v21 = vpack.c.bf16 %v791_v42, %v788_v41 }
 0x191   : > { %3163 = vmatprep.subr.bf16.mxu0 %v3162_v53  ;;  %v794_v53 = vld [vmem:[%s4042_s29 + $0x1000] sm:$0xff]  ;;  %v3182_v54 = vpack.c.bf16 %v940_v46, %v937_v7  ;;  %v963_v7 = vld [vmem:[%s4042_s29 + $0x1548] sm:$0xff]  ;;  %v920_v46 = vld [vmem:[%s4042_s29 + $0x13f0] sm:$0xff] }
 0x192   : > { %2051 = vmatmul.mubr.f32.vlgmr.msra.gmra.mrb[10].mxu1 %v4396_v14  ;;  %v3170_v14 = vpack.c.bf16 %v922_v6, %v919_v5  ;;  %v854_v5 = vld [vmem:[%s4042_s29 + $0x11e0] sm:$0xff]  ;;  %v857_v6 = vld [vmem:[%s4042_s29 + $0x11f8] sm:$0xff] }
 0x193   : > { %3421 = vmatpush3.bf16.msra.mxu1 %v3420_v50  ;;  %2120 = vmatprep.mubr.f32.mxu1 %v4549_v62  ;;  %v928_v62 = vld [vmem:[%s4042_s29 + $0x1430] sm:$0xff]  ;;  %v943_v50 = vld [vmem:[%s4042_s29 + $0x14a8] sm:$0xff]  ;;  %v3446_v15 = vpack.c.bf16 %v857_v6, %v854_v5  ;;  %v881_v5 = vld [vmem:[%s4042_s29 + $0x12b8] sm:$0xff] }
 0x194   : > { %3165 = vmatpush1.bf16.msra.mxu0 %v3164_v58  ;;  %3423 = vmatprep.subr.bf16.mxu1 %v3422_v59  ;;  %v3174_v27 = vpack.c.bf16 %v928_v62, %v925_v40  ;;  %v946_v58 = vld [vmem:[%s4042_s29 + $0x14c0] sm:$0xff]  ;;  %v3440_v59 = vpack.c.bf16 %v797_v29, %v794_v53  ;;  %v908_v40 = vld [vmem:[%s4042_s29 + $0x1390] sm:$0xff]  ;;  %v911_v62 = vld [vmem:[%s4042_s29 + $0x13a8] sm:$0xff]  ;;  %v3456_v53 = vpack.c.bf16 %v869_v45, %v866_v44 }
 0x195   : > { %3167 = vmatprep.subr.bf16.mxu0 %v3166_v2  ;;  %v800_v2 = vld [vmem:[%s4042_s29 + $0x1030] sm:$0xff]  ;;  %v3186_v3 = vpack.c.bf16 %v946_v58, %v943_v50  ;;  %v3450_v24 = vpack.c.bf16 %v911_v62, %v908_v40  ;;  %v969_v50 = vld [vmem:[%s4042_s29 + $0x1578] sm:$0xff]  ;;  %v926_v58 = vld [vmem:[%s4042_s29 + $0x1420] sm:$0xff] }
 0x196   : > { %v975_v6 = vld [vmem:[%s4042_s29 + $0x15a8] sm:$0xff]  ;;  %v981_v62 = vld [vmem:[%s4042_s29 + $0x15d8] sm:$0xff]  ;;  %v990_v44 = vld [vmem:[%s4042_s29 + $0x1620] sm:$0xff] }
 0x197   : > { %3425 = vmatpush3.bf16.msra.mxu1 %v3424_v8  ;;  %v949_v8 = vld [vmem:[%s4042_s29 + $0x14d8] sm:$0xff]  ;;  %v896_v45 = vld [vmem:[%s4042_s29 + $0x1330] sm:$0xff] }
 0x198   : > { %3169 = vmatpush1.bf16.msra.mxu0 %v3168_v9  ;;  %3427 = vmatprep.subr.bf16.mxu1 %v3426_v10  ;;  %v952_v9 = vld [vmem:[%s4042_s29 + $0x14f0] sm:$0xff]  ;;  %v3444_v10 = vpack.c.bf16 %v803_v31, %v800_v2 }
 0x199   : > { %3171 = vmatprep.subr.bf16.mxu0 %v3170_v14  ;;  %v806_v14 = vld [vmem:[%s4042_s29 + $0x1060] sm:$0xff]  ;;  %v3190_v18 = vpack.c.bf16 %v952_v9, %v949_v8  ;;  %v932_v8 = vld [vmem:[%s4042_s29 + $0x1450] sm:$0xff]  ;;  %v935_v9 = vld [vmem:[%s4042_s29 + $0x1468] sm:$0xff] }
 0x19a   : > { %v3448_v23 = vpack.c.bf16 %v809_v17, %v806_v14  ;;  %v3466_v14 = vpack.c.bf16 %v935_v9, %v932_v8  ;;  %v978_v17 = vld [vmem:[%s4042_s29 + $0x15c0] sm:$0xff]  ;;  %v959_v8 = vld [vmem:[%s4042_s29 + $0x1528] sm:$0xff] }
 0x19b   : > { %3429 = vmatpush3.bf16.msra.mxu1 %v3428_v19  ;;  %v955_v19 = vld [vmem:[%s4042_s29 + $0x1508] sm:$0xff] }
 0x19c   : > { %3173 = vmatpush1.bf16.msra.mxu0 %v3172_v20  ;;  %3431 = vmatprep.subr.bf16.mxu1 %v3430_v22  ;;  %v958_v20 = vld [vmem:[%s4042_s29 + $0x1520] sm:$0xff]  ;;  %v1105_v22 = vcombine.high %v4669_v0, %v4669_v0  ;;  %v961_v0 = vld [vmem:[%s4042_s29 + $0x1538] sm:$0xff] }
 0x19d   : > { %3175 = vmatprep.subr.bf16.mxu0 %v3174_v27  ;;  %v954_v27 = vld [vmem:[%s4042_s29 + $0x1500] sm:$0xff]  ;;  %v3194_v34 = vpack.c.bf16 %v958_v20, %v955_v19  ;;  %v941_v20 = vld [vmem:[%s4042_s29 + $0x1498] sm:$0xff] }
 0x19e   : > { %v3196_v41 = vpack.c.bf16 %v957_v32, %v954_v27  ;;  %v938_v19 = vld [vmem:[%s4042_s29 + $0x1480] sm:$0xff] }
 0x19f   : > { %3433 = vmatpush3.bf16.msra.mxu1 %v3432_v36  ;;  %v917_v36 = vld [vmem:[%s4042_s29 + $0x13d8] sm:$0xff]  ;;  %v3470_v27 = vpack.c.bf16 %v941_v20, %v938_v19 }
 0x1a0   : > { %3177 = vmatpush1.bf16.msra.mxu0 %v3176_v37  ;;  %3435 = vmatprep.subr.bf16.mxu1 %v3434_v38  ;;  %v964_v37 = vld [vmem:[%s4042_s29 + $0x1550] sm:$0xff]  ;;  %v4824_v38 = vrot.slane %v1105_v22, %v4164_v12  ;;  %v3454_v42 = vpack.c.bf16 %v917_v36, %v914_v33  ;;  %v985_v22 = vld [vmem:[%s4042_s29 + $0x15f8] sm:$0xff]  ;;  %v987_v33 = vld [vmem:[%s4042_s29 + $0x1608] sm:$0xff] }
 0x1a1   : > { %3179 = vmatprep.subr.bf16.mxu0 %v3178_v43  ;;  %v960_v43 = vld [vmem:[%s4042_s29 + $0x1530] sm:$0xff]  ;;  %v3198_v35 = vpack.c.bf16 %v964_v37, %v961_v0  ;;  %v947_v0 = vld [vmem:[%s4042_s29 + $0x14c8] sm:$0xff]  ;;  %v965_v19 = vld [vmem:[%s4042_s29 + $0x1558] sm:$0xff] }
 0x1a2   : > { %v4837_v52 = vcombine.high %v4824_v38, %v4824_v38  ;;  %v3200_v29 = vpack.c.bf16 %v963_v7, %v960_v43  ;;  %v944_v36 = vld [vmem:[%s4042_s29 + $0x14b0] sm:$0xff]  ;;  %v991_v37 = vld [vmem:[%s4042_s29 + $0x1628] sm:$0xff] }
 0x1a3   : > { %3437 = vmatpush3.bf16.msra.mxu1 %v3436_v21  ;;  %v923_v21 = vld [vmem:[%s4042_s29 + $0x1408] sm:$0xff]  ;;  %v3474_v43 = vpack.c.bf16 %v947_v0, %v944_v36  ;;  %v1017_v0 = vld [vmem:[%s4042_s29 + $0x16f8] sm:$0xff] }
 0x1a4   : > { %3181 = vmatpush1.bf16.msra.mxu0 %v3180_v49  ;;  %3439 = vmatprep.subr.bf16.mxu1 %v3438_v51  ;;  %v967_v49 = vld [vmem:[%s4042_s29 + $0x1568] sm:$0xff]  ;;  %v970_v51 = vld [vmem:[%s4042_s29 + $0x1580] sm:$0xff] }
 0x1a5   : > { %3183 = vmatprep.subr.bf16.mxu0 %v3182_v54  ;;  %v3458_v54 = vpack.c.bf16 %v923_v21, %v920_v46  ;;  %v3202_v57 = vpack.c.bf16 %v970_v51, %v967_v49  ;;  %v993_v21 = vld [vmem:[%s4042_s29 + $0x1638] sm:$0xff]  ;;  %v950_v49 = vld [vmem:[%s4042_s29 + $0x14e0] sm:$0xff]  ;;  %v971_v36 = vld [vmem:[%s4042_s29 + $0x1588] sm:$0xff] }
 0x1a6   : > { %v953_v51 = vld [vmem:[%s4042_s29 + $0x14f8] sm:$0xff]  ;;  %v3220_v55 = vpack.c.bf16 %v993_v21, %v990_v44 }
 0x1a7   : > { %3441 = vmatpush3.bf16.msra.mxu1 %v3440_v59  ;;  %v929_v59 = vld [vmem:[%s4042_s29 + $0x1438] sm:$0xff]  ;;  %v3478_v56 = vpack.c.bf16 %v953_v51, %v950_v49  ;;  %v1023_v49 = vld [vmem:[%s4042_s29 + $0x1728] sm:$0xff]  ;;  %v1028_v51 = vld [vmem:[%s4042_s29 + $0x1750] sm:$0xff] }
 0x1a8   : > { %3185 = vmatpush1.bf16.msra.mxu0 %v3184_v60  ;;  %3443 = vmatprep.subr.bf16.mxu1 %v3442_v61  ;;  %v973_v60 = vld [vmem:[%s4042_s29 + $0x1598] sm:$0xff]  ;;  %v976_v61 = vld [vmem:[%s4042_s29 + $0x15b0] sm:$0xff]  ;;  %v3462_v31 = vpack.c.bf16 %v929_v59, %v926_v58 }
 0x1a9   : > { %3187 = vmatprep.subr.bf16.mxu0 %v3186_v3  ;;  %v972_v3 = vld [vmem:[%s4042_s29 + $0x1590] sm:$0xff]  ;;  %v905_v58 = vld [vmem:[%s4042_s29 + $0x1378] sm:$0xff] }
 0x1aa   : > { %v3208_v16 = vpack.c.bf16 %v975_v6, %v972_v3  ;;  %v956_v6 = vld [vmem:[%s4042_s29 + $0x1510] sm:$0xff] }
 0x1ab   : > { %3445 = vmatpush3.bf16.msra.mxu1 %v3444_v10  ;;  %v979_v10 = vld [vmem:[%s4042_s29 + $0x15c8] sm:$0xff] }
 0x1ac   : > { %3189 = vmatpush1.bf16.msra.mxu0 %v3188_v11  ;;  %3447 = vmatprep.subr.bf16.mxu1 %v3446_v15  ;;  %v982_v11 = vld [vmem:[%s4042_s29 + $0x15e0] sm:$0xff]  ;;  %v3464_v15 = vpack.c.bf16 %v881_v5, %v878_v4 }
 0x1ad   : > { %3191 = vmatprep.subr.bf16.mxu0 %v3190_v18  ;;  %v884_v18 = vld [vmem:[%s4042_s29 + $0x12d0] sm:$0xff]  ;;  %v3210_v40 = vpack.c.bf16 %v982_v11, %v979_v10  ;;  %v1005_v10 = vld [vmem:[%s4042_s29 + $0x1698] sm:$0xff]  ;;  %v1010_v11 = vld [vmem:[%s4042_s29 + $0x16c0] sm:$0xff] }
 0x1af   : > { %3449 = vmatpush3.bf16.msra.mxu1 %v3448_v23  ;;  %v988_v23 = vld [vmem:[%s4042_s29 + $0x1610] sm:$0xff] }
 0x1b0   : > { %3193 = vmatpush1.bf16.msra.mxu0 %v3192_v47  ;;  %3451 = vmatprep.subr.bf16.mxu1 %v3450_v24  ;;  %v3468_v47 = vpack.c.bf16 %v887_v26, %v884_v18  ;;  %v3212_v24 = vpack.c.bf16 %v981_v62, %v978_v17  ;;  %v3214_v32 = vpack.c.bf16 %v988_v23, %v985_v22  ;;  %v962_v62 = vld [vmem:[%s4042_s29 + $0x1540] sm:$0xff]  ;;  %v1011_v22 = vld [vmem:[%s4042_s29 + $0x16c8] sm:$0xff]  ;;  %v1016_v23 = vld [vmem:[%s4042_s29 + $0x16f0] sm:$0xff] }
 0x1b1   : > { %3195 = vmatprep.subr.bf16.mxu0 %v3194_v34  ;;  %v893_v34 = vld [vmem:[%s4042_s29 + $0x1318] sm:$0xff]  ;;  %v3484_v17 = vpack.c.bf16 %v959_v8, %v956_v6  ;;  %v1032_v6 = vld [vmem:[%s4042_s29 + $0x1770] sm:$0xff]  ;;  %v986_v8 = vld [vmem:[%s4042_s29 + $0x1600] sm:$0xff] }
 0x1b2   : > { %2121 = vmatmul.mubr.f32.vlgmr.msra.gmra.mrb[12].mxu1 %v4536_v48  ;;  %v966_v48 = vld [vmem:[%s4042_s29 + $0x1560] sm:$0xff] }
 0x1b3   : > { %1629 = vmatmul.mubr.f32.vlgmr.msra.gmra.mrb[0].mxu0 %v4681_v13  ;;  %3453 = vmatpush3.bf16.msra.mxu1 %v3452_v39  ;;  %v3204_v2 = vpack.c.bf16 %v969_v50, %v966_v48  ;;  %v994_v39 = vld [vmem:[%s4042_s29 + $0x1640] sm:$0xff] }
 0x1b4   : > { %3197 = vmatpush1.bf16.msra.mxu0 %v3196_v41  ;;  %3455 = vmatprep.subr.bf16.mxu1 %v3454_v42  ;;  %v3472_v41 = vpack.c.bf16 %v893_v34, %v890_v30  ;;  %v3216_v42 = vpack.c.bf16 %v987_v33, %v984_v28  ;;  %v3218_v46 = vpack.c.bf16 %v994_v39, %v991_v37  ;;  %v902_v50 = vld [vmem:[%s4042_s29 + $0x1360] sm:$0xff]  ;;  %v968_v33 = vld [vmem:[%s4042_s29 + $0x1570] sm:$0xff]  ;;  %v1025_v39 = vld [vmem:[%s4042_s29 + $0x1738] sm:$0xff] }
 0x1b5   : > { %3199 = vmatprep.subr.bf16.mxu0 %v3198_v35  ;;  %2190 = vmatprep.mubr.f32.mxu1 %v4694_v25  ;;  %v3206_v25 = vpack.c.bf16 %v976_v61, %v973_v60  ;;  %v899_v35 = vld [vmem:[%s4042_s29 + $0x1348] sm:$0xff]  ;;  %v1004_v61 = vld [vmem:[%s4042_s29 + $0x1690] sm:$0xff]  ;;  %v3480_v3 = vpack.c.bf16 %v905_v58, %v902_v50  ;;  %v3488_v28 = vpack.c.bf16 %v965_v19, %v962_v62  ;;  %v1022_v37 = vld [vmem:[%s4042_s29 + $0x1720] sm:$0xff] }
 0x1b6   : > { %1699 = vmatprep.mubr.f32.mxu0 %v4837_v52  ;;  %v3476_v48 = vpack.c.bf16 %v899_v35, %v896_v45  ;;  %v999_v60 = vld [vmem:[%s4042_s29 + $0x1668] sm:$0xff]  ;;  %v3494_v44 = vpack.c.bf16 %v1025_v39, %v1022_v37  ;;  %v1020_v45 = vld [vmem:[%s4042_s29 + $0x1710] sm:$0xff]  ;;  %v974_v35 = vld [vmem:[%s4042_s29 + $0x15a0] sm:$0xff] }
 0x1b7   : > { %3457 = vmatpush3.bf16.msra.mxu1 %v3456_v53  ;;  %v1026_v50 = vld [vmem:[%s4042_s29 + $0x1740] sm:$0xff]  ;;  %v980_v58 = vld [vmem:[%s4042_s29 + $0x15d0] sm:$0xff]  ;;  %v1001_v37 = vld [vmem:[%s4042_s29 + $0x1678] sm:$0xff] }
 0x1b8   : > { %3201 = vmatpush1.bf16.msra.mxu0 %v3200_v29  ;;  %3459 = vmatprep.subr.bf16.mxu1 %v3458_v54  ;;  %v997_v29 = vld [vmem:[%s4042_s29 + $0x1658] sm:$0xff]  ;;  %v1000_v54 = vld [vmem:[%s4042_s29 + $0x1670] sm:$0xff]  ;;  %v1038_v62 = vld [vmem:[%s4042_s29 + $0x17a0] sm:$0xff] }
 0x1b9   : > { %3203 = vmatprep.subr.bf16.mxu0 %v3202_v57  ;;  %v996_v57 = vld [vmem:[%s4042_s29 + $0x1650] sm:$0xff]  ;;  %v3222_v59 = vpack.c.bf16 %v1000_v54, %v997_v29  ;;  %v1031_v29 = vld [vmem:[%s4042_s29 + $0x1768] sm:$0xff] }
 0x1ba   : > { %v3224_v4 = vpack.c.bf16 %v999_v60, %v996_v57  ;;  %v1027_v54 = vld [vmem:[%s4042_s29 + $0x1748] sm:$0xff]  ;;  %v3498_v57 = vpack.c.bf16 %v1031_v29, %v1028_v51  ;;  %v992_v19 = vld [vmem:[%s4042_s29 + $0x1630] sm:$0xff] }
 0x1bb   : > { %3461 = vmatpush3.bf16.msra.mxu1 %v3460_v1  ;;  %v1007_v1 = vld [vmem:[%s4042_s29 + $0x16a8] sm:$0xff] }
 0x1bc   : > { %3205 = vmatpush1.bf16.msra.mxu0 %v3204_v2  ;;  %3463 = vmatprep.subr.bf16.mxu1 %v3462_v31  ;;  %v1003_v2 = vld [vmem:[%s4042_s29 + $0x1688] sm:$0xff]  ;;  %v1006_v31 = vld [vmem:[%s4042_s29 + $0x16a0] sm:$0xff]  ;;  %v3482_v5 = vpack.c.bf16 %v1007_v1, %v1004_v61  ;;  %v1029_v61 = vld [vmem:[%s4042_s29 + $0x1758] sm:$0xff] }
 0x1bd   : > { %3207 = vmatprep.subr.bf16.mxu0 %v3206_v25  ;;  %v1002_v25 = vld [vmem:[%s4042_s29 + $0x1680] sm:$0xff]  ;;  %v3226_v9 = vpack.c.bf16 %v1006_v31, %v1003_v2  ;;  %v1037_v2 = vld [vmem:[%s4042_s29 + $0x1798] sm:$0xff] }
 0x1be   : > { %v3228_v18 = vpack.c.bf16 %v1005_v10, %v1002_v25  ;;  %v1034_v1 = vld [vmem:[%s4042_s29 + $0x1780] sm:$0xff]  ;;  %v1033_v31 = vld [vmem:[%s4042_s29 + $0x1778] sm:$0xff] }
 0x1bf   : > { %3465 = vmatpush3.bf16.msra.mxu1 %v3464_v15  ;;  %v1013_v15 = vld [vmem:[%s4042_s29 + $0x16d8] sm:$0xff]  ;;  %v3502_v25 = vpack.c.bf16 %v1037_v2, %v1034_v1 }
 0x1c0   : > { %3209 = vmatpush1.bf16.msra.mxu0 %v3208_v16  ;;  %3467 = vmatprep.subr.bf16.mxu1 %v3466_v14  ;;  %v1009_v16 = vld [vmem:[%s4042_s29 + $0x16b8] sm:$0xff]  ;;  %v1012_v14 = vld [vmem:[%s4042_s29 + $0x16d0] sm:$0xff]  ;;  %v3486_v26 = vpack.c.bf16 %v1013_v15, %v1010_v11  ;;  %v1035_v11 = vld [vmem:[%s4042_s29 + $0x1788] sm:$0xff] }
 0x1c1   : > { %3211 = vmatprep.subr.bf16.mxu0 %v3210_v40  ;;  %v1008_v40 = vld [vmem:[%s4042_s29 + $0x16b0] sm:$0xff]  ;;  %v3230_v20 = vpack.c.bf16 %v1012_v14, %v1009_v16  ;;  %v1043_v16 = vld [vmem:[%s4042_s29 + $0x17c8] sm:$0xff] }
 0x1c2   : > { %v3232_v30 = vpack.c.bf16 %v1011_v22, %v1008_v40  ;;  %v1040_v15 = vld [vmem:[%s4042_s29 + $0x17b0] sm:$0xff]  ;;  %v1039_v14 = vld [vmem:[%s4042_s29 + $0x17a8] sm:$0xff] }
 0x1c3   : > { %3469 = vmatpush3.bf16.msra.mxu1 %v3468_v47  ;;  %v1019_v47 = vld [vmem:[%s4042_s29 + $0x1708] sm:$0xff]  ;;  %v3506_v40 = vpack.c.bf16 %v1043_v16, %v1040_v15 }
 0x1c4   : > { %3213 = vmatpush1.bf16.msra.mxu0 %v3212_v24  ;;  %3471 = vmatprep.subr.bf16.mxu1 %v3470_v27  ;;  %v1015_v24 = vld [vmem:[%s4042_s29 + $0x16e8] sm:$0xff]  ;;  %v1018_v27 = vld [vmem:[%s4042_s29 + $0x1700] sm:$0xff]  ;;  %v3490_v34 = vpack.c.bf16 %v1019_v47, %v1016_v23  ;;  %v1041_v47 = vld [vmem:[%s4042_s29 + $0x17b8] sm:$0xff] }
 0x1c5   : > { %v4877_v7 = vpop.f32.mrb[0].mxu1  ;;  %3215 = vmatprep.subr.bf16.mxu0 %v3214_v32  ;;  %v1014_v32 = vld [vmem:[%s4042_s29 + $0x16e0] sm:$0xff] }
 0x1c6   : > { %v4882_v53 = vpop.f32.mrb[1].mxu1 }
 0x1c7   : > { %3473 = vmatpush3.bf16.msra.mxu1 %v3472_v41  ;;  %v1021_v41 = vld [vmem:[%s4042_s29 + $0x1718] sm:$0xff] }
 0x1c8   : > { %3217 = vmatpush1.bf16.msra.mxu0 %v3216_v42  ;;  %3475 = vmatprep.subr.bf16.mxu1 %v3474_v43  ;;  %v3492_v42 = vpack.c.bf16 %v971_v36, %v968_v33  ;;  %v3236_v43 = vpack.c.bf16 %v1017_v0, %v1014_v32  ;;  %v3252_v36 = vpack.c.bf16 %v1041_v47, %v1038_v62  ;;  %v998_v0 = vld [vmem:[%s4042_s29 + $0x1660] sm:$0xff]  ;;  %v2297_v62 = vsub.s32 (!%p2462_p0), 0, %v4153_v63 }
 0x1c9   : > { %3219 = vmatprep.subr.bf16.mxu0 %v3218_v46  ;;  %v977_v46 = vld [vmem:[%s4042_s29 + $0x15b8] sm:$0xff] }
 0x1cb   : > { %3477 = vmatpush3.bf16.msra.mxu1 %v3476_v48  ;;  %v1030_v48 = vld [vmem:[%s4042_s29 + $0x1760] sm:$0xff] }
 0x1cc   : > { %3221 = vmatpush1.bf16.msra.mxu0 %v3220_v55  ;;  %3479 = vmatprep.subr.bf16.mxu1 %v3478_v56  ;;  %v3496_v55 = vpack.c.bf16 %v977_v46, %v974_v35  ;;  %v3240_v56 = vpack.c.bf16 %v1023_v49, %v1020_v45  ;;  %v3242_v60 = vpack.c.bf16 %v1030_v48, %v1027_v54 }
 0x1cd   : > { %3223 = vmatprep.subr.bf16.mxu0 %v3222_v59  ;;  %v983_v59 = vld [vmem:[%s4042_s29 + $0x15e8] sm:$0xff] }
 0x1cf   : > { %3481 = vmatpush3.bf16.msra.mxu1 %v3480_v3  ;;  %v1036_v3 = vld [vmem:[%s4042_s29 + $0x1790] sm:$0xff] }
 0x1d0   : > { %3225 = vmatpush1.bf16.msra.mxu0 %v3224_v4  ;;  %3483 = vmatprep.subr.bf16.mxu1 %v3482_v5  ;;  %v3500_v4 = vpack.c.bf16 %v983_v59, %v980_v58  ;;  %v3244_v5 = vpack.c.bf16 %v1029_v61, %v1026_v50  ;;  %v3246_v10 = vpack.c.bf16 %v1036_v3, %v1033_v31 }
 0x1d1   : > { %3227 = vmatprep.subr.bf16.mxu0 %v3226_v9  ;;  %v989_v9 = vld [vmem:[%s4042_s29 + $0x1618] sm:$0xff] }
 0x1d2   : > { %2191 = vmatmul.mubr.f32.vlgmr.msra.gmra.mrb[14].mxu1 %v4681_v13  ;;  %v3234_v13 = vpack.c.bf16 %v1018_v27, %v1015_v24  ;;  %v1046_v24 = vld [vmem:[%s4042_s29 + $0x17e0] sm:$0xff]  ;;  %v1049_v27 = vld [vmem:[%s4042_s29 + $0x17f8] sm:$0xff] }
 0x1d3   : > { %3485 = vmatpush3.bf16.msra.mxu1 %v3484_v17  ;;  %2260 = vmatprep.mubr.f32.mxu1 %v4837_v52  ;;  %v1024_v52 = vld [vmem:[%s4042_s29 + $0x1730] sm:$0xff]  ;;  %v1042_v17 = vld [vmem:[%s4042_s29 + $0x17c0] sm:$0xff] }
 0x1d4   : > { %3229 = vmatpush1.bf16.msra.mxu0 %v3228_v18  ;;  %3487 = vmatprep.subr.bf16.mxu1 %v3486_v26  ;;  %v3238_v21 = vpack.c.bf16 %v1024_v52, %v1021_v41  ;;  %v3504_v18 = vpack.c.bf16 %v989_v9, %v986_v8  ;;  %v3248_v26 = vpack.c.bf16 %v1035_v11, %v1032_v6  ;;  %v1044_v41 = vld [vmem:[%s4042_s29 + $0x17d0] sm:$0xff]  ;;  %v1047_v52 = vld [vmem:[%s4042_s29 + $0x17e8] sm:$0xff] }
 0x1d5   : > { %3231 = vmatprep.subr.bf16.mxu0 %v3230_v20  ;;  %v995_v20 = vld [vmem:[%s4042_s29 + $0x1648] sm:$0xff]  ;;  %v3250_v23 = vpack.c.bf16 %v1042_v17, %v1039_v14 }
 0x1d6   : > { %v3508_v33 = vpack.c.bf16 %v995_v20, %v992_v19  ;;  %v2305_v19 = vsub.s32 (!%p2462_p0), 2, %v4153_v63 }
 0x1d7   : > { %3489 = vmatpush3.bf16.msra.mxu1 %v3488_v28 }
 0x1d8   : > { %3233 = vmatpush1.bf16.msra.mxu0 %v3232_v30  ;;  %3491 = vmatprep.subr.bf16.mxu1 %v3490_v34  ;;  %v1045_v30 = vld [vmem:[%s4042_s29 + $0x17d8] sm:$0xff]  ;;  %v1048_v34 = vld [vmem:[%s4042_s29 + $0x17f0] sm:$0xff] }
 0x1d9   : > { %3235 = vmatprep.subr.bf16.mxu0 %v3234_v13  ;;  %v3510_v13 = vpack.c.bf16 %v1049_v27, %v1046_v24  ;;  %v3254_v39 = vpack.c.bf16 %v1048_v34, %v1045_v30 }
 0x1db   : > { %3493 = vmatpush3.bf16.msra.mxu1 %v3492_v42  ;;  %v3512_v42 = vpack.c.bf16 %v1001_v37, %v998_v0 }
 0x1dc   : > { %3237 = vmatpush1.bf16.msra.mxu0 %v3236_v43  ;;  %3495 = vmatprep.subr.bf16.mxu1 %v3494_v44  ;;  %v3256_v43 = vpack.c.bf16 %v1047_v52, %v1044_v41 }
 0x1dd   : > { %3239 = vmatprep.subr.bf16.mxu0 %v3238_v21 }
 0x1df   : > { %3497 = vmatpush3.bf16.msra.mxu1 %v3496_v55 }
 0x1e0   : > { %3241 = vmatpush1.bf16.msra.mxu0 %v3240_v56  ;;  %3499 = vmatprep.subr.bf16.mxu1 %v3498_v57 }
 0x1e1   : > { %3243 = vmatprep.subr.bf16.mxu0 %v3242_v60 }
 0x1e3   : > { %3501 = vmatpush3.bf16.msra.mxu1 %v3500_v4 }
 0x1e4   : > { %3245 = vmatpush1.bf16.msra.mxu0 %v3244_v5  ;;  %3503 = vmatprep.subr.bf16.mxu1 %v3502_v25 }
 0x1e5   : > { %v2498_v22 = vpop.f32.mrb[2].mxu1  ;;  %3247 = vmatprep.subr.bf16.mxu0 %v3246_v10 }
 0x1e6   : > { %v2499_v28 = vpop.f32.mrb[3].mxu1 }
 0x1e7   : > { %v2500_v32 = vadd.f32 %v2499_v28, %v2498_v22  ;;  %3505 = vmatpush3.bf16.msra.mxu1 %v3504_v18  ;;  %v277_v18 = vld [vmem:[#allocation2] sm:$0x3f] }
 0x1e8   : > { %3249 = vmatpush1.bf16.msra.mxu0 %v3248_v26  ;;  %3507 = vmatprep.subr.bf16.mxu1 %v3506_v40 }
 0x1e9   : > { %3251 = vmatprep.subr.bf16.mxu0 %v3250_v23 }
 0x1eb   : > { %3509 = vmatpush3.bf16.msra.mxu1 %v3508_v33 }
 0x1ec   : > { %3253 = vmatpush1.bf16.msra.mxu0 %v3252_v36  ;;  %3511 = vmatprep.subr.bf16.mxu1 %v3510_v13 }
 0x1ed   : > { %3255 = vmatprep.subr.bf16.mxu0 %v3254_v39 }
 0x1ef   : > { %3513 = vmatpush3.bf16.msra.mxu1 %v3512_v42 }
 0x1f0   : > { %3257 = vmatpush1.bf16.msra.mxu0 %v3256_v43 }
 0x1f2   : > { %2261 = vmatmul.mubr.f32.vlgmr.msra.gmra.mrb[16].mxu1 %v4824_v38 }
 0x1f3   : > { %1700 = vmatmul.mubr.f32.vlgmr.msra.gmra.mrb[0].mxu0 %v4824_v38 }
 0x205   : > { %v2533_v44 = vpop.f32.mrb[4].mxu1 }
 0x206   : > { %v2534_v45 = vpop.f32.mrb[5].mxu1 }
 0x207   : > { %v2535_v35 = vadd.f32 %v2534_v45, %v2533_v44 }
 0x209   : > { %v1843_v46 = vadd.f32 %v2535_v35, %v2500_v32 }
 0x225   : > { %v2568_v21 = vpop.f32.mrb[6].mxu1 }
 0x226   : > { %v2569_v49 = vpop.f32.mrb[7].mxu1 }
 0x227   : > { %v2570_v51 = vadd.f32 %v2569_v49, %v2568_v21 }
 0x229   : > { %v1913_v29 = vadd.f32 %v2570_v51, %v1843_v46 }
 0x245   : > { %v2603_v54 = vpop.f32.mrb[8].mxu1 }
 0x246   : > { %v2604_v48 = vpop.f32.mrb[9].mxu1 }
 0x247   : > { %v2605_v55 = vadd.f32 %v2604_v48, %v2603_v54 }
 0x249   : > { %v1983_v56 = vadd.f32 %v2605_v55, %v1913_v29 }
 0x265   : > { %v2638_v57 = vpop.f32.mrb[10].mxu1 }
 0x266   : > { %v2639_v50 = vpop.f32.mrb[11].mxu1 }
 0x267   : > { %v2640_v58 = vadd.f32 %v2639_v50, %v2638_v57 }
 0x269   : > { %v2053_v59 = vadd.f32 %v2640_v58, %v1983_v56 }
 0x285   : > { %v2673_v60 = vpop.f32.mrb[12].mxu1 }
 0x286   : > { %v2674_v61 = vpop.f32.mrb[13].mxu1 }
 0x287   : > { %v2675_v1 = vadd.f32 %v2674_v61, %v2673_v60 }
 0x289   : > { %v2123_v38 = vadd.f32 %v2675_v1, %v2053_v59 }
 0x2a5   : > { %v2708_v2 = vpop.f32.mrb[14].mxu1 }
 0x2a6   : > { %v2709_v31 = vpop.f32.mrb[15].mxu1 }
 0x2a7   : > { %v2710_v3 = vadd.f32 %v2709_v31, %v2708_v2 }
 0x2a9   : > { %v2193_v4 = vadd.f32 %v2710_v3, %v2123_v38 }
 0x2c5   : > { %v2743_v5 = vpop.f32.mrb[16].mxu1 }
 0x2c6   : > { %v1701_v25 = vpop.f32.mrb[0].mxu0  ;;  %v2744_v6 = vpop.f32.mrb[17].mxu1 }
 0x2c7   : > { %v3514_v8 = vadd.f32 %v1701_v25, %v4877_v7  ;;  %v1703_v9 = vpop.f32.mrb[1].mxu0  ;;  %v2745_v10 = vadd.f32 %v2744_v6, %v2743_v5  ;;  %v2293_v7 = vld [vmem:[%s224_s30] sm:$0x7] (!%p2462_p0) }
 0x2c8   : > { %v3515_v11 = vadd.f32 %v1703_v9, %v4882_v53  ;;  %v2301_v53 = vsub.s32 (!%p2462_p0), 1, %v4153_v63  ;;  %v2298_v20 = vrot.slane (!%p2462_p0), %v2293_v7, %v2297_v62  ;;  %v2306_v23 = vrot.slane (!%p2462_p0), %v2293_v7, %v2305_v19 }
 0x2c9   : > { %v2263_v15 = vadd.f32 %v2745_v10, %v2193_v4 }
 0x2ca   : > { %v2269_v16 = vcombine.low %v3514_v8, %v3515_v11  ;;  %v2302_v22 = vrot.slane (!%p2462_p0), %v2293_v7, %v2301_v53  ;;  %v2321_v24 = vrot.slane (!%p2462_p0), %v2306_v23, %v4164_v12 }
 0x2cb   : > { %v2283_v14 = vrot.slane %v2263_v15, %v4164_v12 }
 0x2cc   : > { %v2276_v17 = vrot.slane %v2269_v16, %v4164_v12  ;;  %2291 = sbr.rel (%p2462_p0) target bundleno = 761 (0x2f9), region = 48  ;;  %v2307_v47 = vcombine.low (!%p2462_p0), %v2298_v20, %v2302_v22 }
 0x2ce   : > { %v2284_v26 = vcombine.low %v2276_v17, %v2283_v14  ;;  %v2314_v27 = vrot.slane (!%p2462_p0), %v2307_v47, %v4164_v12 }
 0x2d0   : > { %v2286_v40 = vadd.f32 %v2284_v26, %v277_v18  ;;  %v2322_v30 = vcombine.low (!%p2462_p0), %v2314_v27, %v2321_v24 }
 0x2d2   : > { %2287 = vst [vmem:[#allocation2] sm:$0x3f] %v2286_v40 }
 0x2d9   : > { %v2292_v28 = vld [vmem:[#allocation2] sm:$0x3f] }
 0x2da   : > { %v2324_v34 = vadd.f32 %v2322_v30, %v2292_v28 }
 0x2dc   : > { %v2325_v32 = vsub.f32 0.0, %v2324_v34 }
 0x2de   : > { %v2326_v33 = vmul.f32 1.442695, %v2325_v32 }
 0x2e0   : > { %3642 = vpow2.f32 %v2326_v33 }
 0x2ea   : > { %v3643_v36 = vpop.eup %3642 }
 0x2eb   : > { %v2328_v13 = vadd.f32 1.0, %v3643_v36 }
 0x2ed   : > { %3644 = vrcp.f32 %v2328_v13 }
 0x2f7   : > { %v3645_v0 = vpop.eup %3644 }
 0x2f8   : > { %2331 = vst [vmem:[%s4066_s8] sm:$0x3f] %v3645_v0 }
 0x2f9 PF: > { %s19_s22 = sadd.s32 1, %s3800_s22   ;;  %s5030_s5 = sld [smem:[#allocation9_spill]] }
 0x2fa   : > { %p16_p11 = scmp.ge.s32.totalorder %s19_s22, 6   ;;  %s5031_s12 = smov %s3764_s13 }
 0x2fb   : > { %s5032_s13 = smov %s3768_s14  ;;  %s5033_s14 = smov %s3993_s9 }
 0x2fc   : > { %s5034_s15 = smov %s3776_s16  ;;  %s5035_s16 = smov %s3780_s17 }
 0x2fd   : > { %s5036_s17 = smov %s3998_s26  ;;  %s5037_s18 = smov %s3792_s20 }
 0x2fe   : > { %s5038_s19 = smov %s3796_s21  ;;  %s5039_s20 = smov %s5042_s23 }
 0x2ff   : > { %s5040_s21 = smov %s5030_s5  ;;  %18 = sbr.rel (!%p16_p11) target bundleno = 11 (0xb), region = 96 }
 0x306   :  { %2354 = vsyncpa [#allocation4], 1 }
 0x307   :  { %2356 = vsyncpa [#allocation4 + $0x1], 1 }
 0x308   :  { %2357 = vsyncpa [#allocation6], 1 }
 0x309   :  { %2359 = vsyncpa [#allocation6 + $0x1], 1 }

// kernel: _lambda_.2
= control target key start
LH: loop header
LB: loop body
LE: loop exit
PB: predicated region body
PF: predicated region fallthrough
CT: control target
= control target key end

     0   :  { %s11671_s0 = inlined_call_operand.hbm [shape: f32[2,128], index: 0, kind: input, shape index: {}]   ;;  %s11672_s1 = inlined_call_operand.hbm [shape: f32[4,8,2], index: 1, kind: input, shape index: {}]   ;;  %s11673_s2 = inlined_call_operand.hbm [shape: f32[512,64], index: 2, kind: input, shape index: {}]   ;;  %s11674_s3 = inlined_call_operand.hbm [shape: f32[1,64], index: 3, kind: input, shape index: {}]   ;;  %s11675_s4 = inlined_call_operand.hbm [shape: f32[1,64], index: 4, kind: input, shape index: {}]   ;;  %s11676_s5 = inlined_call_operand.hbm [shape: f32[4,32,8], index: 5, kind: input, shape index: {}]   ;;  %s11677_s6 = inlined_call_operand.hbm [shape: f32[256,32], index: 6, kind: input, shape index: {}]   ;;  %s11678_s7 = inlined_call_operand.hbm [shape: f32[1,32], index: 7, kind: input, shape index: {}]   ;;  %s11679_s8 = inlined_call_operand.hbm [shape: f32[1,32], index: 8, kind: input, shape index: {}]   ;;  %s11680_s9 = inlined_call_operand.hbm [shape: f32[4,128,32], index: 9, kind: input, shape index: {}]   ;;  %s11681_s10 = inlined_call_operand.hbm [shape: f32[128,16], index: 10, kind: input, shape index: {}]   ;;  %s11682_s11 = inlined_call_operand.hbm [shape: f32[1,16], index: 11, kind: input, shape index: {}]   ;;  %s11683_s12 = inlined_call_operand.hbm [shape: f32[1,16], index: 12, kind: input, shape index: {}]   ;;  %s11684_s13 = inlined_call_operand.hbm [shape: f32[4,512,128], index: 13, kind: input, shape index: {}]   ;;  %s11685_s14 = inlined_call_operand.hbm [shape: f32[64,16], index: 14, kind: input, shape index: {}]   ;;  %s11686_s15 = inlined_call_operand.hbm [shape: f32[1,16], index: 15, kind: input, shape index: {}]   ;;  %s11687_s16 = inlined_call_operand.hbm [shape: f32[1,16], index: 16, kind: input, shape index: {}]   ;;  %s11688_s17 = inlined_call_operand.vmem [shape: f32[512,16], index: 17, kind: output, shape index: {}]  }
   0x1   :  { %11733 = sst [smem:[#allocation71_spill]] %s11671_s0 }
   0x2   :  { %11734 = sst [smem:[#allocation72_spill]] %s11672_s1 }
   0x3   :  { %11735 = sst [smem:[#allocation73_spill]] %s11687_s16 }
   0x4   :  { %11736 = sst [smem:[#allocation74_spill]] %s11688_s17 }
   0x5   :  { %22 = vsyncpa [#allocation3], 0 }
   0x6   :  { %23 = vsyncpa [#allocation5], 0 }
   0x7   :  { %24 = vsyncpa [#allocation8], 0 }
   0x8   :  { %25 = vsyncpa [#allocation11], 0 }
   0x9   :  { %26 = vsyncpa [#allocation14], 0 }
   0xa   :  { %27 = vsyncpa [#allocation17], 0 }
   0xb   :  { %28 = vsyncpa [#allocation20], 0 }
   0xc   :  { %29 = vsyncpa [#allocation23], 0 }
   0xd   :  { %30 = vsyncpa [#allocation26], 0  ;;  %s9277_s24 = smov [#allocation4]   ;;  %s11737_s28 = sld [smem:[#allocation72_spill]] }
   0xe   :  { %s46_s25 = sshll.u32 %s9277_s24, 4  ;;  %s47_s25 = int_to_ptr.vmem [resolvable:$true] %s46_s25 }
  0x13   :  { %s8885_s29 = scalar_lea.hbm %s11737_s28, 512 }
  0x14   :  { %p8886_p0 = scmp.ne.s32.totalorder %s11737_s28, %s8885_s29  ;;  %p8889_p1 = scmp.lt.u32.totalorder %s8885_s29, %s11737_s28 }
  0x16   :  { %p8891_p2 = pnand %p8889_p1, %p8886_p0 }
  0x18   :  { %8894 = shalt.err (!%p8891_p2)
}
  0x19   :  { %s8895_s1 = scalar_lea.vmem %s47_s25, 512  ;;  %p8900_p4 = scmp.lt.s32.totalorder %s47_s25, %s47_s25 }
  0x1a   :  { %p8896_p3 = scmp.ne.s32.totalorder %s47_s25, %s8895_s1  ;;  %p8901_p5 = scmp.lt.s32.totalorder %s8895_s1, %s8895_s1 }
  0x1c   :  { %p8902_p6 = por %p8901_p5, %p8900_p4 }
  0x1e   :  { %p8903_p7 = pnand %p8902_p6, %p8896_p3 }
  0x20   :  { %8906 = shalt.err (!%p8903_p7)
}
  0x21   :  { %s9278_s20 = smov 128   ;;  %s9279_s21 = smov 8  }
  0x22   :  { %52 = dma.hbm_to_vmem [thread:$0]  %s11737_s28, 512, %s47_s25, [#allocation5], %s9278_s20, %s9278_s20, %s9279_s21  }
  0x23   :  { %s9280_s24 = smov [#allocation7]   ;;  %s9281_s27 = smov [#allocation10]  }
  0x24   :  { %s71_s26 = sshll.u32 %s9280_s24, 4  ;;  %s90_s29 = sshll.u32 %s9281_s27, 4  ;;  %s72_s26 = int_to_ptr.vmem [resolvable:$true] %s71_s26  ;;  %s91_s29 = int_to_ptr.vmem [resolvable:$true] %s90_s29 }
  0x25   :  { %s8907_s18 = scalar_lea.hbm %s11674_s3, 16 }
  0x26   :  { %p8908_p8 = scmp.ne.s32.totalorder %s11674_s3, %s8907_s18  ;;  %p8911_p9 = scmp.lt.u32.totalorder %s8907_s18, %s11674_s3 }
  0x28   :  { %p8913_p10 = pnand %p8911_p9, %p8908_p8 }
  0x2a   :  { %8916 = shalt.err (!%p8913_p10)
}
  0x2b   :  { %s8917_s25 = scalar_lea.vmem %s72_s26, 16  ;;  %s8921_s28 = scalar_lea.vmem %s72_s26, 32 }
  0x2c   :  { %p8918_p11 = scmp.ne.s32.totalorder %s72_s26, %s8917_s25  ;;  %p8922_p12 = scmp.lt.s32.totalorder %s72_s26, %s72_s26 }
  0x2d   :  { %p8923_p13 = scmp.lt.s32.totalorder %s8921_s28, %s8917_s25 }
  0x2f   :  { %p8924_p0 = por %p8923_p13, %p8922_p12 }
  0x31   :  { %p8925_p1 = pnand %p8924_p0, %p8918_p11 }
  0x33   :  { %8928 = shalt.err (!%p8925_p1)
}
  0x34   :  { %74 = dma.hbm_to_vmem [thread:$0]  %s11674_s3, 16, %s72_s26, [#allocation8]  }
  0x35   :  { %s8929_s16 = scalar_lea.hbm %s11676_s5, 2048 }
  0x36   :  { %p8930_p2 = scmp.ne.s32.totalorder %s11676_s5, %s8929_s16  ;;  %p8933_p3 = scmp.lt.u32.totalorder %s8929_s16, %s11676_s5 }
  0x38   :  { %p8935_p4 = pnand %p8933_p3, %p8930_p2 }
  0x3a   :  { %8938 = shalt.err (!%p8935_p4)
}
  0x3b   :  { %s8939_s19 = scalar_lea.vmem %s91_s29, 2048  ;;  %p8944_p6 = scmp.lt.s32.totalorder %s91_s29, %s91_s29 }
  0x3c   :  { %p8940_p5 = scmp.ne.s32.totalorder %s91_s29, %s8939_s19  ;;  %p8945_p7 = scmp.lt.s32.totalorder %s8939_s19, %s8939_s19 }
  0x3e   :  { %p8946_p8 = por %p8945_p7, %p8944_p6 }
  0x40   :  { %p8947_p9 = pnand %p8946_p8, %p8940_p5 }
  0x42   :  { %8950 = shalt.err (!%p8947_p9)
}
  0x43   :  { %96 = dma.hbm_to_vmem [thread:$0]  %s11676_s5, 2048, %s91_s29, [#allocation11], %s9278_s20, %s9278_s20, %s9279_s21  }
  0x44   :  { %s9282_s1 = smov [#allocation13]   ;;  %s9283_s28 = smov [#allocation16]  }
  0x45   :  { %s115_s25 = sshll.u32 %s9282_s1, 4  ;;  %s134_s22 = sshll.u32 %s9283_s28, 4  ;;  %s116_s25 = int_to_ptr.vmem [resolvable:$true] %s115_s25  ;;  %s135_s22 = int_to_ptr.vmem [resolvable:$true] %s134_s22 }
  0x46   :  { %s8951_s27 = scalar_lea.hbm %s11678_s7, 16 }
  0x47   :  { %p8952_p10 = scmp.ne.s32.totalorder %s11678_s7, %s8951_s27  ;;  %p8955_p11 = scmp.lt.u32.totalorder %s8951_s27, %s11678_s7 }
  0x49   :  { %p8957_p12 = pnand %p8955_p11, %p8952_p10 }
  0x4b   :  { %8960 = shalt.err (!%p8957_p12)
}
  0x4c   :  { %s8961_s5 = scalar_lea.vmem %s116_s25, 16  ;;  %s8965_s29 = scalar_lea.vmem %s116_s25, 32 }
  0x4d   :  { %p8962_p13 = scmp.ne.s32.totalorder %s116_s25, %s8961_s5  ;;  %p8966_p0 = scmp.lt.s32.totalorder %s116_s25, %s116_s25 }
  0x4e   :  { %p8967_p1 = scmp.lt.s32.totalorder %s8965_s29, %s8961_s5 }
  0x50   :  { %p8968_p2 = por %p8967_p1, %p8966_p0 }
  0x52   :  { %p8969_p3 = pnand %p8968_p2, %p8962_p13 }
  0x54   :  { %8972 = shalt.err (!%p8969_p3)
}
  0x55   :  { %118 = dma.hbm_to_vmem [thread:$0]  %s11678_s7, 16, %s116_s25, [#allocation14]  }
  0x56   :  { %s8973_s1 = scalar_lea.hbm %s11680_s9, 8192 }
  0x57   :  { %p8974_p4 = scmp.ne.s32.totalorder %s11680_s9, %s8973_s1  ;;  %p8977_p5 = scmp.lt.u32.totalorder %s8973_s1, %s11680_s9 }
  0x59   :  { %p8979_p6 = pnand %p8977_p5, %p8974_p4 }
  0x5b   :  { %8982 = shalt.err (!%p8979_p6)
}
  0x5c   :  { %s8983_s16 = scalar_lea.vmem %s135_s22, 8192  ;;  %p8988_p8 = scmp.lt.s32.totalorder %s135_s22, %s135_s22 }
  0x5d   :  { %p8984_p7 = scmp.ne.s32.totalorder %s135_s22, %s8983_s16  ;;  %p8989_p9 = scmp.lt.s32.totalorder %s8983_s16, %s8983_s16 }
  0x5f   :  { %p8990_p10 = por %p8989_p9, %p8988_p8 }
  0x61   :  { %p8991_p11 = pnand %p8990_p10, %p8984_p7 }
  0x63   :  { %8994 = shalt.err (!%p8991_p11)
}
  0x64   :  { %140 = dma.hbm_to_vmem [thread:$0]  %s11680_s9, 8192, %s135_s22, [#allocation17], %s9278_s20, %s9278_s20, %s9279_s21  }
  0x65   :  { %s9284_s17 = smov [#allocation19]   ;;  %s9285_s30 = smov [#allocation22]  }
  0x66   :  { %s159_s0 = sshll.u32 %s9284_s17, 4  ;;  %s178_s5 = sshll.u32 %s9285_s30, 4  ;;  %s160_s0 = int_to_ptr.vmem [resolvable:$true] %s159_s0  ;;  %s179_s5 = int_to_ptr.vmem [resolvable:$true] %s178_s5 }
  0x67   :  { %s8995_s19 = scalar_lea.hbm %s11682_s11, 16 }
  0x68   :  { %p8996_p12 = scmp.ne.s32.totalorder %s11682_s11, %s8995_s19  ;;  %p8999_p13 = scmp.lt.u32.totalorder %s8995_s19, %s11682_s11 }
  0x6a   :  { %p9001_p0 = pnand %p8999_p13, %p8996_p12 }
  0x6c   :  { %9004 = shalt.err (!%p9001_p0)
}
  0x6d   :  { %s9005_s9 = scalar_lea.vmem %s160_s0, 16  ;;  %s9009_s22 = scalar_lea.vmem %s160_s0, 32 }
  0x6e   :  { %p9006_p1 = scmp.ne.s32.totalorder %s160_s0, %s9005_s9  ;;  %p9010_p2 = scmp.lt.s32.totalorder %s160_s0, %s160_s0 }
  0x6f   :  { %p9011_p3 = scmp.lt.s32.totalorder %s9009_s22, %s9005_s9 }
  0x71   :  { %p9012_p4 = por %p9011_p3, %p9010_p2 }
  0x73   :  { %p9013_p5 = pnand %p9012_p4, %p9006_p1 }
  0x75   :  { %9016 = shalt.err (!%p9013_p5)
}
  0x76   :  { %162 = dma.hbm_to_vmem [thread:$0]  %s11682_s11, 16, %s160_s0, [#allocation20]  }
  0x77   :  { %s9017_s7 = scalar_lea.hbm %s11684_s13, 32768 }
  0x78   :  { %p9018_p6 = scmp.ne.s32.totalorder %s11684_s13, %s9017_s7  ;;  %p9021_p7 = scmp.lt.u32.totalorder %s9017_s7, %s11684_s13 }
  0x7a   :  { %p9023_p8 = pnand %p9021_p7, %p9018_p6 }
  0x7c   :  { %9026 = shalt.err (!%p9023_p8)
}
  0x7d   :  { %s9027_s18 = scalar_lea.vmem %s179_s5, 32768  ;;  %p9032_p10 = scmp.lt.s32.totalorder %s179_s5, %s179_s5 }
  0x7e   :  { %p9028_p9 = scmp.ne.s32.totalorder %s179_s5, %s9027_s18  ;;  %p9033_p11 = scmp.lt.s32.totalorder %s9027_s18, %s9027_s18 }
  0x80   :  { %p9034_p12 = por %p9033_p11, %p9032_p10 }
  0x82   :  { %p9035_p13 = pnand %p9034_p12, %p9028_p9 }
  0x84   :  { %9038 = shalt.err (!%p9035_p13)
}
  0x85   :  { %184 = dma.hbm_to_vmem [thread:$0]  %s11684_s13, 32768, %s179_s5, [#allocation23], %s9278_s20, %s9278_s20, %s9279_s21  }
  0x86   :  { %s9286_s19 = smov [#allocation25]   ;;  %s9287_s26 = smov [#allocation2]  }
  0x87   :  { %s203_s3 = sshll.u32 %s9286_s19, 4  ;;  %s37_s1 = sshll.u32 %s9287_s26, 4  ;;  %s204_s3 = int_to_ptr.vmem [resolvable:$true] %s203_s3  ;;  %s38_s1 = int_to_ptr.vmem [resolvable:$true] %s37_s1 }
  0x88   :  { %s9039_s22 = scalar_lea.hbm %s11686_s15, 16 }
  0x89   :  { %p9040_p0 = scmp.ne.s32.totalorder %s11686_s15, %s9039_s22  ;;  %p9043_p1 = scmp.lt.u32.totalorder %s9039_s22, %s11686_s15 }
  0x8b   :  { %p9045_p2 = pnand %p9043_p1, %p9040_p0 }
  0x8d   :  { %9048 = shalt.err (!%p9045_p2)
}
  0x8e   :  { %s9049_s13 = scalar_lea.vmem %s204_s3, 16  ;;  %s9053_s5 = scalar_lea.vmem %s204_s3, 32 }
  0x8f   :  { %p9050_p3 = scmp.ne.s32.totalorder %s204_s3, %s9049_s13  ;;  %p9054_p4 = scmp.lt.s32.totalorder %s204_s3, %s204_s3 }
  0x90   :  { %p9055_p5 = scmp.lt.s32.totalorder %s9053_s5, %s9049_s13 }
  0x92   :  { %p9056_p6 = por %p9055_p5, %p9054_p4 }
  0x94   :  { %p9057_p7 = pnand %p9056_p6, %p9050_p3 }
  0x96   :  { %9060 = shalt.err (!%p9057_p7)
}
  0x97   :  { %206 = dma.hbm_to_vmem [thread:$0]  %s11686_s15, 16, %s204_s3, [#allocation26]  }
  0x98   :  { %s11738_s29 = sld [smem:[#allocation71_spill]] }
  0x9e   :  { %s9061_s18 = scalar_lea.hbm %s11738_s29, 32 }
  0x9f   :  { %p9062_p8 = scmp.ne.s32.totalorder %s11738_s29, %s9061_s18  ;;  %p9065_p9 = scmp.lt.u32.totalorder %s9061_s18, %s11738_s29 }
  0xa1   :  { %p9067_p10 = pnand %p9065_p9, %p9062_p8 }
  0xa3   :  { %9070 = shalt.err (!%p9067_p10)
}
  0xa4   :  { %s9071_s28 = scalar_lea.vmem %s38_s1, 32  ;;  %p9076_p12 = scmp.lt.s32.totalorder %s38_s1, %s38_s1 }
  0xa5   :  { %p9072_p11 = scmp.ne.s32.totalorder %s38_s1, %s9071_s28  ;;  %p9077_p13 = scmp.lt.s32.totalorder %s9071_s28, %s9071_s28 }
  0xa7   :  { %p9078_p0 = por %p9077_p13, %p9076_p12 }
  0xa9   :  { %p9079_p1 = pnand %p9078_p0, %p9072_p11 }
  0xab   :  { %9082 = shalt.err (!%p9079_p1)
}
  0xac   :  { %40 = dma.hbm_to_vmem [thread:$0]  %s11738_s29, 32, %s38_s1, [#allocation3]  }
  0xad   :  { %s9288_s9 = smov [#allocation6]   ;;  %s9289_s23 = smov [#allocation9]  }
  0xae   :  { %s58_s22 = sshll.u32 %s9288_s9, 4  ;;  %s81_s24 = sshll.u32 %s9289_s23, 4  ;;  %s59_s22 = int_to_ptr.vmem [resolvable:$true] %s58_s22  ;;  %s82_s24 = int_to_ptr.vmem [resolvable:$true] %s81_s24 }
  0xaf   :  { %s9083_s13 = scalar_lea.hbm %s11673_s2, 8192 }
  0xb0   :  { %p9084_p2 = scmp.ne.s32.totalorder %s11673_s2, %s9083_s13  ;;  %p9087_p3 = scmp.lt.u32.totalorder %s9083_s13, %s11673_s2 }
  0xb2   :  { %p9089_p4 = pnand %p9087_p3, %p9084_p2 }
  0xb4   :  { %9092 = shalt.err (!%p9089_p4)
}
  0xb5   :  { %s9093_s1 = scalar_lea.vmem %s59_s22, 8192  ;;  %p9098_p6 = scmp.lt.s32.totalorder %s59_s22, %s59_s22 }
  0xb6   :  { %p9094_p5 = scmp.ne.s32.totalorder %s59_s22, %s9093_s1  ;;  %p9099_p7 = scmp.lt.s32.totalorder %s9093_s1, %s9093_s1 }
  0xb8   :  { %p9100_p8 = por %p9099_p7, %p9098_p6 }
  0xba   :  { %p9101_p9 = pnand %p9100_p8, %p9094_p5 }
  0xbc   :  { %9104 = shalt.err (!%p9101_p9)
}
  0xbd   :  { %64 = dma.hbm_to_vmem [thread:$0]  %s11673_s2, 8192, %s59_s22, [#allocation5], %s9278_s20, %s9278_s20, %s9279_s21  }
  0xbe   :  { %s9105_s0 = scalar_lea.hbm %s11675_s4, 16 }
  0xbf   :  { %p9106_p10 = scmp.ne.s32.totalorder %s11675_s4, %s9105_s0  ;;  %p9109_p11 = scmp.lt.u32.totalorder %s9105_s0, %s11675_s4 }
  0xc1   :  { %p9111_p12 = pnand %p9109_p11, %p9106_p10 }
  0xc3   :  { %9114 = shalt.err (!%p9111_p12)
}
  0xc4   :  { %s9115_s3 = scalar_lea.vmem %s82_s24, 16  ;;  %s9119_s9 = scalar_lea.vmem %s82_s24, 32 }
  0xc5   :  { %p9116_p13 = scmp.ne.s32.totalorder %s82_s24, %s9115_s3  ;;  %p9120_p0 = scmp.lt.s32.totalorder %s82_s24, %s82_s24 }
  0xc6   :  { %p9121_p1 = scmp.lt.s32.totalorder %s9119_s9, %s9115_s3 }
  0xc8   :  { %p9122_p2 = por %p9121_p1, %p9120_p0 }
  0xca   :  { %p9123_p3 = pnand %p9122_p2, %p9116_p13 }
  0xcc   :  { %9126 = shalt.err (!%p9123_p3)
}
  0xcd   :  { %84 = dma.hbm_to_vmem [thread:$0]  %s11675_s4, 16, %s82_s24, [#allocation8]  }
  0xce   :  { %s9290_s23 = smov [#allocation12]   ;;  %s9291_s16 = smov [#allocation15]  }
  0xcf   :  { %s102_s27 = sshll.u32 %s9290_s23, 4  ;;  %s125_s13 = sshll.u32 %s9291_s16, 4  ;;  %s103_s27 = int_to_ptr.vmem [resolvable:$true] %s102_s27  ;;  %s126_s13 = int_to_ptr.vmem [resolvable:$true] %s125_s13 }
  0xd0   :  { %s9127_s25 = scalar_lea.hbm %s11677_s6, 4096 }
  0xd1   :  { %p9128_p4 = scmp.ne.s32.totalorder %s11677_s6, %s9127_s25  ;;  %p9131_p5 = scmp.lt.u32.totalorder %s9127_s25, %s11677_s6 }
  0xd3   :  { %p9133_p6 = pnand %p9131_p5, %p9128_p4 }
  0xd5   :  { %9136 = shalt.err (!%p9133_p6)
}
  0xd6   :  { %s9137_s4 = scalar_lea.vmem %s103_s27, 4096  ;;  %p9142_p8 = scmp.lt.s32.totalorder %s103_s27, %s103_s27 }
  0xd7   :  { %p9138_p7 = scmp.ne.s32.totalorder %s103_s27, %s9137_s4  ;;  %p9143_p9 = scmp.lt.s32.totalorder %s9137_s4, %s9137_s4 }
  0xd9   :  { %p9144_p10 = por %p9143_p9, %p9142_p8 }
  0xdb   :  { %p9145_p11 = pnand %p9144_p10, %p9138_p7 }
  0xdd   :  { %9148 = shalt.err (!%p9145_p11)
}
  0xde   :  { %108 = dma.hbm_to_vmem [thread:$0]  %s11677_s6, 4096, %s103_s27, [#allocation11], %s9278_s20, %s9278_s20, %s9279_s21  }
  0xdf   :  { %s9149_s19 = scalar_lea.hbm %s11679_s8, 16 }
  0xe0   :  { %p9150_p12 = scmp.ne.s32.totalorder %s11679_s8, %s9149_s19  ;;  %p9153_p13 = scmp.lt.u32.totalorder %s9149_s19, %s11679_s8 }
  0xe2   :  { %p9155_p0 = pnand %p9153_p13, %p9150_p12 }
  0xe4   :  { %9158 = shalt.err (!%p9155_p0)
}
  0xe5   :  { %s9159_s9 = scalar_lea.vmem %s126_s13, 16  ;;  %s9163_s2 = scalar_lea.vmem %s126_s13, 32 }
  0xe6   :  { %p9160_p1 = scmp.ne.s32.totalorder %s126_s13, %s9159_s9  ;;  %p9164_p2 = scmp.lt.s32.totalorder %s126_s13, %s126_s13 }
  0xe7   :  { %p9165_p3 = scmp.lt.s32.totalorder %s9163_s2, %s9159_s9 }
  0xe9   :  { %p9166_p4 = por %p9165_p3, %p9164_p2 }
  0xeb   :  { %p9167_p5 = pnand %p9166_p4, %p9160_p1 }
  0xed   :  { %9170 = shalt.err (!%p9167_p5)
}
  0xee   :  { %128 = dma.hbm_to_vmem [thread:$0]  %s11679_s8, 16, %s126_s13, [#allocation14]  }
  0xef   :  { %s9292_s23 = smov [#allocation18]   ;;  %s9293_s16 = smov [#allocation21]  }
  0xf0   :  { %s146_s27 = sshll.u32 %s9292_s23, 4  ;;  %s169_s5 = sshll.u32 %s9293_s16, 4  ;;  %s147_s27 = int_to_ptr.vmem [resolvable:$true] %s146_s27  ;;  %s170_s5 = int_to_ptr.vmem [resolvable:$true] %s169_s5 }
  0xf1   :  { %s9171_s17 = scalar_lea.hbm %s11681_s10, 2048 }
  0xf2   :  { %p9172_p6 = scmp.ne.s32.totalorder %s11681_s10, %s9171_s17  ;;  %p9175_p7 = scmp.lt.u32.totalorder %s9171_s17, %s11681_s10 }
  0xf4   :  { %p9177_p8 = pnand %p9175_p7, %p9172_p6 }
  0xf6   :  { %9180 = shalt.err (!%p9177_p8)
}
  0xf7   :  { %s9181_s8 = scalar_lea.vmem %s147_s27, 2048  ;;  %p9186_p10 = scmp.lt.s32.totalorder %s147_s27, %s147_s27 }
  0xf8   :  { %p9182_p9 = scmp.ne.s32.totalorder %s147_s27, %s9181_s8  ;;  %p9187_p11 = scmp.lt.s32.totalorder %s9181_s8, %s9181_s8 }
  0xfa   :  { %p9188_p12 = por %p9187_p11, %p9186_p10 }
  0xfc   :  { %p9189_p13 = pnand %p9188_p12, %p9182_p9 }
  0xfe   :  { %9192 = shalt.err (!%p9189_p13)
}
  0xff   :  { %152 = dma.hbm_to_vmem [thread:$0]  %s11681_s10, 2048, %s147_s27, [#allocation17], %s9278_s20, %s9278_s20, %s9279_s21  }
 0x100   :  { %s9193_s0 = scalar_lea.hbm %s11683_s12, 16 }
 0x101   :  { %p9194_p0 = scmp.ne.s32.totalorder %s11683_s12, %s9193_s0  ;;  %p9197_p1 = scmp.lt.u32.totalorder %s9193_s0, %s11683_s12 }
 0x103   :  { %p9199_p2 = pnand %p9197_p1, %p9194_p0 }
 0x105   :  { %9202 = shalt.err (!%p9199_p2)
}
 0x106   :  { %s9203_s3 = scalar_lea.vmem %s170_s5, 16  ;;  %s9207_s9 = scalar_lea.vmem %s170_s5, 32 }
 0x107   :  { %p9204_p3 = scmp.ne.s32.totalorder %s170_s5, %s9203_s3  ;;  %p9208_p4 = scmp.lt.s32.totalorder %s170_s5, %s170_s5 }
 0x108   :  { %p9209_p5 = scmp.lt.s32.totalorder %s9207_s9, %s9203_s3 }
 0x10a   :  { %p9210_p6 = por %p9209_p5, %p9208_p4 }
 0x10c   :  { %p9211_p7 = pnand %p9210_p6, %p9204_p3 }
 0x10e   :  { %9214 = shalt.err (!%p9211_p7)
}
 0x10f   :  { %172 = dma.hbm_to_vmem [thread:$0]  %s11683_s12, 16, %s170_s5, [#allocation20]  }
 0x110   :  { %s9294_s6 = smov [#allocation24]   ;;  %s9295_s23 = smov [#allocation27]  }
 0x111   :  { %s190_s22 = sshll.u32 %s9294_s6, 4  ;;  %s213_s27 = sshll.u32 %s9295_s23, 4  ;;  %s191_s22 = int_to_ptr.vmem [resolvable:$true] %s190_s22  ;;  %s214_s27 = int_to_ptr.vmem [resolvable:$true] %s213_s27 }
 0x112   :  { %s9215_s25 = scalar_lea.hbm %s11685_s14, 1024 }
 0x113   :  { %p9216_p8 = scmp.ne.s32.totalorder %s11685_s14, %s9215_s25  ;;  %p9219_p9 = scmp.lt.u32.totalorder %s9215_s25, %s11685_s14 }
 0x115   :  { %p9221_p10 = pnand %p9219_p9, %p9216_p8 }
 0x117   :  { %9224 = shalt.err (!%p9221_p10)
}
 0x118   :  { %s9225_s12 = scalar_lea.vmem %s191_s22, 1024  ;;  %p9230_p12 = scmp.lt.s32.totalorder %s191_s22, %s191_s22 }
 0x119   :  { %p9226_p11 = scmp.ne.s32.totalorder %s191_s22, %s9225_s12  ;;  %p9231_p13 = scmp.lt.s32.totalorder %s9225_s12, %s9225_s12 }
 0x11b   :  { %p9232_p0 = por %p9231_p13, %p9230_p12 }
 0x11d   :  { %p9233_p1 = pnand %p9232_p0, %p9226_p11 }
 0x11f   :  { %9236 = shalt.err (!%p9233_p1)
}
 0x120   :  { %196 = dma.hbm_to_vmem [thread:$0]  %s11685_s14, 1024, %s191_s22, [#allocation23], %s9278_s20, %s9278_s20, %s9279_s21  }
 0x121   :  { %s11739_s24 = sld [smem:[#allocation73_spill]] }
 0x127   :  { %s9237_s18 = scalar_lea.hbm %s11739_s24, 16 }
 0x128   :  { %p9238_p2 = scmp.ne.s32.totalorder %s11739_s24, %s9237_s18  ;;  %p9241_p3 = scmp.lt.u32.totalorder %s9237_s18, %s11739_s24 }
 0x12a   :  { %p9243_p4 = pnand %p9241_p3, %p9238_p2 }
 0x12c   :  { %9246 = shalt.err (!%p9243_p4)
}
 0x12d   :  { %s9247_s28 = scalar_lea.vmem %s214_s27, 16  ;;  %s9251_s15 = scalar_lea.vmem %s214_s27, 32 }
 0x12e   :  { %p9248_p5 = scmp.ne.s32.totalorder %s214_s27, %s9247_s28  ;;  %p9252_p6 = scmp.lt.s32.totalorder %s214_s27, %s214_s27 }
 0x12f   :  { %p9253_p7 = scmp.lt.s32.totalorder %s9251_s15, %s9247_s28 }
 0x131   :  { %p9254_p8 = por %p9253_p7, %p9252_p6 }
 0x133   :  { %p9255_p9 = pnand %p9254_p8, %p9248_p5 }
 0x135   :  { %9258 = shalt.err (!%p9255_p9)
}
 0x136   :  { %216 = dma.hbm_to_vmem [thread:$0]  %s11739_s24, 16, %s214_s27, [#allocation26]  }
 0x137   :  { %9259 = dma.done.wait [#allocation3], 32  }
 0x138   :  { %9260 = vsyncadd [#allocation3], 4294967264 }
 0x139   :  { %9261 = dma.done.wait [#allocation5], 8704  }
 0x13a   :  { %9262 = vsyncadd [#allocation5], 4294958592 }
 0x13b   :  { %9263 = dma.done.wait [#allocation8], 32  }
 0x13c   :  { %9264 = vsyncadd [#allocation8], 4294967264 }
 0x13d   :  { %9265 = dma.done.wait [#allocation11], 6144  }
 0x13e   :  { %9266 = vsyncadd [#allocation11], 4294961152 }
 0x13f   :  { %9267 = dma.done.wait [#allocation14], 32  }
 0x140   :  { %9268 = vsyncadd [#allocation14], 4294967264 }
 0x141   :  { %9269 = dma.done.wait [#allocation17], 10240  }
 0x142   :  { %9270 = vsyncadd [#allocation17], 4294957056 }
 0x143   :  { %9271 = dma.done.wait [#allocation20], 32  }
 0x144   :  { %9272 = vsyncadd [#allocation20], 4294967264 }
 0x145   :  { %9273 = dma.done.wait [#allocation23], 33792  }
 0x146   :  { %9274 = vsyncadd [#allocation23], 4294933504 }
 0x147   :  { %9275 = dma.done.wait [#allocation26], 32  }
 0x148   :  { %9276 = vsyncadd [#allocation26], 4294967264  ;;  %v9296_v0 = vmov 0.0|0.0   ;;  %vm9297_vm0 = vmmov 0   ;;  %v9298_v1 = vmov 0.0   ;;  %v356_v2 = vld [vmem:[#allocation6 + $0x80] sm:$0xff] }
 0x149   :  { %8253 = vmatprep.subr.bf16.mxu1 %v9296_v0  ;;  %8229 = vmatprep.subr.bf16.mxu0 %v9296_v0  ;;  %v357_v3 = vld [vmem:[#allocation6 + $0x88] sm:$0xff]  ;;  %v358_v4 = vld [vmem:[#allocation6 + $0x90] sm:$0xff]  ;;  %v359_v6 = vld [vmem:[#allocation6 + $0x98] sm:$0xff]  ;;  %vm448_vm1 = vcmask 1041408   ;;  %vm444_vm2 = vcmask 15360   ;;  %vm928_vm3 = vcmask 523264  }
 0x14a   :  { %7220 = vmatprep.mubr.msk.f32.mxu1 %vm9297_vm0, %v9298_v1  ;;  %7185 = vmatprep.mubr.msk.f32.mxu0 %vm9297_vm0, %v9298_v1  ;;  %v8254_v5 = vpack.c.bf16 %v357_v3, %v356_v2  ;;  %v8257_v7 = vpack.c.bf16 %v359_v6, %v358_v4  ;;  %v360_v8 = vld [vmem:[#allocation6 + $0xa0] sm:$0xff]  ;;  %v361_v9 = vld [vmem:[#allocation6 + $0xa8] sm:$0xff]  ;;  %v271_v13 = vld [vmem:[#allocation6 + $0x10] sm:$0xff]  ;;  %vm1135_vm4 = vcmask 64512   ;;  %vm1698_vm5 = vcmask 261120   ;;  %s11859_s9 = sld [smem:[#allocation74_spill]] }
 0x14b   :  { %v269_v10 = vld [vmem:[#allocation6] sm:$0xff]  ;;  %v270_v11 = vld [vmem:[#allocation6 + $0x8] sm:$0xff]  ;;  %v272_v14 = vld [vmem:[#allocation6 + $0x18] sm:$0xff]  ;;  %v8260_v15 = vpack.c.bf16 %v361_v9, %v360_v8  ;;  %vm3000_vm6 = vcmask 130048  }
 0x14c   :  { %8255 = vmatpush3.bf16.msra.mxu1 %v8254_v5  ;;  %v8230_v12 = vpack.c.bf16 %v270_v11, %v269_v10  ;;  %v362_v16 = vld [vmem:[#allocation6 + $0xb0] sm:$0xff]  ;;  %v8233_v17 = vpack.c.bf16 %v272_v14, %v271_v13  ;;  %v363_v18 = vld [vmem:[#allocation6 + $0xb8] sm:$0xff]  ;;  %v273_v19 = vld [vmem:[#allocation6 + $0x20] sm:$0xff] }
 0x14d   :  { %8256 = vmatprep.subr.bf16.mxu1 %v9296_v0  ;;  %v274_v20 = vld [vmem:[#allocation6 + $0x28] sm:$0xff]  ;;  %v8263_v21 = vpack.c.bf16 %v363_v18, %v362_v16  ;;  %v364_v22 = vld [vmem:[#allocation6 + $0xc0] sm:$0xff]  ;;  %v275_v25 = vld [vmem:[#allocation6 + $0x30] sm:$0xff] }
 0x14e   :  { %8231 = vmatpush3.bf16.msra.mxu0 %v8230_v12  ;;  %v8236_v23 = vpack.c.bf16 %v274_v20, %v273_v19  ;;  %v365_v24 = vld [vmem:[#allocation6 + $0xc8] sm:$0xff]  ;;  %v276_v26 = vld [vmem:[#allocation6 + $0x38] sm:$0xff]  ;;  %v366_v28 = vld [vmem:[#allocation6 + $0xd0] sm:$0xff] }
 0x14f   :  { %8232 = vmatprep.subr.bf16.mxu0 %v9296_v0  ;;  %v8266_v27 = vpack.c.bf16 %v365_v24, %v364_v22  ;;  %v8239_v29 = vpack.c.bf16 %v276_v26, %v275_v25  ;;  %v367_v30 = vld [vmem:[#allocation6 + $0xd8] sm:$0xff]  ;;  %v277_v31 = vld [vmem:[#allocation6 + $0x40] sm:$0xff]  ;;  %v278_v32 = vld [vmem:[#allocation6 + $0x48] sm:$0xff] }
 0x150   :  { %8258 = vmatpush3.bf16.msra.mxu1 %v8257_v7  ;;  %v8269_v33 = vpack.c.bf16 %v367_v30, %v366_v28  ;;  %v368_v34 = vld [vmem:[#allocation6 + $0xe0] sm:$0xff]  ;;  %v8242_v35 = vpack.c.bf16 %v278_v32, %v277_v31  ;;  %v369_v36 = vld [vmem:[#allocation6 + $0xe8] sm:$0xff]  ;;  %v279_v37 = vld [vmem:[#allocation6 + $0x50] sm:$0xff] }
 0x151   :  { %8259 = vmatprep.subr.bf16.mxu1 %v9296_v0  ;;  %v280_v38 = vld [vmem:[#allocation6 + $0x58] sm:$0xff]  ;;  %v8272_v39 = vpack.c.bf16 %v369_v36, %v368_v34  ;;  %v370_v40 = vld [vmem:[#allocation6 + $0xf0] sm:$0xff]  ;;  %v281_v43 = vld [vmem:[#allocation6 + $0x60] sm:$0xff] }
 0x152   :  { %8234 = vmatpush3.bf16.msra.mxu0 %v8233_v17  ;;  %v8245_v41 = vpack.c.bf16 %v280_v38, %v279_v37  ;;  %v371_v42 = vld [vmem:[#allocation6 + $0xf8] sm:$0xff]  ;;  %v282_v44 = vld [vmem:[#allocation6 + $0x68] sm:$0xff]  ;;  %v598_v46 = vld [vmem:[#allocation6 + $0x100] sm:$0xff] }
 0x153   :  { %8235 = vmatprep.subr.bf16.mxu0 %v9296_v0  ;;  %v8275_v45 = vpack.c.bf16 %v371_v42, %v370_v40  ;;  %v8248_v47 = vpack.c.bf16 %v282_v44, %v281_v43  ;;  %v599_v48 = vld [vmem:[#allocation6 + $0x108] sm:$0xff]  ;;  %v283_v49 = vld [vmem:[#allocation6 + $0x70] sm:$0xff]  ;;  %v284_v50 = vld [vmem:[#allocation6 + $0x78] sm:$0xff] }
 0x154   :  { %8261 = vmatpush3.bf16.msra.mxu1 %v8260_v15  ;;  %v9636_v51 = vld [vmem:[#allocation2] sm:$0x3]  ;;  %v8278_v52 = vpack.c.bf16 %v599_v48, %v598_v46  ;;  %v8251_v53 = vpack.c.bf16 %v284_v50, %v283_v49  ;;  %v600_v54 = vld [vmem:[#allocation6 + $0x110] sm:$0xff]  ;;  %v602_v57 = vld [vmem:[#allocation6 + $0x120] sm:$0xff] }
 0x155   :  { %8262 = vmatprep.subr.bf16.mxu1 %v9296_v0  ;;  %v601_v55 = vld [vmem:[#allocation6 + $0x118] sm:$0xff]  ;;  %v603_v58 = vld [vmem:[#allocation6 + $0x128] sm:$0xff]  ;;  %v604_v60 = vld [vmem:[#allocation6 + $0x130] sm:$0xff] }
 0x156   :  { %8237 = vmatpush3.bf16.msra.mxu0 %v8236_v23  ;;  %v8281_v56 = vpack.c.bf16 %v601_v55, %v600_v54  ;;  %v8284_v59 = vpack.c.bf16 %v603_v58, %v602_v57  ;;  %v605_v61 = vld [vmem:[#allocation6 + $0x138] sm:$0xff]  ;;  %v606_v63 = vld [vmem:[#allocation6 + $0x140] sm:$0xff]  ;;  %v607_v2 = vld [vmem:[#allocation6 + $0x148] sm:$0xff] }
 0x157   :  { %8238 = vmatprep.subr.bf16.mxu0 %v9296_v0  ;;  %v8287_v62 = vpack.c.bf16 %v605_v61, %v604_v60  ;;  %v8290_v3 = vpack.c.bf16 %v607_v2, %v606_v63  ;;  %v608_v4 = vld [vmem:[#allocation6 + $0x150] sm:$0xff]  ;;  %v609_v5 = vld [vmem:[#allocation6 + $0x158] sm:$0xff]  ;;  %v610_v7 = vld [vmem:[#allocation6 + $0x160] sm:$0xff] }
 0x158   :  { %8264 = vmatpush3.bf16.msra.mxu1 %v8263_v21  ;;  %v8293_v6 = vpack.c.bf16 %v609_v5, %v608_v4  ;;  %v611_v8 = vld [vmem:[#allocation6 + $0x168] sm:$0xff]  ;;  %v612_v10 = vld [vmem:[#allocation6 + $0x170] sm:$0xff]  ;;  %v613_v11 = vld [vmem:[#allocation6 + $0x178] sm:$0xff] }
 0x159   :  { %8265 = vmatprep.subr.bf16.mxu1 %v9296_v0  ;;  %v8296_v9 = vpack.c.bf16 %v611_v8, %v610_v7  ;;  %v8299_v12 = vpack.c.bf16 %v613_v11, %v612_v10  ;;  %v443_v13 = vld [vmem:[#allocation4 + $0x8] sm:$0xff]  ;;  %v355_v18 = vld [vmem:[#allocation4] sm:$0xff]  ;;  %v685_v21 = vld [vmem:[#allocation4 + $0x10] sm:$0xff] }
 0x15a   :  { %8240 = vmatpush3.bf16.msra.mxu0 %v8239_v29  ;;  %v763_v19 = vld [vmem:[#allocation6 + $0x180] sm:$0xff]  ;;  %v764_v20 = vld [vmem:[#allocation6 + $0x188] sm:$0xff]  ;;  %v765_v24 = vld [vmem:[#allocation6 + $0x190] sm:$0xff] }
 0x15b   :  { %8241 = vmatprep.subr.bf16.mxu0 %v9296_v0  ;;  %v8302_v22 = vpack.c.bf16 %v764_v20, %v763_v19  ;;  %v766_v25 = vld [vmem:[#allocation6 + $0x198] sm:$0xff]  ;;  %v767_v28 = vld [vmem:[#allocation6 + $0x1a0] sm:$0xff]  ;;  %v768_v29 = vld [vmem:[#allocation6 + $0x1a8] sm:$0xff] }
 0x15c   :  { %8267 = vmatpush3.bf16.msra.mxu1 %v8266_v27  ;;  %v8305_v27 = vpack.c.bf16 %v766_v25, %v765_v24  ;;  %v8308_v30 = vpack.c.bf16 %v768_v29, %v767_v28  ;;  %v769_v31 = vld [vmem:[#allocation6 + $0x1b0] sm:$0xff]  ;;  %v770_v32 = vld [vmem:[#allocation6 + $0x1b8] sm:$0xff]  ;;  %v771_v34 = vld [vmem:[#allocation6 + $0x1c0] sm:$0xff] }
 0x15d   :  { %8268 = vmatprep.subr.bf16.mxu1 %v9296_v0  ;;  %v773_v37 = vld [vmem:[#allocation6 + $0x1d0] sm:$0xff]  ;;  %v774_v38 = vld [vmem:[#allocation6 + $0x1d8] sm:$0xff]  ;;  %v775_v40 = vld [vmem:[#allocation6 + $0x1e0] sm:$0xff] }
 0x15e   :  { %8243 = vmatpush3.bf16.msra.mxu0 %v8242_v35  ;;  %v772_v35 = vld [vmem:[#allocation6 + $0x1c8] sm:$0xff]  ;;  %v777_v43 = vld [vmem:[#allocation6 + $0x1f0] sm:$0xff]  ;;  %v778_v44 = vld [vmem:[#allocation6 + $0x1f8] sm:$0xff] }
 0x15f   :  { %8244 = vmatprep.subr.bf16.mxu0 %v9296_v0  ;;  %v8314_v36 = vpack.c.bf16 %v772_v35, %v771_v34  ;;  %v850_v46 = vld [vmem:[#allocation4 + $0x18] sm:$0xff]  ;;  %v1052_v49 = vld [vmem:[#allocation12 + $0x40] sm:$0xff]  ;;  %v1053_v50 = vld [vmem:[#allocation12 + $0x48] sm:$0xff] }
 0x160   :  { %8270 = vmatpush3.bf16.msra.mxu1 %v8269_v33  ;;  %v8311_v33 = vpack.c.bf16 %v770_v32, %v769_v31  ;;  %v1054_v55 = vld [vmem:[#allocation12 + $0x50] sm:$0xff]  ;;  %v1056_v61 = vld [vmem:[#allocation12 + $0x60] sm:$0xff]  ;;  %v953_v32 = vlaneseq  ;;  %v948_v34 = vld [vmem:[#allocation7] sm:$0x1] }
 0x161   :  { %8271 = vmatprep.subr.bf16.mxu1 %v9296_v0  ;;  %v969_v58 = vld [vmem:[#allocation12 + $0x10] sm:$0xff]  ;;  %v971_v2 = vld [vmem:[#allocation12 + $0x20] sm:$0xff] }
 0x162   :  { %8246 = vmatpush3.bf16.msra.mxu0 %v8245_v41  ;;  %v776_v41 = vld [vmem:[#allocation6 + $0x1e8] sm:$0xff]  ;;  %v1058_v5 = vld [vmem:[#allocation12 + $0x70] sm:$0xff] }
 0x163   :  { %8247 = vmatprep.subr.bf16.mxu0 %v9296_v0  ;;  %v8320_v42 = vpack.c.bf16 %v776_v41, %v775_v40  ;;  %v973_v8 = vld [vmem:[#allocation12 + $0x30] sm:$0xff]  ;;  %v1515_v40 = vld [vmem:[#allocation12 + $0xc8] sm:$0xff]  ;;  %v6349_v41 = vld [vmem:[#allocation9] ss:$0 sm:$0xff] }
 0x164   :  { %8273 = vmatpush3.bf16.msra.mxu1 %v8272_v39  ;;  %v8317_v39 = vpack.c.bf16 %v774_v38, %v773_v37 }
 0x165   :  { %8274 = vmatprep.subr.bf16.mxu1 %v9296_v0 }
 0x166   :  { %8249 = vmatpush3.bf16.msra.mxu0 %v8248_v47 }
 0x167   :  { %8250 = vmatprep.subr.bf16.mxu0 %v9296_v0 }
 0x168   :  { %8276 = vmatpush3.bf16.msra.mxu1 %v8275_v45  ;;  %v8323_v45 = vpack.c.bf16 %v778_v44, %v777_v43 }
 0x169   :  { %8277 = vmatprep.subr.bf16.mxu1 %v9296_v0 }
 0x16a   :  { %8252 = vmatpush3.bf16.msra.mxu0 %v8251_v53  ;;  %v967_v53 = vld [vmem:[#allocation12] sm:$0xff] }
 0x16b   :  { %7221 = vmatmul.mubr.f32.vlgmr.msra.gmra.mrb[0].mxu1 %v9636_v51  ;;  %7223 = vmatprep.subr.mxu0 %v9298_v1 }
 0x16c   :  { %8279 = vmatpush3.bf16.msra.mxu1 %v8278_v52  ;;  %7265 = vmatprep.mubr.msk.f32.mxu1 %vm9297_vm0, %v9298_v1  ;;  %v8338_v52 = vpack.c.bf16 %v1053_v50, %v1052_v49  ;;  %v1519_v49 = vld [vmem:[#allocation12 + $0xe8] sm:$0xff] }
 0x16d   :  { %8280 = vmatprep.subr.bf16.mxu1 %v9296_v0  ;;  %7186 = vmatmul.mubr.f32.vlgmr.msra.gmra.mrb[0].mxu0 %v9636_v51 }
 0x16e   :  { %7225 = vmatprep.mubr.msk.f32.mxu0 %vm9297_vm0, %v9298_v1 }
 0x170   :  { %8282 = vmatpush3.bf16.msra.mxu1 %v8281_v56  ;;  %v1055_v56 = vld [vmem:[#allocation12 + $0x58] sm:$0xff] }
 0x171   :  { %8283 = vmatprep.subr.bf16.mxu1 %v9296_v0  ;;  %v8341_v57 = vpack.c.bf16 %v1055_v56, %v1054_v55 }
 0x174   :  { %8285 = vmatpush3.bf16.msra.mxu1 %v8284_v59  ;;  %v970_v59 = vld [vmem:[#allocation12 + $0x18] sm:$0xff] }
 0x175   :  { %8286 = vmatprep.subr.bf16.mxu1 %v9296_v0  ;;  %v8329_v60 = vpack.c.bf16 %v970_v59, %v969_v58 }
 0x178   :  { %8288 = vmatpush3.bf16.msra.mxu1 %v8287_v62  ;;  %v1057_v62 = vld [vmem:[#allocation12 + $0x68] sm:$0xff] }
 0x179   :  { %8289 = vmatprep.subr.bf16.mxu1 %v9296_v0  ;;  %v8344_v63 = vpack.c.bf16 %v1057_v62, %v1056_v61  ;;  %v1134_v61 = vld [vmem:[#allocation10 + $0x38] sm:$0xff]  ;;  %v1048_v62 = vld [vmem:[#allocation10] sm:$0xff] }
 0x17c   :  { %8291 = vmatpush3.bf16.msra.mxu1 %v8290_v3  ;;  %v972_v3 = vld [vmem:[#allocation12 + $0x28] sm:$0xff] }
 0x17d   :  { %8292 = vmatprep.subr.bf16.mxu1 %v9296_v0  ;;  %v8332_v4 = vpack.c.bf16 %v972_v3, %v971_v2  ;;  %v1331_v2 = vld [vmem:[#allocation12 + $0x88] sm:$0xff] }
 0x17e   :  { %v1049_v3 = vld [vmem:[#allocation10 + $0x8] sm:$0xff] }
 0x180   :  { %8294 = vmatpush3.bf16.msra.mxu1 %v8293_v6  ;;  %v1059_v6 = vld [vmem:[#allocation12 + $0x78] sm:$0xff] }
 0x181   :  { %8295 = vmatprep.subr.bf16.mxu1 %v9296_v0  ;;  %v8347_v7 = vpack.c.bf16 %v1059_v6, %v1058_v5  ;;  %v1332_v5 = vld [vmem:[#allocation12 + $0x90] sm:$0xff]  ;;  %v1333_v6 = vld [vmem:[#allocation12 + $0x98] sm:$0xff] }
 0x184   :  { %8297 = vmatpush3.bf16.msra.mxu1 %v8296_v9  ;;  %v974_v9 = vld [vmem:[#allocation12 + $0x38] sm:$0xff] }
 0x185   :  { %8298 = vmatprep.subr.bf16.mxu1 %v9296_v0  ;;  %v8335_v10 = vpack.c.bf16 %v974_v9, %v973_v8  ;;  %v8353_v8 = vpack.c.bf16 %v1333_v6, %v1332_v5  ;;  %v1051_v9 = vld [vmem:[#allocation10 + $0x18] sm:$0xff] }
 0x188   :  { %8300 = vmatpush3.bf16.msra.mxu1 %v8299_v12 }
 0x189   :  { %8325 = vmatprep.subr.bf16.mxu1 %v9296_v0 }
 0x18b   :  { %7266 = vmatmul.mubr.f32.vlgmr.msra.gmra.mrb[2].mxu1 %v9636_v51 }
 0x18c   :  { %7329 = vmatprep.mubr.msk.f32.mxu1 %vm9297_vm0, %v9298_v1 }
 0x23e   :  { %v438_v14 = vpop.f32.mrb[0].mxu1 }
 0x23f   :  { %v7222_v15 = vpop.f32.mrb[1].mxu1  ;;  %7224 = vmatpush3.msk.msra.mxu0 %vm448_vm1, %v438_v14 }
 0x240   :  { %7226 = vmatmul.mubr.msk.f32.vlgmr.msra.gmra.mrb[2].mxu0 %vm444_vm2, %v443_v13  ;;  %7228 = vmatprep.subr.mxu0 %v9298_v1  ;;  %v351_v16 = vpop.f32.mrb[0].mxu0 }
 0x241   :  { %7230 = vmatprep.mubr.msk.f32.mxu0 %vm9297_vm0, %v9298_v1  ;;  %v7187_v17 = vpop.f32.mrb[1].mxu0  ;;  %7229 = vmatpush3.msk.msra.mxu0 %vm448_vm1, %v351_v16 }
 0x242   :  { %7268 = vmatprep.subr.mxu0 %v9298_v1 }
 0x248   :  { %7231 = vmatmul.mubr.msk.f32.vlgmr.msra.gmra.mrb[2].mxu0 %vm444_vm2, %v355_v18 }
 0x249   :  { %7270 = vmatprep.mubr.msk.f32.mxu0 %vm9297_vm0, %v9298_v1 }
 0x25e   :  { %v680_v23 = vpop.f32.mrb[2].mxu1 }
 0x25f   :  { %v7267_v26 = vpop.f32.mrb[3].mxu1  ;;  %7269 = vmatpush3.msk.msra.mxu0 %vm448_vm1, %v680_v23 }
 0x260   :  { %8301 = vmatprep.subr.bf16.mxu0 %v9296_v0  ;;  %7271 = vmatmul.mubr.msk.f32.vlgmr.msra.gmra.mrb[2].mxu0 %vm444_vm2, %v685_v21 }
 0x261   :  { %8303 = vmatpush3.bf16.msra.mxu0 %v8302_v22  ;;  %7305 = vmatprep.mubr.msk.f32.mxu0 %vm9297_vm0, %v9298_v1 }
 0x262   :  { %8304 = vmatprep.subr.bf16.mxu0 %v9296_v0 }
 0x265   :  { %8306 = vmatpush3.bf16.msra.mxu0 %v8305_v27 }
 0x266   :  { %8307 = vmatprep.subr.bf16.mxu0 %v9296_v0 }
 0x269   :  { %8309 = vmatpush3.bf16.msra.mxu0 %v8308_v30 }
 0x26a   :  { %8310 = vmatprep.subr.bf16.mxu0 %v9296_v0 }
 0x26d   :  { %8312 = vmatpush3.bf16.msra.mxu0 %v8311_v33  ;;  %v954_v33 = vshrl.u32 %v953_v32, 7  ;;  %v1878_v32 = vld [vmem:[#allocation18 + $0x20] sm:$0xff] }
 0x26e   :  { %8313 = vmatprep.subr.bf16.mxu0 %v9296_v0 }
 0x26f   :  { %v9698_v35 = vsub.s32 0, %v954_v33  ;;  %v1879_v33 = vld [vmem:[#allocation18 + $0x28] sm:$0xff] }
 0x271   :  { %8315 = vmatpush3.bf16.msra.mxu0 %v8314_v36  ;;  %11740 = vst [vmem:[#allocation37_spill] sm:$0xff] %v9698_v35 }
 0x272   :  { %8316 = vmatprep.subr.bf16.mxu0 %v9296_v0 }
 0x275   :  { %8318 = vmatpush3.bf16.msra.mxu0 %v8317_v39  ;;  %v1514_v39 = vld [vmem:[#allocation12 + $0xc0] sm:$0xff] }
 0x276   :  { %8319 = vmatprep.subr.bf16.mxu0 %v9296_v0  ;;  %v8362_v43 = vpack.c.bf16 %v1515_v40, %v1514_v39 }
 0x279   :  { %8321 = vmatpush3.bf16.msra.mxu0 %v8320_v42 }
 0x27a   :  { %8322 = vmatprep.subr.bf16.mxu0 %v9296_v0 }
 0x27d   :  { %8324 = vmatpush3.bf16.msra.mxu0 %v8323_v45  ;;  %v1516_v45 = vld [vmem:[#allocation12 + $0xd0] sm:$0xff] }
 0x27e   :  { %7308 = vmatprep.subr.mxu0 %v9298_v1 }
 0x280   :  { %7306 = vmatmul.mubr.f32.vlgmr.msra.gmra.mrb[4].mxu0 %v9636_v51  ;;  %v968_v51 = vld [vmem:[#allocation12 + $0x8] sm:$0xff] }
 0x281   :  { %7310 = vmatprep.mubr.msk.f32.mxu0 %vm9297_vm0, %v9298_v1  ;;  %v8326_v54 = vpack.c.bf16 %v968_v51, %v967_v53  ;;  %v1521_v53 = vld [vmem:[#allocation12 + $0xf8] sm:$0xff] }
 0x283   :  { %8327 = vmatpush3.bf16.msra.mxu1 %v8326_v54  ;;  %v1131_v54 = vld [vmem:[#allocation10 + $0x20] sm:$0xff] }
 0x284   :  { %8328 = vmatprep.subr.bf16.mxu1 %v9296_v0 }
 0x287   :  { %8330 = vmatpush3.bf16.msra.mxu1 %v8329_v60  ;;  %v1133_v60 = vld [vmem:[#allocation10 + $0x30] sm:$0xff] }
 0x288   :  { %8331 = vmatprep.subr.bf16.mxu1 %v9296_v0 }
 0x28b   :  { %8333 = vmatpush3.bf16.msra.mxu1 %v8332_v4 }
 0x28c   :  { %8334 = vmatprep.subr.bf16.mxu1 %v9296_v0 }
 0x28f   :  { %8336 = vmatpush3.bf16.msra.mxu1 %v8335_v10  ;;  %v1334_v10 = vld [vmem:[#allocation12 + $0xa0] sm:$0xff] }
 0x353   :  { %v845_v47 = vpop.f32.mrb[4].mxu0 }
 0x354   :  { %v7307_v48 = vpop.f32.mrb[5].mxu0  ;;  %7309 = vmatpush3.msk.msra.mxu0 %vm448_vm1, %v845_v47 }
 0x355   :  { %7311 = vmatmul.mubr.msk.f32.vlgmr.msra.gmra.mrb[2].mxu0 %vm444_vm2, %v850_v46  ;;  %8337 = vmatprep.subr.bf16.mxu0 %v9296_v0  ;;  %v1517_v46 = vld [vmem:[#allocation12 + $0xd8] sm:$0xff]  ;;  %v1518_v48 = vld [vmem:[#allocation12 + $0xe0] sm:$0xff] }
 0x356   :  { %7348 = vmatprep.mubr.msk.f32.mxu0 %vm9297_vm0, %v9298_v1  ;;  %8339 = vmatpush3.bf16.msra.mxu0 %v8338_v52  ;;  %v8365_v47 = vpack.c.bf16 %v1517_v46, %v1516_v45  ;;  %v8368_v50 = vpack.c.bf16 %v1519_v49, %v1518_v48  ;;  %v1520_v52 = vld [vmem:[#allocation12 + $0xf0] sm:$0xff] }
 0x357   :  { %8340 = vmatprep.subr.bf16.mxu0 %v9296_v0  ;;  %v8371_v51 = vpack.c.bf16 %v1521_v53, %v1520_v52 }
 0x35a   :  { %8342 = vmatpush3.bf16.msra.mxu0 %v8341_v57  ;;  %v1132_v57 = vld [vmem:[#allocation10 + $0x28] sm:$0xff] }
 0x35b   :  { %8343 = vmatprep.subr.bf16.mxu0 %v9296_v0 }
 0x35e   :  { %8345 = vmatpush3.bf16.msra.mxu0 %v8344_v63  ;;  %v1330_v63 = vld [vmem:[#allocation12 + $0x80] sm:$0xff] }
 0x35f   :  { %8346 = vmatprep.subr.bf16.mxu0 %v9296_v0  ;;  %v8350_v4 = vpack.c.bf16 %v1331_v2, %v1330_v63 }
 0x362   :  { %8348 = vmatpush3.bf16.msra.mxu0 %v8347_v7  ;;  %v1050_v7 = vld [vmem:[#allocation10 + $0x10] sm:$0xff] }
 0x363   :  { %8361 = vmatprep.subr.bf16.mxu0 %v9296_v0 }
 0x428   :  { %v923_v11 = vpop.f32.mrb[2].mxu0 }
 0x429   :  { %v929_v12 = vsel %vm928_vm3, %v923_v11, 0.0  ;;  %v7312_v13 = vpop.f32.mrb[3].mxu0 }
 0x42a   :  { %v930_v14 = vrot.slane %v929_v12, 4 }
 0x42c   :  { %v931_v15 = vadd.f32 %v930_v14, %v929_v12 }
 0x42e   :  { %v932_v16 = vrot.slane %v931_v15, 2 }
 0x430   :  { %v933_v17 = vadd.f32 %v932_v16, %v931_v15  ;;  %v1336_v15 = vld [vmem:[#allocation12 + $0xb0] sm:$0xff]  ;;  %v1337_v16 = vld [vmem:[#allocation12 + $0xb8] sm:$0xff] }
 0x432   :  { %v934_v18 = vrot.slane %v933_v17, 1 }
 0x434   :  { %v935_v19 = vadd.f32 %v934_v18, %v933_v17  ;;  %v8359_v17 = vpack.c.bf16 %v1337_v16, %v1336_v15  ;;  %v1409_v18 = vld [vmem:[#allocation10 + $0x40] sm:$0xff] }
 0x435   :  { %v1736_v15 = vld [vmem:[#allocation13] sm:$0x1] }
 0x436   :  { %v937_v20 = vmul.f32 0.125, %v935_v19 }
 0x438   :  { %v938_v21 = vsub.f32 %v923_v11, %v937_v20  ;;  %v1335_v11 = vld [vmem:[#allocation12 + $0xa8] sm:$0xff] }
 0x439   :  { %v8356_v13 = vpack.c.bf16 %v1335_v11, %v1334_v10  ;;  %v1410_v20 = vld [vmem:[#allocation10 + $0x48] sm:$0xff] }
 0x43a   :  { %v939_v22 = vmul.f32 %v938_v21, %v938_v21 }
 0x43c   :  { %v940_v23 = vsel %vm928_vm3, %v939_v22, 0.0  ;;  %v1593_v22 = vld [vmem:[#allocation10 + $0x60] sm:$0xff] }
 0x43d   :  { %v941_v24 = vrot.slane %v940_v23, 4 }
 0x43f   :  { %v942_v25 = vadd.f32 %v941_v24, %v940_v23  ;;  %v1594_v23 = vld [vmem:[#allocation10 + $0x68] sm:$0xff]  ;;  %v1595_v24 = vld [vmem:[#allocation10 + $0x70] sm:$0xff] }
 0x441   :  { %v943_v26 = vrot.slane %v942_v25, 2 }
 0x443   :  { %v944_v27 = vadd.f32 %v943_v26, %v942_v25  ;;  %v1596_v25 = vld [vmem:[#allocation10 + $0x78] sm:$0xff]  ;;  %v1761_v26 = vld [vmem:[#allocation18] sm:$0xff] }
 0x445   :  { %v945_v28 = vrot.slane %v944_v27, 1 }
 0x447   :  { %v946_v29 = vadd.f32 %v945_v28, %v944_v27  ;;  %v1762_v27 = vld [vmem:[#allocation18 + $0x8] sm:$0xff] }
 0x448   :  { %v8373_v28 = vpack.c.bf16 %v1762_v27, %v1761_v26 }
 0x449   :  { %v947_v30 = vmul.f32 0.125, %v946_v29  ;;  %v1763_v29 = vld [vmem:[#allocation18 + $0x10] sm:$0xff] }
 0x44b   :  { %v949_v31 = vadd.f32 1e-05, %v947_v30  ;;  %v1764_v30 = vld [vmem:[#allocation18 + $0x18] sm:$0xff] }
 0x44d   :  { %8877 = vrsqrt.f32 %v949_v31  ;;  %v8377_v31 = vpack.c.bf16 %v1764_v30, %v1763_v29  ;;  %v2371_v29 = vld [vmem:[#allocation18 + $0x48] sm:$0xff] }
 0x457   :  { %v8878_v36 = vpop.eup %8877 }
 0x458   :  { %v951_v37 = vmul.f32 %v8878_v36, %v948_v34  ;;  %v9738_v34 = vpack.c.bf16 %v1879_v33, %v1878_v32  ;;  %v2372_v32 = vld [vmem:[#allocation18 + $0x50] sm:$0xff]  ;;  %v2373_v33 = vld [vmem:[#allocation18 + $0x58] sm:$0xff] }
 0x45a   :  { %v956_v38 = vrot.slane %v951_v37, %v9698_v35 }
 0x45c   :  { %v958_v42 = vmul.f32 %v956_v38, %v938_v21 }
 0x45e   :  { %v9701_v44 = vadd.f32 %v6349_v41, %v958_v42 }
 0x460   :  { %7330 = vmatmul.mubr.msk.f32.vlgmr.msra.gmra.mrb[4].mxu1 %vm928_vm3, %v9701_v44  ;;  %7349 = vmatmul.mubr.msk.f32.vlgmr.msra.gmra.mrb[6].mxu0 %vm928_vm3, %v9701_v44 }
 0x461   :  { %8363 = vmatpush3.bf16.msra.mxu0 %v8362_v43  ;;  %7410 = vmatprep.mubr.msk.f32.mxu0 %vm9297_vm0, %v9298_v1 }
 0x462   :  { %8364 = vmatprep.subr.bf16.mxu0 %v9296_v0  ;;  %7353 = vmatprep.mubr.msk.f32.mxu1 %vm1135_vm4, %v1131_v54 }
 0x465   :  { %8366 = vmatpush3.bf16.msra.mxu0 %v8365_v47 }
 0x466   :  { %8367 = vmatprep.subr.bf16.mxu0 %v9296_v0 }
 0x469   :  { %8369 = vmatpush3.bf16.msra.mxu0 %v8368_v50 }
 0x46a   :  { %8370 = vmatprep.subr.bf16.mxu0 %v9296_v0 }
 0x46d   :  { %8372 = vmatpush3.bf16.msra.mxu0 %v8371_v51 }
 0x46e   :  { %8374 = vmatprep.subr.bf16.mxu0 %v8373_v28 }
 0x470   :  { %7411 = vmatmul.mubr.msk.f32.vlgmr.msra.gmra.mrb[8].mxu0 %vm928_vm3, %v9701_v44 }
 0x471   :  { %8376 = vmatpush3.bf16.msra.mxu0 %v8373_v28  ;;  %v2370_v28 = vld [vmem:[#allocation18 + $0x40] sm:$0xff] }
 0x472   :  { %8378 = vmatprep.subr.bf16.mxu0 %v8377_v31 }
 0x475   :  { %8380 = vmatpush3.bf16.msra.mxu0 %v8377_v31  ;;  %v8405_v31 = vpack.c.bf16 %v2371_v29, %v2370_v28  ;;  %v1872_v28 = vld [vmem:[#allocation16 + $0x50] sm:$0xff]  ;;  %v1873_v29 = vld [vmem:[#allocation16 + $0x58] sm:$0xff] }
 0x476   :  { %8382 = vmatprep.subr.bf16.mxu0 %v9738_v34 }
 0x533   :  { %v1044_v55 = vpop.f32.mrb[4].mxu1  ;;  %v1126_v56 = vpop.f32.mrb[6].mxu0 }
 0x534   :  { %v7331_v58 = vpop.f32.mrb[5].mxu1  ;;  %v7350_v59 = vpop.f32.mrb[7].mxu0  ;;  %7351 = vmatprep.subr.mxu1 %v1126_v56 }
 0x535   :  { %7352 = vmatpush3.msra.mxu1 %v1126_v56 }
 0x536   :  { %7354 = vmatmul.mubr.msk.f32.vlgmr.msra.gmra.mrb[6].mxu1 %vm1135_vm4, %v1132_v57  ;;  %7359 = vmatprep.subr.mxu1 %v1044_v55 }
 0x537   :  { %7360 = vmatpush3.msra.mxu1 %v1044_v55  ;;  %7356 = vmatprep.mubr.msk.f32.mxu1 %vm1135_vm4, %v1133_v60 }
 0x538   :  { %8349 = vmatprep.subr.bf16.mxu1 %v9296_v0 }
 0x53a   :  { %7357 = vmatmul.mubr.msk.f32.gmra.mrb[8].mxu1 %vm1135_vm4, %v1134_v61 }
 0x53b   :  { %7361 = vmatprep.mubr.msk.f32.mxu1 %vm1135_vm4, %v1048_v62 }
 0x53e   :  { %7362 = vmatmul.mubr.msk.f32.vlgmr.msra.gmra.mrb[6].mxu1 %vm1135_vm4, %v1049_v3 }
 0x53f   :  { %8351 = vmatpush3.bf16.msra.mxu1 %v8350_v4  ;;  %7364 = vmatprep.mubr.msk.f32.mxu1 %vm1135_vm4, %v1050_v7 }
 0x540   :  { %8352 = vmatprep.subr.bf16.mxu1 %v9296_v0 }
 0x542   :  { %7365 = vmatmul.mubr.msk.f32.gmra.mrb[8].mxu1 %vm1135_vm4, %v1051_v9 }
 0x543   :  { %8354 = vmatpush3.bf16.msra.mxu1 %v8353_v8  ;;  %v1588_v12 = vpop.f32.mrb[8].mxu0  ;;  %7383 = vmatprep.mubr.msk.f32.mxu1 %vm9297_vm0, %v9298_v1  ;;  %v1411_v1 = vld [vmem:[#allocation10 + $0x50] sm:$0xff] }
 0x544   :  { %v7412_v14 = vpop.f32.mrb[9].mxu0  ;;  %8355 = vmatprep.subr.bf16.mxu1 %v9296_v0 }
 0x547   :  { %8357 = vmatpush3.bf16.msra.mxu1 %v8356_v13 }
 0x548   :  { %8358 = vmatprep.subr.bf16.mxu1 %v9296_v0  ;;  %v1412_v0 = vld [vmem:[#allocation10 + $0x58] sm:$0xff] }
 0x54b   :  { %8360 = vmatpush3.bf16.msra.mxu1 %v8359_v17 }
 0x54e   :  { %7384 = vmatmul.mubr.msk.f32.vlgmr.msra.gmra.mrb[10].mxu1 %vm928_vm3, %v9701_v44 }
 0x54f   :  { %7388 = vmatprep.mubr.msk.f32.mxu1 %vm1135_vm4, %v1409_v18 }
 0x621   :  { %v1404_v19 = vpop.f32.mrb[10].mxu1 }
 0x622   :  { %v7385_v21 = vpop.f32.mrb[11].mxu1  ;;  %7386 = vmatprep.subr.mxu1 %v1404_v19 }
 0x623   :  { %7387 = vmatpush3.msra.mxu1 %v1404_v19  ;;  %v6370_v19 = vld [vmem:[#allocation15] ss:$0 sm:$0xff] }
 0x624   :  { %7389 = vmatmul.mubr.msk.f32.vlgmr.msra.gmra.mrb[6].mxu1 %vm1135_vm4, %v1410_v20  ;;  %7413 = vmatprep.subr.mxu1 %v1588_v12 }
 0x625   :  { %7414 = vmatpush3.msra.mxu1 %v1588_v12  ;;  %7391 = vmatprep.mubr.msk.f32.mxu1 %vm1135_vm4, %v1411_v1 }
 0x628   :  { %7392 = vmatmul.mubr.msk.f32.gmra.mrb[8].mxu1 %vm1135_vm4, %v1412_v0 }
 0x629   :  { %7415 = vmatprep.mubr.msk.f32.mxu1 %vm1135_vm4, %v1593_v22  ;;  %v1880_v22 = vld [vmem:[#allocation18 + $0x30] sm:$0xff] }
 0x62c   :  { %7416 = vmatmul.mubr.msk.f32.vlgmr.msra.gmra.mrb[6].mxu1 %vm1135_vm4, %v1594_v23  ;;  %v1881_v23 = vld [vmem:[#allocation18 + $0x38] sm:$0xff] }
 0x62d   :  { %7418 = vmatprep.mubr.msk.f32.mxu1 %vm1135_vm4, %v1595_v24  ;;  %v8385_v26 = vpack.c.bf16 %v1881_v23, %v1880_v22  ;;  %v1866_v22 = vld [vmem:[#allocation16 + $0x20] sm:$0xff]  ;;  %v1867_v23 = vld [vmem:[#allocation16 + $0x28] sm:$0xff] }
 0x630   :  { %7419 = vmatmul.mubr.msk.f32.gmra.mrb[8].mxu1 %vm1135_vm4, %v1596_v25 }
 0x6ff   :  { %v7417_v36 = vpop.f32.mrb[6].mxu1 }
 0x700   :  { %v1700_v37 = vsel %vm1698_vm5, %v7417_v36, 0.0  ;;  %v1675_v38 = vpop.f32.mrb[7].mxu1 }
 0x701   :  { %v1699_v39 = vsel %vm1698_vm5, %v1675_v38, 0.0 }
 0x702   :  { %v1701_v40 = vadd.f32 %v1700_v37, %v1699_v39  ;;  %v2685_v37 = vld [vmem:[#allocation18 + $0x60] sm:$0xff]  ;;  %v2687_v39 = vld [vmem:[#allocation18 + $0x70] sm:$0xff] }
 0x703   :  { %v7420_v41 = vpop.f32.mrb[8].mxu1 }
 0x704   :  { %v1685_v42 = vpop.f32.mrb[9].mxu1  ;;  %v1704_v45 = vsel %vm1698_vm5, %v7420_v41, 0.0 }
 0x705   :  { %v1702_v43 = vsel %vm1698_vm5, %v1685_v42, 0.0 }
 0x706   :  { %v1703_v44 = vadd.f32 %v1702_v43, %v1701_v40  ;;  %v2688_v40 = vld [vmem:[#allocation18 + $0x78] sm:$0xff] }
 0x708   :  { %v1705_v46 = vadd.f32 %v1704_v45, %v1703_v44 }
 0x70a   :  { %v1706_v47 = vrot.slane %v1705_v46, 4 }
 0x70c   :  { %v1707_v48 = vadd.f32 %v1706_v47, %v1705_v46 }
 0x70e   :  { %v1708_v49 = vrot.slane %v1707_v48, 2 }
 0x710   :  { %v1709_v50 = vadd.f32 %v1708_v49, %v1707_v48 }
 0x712   :  { %v1710_v52 = vrot.slane %v1709_v50, 1 }
 0x714   :  { %v1711_v53 = vadd.f32 %v1710_v52, %v1709_v50 }
 0x716   :  { %v1713_v51 = vmul.f32 0.03125, %v1711_v53 }
 0x718   :  { %v1714_v54 = vsub.f32 %v1675_v38, %v1713_v51  ;;  %v1715_v55 = vsub.f32 %v7417_v36, %v1713_v51  ;;  %v1716_v56 = vsub.f32 %v1685_v42, %v1713_v51  ;;  %v1717_v57 = vsub.f32 %v7420_v41, %v1713_v51  ;;  %v2686_v38 = vld [vmem:[#allocation18 + $0x68] sm:$0xff]  ;;  %v1968_v42 = vld [vmem:[#allocation16 + $0x80] sm:$0xff] }
 0x719   :  { %v8409_v36 = vpack.c.bf16 %v2373_v33, %v2372_v32  ;;  %v8425_v41 = vpack.c.bf16 %v2688_v40, %v2687_v39  ;;  %7457 = vmatprep.mubr.msk.f32.mxu1 %vm1698_vm5, %v1968_v42  ;;  %v1876_v32 = vld [vmem:[#allocation16 + $0x70] sm:$0xff]  ;;  %v1877_v33 = vld [vmem:[#allocation16 + $0x78] sm:$0xff]  ;;  %v2464_v39 = vld [vmem:[#allocation16 + $0x120] sm:$0xff] }
 0x71a   :  { %v1718_v58 = vmul.f32 %v1714_v54, %v1714_v54  ;;  %v1719_v59 = vmul.f32 %v1715_v55, %v1715_v55  ;;  %v1720_v60 = vmul.f32 %v1716_v56, %v1716_v56  ;;  %v1721_v61 = vmul.f32 %v1717_v57, %v1717_v57  ;;  %v2465_v40 = vld [vmem:[#allocation16 + $0x128] sm:$0xff]  ;;  %v2467_v42 = vld [vmem:[#allocation16 + $0x138] sm:$0xff] }
 0x71c   :  { %v1722_v62 = vsel %vm1698_vm5, %v1718_v58, 0.0  ;;  %v1723_v63 = vsel %vm1698_vm5, %v1719_v59, 0.0  ;;  %v1725_v3 = vsel %vm1698_vm5, %v1720_v60, 0.0  ;;  %v1727_v5 = vsel %vm1698_vm5, %v1721_v61, 0.0  ;;  %v1970_v59 = vld [vmem:[#allocation16 + $0x90] sm:$0xff] }
 0x71d   :  { %v1724_v2 = vadd.f32 %v1723_v63, %v1722_v62  ;;  %v1971_v62 = vld [vmem:[#allocation16 + $0x98] sm:$0xff] }
 0x71f   :  { %v1726_v4 = vadd.f32 %v1725_v3, %v1724_v2  ;;  %v1972_v2 = vld [vmem:[#allocation16 + $0xa0] sm:$0xff] }
 0x721   :  { %v1728_v6 = vadd.f32 %v1727_v5, %v1726_v4  ;;  %v1973_v5 = vld [vmem:[#allocation16 + $0xa8] sm:$0xff] }
 0x723   :  { %v1729_v7 = vrot.slane %v1728_v6, 4 }
 0x725   :  { %v1730_v8 = vadd.f32 %v1729_v7, %v1728_v6  ;;  %v1974_v7 = vld [vmem:[#allocation16 + $0xb0] sm:$0xff] }
 0x727   :  { %v1731_v9 = vrot.slane %v1730_v8, 2 }
 0x729   :  { %v1732_v10 = vadd.f32 %v1731_v9, %v1730_v8 }
 0x72b   :  { %v1733_v11 = vrot.slane %v1732_v10, 1 }
 0x72d   :  { %v1734_v12 = vadd.f32 %v1733_v11, %v1732_v10  ;;  %v1975_v10 = vld [vmem:[#allocation16 + $0xb8] sm:$0xff] }
 0x72f   :  { %v1735_v13 = vmul.f32 0.03125, %v1734_v12  ;;  %v1976_v12 = vld [vmem:[#allocation16 + $0xc0] sm:$0xff] }
 0x731   :  { %v1737_v14 = vadd.f32 1e-05, %v1735_v13  ;;  %v1977_v13 = vld [vmem:[#allocation16 + $0xc8] sm:$0xff] }
 0x733   :  { %8879 = vrsqrt.f32 %v1737_v14  ;;  %v1978_v14 = vld [vmem:[#allocation16 + $0xd0] sm:$0xff] }
 0x73d   :  { %v8880_v16 = vpop.eup %8879 }
 0x73e   :  { %v1739_v17 = vmul.f32 %v8880_v16, %v1736_v15  ;;  %v1979_v15 = vld [vmem:[#allocation16 + $0xd8] sm:$0xff]  ;;  %v1980_v16 = vld [vmem:[#allocation16 + $0xe0] sm:$0xff] }
 0x740   :  { %v1744_v18 = vrot.slane %v1739_v17, %v9698_v35  ;;  %v1981_v17 = vld [vmem:[#allocation16 + $0xe8] sm:$0xff] }
 0x742   :  { %v1748_v20 = vmul.f32 %v1744_v18, %v1716_v56  ;;  %v1746_v21 = vmul.f32 %v1744_v18, %v1714_v54  ;;  %v1747_v1 = vmul.f32 %v1744_v18, %v1715_v55  ;;  %v1749_v0 = vmul.f32 %v1744_v18, %v1717_v57  ;;  %v1969_v57 = vld [vmem:[#allocation16 + $0x88] sm:$0xff]  ;;  %v1982_v18 = vld [vmem:[#allocation16 + $0xf0] sm:$0xff] }
 0x744   :  { %v1757_v24 = vadd.f32 %v6370_v19, %v1746_v21  ;;  %v1758_v25 = vadd.f32 %v6370_v19, %v1747_v1  ;;  %v1759_v27 = vadd.f32 %v6370_v19, %v1748_v20  ;;  %v1760_v30 = vadd.f32 %v6370_v19, %v1749_v0  ;;  %v1983_v19 = vld [vmem:[#allocation16 + $0xf8] sm:$0xff]  ;;  %v1862_v20 = vld [vmem:[#allocation16] sm:$0xff]  ;;  %v1863_v21 = vld [vmem:[#allocation16 + $0x8] sm:$0xff] }
 0x745   :  { %v1864_v1 = vld [vmem:[#allocation16 + $0x10] sm:$0xff]  ;;  %v1865_v0 = vld [vmem:[#allocation16 + $0x18] sm:$0xff] }
 0x746   :  { %7429 = vmatprep.mubr.msk.f32.mxu0 %vm1698_vm5, %v1757_v24 }
 0x747   :  { %7430 = vmatmul.mubr.msk.f32.vlgmr.msra.gmra.mrb[10].mxu0 %vm1698_vm5, %v1758_v25 }
 0x748   :  { %7432 = vmatprep.mubr.msk.f32.mxu0 %vm1698_vm5, %v1759_v27  ;;  %8384 = vmatpush3.bf16.msra.mxu0 %v9738_v34  ;;  %v8421_v34 = vpack.c.bf16 %v2686_v38, %v2685_v37  ;;  %v2461_v37 = vld [vmem:[#allocation16 + $0x108] sm:$0xff]  ;;  %v2462_v38 = vld [vmem:[#allocation16 + $0x110] sm:$0xff] }
 0x749   :  { %8386 = vmatprep.subr.bf16.mxu0 %v8385_v26 }
 0x74b   :  { %7433 = vmatmul.mubr.msk.f32.gmra.mrb[12].mxu0 %vm1698_vm5, %v1760_v30 }
 0x74c   :  { %8388 = vmatpush3.bf16.msra.mxu0 %v8385_v26  ;;  %7443 = vmatprep.mubr.msk.f32.mxu0 %vm1698_vm5, %v1757_v24  ;;  %v1870_v26 = vld [vmem:[#allocation16 + $0x40] sm:$0xff] }
 0x74d   :  { %8406 = vmatprep.subr.bf16.mxu0 %v8405_v31 }
 0x74f   :  { %7444 = vmatmul.mubr.msk.f32.vlgmr.msra.gmra.mrb[14].mxu0 %vm1698_vm5, %v1758_v25 }
 0x750   :  { %7446 = vmatprep.mubr.msk.f32.mxu0 %vm1698_vm5, %v1759_v27  ;;  %8408 = vmatpush3.bf16.msra.mxu0 %v8405_v31  ;;  %v1875_v31 = vld [vmem:[#allocation16 + $0x68] sm:$0xff] }
 0x751   :  { %8410 = vmatprep.subr.bf16.mxu0 %v8409_v36 }
 0x753   :  { %7447 = vmatmul.mubr.msk.f32.gmra.mrb[16].mxu0 %vm1698_vm5, %v1760_v30 }
 0x754   :  { %8412 = vmatpush3.bf16.msra.mxu0 %v8409_v36  ;;  %7521 = vmatprep.mubr.msk.f32.mxu0 %vm1698_vm5, %v1757_v24  ;;  %v2460_v36 = vld [vmem:[#allocation16 + $0x100] sm:$0xff] }
 0x755   :  { %8422 = vmatprep.subr.bf16.mxu0 %v8421_v34 }
 0x757   :  { %7522 = vmatmul.mubr.msk.f32.vlgmr.msra.gmra.mrb[18].mxu0 %vm1698_vm5, %v1758_v25 }
 0x758   :  { %7524 = vmatprep.mubr.msk.f32.mxu0 %vm1698_vm5, %v1759_v27  ;;  %8424 = vmatpush3.bf16.msra.mxu0 %v8421_v34  ;;  %v2463_v34 = vld [vmem:[#allocation16 + $0x118] sm:$0xff] }
 0x759   :  { %8426 = vmatprep.subr.bf16.mxu0 %v8425_v41 }
 0x75b   :  { %7525 = vmatmul.mubr.msk.f32.gmra.mrb[20].mxu0 %vm1698_vm5, %v1760_v30 }
 0x75c   :  { %8428 = vmatpush3.bf16.msra.mxu0 %v8425_v41  ;;  %7567 = vmatprep.mubr.msk.f32.mxu0 %vm1698_vm5, %v1757_v24  ;;  %v1868_v24 = vld [vmem:[#allocation16 + $0x30] sm:$0xff] }
 0x75d   :  { %v2466_v41 = vld [vmem:[#allocation16 + $0x130] sm:$0xff] }
 0x75f   :  { %7568 = vmatmul.mubr.msk.f32.vlgmr.msra.gmra.mrb[22].mxu0 %vm1698_vm5, %v1758_v25  ;;  %v1869_v25 = vld [vmem:[#allocation16 + $0x38] sm:$0xff] }
 0x760   :  { %7570 = vmatprep.mubr.msk.f32.mxu0 %vm1698_vm5, %v1759_v27  ;;  %v1871_v27 = vld [vmem:[#allocation16 + $0x48] sm:$0xff] }
 0x763   :  { %7571 = vmatmul.mubr.msk.f32.gmra.mrb[24].mxu0 %vm1698_vm5, %v1760_v30  ;;  %v1874_v30 = vld [vmem:[#allocation16 + $0x60] sm:$0xff] }
 0x81a   :  { %v7431_v43 = vpop.f32.mrb[10].mxu0 }
 0x81b   :  { %v1843_v44 = vpop.f32.mrb[11].mxu0 }
 0x81c   :  { %v8397_v45 = vpack.c.bf16 %v7431_v43, %v1843_v44  ;;  %v2468_v43 = vld [vmem:[#allocation16 + $0x140] sm:$0xff]  ;;  %v2469_v44 = vld [vmem:[#allocation16 + $0x148] sm:$0xff] }
 0x81e   :  { %v7434_v46 = vpop.f32.mrb[12].mxu0 }
 0x81f   :  { %v1853_v47 = vpop.f32.mrb[13].mxu0 }
 0x820   :  { %v8401_v48 = vpack.c.bf16 %v7434_v46, %v1853_v47  ;;  %v2471_v46 = vld [vmem:[#allocation16 + $0x158] sm:$0xff]  ;;  %v2472_v47 = vld [vmem:[#allocation16 + $0x160] sm:$0xff] }
 0x822   :  { %v7445_v49 = vpop.f32.mrb[14].mxu0 }
 0x823   :  { %v1948_v50 = vpop.f32.mrb[15].mxu0 }
 0x824   :  { %v8389_v52 = vpack.c.bf16 %v7445_v49, %v1948_v50  ;;  %v2474_v49 = vld [vmem:[#allocation16 + $0x170] sm:$0xff]  ;;  %v2475_v50 = vld [vmem:[#allocation16 + $0x178] sm:$0xff] }
 0x826   :  { %v7448_v53 = vpop.f32.mrb[16].mxu0  ;;  %8390 = vmatprep.subr.bf16.mxu1 %v8389_v52 }
 0x827   :  { %v1958_v51 = vpop.f32.mrb[17].mxu0  ;;  %8392 = vmatpush3.bf16.msra.mxu1 %v8389_v52  ;;  %v2775_v52 = vld [vmem:[#allocation16 + $0x180] sm:$0xff] }
 0x828   :  { %v8393_v54 = vpack.c.bf16 %v7448_v53, %v1958_v51  ;;  %v2776_v53 = vld [vmem:[#allocation16 + $0x188] sm:$0xff]  ;;  %v2777_v51 = vld [vmem:[#allocation16 + $0x190] sm:$0xff] }
 0x82a   :  { %8394 = vmatprep.subr.bf16.mxu1 %v8393_v54  ;;  %v7523_v55 = vpop.f32.mrb[18].mxu0 }
 0x82b   :  { %8396 = vmatpush3.bf16.msra.mxu1 %v8393_v54  ;;  %v2440_v56 = vpop.f32.mrb[19].mxu0  ;;  %v2778_v54 = vld [vmem:[#allocation16 + $0x198] sm:$0xff] }
 0x82c   :  { %v8413_v58 = vpack.c.bf16 %v7523_v55, %v2440_v56  ;;  %8398 = vmatprep.subr.bf16.mxu1 %v8397_v45  ;;  %v2779_v55 = vld [vmem:[#allocation16 + $0x1a0] sm:$0xff]  ;;  %v2780_v56 = vld [vmem:[#allocation16 + $0x1a8] sm:$0xff] }
 0x82e   :  { %7458 = vmatmul.mubr.msk.f32.vlgmr.msra.gmra.mrb[12].mxu1 %vm1698_vm5, %v1969_v57  ;;  %v7526_v60 = vpop.f32.mrb[20].mxu0  ;;  %v2781_v57 = vld [vmem:[#allocation16 + $0x1b0] sm:$0xff] }
 0x82f   :  { %8400 = vmatpush3.bf16.msra.mxu1 %v8397_v45  ;;  %v2450_v61 = vpop.f32.mrb[21].mxu0  ;;  %7460 = vmatprep.mubr.msk.f32.mxu1 %vm1698_vm5, %v1970_v59  ;;  %v2470_v45 = vld [vmem:[#allocation16 + $0x150] sm:$0xff]  ;;  %v2783_v59 = vld [vmem:[#allocation16 + $0x1c0] sm:$0xff] }
 0x830   :  { %v8417_v63 = vpack.c.bf16 %v7526_v60, %v2450_v61  ;;  %8402 = vmatprep.subr.bf16.mxu1 %v8401_v48  ;;  %v2784_v60 = vld [vmem:[#allocation16 + $0x1c8] sm:$0xff]  ;;  %v2785_v61 = vld [vmem:[#allocation16 + $0x1d0] sm:$0xff] }
 0x832   :  { %7461 = vmatmul.mubr.msk.f32.gmra.mrb[14].mxu1 %vm1698_vm5, %v1971_v62  ;;  %v7569_v3 = vpop.f32.mrb[22].mxu0  ;;  %v2786_v62 = vld [vmem:[#allocation16 + $0x1d8] sm:$0xff] }
 0x833   :  { %8404 = vmatpush3.bf16.msra.mxu1 %v8401_v48  ;;  %v2755_v4 = vpop.f32.mrb[23].mxu0  ;;  %7463 = vmatprep.mubr.msk.f32.mxu1 %vm1698_vm5, %v1972_v2  ;;  %v2473_v48 = vld [vmem:[#allocation16 + $0x168] sm:$0xff] }
 0x834   :  { %v9772_v6 = vpack.c.bf16 %v7569_v3, %v2755_v4  ;;  %8414 = vmatprep.subr.bf16.mxu1 %v8413_v58  ;;  %v2788_v2 = vld [vmem:[#allocation16 + $0x1e8] sm:$0xff]  ;;  %v2789_v3 = vld [vmem:[#allocation16 + $0x1f0] sm:$0xff]  ;;  %v2790_v4 = vld [vmem:[#allocation16 + $0x1f8] sm:$0xff] }
 0x836   :  { %7464 = vmatmul.mubr.msk.f32.gmra.mrb[16].mxu1 %vm1698_vm5, %v1973_v5  ;;  %v7572_v8 = vpop.f32.mrb[24].mxu0  ;;  %v3159_v5 = vld [vmem:[#allocation24] sm:$0xff] }
 0x837   :  { %v2765_v9 = vpop.f32.mrb[25].mxu0  ;;  %7466 = vmatprep.mubr.msk.f32.mxu1 %vm1698_vm5, %v1974_v7 }
 0x838   :  { %v9776_v11 = vpack.c.bf16 %v7572_v8, %v2765_v9 }
 0x83a   :  { %7467 = vmatmul.mubr.msk.f32.gmra.mrb[18].mxu1 %vm1698_vm5, %v1975_v10 }
 0x83b   :  { %7469 = vmatprep.mubr.msk.f32.mxu1 %vm1698_vm5, %v1976_v12 }
 0x83e   :  { %7470 = vmatmul.mubr.msk.f32.gmra.mrb[20].mxu1 %vm1698_vm5, %v1977_v13 }
 0x83f   :  { %7472 = vmatprep.mubr.msk.f32.mxu1 %vm1698_vm5, %v1978_v14 }
 0x842   :  { %7473 = vmatmul.mubr.msk.f32.gmra.mrb[22].mxu1 %vm1698_vm5, %v1979_v15 }
 0x843   :  { %7475 = vmatprep.mubr.msk.f32.mxu1 %vm1698_vm5, %v1980_v16 }
 0x846   :  { %7476 = vmatmul.mubr.msk.f32.gmra.mrb[24].mxu1 %vm1698_vm5, %v1981_v17 }
 0x847   :  { %7478 = vmatprep.mubr.msk.f32.mxu1 %vm1698_vm5, %v1982_v18 }
 0x84a   :  { %7479 = vmatmul.mubr.msk.f32.gmra.mrb[26].mxu1 %vm1698_vm5, %v1983_v19 }
 0x84b   :  { %7489 = vmatprep.mubr.msk.f32.mxu1 %vm1698_vm5, %v1862_v20 }
 0x84e   :  { %7490 = vmatmul.mubr.msk.f32.vlgmr.msra.gmra.mrb[12].mxu1 %vm1698_vm5, %v1863_v21 }
 0x84f   :  { %8416 = vmatpush3.bf16.msra.mxu1 %v8413_v58  ;;  %7492 = vmatprep.mubr.msk.f32.mxu1 %vm1698_vm5, %v1864_v1  ;;  %v2782_v58 = vld [vmem:[#allocation16 + $0x1b8] sm:$0xff] }
 0x850   :  { %8418 = vmatprep.subr.bf16.mxu1 %v8417_v63 }
 0x852   :  { %7493 = vmatmul.mubr.msk.f32.gmra.mrb[14].mxu1 %vm1698_vm5, %v1865_v0 }
 0x853   :  { %8420 = vmatpush3.bf16.msra.mxu1 %v8417_v63  ;;  %7495 = vmatprep.mubr.msk.f32.mxu1 %vm1698_vm5, %v1866_v22  ;;  %v2787_v63 = vld [vmem:[#allocation16 + $0x1e0] sm:$0xff] }
 0x854   :  { %8430 = vmatprep.subr.bf16.mxu1 %v9772_v6 }
 0x856   :  { %7496 = vmatmul.mubr.msk.f32.gmra.mrb[16].mxu1 %vm1698_vm5, %v1867_v23 }
 0x857   :  { %7498 = vmatprep.mubr.msk.f32.mxu1 %vm1698_vm5, %v1868_v24 }
 0x85a   :  { %7499 = vmatmul.mubr.msk.f32.gmra.mrb[18].mxu1 %vm1698_vm5, %v1869_v25 }
 0x85b   :  { %7501 = vmatprep.mubr.msk.f32.mxu1 %vm1698_vm5, %v1870_v26 }
 0x85e   :  { %7502 = vmatmul.mubr.msk.f32.gmra.mrb[20].mxu1 %vm1698_vm5, %v1871_v27 }
 0x85f   :  { %7504 = vmatprep.mubr.msk.f32.mxu1 %vm1698_vm5, %v1872_v28 }
 0x862   :  { %7505 = vmatmul.mubr.msk.f32.gmra.mrb[22].mxu1 %vm1698_vm5, %v1873_v29  ;;  %v3418_v29 = vld [vmem:[#allocation24 + $0x10] sm:$0xff] }
 0x863   :  { %7507 = vmatprep.mubr.msk.f32.mxu1 %vm1698_vm5, %v1874_v30  ;;  %v3419_v30 = vld [vmem:[#allocation24 + $0x18] sm:$0xff] }
 0x866   :  { %7508 = vmatmul.mubr.msk.f32.gmra.mrb[24].mxu1 %vm1698_vm5, %v1875_v31 }
 0x867   :  { %7510 = vmatprep.mubr.msk.f32.mxu1 %vm1698_vm5, %v1876_v32 }
 0x86a   :  { %7511 = vmatmul.mubr.msk.f32.gmra.mrb[26].mxu1 %vm1698_vm5, %v1877_v33  ;;  %v9847_v33 = vpack.c.bf16 %v3419_v30, %v3418_v29 }
 0x86b   :  { %7535 = vmatprep.mubr.msk.f32.mxu1 %vm1698_vm5, %v2460_v36 }
 0x86e   :  { %7536 = vmatmul.mubr.msk.f32.vlgmr.msra.gmra.mrb[12].mxu1 %vm1698_vm5, %v2461_v37 }
 0x86f   :  { %8432 = vmatpush3.bf16.msra.mxu1 %v9772_v6  ;;  %7538 = vmatprep.mubr.msk.f32.mxu1 %vm1698_vm5, %v2462_v38  ;;  %v3160_v6 = vld [vmem:[#allocation24 + $0x8] sm:$0xff] }
 0x870   :  { %8434 = vmatprep.subr.bf16.mxu1 %v9776_v11  ;;  %v8437_v7 = vpack.c.bf16 %v3160_v6, %v3159_v5 }
 0x872   :  { %7539 = vmatmul.mubr.msk.f32.gmra.mrb[14].mxu1 %vm1698_vm5, %v2463_v34  ;;  %8438 = vmatprep.subr.bf16.mxu0 %v8437_v7 }
 0x873   :  { %8436 = vmatpush3.bf16.msra.mxu1 %v9776_v11  ;;  %7541 = vmatprep.mubr.msk.f32.mxu1 %vm1698_vm5, %v2464_v39 }
 0x874   :  { %8440 = vmatpush3.bf16.msra.mxu0 %v8437_v7 }
 0x875   :  { %8442 = vmatprep.subr.bf16.mxu0 %v9847_v33 }
 0x876   :  { %7542 = vmatmul.mubr.msk.f32.gmra.mrb[16].mxu1 %vm1698_vm5, %v2465_v40 }
 0x877   :  { %7544 = vmatprep.mubr.msk.f32.mxu1 %vm1698_vm5, %v2466_v41 }
 0x87a   :  { %7545 = vmatmul.mubr.msk.f32.gmra.mrb[18].mxu1 %vm1698_vm5, %v2467_v42 }
 0x87b   :  { %7547 = vmatprep.mubr.msk.f32.mxu1 %vm1698_vm5, %v2468_v43 }
 0x87e   :  { %7548 = vmatmul.mubr.msk.f32.gmra.mrb[20].mxu1 %vm1698_vm5, %v2469_v44 }
 0x87f   :  { %7550 = vmatprep.mubr.msk.f32.mxu1 %vm1698_vm5, %v2470_v45 }
 0x882   :  { %7551 = vmatmul.mubr.msk.f32.gmra.mrb[22].mxu1 %vm1698_vm5, %v2471_v46 }
 0x883   :  { %7553 = vmatprep.mubr.msk.f32.mxu1 %vm1698_vm5, %v2472_v47 }
 0x886   :  { %7554 = vmatmul.mubr.msk.f32.gmra.mrb[24].mxu1 %vm1698_vm5, %v2473_v48 }
 0x887   :  { %7556 = vmatprep.mubr.msk.f32.mxu1 %vm1698_vm5, %v2474_v49 }
 0x88a   :  { %7557 = vmatmul.mubr.msk.f32.gmra.mrb[26].mxu1 %vm1698_vm5, %v2475_v50 }
 0x88b   :  { %7581 = vmatprep.mubr.msk.f32.mxu1 %vm1698_vm5, %v2775_v52 }
 0x88e   :  { %7582 = vmatmul.mubr.msk.f32.vlgmr.msra.gmra.mrb[12].mxu1 %vm1698_vm5, %v2776_v53 }
 0x88f   :  { %7584 = vmatprep.mubr.msk.f32.mxu1 %vm1698_vm5, %v2777_v51 }
 0x892   :  { %7585 = vmatmul.mubr.msk.f32.gmra.mrb[14].mxu1 %vm1698_vm5, %v2778_v54 }
 0x893   :  { %7587 = vmatprep.mubr.msk.f32.mxu1 %vm1698_vm5, %v2779_v55 }
 0x896   :  { %7588 = vmatmul.mubr.msk.f32.gmra.mrb[16].mxu1 %vm1698_vm5, %v2780_v56 }
 0x897   :  { %7590 = vmatprep.mubr.msk.f32.mxu1 %vm1698_vm5, %v2781_v57 }
 0x89a   :  { %7591 = vmatmul.mubr.msk.f32.gmra.mrb[18].mxu1 %vm1698_vm5, %v2782_v58 }
 0x89b   :  { %7593 = vmatprep.mubr.msk.f32.mxu1 %vm1698_vm5, %v2783_v59 }
 0x89e   :  { %7594 = vmatmul.mubr.msk.f32.gmra.mrb[20].mxu1 %vm1698_vm5, %v2784_v60 }
 0x89f   :  { %7596 = vmatprep.mubr.msk.f32.mxu1 %vm1698_vm5, %v2785_v61 }
 0x8a2   :  { %7597 = vmatmul.mubr.msk.f32.gmra.mrb[22].mxu1 %vm1698_vm5, %v2786_v62 }
 0x8a3   :  { %7599 = vmatprep.mubr.msk.f32.mxu1 %vm1698_vm5, %v2787_v63 }
 0x8a6   :  { %7600 = vmatmul.mubr.msk.f32.gmra.mrb[24].mxu1 %vm1698_vm5, %v2788_v2 }
 0x8a7   :  { %7602 = vmatprep.mubr.msk.f32.mxu1 %vm1698_vm5, %v2789_v3 }
 0x8aa   :  { %7603 = vmatmul.mubr.msk.f32.gmra.mrb[26].mxu1 %vm1698_vm5, %v2790_v4 }
 0x961   :  { %v7583_v8 = vpop.f32.mrb[12].mxu1 }
 0x962   :  { %v3002_v9 = vsel %vm3000_vm6, %v7583_v8, 0.0  ;;  %v2905_v10 = vpop.f32.mrb[13].mxu1 }
 0x963   :  { %v3001_v11 = vsel %vm3000_vm6, %v2905_v10, 0.0 }
 0x964   :  { %v3003_v12 = vadd.f32 %v3002_v9, %v3001_v11 }
 0x965   :  { %v7586_v13 = vpop.f32.mrb[14].mxu1 }
 0x966   :  { %v2915_v14 = vpop.f32.mrb[15].mxu1  ;;  %v3006_v17 = vsel %vm3000_vm6, %v7586_v13, 0.0 }
 0x967   :  { %v3004_v15 = vsel %vm3000_vm6, %v2915_v14, 0.0 }
 0x968   :  { %v3005_v16 = vadd.f32 %v3004_v15, %v3003_v12 }
 0x969   :  { %v7589_v18 = vpop.f32.mrb[16].mxu1 }
 0x96a   :  { %v2925_v19 = vpop.f32.mrb[17].mxu1  ;;  %v3007_v20 = vadd.f32 %v3006_v17, %v3005_v16  ;;  %v3010_v0 = vsel %vm3000_vm6, %v7589_v18, 0.0 }
 0x96b   :  { %v3008_v21 = vsel %vm3000_vm6, %v2925_v19, 0.0 }
 0x96c   :  { %v3009_v1 = vadd.f32 %v3008_v21, %v3007_v20 }
 0x96d   :  { %v7592_v22 = vpop.f32.mrb[18].mxu1 }
 0x96e   :  { %v2935_v23 = vpop.f32.mrb[19].mxu1  ;;  %v3011_v24 = vadd.f32 %v3010_v0, %v3009_v1  ;;  %v3014_v27 = vsel %vm3000_vm6, %v7592_v22, 0.0 }
 0x96f   :  { %v3012_v25 = vsel %vm3000_vm6, %v2935_v23, 0.0 }
 0x970   :  { %v3013_v26 = vadd.f32 %v3012_v25, %v3011_v24 }
 0x971   :  { %v7595_v28 = vpop.f32.mrb[20].mxu1 }
 0x972   :  { %v2945_v31 = vpop.f32.mrb[21].mxu1  ;;  %v3015_v32 = vadd.f32 %v3014_v27, %v3013_v26  ;;  %v3018_v38 = vsel %vm3000_vm6, %v7595_v28, 0.0 }
 0x973   :  { %v3016_v36 = vsel %vm3000_vm6, %v2945_v31, 0.0 }
 0x974   :  { %v3017_v37 = vadd.f32 %v3016_v36, %v3015_v32 }
 0x975   :  { %v7598_v34 = vpop.f32.mrb[22].mxu1 }
 0x976   :  { %v2955_v39 = vpop.f32.mrb[23].mxu1  ;;  %v3019_v40 = vadd.f32 %v3018_v38, %v3017_v37  ;;  %v3022_v43 = vsel %vm3000_vm6, %v7598_v34, 0.0 }
 0x977   :  { %v3020_v41 = vsel %vm3000_vm6, %v2955_v39, 0.0 }
 0x978   :  { %v3021_v42 = vadd.f32 %v3020_v41, %v3019_v40 }
 0x979   :  { %v7601_v44 = vpop.f32.mrb[24].mxu1 }
 0x97a   :  { %v2965_v45 = vpop.f32.mrb[25].mxu1  ;;  %v3023_v46 = vadd.f32 %v3022_v43, %v3021_v42  ;;  %v3026_v49 = vsel %vm3000_vm6, %v7601_v44, 0.0 }
 0x97b   :  { %v3024_v47 = vsel %vm3000_vm6, %v2965_v45, 0.0 }
 0x97c   :  { %v3025_v48 = vadd.f32 %v3024_v47, %v3023_v46 }
 0x97d   :  { %v7604_v50 = vpop.f32.mrb[26].mxu1 }
 0x97e   :  { %v2975_v52 = vpop.f32.mrb[27].mxu1  ;;  %v3027_v53 = vadd.f32 %v3026_v49, %v3025_v48  ;;  %v3030_v55 = vsel %vm3000_vm6, %v7604_v50, 0.0 }
 0x97f   :  { %v3028_v51 = vsel %vm3000_vm6, %v2975_v52, 0.0 }
 0x980   :  { %v3029_v54 = vadd.f32 %v3028_v51, %v3027_v53 }
 0x982   :  { %v3031_v56 = vadd.f32 %v3030_v55, %v3029_v54 }
 0x984   :  { %v3032_v57 = vrot.slane %v3031_v56, 4 }
 0x986   :  { %v3033_v58 = vadd.f32 %v3032_v57, %v3031_v56 }
 0x988   :  { %v3034_v59 = vrot.slane %v3033_v58, 2 }
 0x98a   :  { %v3035_v60 = vadd.f32 %v3034_v59, %v3033_v58 }
 0x98c   :  { %v3036_v61 = vrot.slane %v3035_v60, 1 }
 0x98e   :  { %v3037_v62 = vadd.f32 %v3036_v61, %v3035_v60 }
 0x990   :  { %v3039_v63 = vmul.f32 0.0078125, %v3037_v62 }
 0x992   :  { %v9858_v2 = vsub.f32 %v2905_v10, %v3039_v63  ;;  %v9860_v3 = vsub.f32 %v7583_v8, %v3039_v63  ;;  %v9862_v4 = vsub.f32 %v2915_v14, %v3039_v63  ;;  %v9864_v5 = vsub.f32 %v7586_v13, %v3039_v63 }
 0x993   :  { %v9866_v6 = vsub.f32 %v2925_v19, %v3039_v63  ;;  %v9868_v7 = vsub.f32 %v7589_v18, %v3039_v63  ;;  %v9870_v9 = vsub.f32 %v2935_v23, %v3039_v63  ;;  %v9872_v11 = vsub.f32 %v7592_v22, %v3039_v63 }
 0x994   :  { %v9874_v12 = vsub.f32 %v2945_v31, %v3039_v63  ;;  %v9876_v15 = vsub.f32 %v7595_v28, %v3039_v63  ;;  %v9878_v10 = vsub.f32 %v2955_v39, %v3039_v63  ;;  %v9880_v8 = vsub.f32 %v7598_v34, %v3039_v63 }
 0x995   :  { %v9882_v14 = vsub.f32 %v2965_v45, %v3039_v63  ;;  %v9884_v13 = vsub.f32 %v7601_v44, %v3039_v63  ;;  %v9886_v16 = vsub.f32 %v2975_v52, %v3039_v63  ;;  %v9888_v17 = vsub.f32 %v7604_v50, %v3039_v63 }
 0x996   :  { %v3056_v18 = vmul.f32 %v9858_v2, %v9858_v2  ;;  %v3057_v19 = vmul.f32 %v9860_v3, %v9860_v3  ;;  %v3058_v20 = vmul.f32 %v9862_v4, %v9862_v4  ;;  %v3059_v21 = vmul.f32 %v9864_v5, %v9864_v5 }
 0x997   :  { %v3060_v23 = vmul.f32 %v9866_v6, %v9866_v6  ;;  %v3061_v26 = vmul.f32 %v9868_v7, %v9868_v7  ;;  %v3062_v29 = vmul.f32 %v9870_v9, %v9870_v9  ;;  %v3063_v32 = vmul.f32 %v9872_v11, %v9872_v11 }
 0x998   :  { %v3072_v1 = vsel %vm3000_vm6, %v3056_v18, 0.0  ;;  %v3073_v0 = vsel %vm3000_vm6, %v3057_v19, 0.0  ;;  %v3075_v24 = vsel %vm3000_vm6, %v3058_v20, 0.0  ;;  %v3077_v27 = vsel %vm3000_vm6, %v3059_v21, 0.0 }
 0x999   :  { %v3074_v22 = vadd.f32 %v3073_v0, %v3072_v1  ;;  %v3079_v30 = vsel %vm3000_vm6, %v3060_v23, 0.0  ;;  %v3081_v36 = vsel %vm3000_vm6, %v3061_v26, 0.0  ;;  %v3064_v38 = vmul.f32 %v9874_v12, %v9874_v12 }
 0x99a   :  { %v3083_v34 = vsel %vm3000_vm6, %v3062_v29, 0.0  ;;  %v3065_v40 = vmul.f32 %v9876_v15, %v9876_v15  ;;  %v3085_v41 = vsel %vm3000_vm6, %v3063_v32, 0.0  ;;  %v3066_v43 = vmul.f32 %v9878_v10, %v9878_v10  ;;  %v6451_v29 = vld [vmem:[#allocation21] ss:$0 sm:$0xff] }
 0x99b   :  { %v3076_v25 = vadd.f32 %v3075_v24, %v3074_v22  ;;  %v3087_v44 = vsel %vm3000_vm6, %v3064_v38, 0.0  ;;  %v3067_v46 = vmul.f32 %v9880_v8, %v9880_v8  ;;  %v3068_v49 = vmul.f32 %v9882_v14, %v9882_v14 }
 0x99c   :  { %v3089_v47 = vsel %vm3000_vm6, %v3065_v40, 0.0  ;;  %v3091_v50 = vsel %vm3000_vm6, %v3066_v43, 0.0  ;;  %v3069_v53 = vmul.f32 %v9884_v13, %v9884_v13  ;;  %v3070_v55 = vmul.f32 %v9886_v16, %v9886_v16 }
 0x99d   :  { %v3078_v28 = vadd.f32 %v3077_v27, %v3076_v25  ;;  %v3093_v51 = vsel %vm3000_vm6, %v3067_v46, 0.0  ;;  %v3095_v56 = vsel %vm3000_vm6, %v3068_v49, 0.0  ;;  %v3071_v58 = vmul.f32 %v9888_v17, %v9888_v17  ;;  %v3110_v25 = vld [vmem:[#allocation19] sm:$0x1] }
 0x99e   :  { %v3097_v59 = vsel %vm3000_vm6, %v3069_v53, 0.0  ;;  %v3099_v61 = vsel %vm3000_vm6, %v3070_v55, 0.0 }
 0x99f   :  { %v3080_v31 = vadd.f32 %v3079_v30, %v3078_v28  ;;  %v3101_v63 = vsel %vm3000_vm6, %v3071_v58, 0.0 }
 0x9a1   :  { %v3082_v37 = vadd.f32 %v3081_v36, %v3080_v31 }
 0x9a3   :  { %v3084_v39 = vadd.f32 %v3083_v34, %v3082_v37 }
 0x9a5   :  { %v3086_v42 = vadd.f32 %v3085_v41, %v3084_v39 }
 0x9a7   :  { %v3088_v45 = vadd.f32 %v3087_v44, %v3086_v42 }
 0x9a9   :  { %v3090_v48 = vadd.f32 %v3089_v47, %v3088_v45 }
 0x9ab   :  { %v3092_v52 = vadd.f32 %v3091_v50, %v3090_v48 }
 0x9ad   :  { %v3094_v54 = vadd.f32 %v3093_v51, %v3092_v52 }
 0x9af   :  { %v3096_v57 = vadd.f32 %v3095_v56, %v3094_v54 }
 0x9b1   :  { %v3098_v60 = vadd.f32 %v3097_v59, %v3096_v57 }
 0x9b3   :  { %v3100_v62 = vadd.f32 %v3099_v61, %v3098_v60 }
 0x9b5   :  { %v3102_v18 = vadd.f32 %v3101_v63, %v3100_v62 }
 0x9b7   :  { %v3103_v19 = vrot.slane %v3102_v18, 4 }
 0x9b9   :  { %v3104_v20 = vadd.f32 %v3103_v19, %v3102_v18 }
 0x9bb   :  { %v3105_v21 = vrot.slane %v3104_v20, 2 }
 0x9bd   :  { %v3106_v1 = vadd.f32 %v3105_v21, %v3104_v20 }
 0x9bf   :  { %v3107_v0 = vrot.slane %v3106_v1, 1 }
 0x9c1   :  { %v3108_v22 = vadd.f32 %v3107_v0, %v3106_v1 }
 0x9c3   :  { %v3109_v23 = vmul.f32 0.0078125, %v3108_v22 }
 0x9c5   :  { %v3111_v24 = vadd.f32 1e-05, %v3109_v23 }
 0x9c7   :  { %8881 = vrsqrt.f32 %v3111_v24 }
 0x9d1   :  { %v8882_v26 = vpop.eup %8881 }
 0x9d2   :  { %v3113_v27 = vmul.f32 %v8882_v26, %v3110_v25 }
 0x9d4   :  { %v3118_v28 = vrot.slane %v3113_v27, %v9698_v35 }
 0x9d6   :  { %v3134_v30 = vmul.f32 %v3118_v28, %v9886_v16  ;;  %v3120_v31 = vmul.f32 %v3118_v28, %v9858_v2  ;;  %v3121_v32 = vmul.f32 %v3118_v28, %v9860_v3  ;;  %v3122_v36 = vmul.f32 %v3118_v28, %v9862_v4 }
 0x9d7   :  { %v3124_v37 = vmul.f32 %v3118_v28, %v9866_v6  ;;  %v3126_v38 = vmul.f32 %v3118_v28, %v9870_v9  ;;  %v3123_v40 = vmul.f32 %v3118_v28, %v9864_v5  ;;  %v3128_v2 = vmul.f32 %v3118_v28, %v9874_v12 }
 0x9d8   :  { %v9945_v34 = vadd.f32 %v6451_v29, %v3120_v31  ;;  %v9947_v39 = vadd.f32 %v6451_v29, %v3121_v32  ;;  %v9952_v16 = vadd.f32 %v6451_v29, %v3122_v36  ;;  %v3130_v3 = vmul.f32 %v3118_v28, %v9878_v10 }
 0x9d9   :  { %v3132_v4 = vmul.f32 %v3118_v28, %v9882_v14  ;;  %v9961_v6 = vadd.f32 %v6451_v29, %v3123_v40  ;;  %v3125_v5 = vmul.f32 %v3118_v28, %v9868_v7  ;;  %v9965_v9 = vadd.f32 %v6451_v29, %v3124_v37 }
 0x9da   :  { %7609 = vmatprep.mubr.msk.f32.mxu0 %vm3000_vm6, %v9945_v34  ;;  %v3127_v10 = vmul.f32 %v3118_v28, %v9872_v11  ;;  %v9974_v14 = vadd.f32 %v6451_v29, %v3126_v38  ;;  %v3129_v7 = vmul.f32 %v3118_v28, %v9876_v15  ;;  %v9983_v41 = vadd.f32 %v6451_v29, %v3128_v2 }
 0x9db   :  { %7610 = vmatmul.mubr.msk.f32.vlgmr.msra.gmra.mrb[26].mxu0 %vm3000_vm6, %v9947_v39  ;;  %v9971_v12 = vadd.f32 %v6451_v29, %v3125_v5  ;;  %v3131_v42 = vmul.f32 %v3118_v28, %v9880_v8  ;;  %v9992_v43 = vadd.f32 %v6451_v29, %v3130_v3  ;;  %v3133_v44 = vmul.f32 %v3118_v28, %v9884_v13 }
 0x9dc   :  { %7612 = vmatprep.mubr.msk.f32.mxu0 %vm3000_vm6, %v9952_v16  ;;  %8444 = vmatpush3.bf16.msra.mxu0 %v9847_v33  ;;  %v9980_v33 = vadd.f32 %v6451_v29, %v3127_v10  ;;  %v9989_v11 = vadd.f32 %v6451_v29, %v3129_v7  ;;  %v10001_v45 = vadd.f32 %v6451_v29, %v3132_v4 }
 0x9dd   :  { %v9998_v15 = vadd.f32 %v6451_v29, %v3131_v42  ;;  %v10007_v8 = vadd.f32 %v6451_v29, %v3133_v44  ;;  %v3135_v46 = vmul.f32 %v3118_v28, %v9888_v17  ;;  %v10010_v47 = vadd.f32 %v6451_v29, %v3134_v30  ;;  %v3566_v17 = vld [vmem:[#allocation22 + $0x200] sm:$0xff] }
 0x9de   :  { %7693 = vmatprep.mubr.f32.mxu1 %v3566_v17 }
 0x9df   :  { %7613 = vmatmul.mubr.msk.f32.gmra.mrb[28].mxu0 %vm3000_vm6, %v9961_v6  ;;  %v10016_v13 = vadd.f32 %v6451_v29, %v3135_v46 }
 0x9e0   :  { %7615 = vmatprep.mubr.msk.f32.mxu0 %vm3000_vm6, %v9965_v9 }
 0x9e3   :  { %7616 = vmatmul.mubr.msk.f32.gmra.mrb[30].mxu0 %vm3000_vm6, %v9971_v12 }
 0x9e4   :  { %7618 = vmatprep.mubr.msk.f32.mxu0 %vm3000_vm6, %v9974_v14 }
 0x9e7   :  { %7619 = vmatmul.mubr.msk.f32.gmra.mrb[32].mxu0 %vm3000_vm6, %v9980_v33 }
 0x9e8   :  { %7621 = vmatprep.mubr.msk.f32.mxu0 %vm3000_vm6, %v9983_v41 }
 0x9eb   :  { %7622 = vmatmul.mubr.msk.f32.gmra.mrb[34].mxu0 %vm3000_vm6, %v9989_v11 }
 0x9ec   :  { %7624 = vmatprep.mubr.msk.f32.mxu0 %vm3000_vm6, %v9992_v43 }
 0x9ef   :  { %7625 = vmatmul.mubr.msk.f32.gmra.mrb[36].mxu0 %vm3000_vm6, %v9998_v15 }
 0x9f0   :  { %7627 = vmatprep.mubr.msk.f32.mxu0 %vm3000_vm6, %v10001_v45 }
 0x9f3   :  { %7628 = vmatmul.mubr.msk.f32.gmra.mrb[38].mxu0 %vm3000_vm6, %v10007_v8 }
 0x9f4   :  { %7630 = vmatprep.mubr.msk.f32.mxu0 %vm3000_vm6, %v10010_v47 }
 0x9f7   :  { %7631 = vmatmul.mubr.msk.f32.gmra.mrb[40].mxu0 %vm3000_vm6, %v10016_v13 }
 0x9f8   :  { %7637 = vmatprep.mubr.msk.f32.mxu0 %vm3000_vm6, %v9945_v34 }
 0x9fb   :  { %7638 = vmatmul.mubr.msk.f32.vlgmr.msra.gmra.mrb[42].mxu0 %vm3000_vm6, %v9947_v39 }
 0x9fc   :  { %7640 = vmatprep.mubr.msk.f32.mxu0 %vm3000_vm6, %v9952_v16 }
 0x9ff   :  { %7641 = vmatmul.mubr.msk.f32.gmra.mrb[44].mxu0 %vm3000_vm6, %v9961_v6 }
 0xa00   :  { %7643 = vmatprep.mubr.msk.f32.mxu0 %vm3000_vm6, %v9965_v9 }
 0xa03   :  { %7644 = vmatmul.mubr.msk.f32.gmra.mrb[46].mxu0 %vm3000_vm6, %v9971_v12 }
 0xa04   :  { %7646 = vmatprep.mubr.msk.f32.mxu0 %vm3000_vm6, %v9974_v14 }
 0xa07   :  { %7647 = vmatmul.mubr.msk.f32.gmra.mrb[48].mxu0 %vm3000_vm6, %v9980_v33 }
 0xa08   :  { %7649 = vmatprep.mubr.msk.f32.mxu0 %vm3000_vm6, %v9983_v41 }
 0xa0b   :  { %7650 = vmatmul.mubr.msk.f32.gmra.mrb[50].mxu0 %vm3000_vm6, %v9989_v11 }
 0xa0c   :  { %7652 = vmatprep.mubr.msk.f32.mxu0 %vm3000_vm6, %v9992_v43 }
 0xa0f   :  { %7653 = vmatmul.mubr.msk.f32.gmra.mrb[52].mxu0 %vm3000_vm6, %v9998_v15 }
 0xa10   :  { %7655 = vmatprep.mubr.msk.f32.mxu0 %vm3000_vm6, %v10001_v45 }
 0xa13   :  { %7656 = vmatmul.mubr.msk.f32.gmra.mrb[54].mxu0 %vm3000_vm6, %v10007_v8 }
 0xa14   :  { %7658 = vmatprep.mubr.msk.f32.mxu0 %vm3000_vm6, %v10010_v47 }
 0xa17   :  { %7659 = vmatmul.mubr.msk.f32.gmra.mrb[56].mxu0 %vm3000_vm6, %v10016_v13 }
 0xaae   :  { %v7611_v48 = vpop.f32.mrb[26].mxu0 }
 0xaaf   :  { %v3275_v49 = vpop.f32.mrb[27].mxu0 }
 0xab0   :  { %v10052_v50 = vpack.c.bf16 %v7611_v48, %v3275_v49  ;;  %v3567_v49 = vld [vmem:[#allocation22 + $0x208] sm:$0xff] }
 0xab2   :  { %v7614_v52 = vpop.f32.mrb[28].mxu0  ;;  %8478 = vmatprep.subr.bf16.mxu0 %v10052_v50 }
 0xab3   :  { %v3285_v53 = vpop.f32.mrb[29].mxu0  ;;  %8480 = vmatpush3.bf16.msra.mxu0 %v10052_v50 }
 0xab4   :  { %v10056_v51 = vpack.c.bf16 %v7614_v52, %v3285_v53  ;;  %v3568_v52 = vld [vmem:[#allocation22 + $0x210] sm:$0xff]  ;;  %v3569_v53 = vld [vmem:[#allocation22 + $0x218] sm:$0xff] }
 0xab6   :  { %v7617_v54 = vpop.f32.mrb[30].mxu0  ;;  %8482 = vmatprep.subr.bf16.mxu0 %v10056_v51 }
 0xab7   :  { %v3295_v55 = vpop.f32.mrb[31].mxu0  ;;  %8484 = vmatpush3.bf16.msra.mxu0 %v10056_v51 }
 0xab8   :  { %v10060_v56 = vpack.c.bf16 %v7617_v54, %v3295_v55  ;;  %v3570_v54 = vld [vmem:[#allocation22 + $0x220] sm:$0xff]  ;;  %v3571_v55 = vld [vmem:[#allocation22 + $0x228] sm:$0xff] }
 0xaba   :  { %v7620_v57 = vpop.f32.mrb[32].mxu0  ;;  %8486 = vmatprep.subr.bf16.mxu0 %v10060_v56 }
 0xabb   :  { %v3305_v58 = vpop.f32.mrb[33].mxu0  ;;  %8488 = vmatpush3.bf16.msra.mxu0 %v10060_v56 }
 0xabc   :  { %v10064_v59 = vpack.c.bf16 %v7620_v57, %v3305_v58  ;;  %v3572_v57 = vld [vmem:[#allocation22 + $0x230] sm:$0xff]  ;;  %v3573_v58 = vld [vmem:[#allocation22 + $0x238] sm:$0xff] }
 0xabe   :  { %v7623_v60 = vpop.f32.mrb[34].mxu0  ;;  %8490 = vmatprep.subr.bf16.mxu0 %v10064_v59 }
 0xabf   :  { %v3315_v61 = vpop.f32.mrb[35].mxu0  ;;  %8492 = vmatpush3.bf16.msra.mxu0 %v10064_v59 }
 0xac0   :  { %v10068_v62 = vpack.c.bf16 %v7623_v60, %v3315_v61  ;;  %v3575_v60 = vld [vmem:[#allocation22 + $0x248] sm:$0xff]  ;;  %v3577_v61 = vld [vmem:[#allocation22 + $0x258] sm:$0xff] }
 0xac2   :  { %v7626_v63 = vpop.f32.mrb[36].mxu0  ;;  %8494 = vmatprep.subr.bf16.mxu0 %v10068_v62 }
 0xac3   :  { %v3325_v18 = vpop.f32.mrb[37].mxu0  ;;  %8496 = vmatpush3.bf16.msra.mxu0 %v10068_v62 }
 0xac4   :  { %v10072_v19 = vpack.c.bf16 %v7626_v63, %v3325_v18  ;;  %v3579_v63 = vld [vmem:[#allocation22 + $0x268] sm:$0xff]  ;;  %v4400_v18 = vld [vmem:[#allocation24 + $0x20] sm:$0xff] }
 0xac6   :  { %v7629_v20 = vpop.f32.mrb[38].mxu0  ;;  %8498 = vmatprep.subr.bf16.mxu0 %v10072_v19 }
 0xac7   :  { %v3335_v21 = vpop.f32.mrb[39].mxu0  ;;  %8500 = vmatpush3.bf16.msra.mxu0 %v10072_v19 }
 0xac8   :  { %v10076_v1 = vpack.c.bf16 %v7629_v20, %v3335_v21  ;;  %v4401_v20 = vld [vmem:[#allocation24 + $0x28] sm:$0xff]  ;;  %v3582_v21 = vld [vmem:[#allocation22 + $0x280] sm:$0xff] }
 0xaca   :  { %v7632_v0 = vpop.f32.mrb[40].mxu0  ;;  %8502 = vmatprep.subr.bf16.mxu0 %v10076_v1 }
 0xacb   :  { %v3345_v22 = vpop.f32.mrb[41].mxu0  ;;  %8504 = vmatpush3.bf16.msra.mxu0 %v10076_v1 }
 0xacc   :  { %v10080_v23 = vpack.c.bf16 %v7632_v0, %v3345_v22  ;;  %v10099_v0 = vpack.c.bf16 %v4401_v20, %v4400_v18  ;;  %v3584_v22 = vld [vmem:[#allocation22 + $0x290] sm:$0xff]  ;;  %v3625_v18 = vld [vmem:[#allocation22 + $0x3d8] sm:$0xff]  ;;  %v3626_v20 = vld [vmem:[#allocation22 + $0x3e0] sm:$0xff] }
 0xace   :  { %v7639_v24 = vpop.f32.mrb[42].mxu0  ;;  %8506 = vmatprep.subr.bf16.mxu0 %v10080_v23 }
 0xacf   :  { %v3486_v25 = vpop.f32.mrb[43].mxu0  ;;  %8508 = vmatpush3.bf16.msra.mxu0 %v10080_v23 }
 0xad0   :  { %v8445_v26 = vpack.c.bf16 %v7639_v24, %v3486_v25  ;;  %v3585_v24 = vld [vmem:[#allocation22 + $0x298] sm:$0xff]  ;;  %v3586_v25 = vld [vmem:[#allocation22 + $0x2a0] sm:$0xff] }
 0xad2   :  { %v7642_v27 = vpop.f32.mrb[44].mxu0  ;;  %8446 = vmatprep.subr.bf16.mxu1 %v8445_v26 }
 0xad3   :  { %v3496_v28 = vpop.f32.mrb[45].mxu0  ;;  %8448 = vmatpush3.bf16.msra.mxu1 %v8445_v26  ;;  %v3588_v26 = vld [vmem:[#allocation22 + $0x2b0] sm:$0xff] }
 0xad4   :  { %v8449_v29 = vpack.c.bf16 %v7642_v27, %v3496_v28  ;;  %v3589_v27 = vld [vmem:[#allocation22 + $0x2b8] sm:$0xff]  ;;  %v3590_v28 = vld [vmem:[#allocation22 + $0x2c0] sm:$0xff] }
 0xad6   :  { %v7645_v30 = vpop.f32.mrb[46].mxu0  ;;  %8450 = vmatprep.subr.bf16.mxu1 %v8449_v29 }
 0xad7   :  { %v3506_v31 = vpop.f32.mrb[47].mxu0  ;;  %8452 = vmatpush3.bf16.msra.mxu1 %v8449_v29  ;;  %v3592_v29 = vld [vmem:[#allocation22 + $0x2d0] sm:$0xff] }
 0xad8   :  { %v8453_v32 = vpack.c.bf16 %v7645_v30, %v3506_v31  ;;  %v3593_v30 = vld [vmem:[#allocation22 + $0x2d8] sm:$0xff]  ;;  %v3594_v31 = vld [vmem:[#allocation22 + $0x2e0] sm:$0xff] }
 0xada   :  { %v7648_v36 = vpop.f32.mrb[48].mxu0  ;;  %8454 = vmatprep.subr.bf16.mxu1 %v8453_v32 }
 0xadb   :  { %v3516_v37 = vpop.f32.mrb[49].mxu0  ;;  %8456 = vmatpush3.bf16.msra.mxu1 %v8453_v32  ;;  %v3595_v32 = vld [vmem:[#allocation22 + $0x2e8] sm:$0xff] }
 0xadc   :  { %v8457_v38 = vpack.c.bf16 %v7648_v36, %v3516_v37  ;;  %v3596_v36 = vld [vmem:[#allocation22 + $0x2f0] sm:$0xff]  ;;  %v3597_v37 = vld [vmem:[#allocation22 + $0x2f8] sm:$0xff] }
 0xade   :  { %v7651_v40 = vpop.f32.mrb[50].mxu0  ;;  %8458 = vmatprep.subr.bf16.mxu1 %v8457_v38 }
 0xadf   :  { %v3526_v2 = vpop.f32.mrb[51].mxu0  ;;  %8460 = vmatpush3.bf16.msra.mxu1 %v8457_v38  ;;  %v3598_v38 = vld [vmem:[#allocation22 + $0x300] sm:$0xff] }
 0xae0   :  { %v8461_v3 = vpack.c.bf16 %v7651_v40, %v3526_v2  ;;  %v3599_v40 = vld [vmem:[#allocation22 + $0x308] sm:$0xff]  ;;  %v3600_v2 = vld [vmem:[#allocation22 + $0x310] sm:$0xff] }
 0xae2   :  { %v7654_v4 = vpop.f32.mrb[52].mxu0  ;;  %8462 = vmatprep.subr.bf16.mxu1 %v8461_v3 }
 0xae3   :  { %v3536_v5 = vpop.f32.mrb[53].mxu0  ;;  %8464 = vmatpush3.bf16.msra.mxu1 %v8461_v3  ;;  %v3601_v3 = vld [vmem:[#allocation22 + $0x318] sm:$0xff] }
 0xae4   :  { %v8465_v10 = vpack.c.bf16 %v7654_v4, %v3536_v5  ;;  %v3602_v4 = vld [vmem:[#allocation22 + $0x320] sm:$0xff]  ;;  %v3603_v5 = vld [vmem:[#allocation22 + $0x328] sm:$0xff] }
 0xae6   :  { %v7657_v7 = vpop.f32.mrb[54].mxu0  ;;  %8466 = vmatprep.subr.bf16.mxu1 %v8465_v10 }
 0xae7   :  { %v3546_v42 = vpop.f32.mrb[55].mxu0  ;;  %8468 = vmatpush3.bf16.msra.mxu1 %v8465_v10  ;;  %v3604_v10 = vld [vmem:[#allocation22 + $0x330] sm:$0xff] }
 0xae8   :  { %v8469_v44 = vpack.c.bf16 %v7657_v7, %v3546_v42  ;;  %v3605_v7 = vld [vmem:[#allocation22 + $0x338] sm:$0xff]  ;;  %v3606_v42 = vld [vmem:[#allocation22 + $0x340] sm:$0xff] }
 0xaea   :  { %v7660_v46 = vpop.f32.mrb[56].mxu0  ;;  %8470 = vmatprep.subr.bf16.mxu1 %v8469_v44 }
 0xaeb   :  { %v3556_v17 = vpop.f32.mrb[57].mxu0  ;;  %8472 = vmatpush3.bf16.msra.mxu1 %v8469_v44  ;;  %v3607_v44 = vld [vmem:[#allocation22 + $0x348] sm:$0xff] }
 0xaec   :  { %v8473_v48 = vpack.c.bf16 %v7660_v46, %v3556_v17  ;;  %v3608_v46 = vld [vmem:[#allocation22 + $0x350] sm:$0xff]  ;;  %v3609_v17 = vld [vmem:[#allocation22 + $0x358] sm:$0xff] }
 0xaee   :  { %8474 = vmatprep.subr.bf16.mxu1 %v8473_v48 }
 0xaef   :  { %8476 = vmatpush3.bf16.msra.mxu1 %v8473_v48  ;;  %v3610_v48 = vld [vmem:[#allocation22 + $0x360] sm:$0xff] }
 0xaf0   :  { %8581 = vmatprep.subr.bf16.mxu1 %v10052_v50 }
 0xaf2   :  { %7694 = vmatmul.mubr.f32.vlgmr.msra.gmra.mrb[28].mxu1 %v3567_v49  ;;  %v3611_v49 = vld [vmem:[#allocation22 + $0x368] sm:$0xff] }
 0xaf3   :  { %8589 = vmatpush3.bf16.msra.mxu1 %v10052_v50  ;;  %7696 = vmatprep.mubr.f32.mxu1 %v3568_v52  ;;  %v3574_v50 = vld [vmem:[#allocation22 + $0x240] sm:$0xff]  ;;  %v3612_v52 = vld [vmem:[#allocation22 + $0x370] sm:$0xff] }
 0xaf4   :  { %8582 = vmatprep.subr.bf16.mxu1 %v10056_v51 }
 0xaf6   :  { %7697 = vmatmul.mubr.f32.gmra.mrb[30].mxu1 %v3569_v53  ;;  %v3613_v53 = vld [vmem:[#allocation22 + $0x378] sm:$0xff] }
 0xaf7   :  { %8590 = vmatpush3.bf16.msra.mxu1 %v10056_v51  ;;  %7699 = vmatprep.mubr.f32.mxu1 %v3570_v54  ;;  %v3576_v51 = vld [vmem:[#allocation22 + $0x250] sm:$0xff]  ;;  %v3614_v54 = vld [vmem:[#allocation22 + $0x380] sm:$0xff] }
 0xaf8   :  { %8583 = vmatprep.subr.bf16.mxu1 %v10060_v56 }
 0xafa   :  { %7700 = vmatmul.mubr.f32.gmra.mrb[32].mxu1 %v3571_v55  ;;  %v3615_v55 = vld [vmem:[#allocation22 + $0x388] sm:$0xff] }
 0xafb   :  { %8591 = vmatpush3.bf16.msra.mxu1 %v10060_v56  ;;  %7702 = vmatprep.mubr.f32.mxu1 %v3572_v57  ;;  %v3578_v56 = vld [vmem:[#allocation22 + $0x260] sm:$0xff]  ;;  %v3616_v57 = vld [vmem:[#allocation22 + $0x390] sm:$0xff] }
 0xafc   :  { %8584 = vmatprep.subr.bf16.mxu1 %v10064_v59 }
 0xafe   :  { %7703 = vmatmul.mubr.f32.gmra.mrb[34].mxu1 %v3573_v58  ;;  %v3617_v58 = vld [vmem:[#allocation22 + $0x398] sm:$0xff] }
 0xaff   :  { %8592 = vmatpush3.bf16.msra.mxu1 %v10064_v59  ;;  %7705 = vmatprep.mubr.f32.mxu1 %v3574_v50  ;;  %v3580_v59 = vld [vmem:[#allocation22 + $0x270] sm:$0xff]  ;;  %v3618_v50 = vld [vmem:[#allocation22 + $0x3a0] sm:$0xff] }
 0xb00   :  { %8585 = vmatprep.subr.bf16.mxu1 %v10068_v62 }
 0xb02   :  { %7706 = vmatmul.mubr.f32.gmra.mrb[36].mxu1 %v3575_v60  ;;  %v3619_v60 = vld [vmem:[#allocation22 + $0x3a8] sm:$0xff] }
 0xb03   :  { %8593 = vmatpush3.bf16.msra.mxu1 %v10068_v62  ;;  %7708 = vmatprep.mubr.f32.mxu1 %v3576_v51  ;;  %v3581_v62 = vld [vmem:[#allocation22 + $0x278] sm:$0xff]  ;;  %v3620_v51 = vld [vmem:[#allocation22 + $0x3b0] sm:$0xff] }
 0xb04   :  { %8586 = vmatprep.subr.bf16.mxu1 %v10072_v19 }
 0xb06   :  { %7709 = vmatmul.mubr.f32.gmra.mrb[38].mxu1 %v3577_v61  ;;  %v3621_v61 = vld [vmem:[#allocation22 + $0x3b8] sm:$0xff] }
 0xb07   :  { %8594 = vmatpush3.bf16.msra.mxu1 %v10072_v19  ;;  %7711 = vmatprep.mubr.f32.mxu1 %v3578_v56  ;;  %v3583_v19 = vld [vmem:[#allocation22 + $0x288] sm:$0xff]  ;;  %v3622_v56 = vld [vmem:[#allocation22 + $0x3c0] sm:$0xff] }
 0xb08   :  { %8587 = vmatprep.subr.bf16.mxu1 %v10076_v1 }
 0xb0a   :  { %7712 = vmatmul.mubr.f32.gmra.mrb[40].mxu1 %v3579_v63  ;;  %v3623_v63 = vld [vmem:[#allocation22 + $0x3c8] sm:$0xff] }
 0xb0b   :  { %8595 = vmatpush3.bf16.msra.mxu1 %v10076_v1  ;;  %7714 = vmatprep.mubr.f32.mxu1 %v3580_v59  ;;  %v3587_v1 = vld [vmem:[#allocation22 + $0x2a8] sm:$0xff]  ;;  %v3624_v59 = vld [vmem:[#allocation22 + $0x3d0] sm:$0xff] }
 0xb0c   :  { %8588 = vmatprep.subr.bf16.mxu1 %v10080_v23 }
 0xb0e   :  { %7715 = vmatmul.mubr.f32.gmra.mrb[42].mxu1 %v3581_v62  ;;  %v3627_v62 = vld [vmem:[#allocation22 + $0x3e8] sm:$0xff] }
 0xb0f   :  { %8596 = vmatpush3.bf16.msra.mxu1 %v10080_v23  ;;  %7717 = vmatprep.mubr.f32.mxu1 %v3582_v21  ;;  %v3591_v23 = vld [vmem:[#allocation22 + $0x2c8] sm:$0xff]  ;;  %v3628_v21 = vld [vmem:[#allocation22 + $0x3f0] sm:$0xff] }
 0xb10   :  { %8510 = vmatprep.subr.bf16.mxu1 %v10099_v0 }
 0xb12   :  { %7718 = vmatmul.mubr.f32.gmra.mrb[44].mxu1 %v3583_v19  ;;  %v3629_v19 = vld [vmem:[#allocation22 + $0x3f8] sm:$0xff] }
 0xb13   :  { %7720 = vmatprep.mubr.f32.mxu1 %v3584_v22  ;;  %v3380_v22 = vld [vmem:[#allocation22 + $0xd0] sm:$0xff] }
 0xb16   :  { %7721 = vmatmul.mubr.f32.gmra.mrb[46].mxu1 %v3585_v24  ;;  %v5061_v24 = vld [vmem:[#allocation24 + $0x30] sm:$0xff] }
 0xb17   :  { %7723 = vmatprep.mubr.f32.mxu1 %v3586_v25  ;;  %v5062_v25 = vld [vmem:[#allocation24 + $0x38] sm:$0xff] }
 0xb1a   :  { %7724 = vmatmul.mubr.f32.gmra.mrb[48].mxu1 %v3587_v1  ;;  %v3381_v1 = vld [vmem:[#allocation22 + $0xd8] sm:$0xff] }
 0xb1b   :  { %7726 = vmatprep.mubr.f32.mxu1 %v3588_v26  ;;  %v3382_v26 = vld [vmem:[#allocation22 + $0xe0] sm:$0xff] }
 0xb1e   :  { %7727 = vmatmul.mubr.f32.gmra.mrb[50].mxu1 %v3589_v27  ;;  %v10103_v27 = vpack.c.bf16 %v5062_v25, %v5061_v24 }
 0xb1f   :  { %7729 = vmatprep.mubr.f32.mxu1 %v3590_v28  ;;  %v3383_v28 = vld [vmem:[#allocation22 + $0xe8] sm:$0xff] }
 0xb22   :  { %7730 = vmatmul.mubr.f32.gmra.mrb[52].mxu1 %v3591_v23  ;;  %v3384_v23 = vld [vmem:[#allocation22 + $0xf0] sm:$0xff] }
 0xb23   :  { %7732 = vmatprep.mubr.f32.mxu1 %v3592_v29  ;;  %v3385_v29 = vld [vmem:[#allocation22 + $0xf8] sm:$0xff] }
 0xb26   :  { %7733 = vmatmul.mubr.f32.gmra.mrb[54].mxu1 %v3593_v30  ;;  %v3386_v30 = vld [vmem:[#allocation22 + $0x100] sm:$0xff] }
 0xb27   :  { %7735 = vmatprep.mubr.f32.mxu1 %v3594_v31  ;;  %v3387_v31 = vld [vmem:[#allocation22 + $0x108] sm:$0xff] }
 0xb2a   :  { %7736 = vmatmul.mubr.f32.gmra.mrb[56].mxu1 %v3595_v32  ;;  %v3388_v32 = vld [vmem:[#allocation22 + $0x110] sm:$0xff] }
 0xb2b   :  { %7738 = vmatprep.mubr.f32.mxu1 %v3596_v36  ;;  %v3389_v36 = vld [vmem:[#allocation22 + $0x118] sm:$0xff] }
 0xb2e   :  { %7739 = vmatmul.mubr.f32.gmra.mrb[58].mxu1 %v3597_v37  ;;  %v3390_v37 = vld [vmem:[#allocation22 + $0x120] sm:$0xff] }
 0xb2f   :  { %7741 = vmatprep.mubr.f32.mxu1 %v3598_v38  ;;  %v3391_v38 = vld [vmem:[#allocation22 + $0x128] sm:$0xff] }
 0xb32   :  { %7742 = vmatmul.mubr.f32.gmra.mrb[60].mxu1 %v3599_v40  ;;  %v3392_v40 = vld [vmem:[#allocation22 + $0x130] sm:$0xff] }
 0xb33   :  { %7744 = vmatprep.mubr.f32.mxu1 %v3600_v2  ;;  %v3394_v2 = vld [vmem:[#allocation22 + $0x140] sm:$0xff] }
 0xb36   :  { %7745 = vmatmul.mubr.f32.gmra.mrb[62].mxu1 %v3601_v3  ;;  %v3395_v3 = vld [vmem:[#allocation22 + $0x148] sm:$0xff] }
 0xb37   :  { %7747 = vmatprep.mubr.f32.mxu1 %v3602_v4  ;;  %v3396_v4 = vld [vmem:[#allocation22 + $0x150] sm:$0xff] }
 0xb3a   :  { %7748 = vmatmul.mubr.f32.gmra.mrb[64].mxu1 %v3603_v5  ;;  %v3397_v5 = vld [vmem:[#allocation22 + $0x158] sm:$0xff] }
 0xb3b   :  { %7750 = vmatprep.mubr.f32.mxu1 %v3604_v10  ;;  %v3398_v10 = vld [vmem:[#allocation22 + $0x160] sm:$0xff] }
 0xb3e   :  { %7751 = vmatmul.mubr.f32.gmra.mrb[66].mxu1 %v3605_v7  ;;  %v3399_v7 = vld [vmem:[#allocation22 + $0x168] sm:$0xff] }
 0xb3f   :  { %7753 = vmatprep.mubr.f32.mxu1 %v3606_v42  ;;  %v3400_v42 = vld [vmem:[#allocation22 + $0x170] sm:$0xff] }
 0xb42   :  { %7754 = vmatmul.mubr.f32.gmra.mrb[68].mxu1 %v3607_v44  ;;  %v3401_v44 = vld [vmem:[#allocation22 + $0x178] sm:$0xff] }
 0xb43   :  { %7756 = vmatprep.mubr.f32.mxu1 %v3608_v46  ;;  %v3402_v46 = vld [vmem:[#allocation22 + $0x180] sm:$0xff] }
 0xb46   :  { %7757 = vmatmul.mubr.f32.gmra.mrb[70].mxu1 %v3609_v17  ;;  %v3403_v17 = vld [vmem:[#allocation22 + $0x188] sm:$0xff] }
 0xb47   :  { %7759 = vmatprep.mubr.f32.mxu1 %v3610_v48  ;;  %v3404_v48 = vld [vmem:[#allocation22 + $0x190] sm:$0xff] }
 0xb4a   :  { %7760 = vmatmul.mubr.f32.gmra.mrb[72].mxu1 %v3611_v49  ;;  %v3405_v49 = vld [vmem:[#allocation22 + $0x198] sm:$0xff] }
 0xb4b   :  { %7762 = vmatprep.mubr.f32.mxu1 %v3612_v52  ;;  %v3406_v52 = vld [vmem:[#allocation22 + $0x1a0] sm:$0xff] }
 0xb4e   :  { %7763 = vmatmul.mubr.f32.gmra.mrb[74].mxu1 %v3613_v53  ;;  %v3407_v53 = vld [vmem:[#allocation22 + $0x1a8] sm:$0xff] }
 0xb4f   :  { %7765 = vmatprep.mubr.f32.mxu1 %v3614_v54  ;;  %v3408_v54 = vld [vmem:[#allocation22 + $0x1b0] sm:$0xff] }
 0xb52   :  { %7766 = vmatmul.mubr.f32.gmra.mrb[76].mxu1 %v3615_v55  ;;  %v3409_v55 = vld [vmem:[#allocation22 + $0x1b8] sm:$0xff] }
 0xb53   :  { %7768 = vmatprep.mubr.f32.mxu1 %v3616_v57  ;;  %v3410_v57 = vld [vmem:[#allocation22 + $0x1c0] sm:$0xff] }
 0xb56   :  { %7769 = vmatmul.mubr.f32.gmra.mrb[78].mxu1 %v3617_v58  ;;  %v3411_v58 = vld [vmem:[#allocation22 + $0x1c8] sm:$0xff] }
 0xb57   :  { %7771 = vmatprep.mubr.f32.mxu1 %v3618_v50  ;;  %v3412_v50 = vld [vmem:[#allocation22 + $0x1d0] sm:$0xff] }
 0xb5a   :  { %7772 = vmatmul.mubr.f32.gmra.mrb[80].mxu1 %v3619_v60  ;;  %v3413_v60 = vld [vmem:[#allocation22 + $0x1d8] sm:$0xff] }
 0xb5b   :  { %7774 = vmatprep.mubr.f32.mxu1 %v3620_v51  ;;  %v3414_v51 = vld [vmem:[#allocation22 + $0x1e0] sm:$0xff] }
 0xb5e   :  { %7775 = vmatmul.mubr.f32.gmra.mrb[82].mxu1 %v3621_v61  ;;  %v3415_v61 = vld [vmem:[#allocation22 + $0x1e8] sm:$0xff] }
 0xb5f   :  { %7777 = vmatprep.mubr.f32.mxu1 %v3622_v56  ;;  %v3416_v56 = vld [vmem:[#allocation22 + $0x1f0] sm:$0xff] }
 0xb62   :  { %7778 = vmatmul.mubr.f32.gmra.mrb[84].mxu1 %v3623_v63  ;;  %v3417_v63 = vld [vmem:[#allocation22 + $0x1f8] sm:$0xff] }
 0xb63   :  { %7780 = vmatprep.mubr.f32.mxu1 %v3624_v59 }
 0xb66   :  { %7781 = vmatmul.mubr.f32.gmra.mrb[86].mxu1 %v3625_v18 }
 0xb67   :  { %7783 = vmatprep.mubr.f32.mxu1 %v3626_v20 }
 0xb6a   :  { %7784 = vmatmul.mubr.f32.gmra.mrb[88].mxu1 %v3627_v62 }
 0xb6b   :  { %7786 = vmatprep.mubr.f32.mxu1 %v3628_v21 }
 0xb6e   :  { %7787 = vmatmul.mubr.f32.gmra.mrb[90].mxu1 %v3629_v19 }
 0xb6f   :  { %7860 = vmatprep.mubr.f32.mxu1 %v3380_v22 }
 0xb72   :  { %7861 = vmatmul.mubr.f32.vlgmr.msra.gmra.mrb[54].mxu1 %v3381_v1 }
 0xb73   :  { %7863 = vmatprep.mubr.f32.mxu1 %v3382_v26  ;;  %8512 = vmatpush3.bf16.msra.mxu1 %v10099_v0  ;;  %v3393_v0 = vld [vmem:[#allocation22 + $0x138] sm:$0xff] }
 0xb74   :  { %8546 = vmatprep.subr.bf16.mxu1 %v10103_v27 }
 0xb76   :  { %7864 = vmatmul.mubr.f32.gmra.mrb[56].mxu1 %v3383_v28 }
 0xb77   :  { %7866 = vmatprep.mubr.f32.mxu1 %v3384_v23 }
 0xb7a   :  { %7867 = vmatmul.mubr.f32.gmra.mrb[58].mxu1 %v3385_v29 }
 0xb7b   :  { %7869 = vmatprep.mubr.f32.mxu1 %v3386_v30 }
 0xb7e   :  { %7870 = vmatmul.mubr.f32.gmra.mrb[60].mxu1 %v3387_v31 }
 0xb7f   :  { %7872 = vmatprep.mubr.f32.mxu1 %v3388_v32  ;;  %v3357_v32 = vld [vmem:[#allocation22 + $0x18] sm:$0xff] }
 0xb82   :  { %7873 = vmatmul.mubr.f32.gmra.mrb[62].mxu1 %v3389_v36  ;;  %v3359_v36 = vld [vmem:[#allocation22 + $0x28] sm:$0xff] }
 0xb83   :  { %7875 = vmatprep.mubr.f32.mxu1 %v3390_v37  ;;  %v3360_v37 = vld [vmem:[#allocation22 + $0x30] sm:$0xff] }
 0xb86   :  { %7876 = vmatmul.mubr.f32.gmra.mrb[64].mxu1 %v3391_v38  ;;  %v3363_v38 = vld [vmem:[#allocation22 + $0x48] sm:$0xff] }
 0xb87   :  { %7878 = vmatprep.mubr.f32.mxu1 %v3392_v40  ;;  %v3365_v40 = vld [vmem:[#allocation22 + $0x58] sm:$0xff] }
 0xb8a   :  { %7879 = vmatmul.mubr.f32.gmra.mrb[66].mxu1 %v3393_v0  ;;  %v3366_v0 = vld [vmem:[#allocation22 + $0x60] sm:$0xff] }
 0xb8b   :  { %7881 = vmatprep.mubr.f32.mxu1 %v3394_v2  ;;  %v3367_v2 = vld [vmem:[#allocation22 + $0x68] sm:$0xff] }
 0xb8e   :  { %7882 = vmatmul.mubr.f32.gmra.mrb[68].mxu1 %v3395_v3  ;;  %v3368_v3 = vld [vmem:[#allocation22 + $0x70] sm:$0xff] }
 0xb8f   :  { %7884 = vmatprep.mubr.f32.mxu1 %v3396_v4  ;;  %v3369_v4 = vld [vmem:[#allocation22 + $0x78] sm:$0xff] }
 0xb92   :  { %7885 = vmatmul.mubr.f32.gmra.mrb[70].mxu1 %v3397_v5  ;;  %v3370_v5 = vld [vmem:[#allocation22 + $0x80] sm:$0xff] }
 0xb93   :  { %7887 = vmatprep.mubr.f32.mxu1 %v3398_v10  ;;  %v3371_v10 = vld [vmem:[#allocation22 + $0x88] sm:$0xff] }
 0xb96   :  { %7888 = vmatmul.mubr.f32.gmra.mrb[72].mxu1 %v3399_v7  ;;  %v3372_v7 = vld [vmem:[#allocation22 + $0x90] sm:$0xff] }
 0xb97   :  { %7890 = vmatprep.mubr.f32.mxu1 %v3400_v42  ;;  %v3373_v42 = vld [vmem:[#allocation22 + $0x98] sm:$0xff] }
 0xb9a   :  { %7891 = vmatmul.mubr.f32.gmra.mrb[74].mxu1 %v3401_v44  ;;  %v3374_v44 = vld [vmem:[#allocation22 + $0xa0] sm:$0xff] }
 0xb9b   :  { %7893 = vmatprep.mubr.f32.mxu1 %v3402_v46  ;;  %v3375_v46 = vld [vmem:[#allocation22 + $0xa8] sm:$0xff] }
 0xb9e   :  { %7894 = vmatmul.mubr.f32.gmra.mrb[76].mxu1 %v3403_v17  ;;  %v3376_v17 = vld [vmem:[#allocation22 + $0xb0] sm:$0xff] }
 0xb9f   :  { %7896 = vmatprep.mubr.f32.mxu1 %v3404_v48  ;;  %v3377_v48 = vld [vmem:[#allocation22 + $0xb8] sm:$0xff] }
 0xba2   :  { %7897 = vmatmul.mubr.f32.gmra.mrb[78].mxu1 %v3405_v49  ;;  %v3378_v49 = vld [vmem:[#allocation22 + $0xc0] sm:$0xff] }
 0xba3   :  { %7899 = vmatprep.mubr.f32.mxu1 %v3406_v52  ;;  %v3379_v52 = vld [vmem:[#allocation22 + $0xc8] sm:$0xff] }
 0xba6   :  { %7900 = vmatmul.mubr.f32.gmra.mrb[80].mxu1 %v3407_v53  ;;  %v4548_v53 = vld [vmem:[#allocation22 + $0x400] sm:$0xff] }
 0xba7   :  { %7902 = vmatprep.mubr.f32.mxu1 %v3408_v54 }
 0xbaa   :  { %7903 = vmatmul.mubr.f32.gmra.mrb[82].mxu1 %v3409_v55 }
 0xbab   :  { %7905 = vmatprep.mubr.f32.mxu1 %v3410_v57 }
 0xbae   :  { %7906 = vmatmul.mubr.f32.gmra.mrb[84].mxu1 %v3411_v58 }
 0xbaf   :  { %7908 = vmatprep.mubr.f32.mxu1 %v3412_v50 }
 0xbb2   :  { %7909 = vmatmul.mubr.f32.gmra.mrb[86].mxu1 %v3413_v60 }
 0xbb3   :  { %7911 = vmatprep.mubr.f32.mxu1 %v3414_v51 }
 0xbb6   :  { %7912 = vmatmul.mubr.f32.gmra.mrb[88].mxu1 %v3415_v61 }
 0xbb7   :  { %7914 = vmatprep.mubr.f32.mxu1 %v3416_v56 }
 0xbba   :  { %7915 = vmatmul.mubr.f32.gmra.mrb[90].mxu1 %v3417_v63 }
 0xbbb   :  { %7921 = vmatprep.mubr.msk.f32.mxu1 %vm3000_vm6, %v9945_v34 }
 0xbbe   :  { %7922 = vmatmul.mubr.msk.f32.vlgmr.msra.gmra.mrb[92].mxu1 %vm3000_vm6, %v9947_v39 }
 0xbbf   :  { %7924 = vmatprep.mubr.msk.f32.mxu1 %vm3000_vm6, %v9952_v16  ;;  %8548 = vmatpush3.bf16.msra.mxu1 %v10103_v27 }
 0xbc2   :  { %7925 = vmatmul.mubr.msk.f32.gmra.mrb[94].mxu1 %vm3000_vm6, %v9961_v6 }
 0xbc3   :  { %7927 = vmatprep.mubr.msk.f32.mxu1 %vm3000_vm6, %v9965_v9 }
 0xbc5   :  { %v10118_v59 = vpop.f32.mrb[28].mxu1 }
 0xbc6   :  { %v10120_v18 = vpop.f32.mrb[29].mxu1  ;;  %7928 = vmatmul.mubr.msk.f32.gmra.mrb[96].mxu1 %vm3000_vm6, %v9971_v12 }
 0xbc7   :  { %7930 = vmatprep.mubr.msk.f32.mxu1 %vm3000_vm6, %v9974_v14 }
 0xbc9   :  { %v10126_v20 = vpop.f32.mrb[30].mxu1 }
 0xbca   :  { %v10128_v62 = vpop.f32.mrb[31].mxu1  ;;  %7931 = vmatmul.mubr.msk.f32.gmra.mrb[98].mxu1 %vm3000_vm6, %v9980_v33 }
 0xbcb   :  { %7933 = vmatprep.mubr.msk.f32.mxu1 %vm3000_vm6, %v9983_v41 }
 0xbcd   :  { %v10134_v21 = vpop.f32.mrb[32].mxu1 }
 0xbce   :  { %v10136_v19 = vpop.f32.mrb[33].mxu1  ;;  %7934 = vmatmul.mubr.msk.f32.gmra.mrb[100].mxu1 %vm3000_vm6, %v9989_v11 }
 0xbcf   :  { %7936 = vmatprep.mubr.msk.f32.mxu1 %vm3000_vm6, %v9992_v43 }
 0xbd1   :  { %v10142_v22 = vpop.f32.mrb[34].mxu1 }
 0xbd2   :  { %v10144_v24 = vpop.f32.mrb[35].mxu1  ;;  %7937 = vmatmul.mubr.msk.f32.gmra.mrb[102].mxu1 %vm3000_vm6, %v9998_v15 }
 0xbd3   :  { %7939 = vmatprep.mubr.msk.f32.mxu1 %vm3000_vm6, %v10001_v45 }
 0xbd5   :  { %v10150_v25 = vpop.f32.mrb[36].mxu1 }
 0xbd6   :  { %v10152_v1 = vpop.f32.mrb[37].mxu1  ;;  %7940 = vmatmul.mubr.msk.f32.gmra.mrb[104].mxu1 %vm3000_vm6, %v10007_v8 }
 0xbd7   :  { %7942 = vmatprep.mubr.msk.f32.mxu1 %vm3000_vm6, %v10010_v47 }
 0xbd9   :  { %v10158_v26 = vpop.f32.mrb[38].mxu1 }
 0xbda   :  { %v10160_v27 = vpop.f32.mrb[39].mxu1  ;;  %7943 = vmatmul.mubr.msk.f32.gmra.mrb[106].mxu1 %vm3000_vm6, %v10016_v13 }
 0xbdb   :  { %8077 = vmatprep.mubr.msk.f32.mxu1 %vm3000_vm6, %v9945_v34 }
 0xbdd   :  { %v10166_v28 = vpop.f32.mrb[40].mxu1 }
 0xbde   :  { %v10168_v23 = vpop.f32.mrb[41].mxu1  ;;  %8078 = vmatmul.mubr.msk.f32.vlgmr.msra.gmra.mrb[108].mxu1 %vm3000_vm6, %v9947_v39 }
 0xbdf   :  { %8080 = vmatprep.mubr.msk.f32.mxu1 %vm3000_vm6, %v9952_v16 }
 0xbe1   :  { %v10174_v29 = vpop.f32.mrb[42].mxu1 }
 0xbe2   :  { %v10176_v30 = vpop.f32.mrb[43].mxu1  ;;  %8081 = vmatmul.mubr.msk.f32.gmra.mrb[110].mxu1 %vm3000_vm6, %v9961_v6 }
 0xbe3   :  { %8083 = vmatprep.mubr.msk.f32.mxu1 %vm3000_vm6, %v9965_v9 }
 0xbe5   :  { %v10182_v34 = vpop.f32.mrb[44].mxu1 }
 0xbe6   :  { %v10184_v31 = vpop.f32.mrb[45].mxu1  ;;  %8084 = vmatmul.mubr.msk.f32.gmra.mrb[112].mxu1 %vm3000_vm6, %v9971_v12 }
 0xbe7   :  { %8086 = vmatprep.mubr.msk.f32.mxu1 %vm3000_vm6, %v9974_v14 }
 0xbe9   :  { %v10190_v39 = vpop.f32.mrb[46].mxu1 }
 0xbea   :  { %v10192_v16 = vpop.f32.mrb[47].mxu1  ;;  %8087 = vmatmul.mubr.msk.f32.gmra.mrb[114].mxu1 %vm3000_vm6, %v9980_v33 }
 0xbeb   :  { %8089 = vmatprep.mubr.msk.f32.mxu1 %vm3000_vm6, %v9983_v41 }
 0xbed   :  { %v10198_v6 = vpop.f32.mrb[48].mxu1 }
 0xbee   :  { %v10200_v9 = vpop.f32.mrb[49].mxu1  ;;  %8090 = vmatmul.mubr.msk.f32.gmra.mrb[116].mxu1 %vm3000_vm6, %v9989_v11  ;;  %v3354_v11 = vld [vmem:[#allocation22] sm:$0xff] }
 0xbef   :  { %8092 = vmatprep.mubr.msk.f32.mxu1 %vm3000_vm6, %v9992_v43  ;;  %v3355_v43 = vld [vmem:[#allocation22 + $0x8] sm:$0xff]  ;;  %7821 = vmatprep.mubr.f32.mxu0 %v3354_v11 }
 0xbf0   :  { %7822 = vmatmul.mubr.f32.vlgmr.msra.gmra.mrb[58].mxu0 %v3355_v43 }
 0xbf1   :  { %v10206_v12 = vpop.f32.mrb[50].mxu1 }
 0xbf2   :  { %v10208_v14 = vpop.f32.mrb[51].mxu1  ;;  %8093 = vmatmul.mubr.msk.f32.gmra.mrb[118].mxu1 %vm3000_vm6, %v9998_v15  ;;  %v3356_v15 = vld [vmem:[#allocation22 + $0x10] sm:$0xff] }
 0xbf3   :  { %8095 = vmatprep.mubr.msk.f32.mxu1 %vm3000_vm6, %v10001_v45  ;;  %7824 = vmatprep.mubr.f32.mxu0 %v3356_v15  ;;  %v3358_v45 = vld [vmem:[#allocation22 + $0x20] sm:$0xff] }
 0xbf4   :  { %7825 = vmatmul.mubr.f32.gmra.mrb[60].mxu0 %v3357_v32 }
 0xbf5   :  { %v10214_v33 = vpop.f32.mrb[52].mxu1  ;;  %7827 = vmatprep.mubr.f32.mxu0 %v3358_v45 }
 0xbf6   :  { %v10216_v41 = vpop.f32.mrb[53].mxu1  ;;  %8096 = vmatmul.mubr.msk.f32.gmra.mrb[120].mxu1 %vm3000_vm6, %v10007_v8  ;;  %v3361_v8 = vld [vmem:[#allocation22 + $0x38] sm:$0xff] }
 0xbf7   :  { %8098 = vmatprep.mubr.msk.f32.mxu1 %vm3000_vm6, %v10010_v47  ;;  %v3362_v47 = vld [vmem:[#allocation22 + $0x40] sm:$0xff] }
 0xbf8   :  { %7828 = vmatmul.mubr.f32.gmra.mrb[62].mxu0 %v3359_v36 }
 0xbf9   :  { %7830 = vmatprep.mubr.f32.mxu0 %v3360_v37 }
 0xbfa   :  { %8099 = vmatmul.mubr.msk.f32.gmra.mrb[122].mxu1 %vm3000_vm6, %v10016_v13  ;;  %v3364_v13 = vld [vmem:[#allocation22 + $0x50] sm:$0xff] }
 0xbfc   :  { %7831 = vmatmul.mubr.f32.gmra.mrb[64].mxu0 %v3361_v8 }
 0xbfd   :  { %7833 = vmatprep.mubr.f32.mxu0 %v3362_v47 }
 0xc00   :  { %7834 = vmatmul.mubr.f32.gmra.mrb[66].mxu0 %v3363_v38 }
 0xc01   :  { %7836 = vmatprep.mubr.f32.mxu0 %v3364_v13 }
 0xc04   :  { %7837 = vmatmul.mubr.f32.gmra.mrb[68].mxu0 %v3365_v40 }
 0xc05   :  { %7839 = vmatprep.mubr.f32.mxu0 %v3366_v0 }
 0xc08   :  { %7840 = vmatmul.mubr.f32.gmra.mrb[70].mxu0 %v3367_v2 }
 0xc09   :  { %7842 = vmatprep.mubr.f32.mxu0 %v3368_v3 }
 0xc0c   :  { %7843 = vmatmul.mubr.f32.gmra.mrb[72].mxu0 %v3369_v4 }
 0xc0d   :  { %7845 = vmatprep.mubr.f32.mxu0 %v3370_v5 }
 0xc10   :  { %7846 = vmatmul.mubr.f32.gmra.mrb[74].mxu0 %v3371_v10 }
 0xc11   :  { %7848 = vmatprep.mubr.f32.mxu0 %v3372_v7 }
 0xc14   :  { %7849 = vmatmul.mubr.f32.gmra.mrb[76].mxu0 %v3373_v42 }
 0xc15   :  { %7851 = vmatprep.mubr.f32.mxu0 %v3374_v44 }
 0xc18   :  { %7852 = vmatmul.mubr.f32.gmra.mrb[78].mxu0 %v3375_v46 }
 0xc19   :  { %7854 = vmatprep.mubr.f32.mxu0 %v3376_v17 }
 0xc1c   :  { %7855 = vmatmul.mubr.f32.gmra.mrb[80].mxu0 %v3377_v48 }
 0xc1d   :  { %7857 = vmatprep.mubr.f32.mxu0 %v3378_v49 }
 0xc20   :  { %7858 = vmatmul.mubr.f32.gmra.mrb[82].mxu0 %v3379_v52 }
 0xc21   :  { %7977 = vmatprep.mubr.f32.mxu0 %v4548_v53 }
 0xc45   :  { %v10224_v54 = vpop.f32.mrb[54].mxu1 }
 0xc46   :  { %v10226_v55 = vpop.f32.mrb[55].mxu1 }
 0xc49   :  { %v10228_v57 = vpop.f32.mrb[56].mxu1 }
 0xc4a   :  { %v10230_v58 = vpop.f32.mrb[57].mxu1 }
 0xc4d   :  { %v10232_v50 = vpop.f32.mrb[58].mxu1 }
 0xc4e   :  { %v10234_v60 = vpop.f32.mrb[59].mxu1 }
 0xc51   :  { %v10236_v51 = vpop.f32.mrb[60].mxu1 }
 0xc52   :  { %v10238_v61 = vpop.f32.mrb[61].mxu1 }
 0xc55   :  { %v10240_v56 = vpop.f32.mrb[62].mxu1 }
 0xc56   :  { %v10242_v63 = vpop.f32.mrb[63].mxu1 }
 0xc59   :  { %v10244_v11 = vpop.f32.mrb[64].mxu1 }
 0xc5a   :  { %v10246_v43 = vpop.f32.mrb[65].mxu1 }
 0xc5d   :  { %v10248_v15 = vpop.f32.mrb[66].mxu1 }
 0xc5e   :  { %v10250_v32 = vpop.f32.mrb[67].mxu1 }
 0xc61   :  { %v10252_v45 = vpop.f32.mrb[68].mxu1 }
 0xc62   :  { %v10254_v36 = vpop.f32.mrb[69].mxu1 }
 0xc65   :  { %v10256_v37 = vpop.f32.mrb[70].mxu1 }
 0xc66   :  { %v10258_v8 = vpop.f32.mrb[71].mxu1 }
 0xc69   :  { %v10260_v47 = vpop.f32.mrb[72].mxu1 }
 0xc6a   :  { %v10262_v38 = vpop.f32.mrb[73].mxu1 }
 0xc6d   :  { %v10264_v13 = vpop.f32.mrb[74].mxu1 }
 0xc6e   :  { %v10266_v40 = vpop.f32.mrb[75].mxu1 }
 0xc71   :  { %v10268_v0 = vpop.f32.mrb[76].mxu1 }
 0xc72   :  { %v10270_v2 = vpop.f32.mrb[77].mxu1 }
 0xc73   :  { %11741 = vst [vmem:[#allocation38_spill] sm:$0xff] %v10270_v2 }
 0xc75   :  { %v10272_v3 = vpop.f32.mrb[78].mxu1 }
 0xc76   :  { %11742 = vst [vmem:[#allocation39_spill] sm:$0xff] %v10272_v3  ;;  %v10274_v4 = vpop.f32.mrb[79].mxu1 }
 0xc77   :  { %11743 = vst [vmem:[#allocation40_spill] sm:$0xff] %v10274_v4 }
 0xc79   :  { %v10276_v5 = vpop.f32.mrb[80].mxu1 }
 0xc7a   :  { %11744 = vst [vmem:[#allocation41_spill] sm:$0xff] %v10276_v5  ;;  %v10278_v10 = vpop.f32.mrb[81].mxu1 }
 0xc7b   :  { %11745 = vst [vmem:[#allocation42_spill] sm:$0xff] %v10278_v10 }
 0xc7d   :  { %v10280_v7 = vpop.f32.mrb[82].mxu1 }
 0xc7e   :  { %11746 = vst [vmem:[#allocation43_spill] sm:$0xff] %v10280_v7  ;;  %v10282_v42 = vpop.f32.mrb[83].mxu1 }
 0xc7f   :  { %11747 = vst [vmem:[#allocation44_spill] sm:$0xff] %v10282_v42 }
 0xc81   :  { %v10284_v44 = vpop.f32.mrb[84].mxu1 }
 0xc82   :  { %11748 = vst [vmem:[#allocation45_spill] sm:$0xff] %v10284_v44  ;;  %v10286_v46 = vpop.f32.mrb[85].mxu1 }
 0xc83   :  { %11749 = vst [vmem:[#allocation46_spill] sm:$0xff] %v10286_v46 }
 0xc85   :  { %v10288_v17 = vpop.f32.mrb[86].mxu1 }
 0xc86   :  { %11750 = vst [vmem:[#allocation47_spill] sm:$0xff] %v10288_v17  ;;  %v10290_v48 = vpop.f32.mrb[87].mxu1 }
 0xc87   :  { %11751 = vst [vmem:[#allocation48_spill] sm:$0xff] %v10290_v48 }
 0xc89   :  { %v10292_v49 = vpop.f32.mrb[88].mxu1 }
 0xc8a   :  { %11752 = vst [vmem:[#allocation49_spill] sm:$0xff] %v10292_v49  ;;  %v10294_v52 = vpop.f32.mrb[89].mxu1 }
 0xc8b   :  { %11753 = vst [vmem:[#allocation50_spill] sm:$0xff] %v10294_v52 }
 0xc8d   :  { %v10296_v53 = vpop.f32.mrb[90].mxu1 }
 0xc8e   :  { %11754 = vst [vmem:[#allocation51_spill] sm:$0xff] %v10296_v53  ;;  %v10298_v35 = vpop.f32.mrb[91].mxu1 }
 0xc8f   :  { %11755 = vst [vmem:[#allocation52_spill] sm:$0xff] %v10298_v35 }
 0xc91   :  { %v7923_v10 = vpop.f32.mrb[92].mxu1 }
 0xc92   :  { %v4468_v7 = vpop.f32.mrb[93].mxu1 }
 0xc93   :  { %v8513_v5 = vpack.c.bf16 %v7923_v10, %v4468_v7 }
 0xc95   :  { %v7926_v42 = vpop.f32.mrb[94].mxu1  ;;  %8514 = vmatprep.subr.bf16.mxu0 %v8513_v5 }
 0xc96   :  { %v4478_v44 = vpop.f32.mrb[95].mxu1  ;;  %8516 = vmatpush3.bf16.msra.mxu0 %v8513_v5 }
 0xc97   :  { %v8517_v46 = vpack.c.bf16 %v7926_v42, %v4478_v44 }
 0xc99   :  { %v7929_v4 = vpop.f32.mrb[96].mxu1  ;;  %8518 = vmatprep.subr.bf16.mxu0 %v8517_v46 }
 0xc9a   :  { %v4488_v17 = vpop.f32.mrb[97].mxu1  ;;  %8520 = vmatpush3.bf16.msra.mxu0 %v8517_v46 }
 0xc9b   :  { %v8521_v48 = vpack.c.bf16 %v7929_v4, %v4488_v17 }
 0xc9d   :  { %v7932_v49 = vpop.f32.mrb[98].mxu1  ;;  %8522 = vmatprep.subr.bf16.mxu0 %v8521_v48 }
 0xc9e   :  { %v4498_v52 = vpop.f32.mrb[99].mxu1  ;;  %8524 = vmatpush3.bf16.msra.mxu0 %v8521_v48 }
 0xc9f   :  { %v8525_v53 = vpack.c.bf16 %v7932_v49, %v4498_v52 }
 0xca1   :  { %v7935_v3 = vpop.f32.mrb[100].mxu1  ;;  %8526 = vmatprep.subr.bf16.mxu0 %v8525_v53 }
 0xca2   :  { %v4508_v35 = vpop.f32.mrb[101].mxu1  ;;  %8528 = vmatpush3.bf16.msra.mxu0 %v8525_v53  ;;  %v4550_v53 = vld [vmem:[#allocation22 + $0x410] sm:$0xff] }
 0xca3   :  { %v8529_v10 = vpack.c.bf16 %v7935_v3, %v4508_v35  ;;  %v4549_v35 = vld [vmem:[#allocation22 + $0x408] sm:$0xff] }
 0xca5   :  { %v7938_v7 = vpop.f32.mrb[102].mxu1  ;;  %8530 = vmatprep.subr.bf16.mxu0 %v8529_v10 }
 0xca6   :  { %v4518_v2 = vpop.f32.mrb[103].mxu1  ;;  %8532 = vmatpush3.bf16.msra.mxu0 %v8529_v10 }
 0xca7   :  { %v8533_v5 = vpack.c.bf16 %v7938_v7, %v4518_v2  ;;  %v4551_v7 = vld [vmem:[#allocation22 + $0x418] sm:$0xff] }
 0xca9   :  { %v7941_v42 = vpop.f32.mrb[104].mxu1  ;;  %8534 = vmatprep.subr.bf16.mxu0 %v8533_v5 }
 0xcaa   :  { %v4528_v44 = vpop.f32.mrb[105].mxu1  ;;  %8536 = vmatpush3.bf16.msra.mxu0 %v8533_v5 }
 0xcab   :  { %v8537_v4 = vpack.c.bf16 %v7941_v42, %v4528_v44  ;;  %v4552_v42 = vld [vmem:[#allocation22 + $0x420] sm:$0xff] }
 0xcad   :  { %v7944_v46 = vpop.f32.mrb[106].mxu1  ;;  %8538 = vmatprep.subr.bf16.mxu0 %v8537_v4 }
 0xcae   :  { %v4538_v17 = vpop.f32.mrb[107].mxu1  ;;  %8540 = vmatpush3.bf16.msra.mxu0 %v8537_v4 }
 0xcaf   :  { %v8541_v48 = vpack.c.bf16 %v7944_v46, %v4538_v17  ;;  %v4553_v46 = vld [vmem:[#allocation22 + $0x428] sm:$0xff] }
 0xcb1   :  { %8542 = vmatprep.subr.bf16.mxu0 %v8541_v48  ;;  %v8079_v49 = vpop.f32.mrb[108].mxu1 }
 0xcb2   :  { %8544 = vmatpush3.bf16.msra.mxu0 %v8541_v48  ;;  %v5129_v52 = vpop.f32.mrb[109].mxu1  ;;  %v4554_v48 = vld [vmem:[#allocation22 + $0x430] sm:$0xff] }
 0xcb3   :  { %v8549_v3 = vpack.c.bf16 %v8079_v49, %v5129_v52 }
 0xcb5   :  { %7978 = vmatmul.mubr.f32.vlgmr.msra.gmra.mrb[58].mxu0 %v4549_v35  ;;  %v8082_v10 = vpop.f32.mrb[110].mxu1  ;;  %8550 = vmatprep.subr.bf16.mxu0 %v8549_v3  ;;  %v4555_v35 = vld [vmem:[#allocation22 + $0x438] sm:$0xff] }
 0xcb6   :  { %v5139_v2 = vpop.f32.mrb[111].mxu1  ;;  %8552 = vmatpush3.bf16.msra.mxu0 %v8549_v3  ;;  %7980 = vmatprep.mubr.f32.mxu0 %v4550_v53  ;;  %v4556_v53 = vld [vmem:[#allocation22 + $0x440] sm:$0xff] }
 0xcb7   :  { %v8553_v5 = vpack.c.bf16 %v8082_v10, %v5139_v2 }
 0xcb9   :  { %7981 = vmatmul.mubr.f32.gmra.mrb[60].mxu0 %v4551_v7  ;;  %v8085_v44 = vpop.f32.mrb[112].mxu1  ;;  %8554 = vmatprep.subr.bf16.mxu0 %v8553_v5  ;;  %v4557_v7 = vld [vmem:[#allocation22 + $0x448] sm:$0xff] }
 0xcba   :  { %v5149_v4 = vpop.f32.mrb[113].mxu1  ;;  %8556 = vmatpush3.bf16.msra.mxu0 %v8553_v5  ;;  %7983 = vmatprep.mubr.f32.mxu0 %v4552_v42  ;;  %v4558_v42 = vld [vmem:[#allocation22 + $0x450] sm:$0xff] }
 0xcbb   :  { %v8557_v17 = vpack.c.bf16 %v8085_v44, %v5149_v4 }
 0xcbd   :  { %7984 = vmatmul.mubr.f32.gmra.mrb[62].mxu0 %v4553_v46  ;;  %v8088_v49 = vpop.f32.mrb[114].mxu1  ;;  %8558 = vmatprep.subr.bf16.mxu0 %v8557_v17  ;;  %v4559_v46 = vld [vmem:[#allocation22 + $0x458] sm:$0xff] }
 0xcbe   :  { %v5159_v52 = vpop.f32.mrb[115].mxu1  ;;  %8560 = vmatpush3.bf16.msra.mxu0 %v8557_v17  ;;  %7986 = vmatprep.mubr.f32.mxu0 %v4554_v48  ;;  %v4560_v48 = vld [vmem:[#allocation22 + $0x460] sm:$0xff] }
 0xcbf   :  { %v8561_v3 = vpack.c.bf16 %v8088_v49, %v5159_v52 }
 0xcc1   :  { %7987 = vmatmul.mubr.f32.gmra.mrb[64].mxu0 %v4555_v35  ;;  %v8091_v10 = vpop.f32.mrb[116].mxu1  ;;  %8562 = vmatprep.subr.bf16.mxu0 %v8561_v3  ;;  %v4561_v35 = vld [vmem:[#allocation22 + $0x468] sm:$0xff] }
 0xcc2   :  { %v5169_v2 = vpop.f32.mrb[117].mxu1  ;;  %8564 = vmatpush3.bf16.msra.mxu0 %v8561_v3  ;;  %7989 = vmatprep.mubr.f32.mxu0 %v4556_v53  ;;  %v4562_v53 = vld [vmem:[#allocation22 + $0x470] sm:$0xff] }
 0xcc3   :  { %v8565_v5 = vpack.c.bf16 %v8091_v10, %v5169_v2 }
 0xcc5   :  { %7990 = vmatmul.mubr.f32.gmra.mrb[66].mxu0 %v4557_v7  ;;  %v8094_v44 = vpop.f32.mrb[118].mxu1  ;;  %8566 = vmatprep.subr.bf16.mxu0 %v8565_v5  ;;  %v4563_v7 = vld [vmem:[#allocation22 + $0x478] sm:$0xff] }
 0xcc6   :  { %v5179_v4 = vpop.f32.mrb[119].mxu1  ;;  %8568 = vmatpush3.bf16.msra.mxu0 %v8565_v5  ;;  %7992 = vmatprep.mubr.f32.mxu0 %v4558_v42  ;;  %v4564_v42 = vld [vmem:[#allocation22 + $0x480] sm:$0xff] }
 0xcc7   :  { %v8569_v17 = vpack.c.bf16 %v8094_v44, %v5179_v4  ;;  %v4565_v44 = vld [vmem:[#allocation22 + $0x488] sm:$0xff]  ;;  %v4566_v4 = vld [vmem:[#allocation22 + $0x490] sm:$0xff] }
 0xcc9   :  { %7993 = vmatmul.mubr.f32.gmra.mrb[68].mxu0 %v4559_v46  ;;  %v8097_v49 = vpop.f32.mrb[120].mxu1  ;;  %8570 = vmatprep.subr.bf16.mxu0 %v8569_v17  ;;  %v4567_v46 = vld [vmem:[#allocation22 + $0x498] sm:$0xff] }
 0xcca   :  { %v5189_v52 = vpop.f32.mrb[121].mxu1  ;;  %8572 = vmatpush3.bf16.msra.mxu0 %v8569_v17  ;;  %7995 = vmatprep.mubr.f32.mxu0 %v4560_v48  ;;  %v4568_v17 = vld [vmem:[#allocation22 + $0x4a0] sm:$0xff]  ;;  %v4569_v48 = vld [vmem:[#allocation22 + $0x4a8] sm:$0xff] }
 0xccb   :  { %v8573_v3 = vpack.c.bf16 %v8097_v49, %v5189_v52  ;;  %v4570_v49 = vld [vmem:[#allocation22 + $0x4b0] sm:$0xff]  ;;  %v4571_v52 = vld [vmem:[#allocation22 + $0x4b8] sm:$0xff] }
 0xccd   :  { %7996 = vmatmul.mubr.f32.gmra.mrb[70].mxu0 %v4561_v35  ;;  %v8100_v10 = vpop.f32.mrb[122].mxu1  ;;  %8574 = vmatprep.subr.bf16.mxu0 %v8573_v3  ;;  %v4572_v35 = vld [vmem:[#allocation22 + $0x4c0] sm:$0xff] }
 0xcce   :  { %v5199_v2 = vpop.f32.mrb[123].mxu1  ;;  %8576 = vmatpush3.bf16.msra.mxu0 %v8573_v3  ;;  %7998 = vmatprep.mubr.f32.mxu0 %v4562_v53  ;;  %v4573_v3 = vld [vmem:[#allocation22 + $0x4c8] sm:$0xff]  ;;  %v4574_v53 = vld [vmem:[#allocation22 + $0x4d0] sm:$0xff] }
 0xccf   :  { %v8577_v5 = vpack.c.bf16 %v8100_v10, %v5199_v2  ;;  %v4575_v10 = vld [vmem:[#allocation22 + $0x4d8] sm:$0xff]  ;;  %v4576_v2 = vld [vmem:[#allocation22 + $0x4e0] sm:$0xff] }
 0xcd1   :  { %7999 = vmatmul.mubr.f32.gmra.mrb[72].mxu0 %v4563_v7  ;;  %8578 = vmatprep.subr.bf16.mxu0 %v8577_v5  ;;  %v4577_v7 = vld [vmem:[#allocation22 + $0x4e8] sm:$0xff] }
 0xcd2   :  { %8580 = vmatpush3.bf16.msra.mxu0 %v8577_v5  ;;  %8001 = vmatprep.mubr.f32.mxu0 %v4564_v42  ;;  %v4578_v5 = vld [vmem:[#allocation22 + $0x4f0] sm:$0xff]  ;;  %v4579_v42 = vld [vmem:[#allocation22 + $0x4f8] sm:$0xff] }
 0xcd5   :  { %8002 = vmatmul.mubr.f32.gmra.mrb[74].mxu0 %v4565_v44  ;;  %v4580_v44 = vld [vmem:[#allocation22 + $0x500] sm:$0xff] }
 0xcd6   :  { %8004 = vmatprep.mubr.f32.mxu0 %v4566_v4  ;;  %v4581_v4 = vld [vmem:[#allocation22 + $0x508] sm:$0xff] }
 0xcd9   :  { %8005 = vmatmul.mubr.f32.gmra.mrb[76].mxu0 %v4567_v46  ;;  %v4582_v46 = vld [vmem:[#allocation22 + $0x510] sm:$0xff] }
 0xcda   :  { %8007 = vmatprep.mubr.f32.mxu0 %v4568_v17  ;;  %v4583_v17 = vld [vmem:[#allocation22 + $0x518] sm:$0xff] }
 0xcdd   :  { %8008 = vmatmul.mubr.f32.gmra.mrb[78].mxu0 %v4569_v48  ;;  %v4584_v48 = vld [vmem:[#allocation22 + $0x520] sm:$0xff] }
 0xcde   :  { %8010 = vmatprep.mubr.f32.mxu0 %v4570_v49  ;;  %v4585_v49 = vld [vmem:[#allocation22 + $0x528] sm:$0xff] }
 0xce1   :  { %8011 = vmatmul.mubr.f32.gmra.mrb[80].mxu0 %v4571_v52  ;;  %v4586_v52 = vld [vmem:[#allocation22 + $0x530] sm:$0xff] }
 0xce2   :  { %8013 = vmatprep.mubr.f32.mxu0 %v4572_v35  ;;  %v4587_v35 = vld [vmem:[#allocation22 + $0x538] sm:$0xff] }
 0xce5   :  { %8014 = vmatmul.mubr.f32.gmra.mrb[82].mxu0 %v4573_v3  ;;  %v4588_v3 = vld [vmem:[#allocation22 + $0x540] sm:$0xff] }
 0xce6   :  { %8016 = vmatprep.mubr.f32.mxu0 %v4574_v53  ;;  %v4589_v53 = vld [vmem:[#allocation22 + $0x548] sm:$0xff] }
 0xce9   :  { %8017 = vmatmul.mubr.f32.gmra.mrb[84].mxu0 %v4575_v10  ;;  %v4590_v10 = vld [vmem:[#allocation22 + $0x550] sm:$0xff] }
 0xcea   :  { %8019 = vmatprep.mubr.f32.mxu0 %v4576_v2  ;;  %v4591_v2 = vld [vmem:[#allocation22 + $0x558] sm:$0xff] }
 0xced   :  { %8020 = vmatmul.mubr.f32.gmra.mrb[86].mxu0 %v4577_v7  ;;  %v4592_v7 = vld [vmem:[#allocation22 + $0x560] sm:$0xff] }
 0xcee   :  { %8022 = vmatprep.mubr.f32.mxu0 %v4578_v5  ;;  %v4593_v5 = vld [vmem:[#allocation22 + $0x568] sm:$0xff] }
 0xcf1   :  { %8023 = vmatmul.mubr.f32.gmra.mrb[88].mxu0 %v4579_v42  ;;  %v4594_v42 = vld [vmem:[#allocation22 + $0x570] sm:$0xff] }
 0xcf2   :  { %8025 = vmatprep.mubr.f32.mxu0 %v4580_v44  ;;  %v4595_v44 = vld [vmem:[#allocation22 + $0x578] sm:$0xff] }
 0xcf5   :  { %8026 = vmatmul.mubr.f32.gmra.mrb[90].mxu0 %v4581_v4  ;;  %v4596_v4 = vld [vmem:[#allocation22 + $0x580] sm:$0xff] }
 0xcf6   :  { %8028 = vmatprep.mubr.f32.mxu0 %v4582_v46  ;;  %v4597_v46 = vld [vmem:[#allocation22 + $0x588] sm:$0xff] }
 0xcf9   :  { %8029 = vmatmul.mubr.f32.gmra.mrb[92].mxu0 %v4583_v17  ;;  %v4598_v17 = vld [vmem:[#allocation22 + $0x590] sm:$0xff] }
 0xcfa   :  { %8031 = vmatprep.mubr.f32.mxu0 %v4584_v48  ;;  %v4599_v48 = vld [vmem:[#allocation22 + $0x598] sm:$0xff] }
 0xcfd   :  { %8032 = vmatmul.mubr.f32.gmra.mrb[94].mxu0 %v4585_v49  ;;  %v4600_v49 = vld [vmem:[#allocation22 + $0x5a0] sm:$0xff] }
 0xcfe   :  { %8034 = vmatprep.mubr.f32.mxu0 %v4586_v52  ;;  %v4601_v52 = vld [vmem:[#allocation22 + $0x5a8] sm:$0xff] }
 0xd01   :  { %8035 = vmatmul.mubr.f32.gmra.mrb[96].mxu0 %v4587_v35  ;;  %v4602_v35 = vld [vmem:[#allocation22 + $0x5b0] sm:$0xff] }
 0xd02   :  { %8037 = vmatprep.mubr.f32.mxu0 %v4588_v3  ;;  %v4603_v3 = vld [vmem:[#allocation22 + $0x5b8] sm:$0xff] }
 0xd05   :  { %8038 = vmatmul.mubr.f32.gmra.mrb[98].mxu0 %v4589_v53  ;;  %v4604_v53 = vld [vmem:[#allocation22 + $0x5c0] sm:$0xff] }
 0xd06   :  { %8040 = vmatprep.mubr.f32.mxu0 %v4590_v10  ;;  %v4605_v10 = vld [vmem:[#allocation22 + $0x5c8] sm:$0xff] }
 0xd09   :  { %8041 = vmatmul.mubr.f32.gmra.mrb[100].mxu0 %v4591_v2  ;;  %v4606_v2 = vld [vmem:[#allocation22 + $0x5d0] sm:$0xff] }
 0xd0a   :  { %8043 = vmatprep.mubr.f32.mxu0 %v4592_v7  ;;  %v4607_v7 = vld [vmem:[#allocation22 + $0x5d8] sm:$0xff] }
 0xd0d   :  { %8044 = vmatmul.mubr.f32.gmra.mrb[102].mxu0 %v4593_v5  ;;  %v4608_v5 = vld [vmem:[#allocation22 + $0x5e0] sm:$0xff] }
 0xd0e   :  { %8046 = vmatprep.mubr.f32.mxu0 %v4594_v42  ;;  %v4609_v42 = vld [vmem:[#allocation22 + $0x5e8] sm:$0xff] }
 0xd11   :  { %8047 = vmatmul.mubr.f32.gmra.mrb[104].mxu0 %v4595_v44  ;;  %v4610_v44 = vld [vmem:[#allocation22 + $0x5f0] sm:$0xff] }
 0xd12   :  { %8049 = vmatprep.mubr.f32.mxu0 %v4596_v4  ;;  %v4611_v4 = vld [vmem:[#allocation22 + $0x5f8] sm:$0xff] }
 0xd15   :  { %8050 = vmatmul.mubr.f32.gmra.mrb[106].mxu0 %v4597_v46  ;;  %v5209_v46 = vld [vmem:[#allocation22 + $0x600] sm:$0xff] }
 0xd16   :  { %8052 = vmatprep.mubr.f32.mxu0 %v4598_v17  ;;  %v5210_v17 = vld [vmem:[#allocation22 + $0x608] sm:$0xff] }
 0xd19   :  { %8053 = vmatmul.mubr.f32.gmra.mrb[108].mxu0 %v4599_v48  ;;  %v5211_v48 = vld [vmem:[#allocation22 + $0x610] sm:$0xff] }
 0xd1a   :  { %8055 = vmatprep.mubr.f32.mxu0 %v4600_v49  ;;  %v5212_v49 = vld [vmem:[#allocation22 + $0x618] sm:$0xff] }
 0xd1d   :  { %8056 = vmatmul.mubr.f32.gmra.mrb[110].mxu0 %v4601_v52  ;;  %v5213_v52 = vld [vmem:[#allocation22 + $0x620] sm:$0xff] }
 0xd1e   :  { %8058 = vmatprep.mubr.f32.mxu0 %v4602_v35  ;;  %v5214_v35 = vld [vmem:[#allocation22 + $0x628] sm:$0xff] }
 0xd21   :  { %8059 = vmatmul.mubr.f32.gmra.mrb[112].mxu0 %v4603_v3  ;;  %v5215_v3 = vld [vmem:[#allocation22 + $0x630] sm:$0xff] }
 0xd22   :  { %8061 = vmatprep.mubr.f32.mxu0 %v4604_v53  ;;  %v5216_v53 = vld [vmem:[#allocation22 + $0x638] sm:$0xff] }
 0xd25   :  { %8062 = vmatmul.mubr.f32.gmra.mrb[114].mxu0 %v4605_v10  ;;  %v5217_v10 = vld [vmem:[#allocation22 + $0x640] sm:$0xff] }
 0xd26   :  { %8064 = vmatprep.mubr.f32.mxu0 %v4606_v2  ;;  %v5218_v2 = vld [vmem:[#allocation22 + $0x648] sm:$0xff] }
 0xd29   :  { %8065 = vmatmul.mubr.f32.gmra.mrb[116].mxu0 %v4607_v7  ;;  %v5219_v7 = vld [vmem:[#allocation22 + $0x650] sm:$0xff] }
 0xd2a   :  { %8067 = vmatprep.mubr.f32.mxu0 %v4608_v5  ;;  %v5220_v5 = vld [vmem:[#allocation22 + $0x658] sm:$0xff] }
 0xd2d   :  { %8068 = vmatmul.mubr.f32.gmra.mrb[118].mxu0 %v4609_v42  ;;  %v5221_v42 = vld [vmem:[#allocation22 + $0x660] sm:$0xff] }
 0xd2e   :  { %8070 = vmatprep.mubr.f32.mxu0 %v4610_v44  ;;  %v5222_v44 = vld [vmem:[#allocation22 + $0x668] sm:$0xff] }
 0xd31   :  { %8071 = vmatmul.mubr.f32.gmra.mrb[120].mxu0 %v4611_v4  ;;  %v5223_v4 = vld [vmem:[#allocation22 + $0x670] sm:$0xff] }
 0xd32   :  { %8133 = vmatprep.mubr.f32.mxu0 %v5209_v46  ;;  %v5224_v46 = vld [vmem:[#allocation22 + $0x678] sm:$0xff] }
 0xd35   :  { %8134 = vmatmul.mubr.f32.vlgmr.msra.gmra.mrb[58].mxu0 %v5210_v17  ;;  %v5225_v17 = vld [vmem:[#allocation22 + $0x680] sm:$0xff] }
 0xd36   :  { %8136 = vmatprep.mubr.f32.mxu0 %v5211_v48  ;;  %v5226_v48 = vld [vmem:[#allocation22 + $0x688] sm:$0xff] }
 0xd39   :  { %8137 = vmatmul.mubr.f32.gmra.mrb[60].mxu0 %v5212_v49  ;;  %v5227_v49 = vld [vmem:[#allocation22 + $0x690] sm:$0xff] }
 0xd3a   :  { %8139 = vmatprep.mubr.f32.mxu0 %v5213_v52  ;;  %v5228_v52 = vld [vmem:[#allocation22 + $0x698] sm:$0xff] }
 0xd3d   :  { %8140 = vmatmul.mubr.f32.gmra.mrb[62].mxu0 %v5214_v35  ;;  %v5229_v35 = vld [vmem:[#allocation22 + $0x6a0] sm:$0xff] }
 0xd3e   :  { %8142 = vmatprep.mubr.f32.mxu0 %v5215_v3  ;;  %v5230_v3 = vld [vmem:[#allocation22 + $0x6a8] sm:$0xff] }
 0xd41   :  { %8143 = vmatmul.mubr.f32.gmra.mrb[64].mxu0 %v5216_v53  ;;  %v5231_v53 = vld [vmem:[#allocation22 + $0x6b0] sm:$0xff] }
 0xd42   :  { %8145 = vmatprep.mubr.f32.mxu0 %v5217_v10  ;;  %v5232_v10 = vld [vmem:[#allocation22 + $0x6b8] sm:$0xff] }
 0xd45   :  { %8146 = vmatmul.mubr.f32.gmra.mrb[66].mxu0 %v5218_v2  ;;  %v5233_v2 = vld [vmem:[#allocation22 + $0x6c0] sm:$0xff] }
 0xd46   :  { %8148 = vmatprep.mubr.f32.mxu0 %v5219_v7  ;;  %v5234_v7 = vld [vmem:[#allocation22 + $0x6c8] sm:$0xff] }
 0xd49   :  { %8149 = vmatmul.mubr.f32.gmra.mrb[68].mxu0 %v5220_v5  ;;  %v5235_v5 = vld [vmem:[#allocation22 + $0x6d0] sm:$0xff] }
 0xd4a   :  { %8151 = vmatprep.mubr.f32.mxu0 %v5221_v42  ;;  %v5236_v42 = vld [vmem:[#allocation22 + $0x6d8] sm:$0xff] }
 0xd4d   :  { %8152 = vmatmul.mubr.f32.gmra.mrb[70].mxu0 %v5222_v44  ;;  %v5237_v44 = vld [vmem:[#allocation22 + $0x6e0] sm:$0xff] }
 0xd4e   :  { %8154 = vmatprep.mubr.f32.mxu0 %v5223_v4  ;;  %v5238_v4 = vld [vmem:[#allocation22 + $0x6e8] sm:$0xff] }
 0xd51   :  { %8155 = vmatmul.mubr.f32.gmra.mrb[72].mxu0 %v5224_v46  ;;  %v5239_v46 = vld [vmem:[#allocation22 + $0x6f0] sm:$0xff] }
 0xd52   :  { %8157 = vmatprep.mubr.f32.mxu0 %v5225_v17  ;;  %v5240_v17 = vld [vmem:[#allocation22 + $0x6f8] sm:$0xff] }
 0xd55   :  { %8158 = vmatmul.mubr.f32.gmra.mrb[74].mxu0 %v5226_v48  ;;  %v5241_v48 = vld [vmem:[#allocation22 + $0x700] sm:$0xff] }
 0xd56   :  { %8160 = vmatprep.mubr.f32.mxu0 %v5227_v49  ;;  %v5242_v49 = vld [vmem:[#allocation22 + $0x708] sm:$0xff] }
 0xd59   :  { %8161 = vmatmul.mubr.f32.gmra.mrb[76].mxu0 %v5228_v52  ;;  %v5243_v52 = vld [vmem:[#allocation22 + $0x710] sm:$0xff] }
 0xd5a   :  { %8163 = vmatprep.mubr.f32.mxu0 %v5229_v35  ;;  %v5244_v35 = vld [vmem:[#allocation22 + $0x718] sm:$0xff] }
 0xd5d   :  { %8164 = vmatmul.mubr.f32.gmra.mrb[78].mxu0 %v5230_v3  ;;  %v5245_v3 = vld [vmem:[#allocation22 + $0x720] sm:$0xff] }
 0xd5e   :  { %8166 = vmatprep.mubr.f32.mxu0 %v5231_v53  ;;  %v5246_v53 = vld [vmem:[#allocation22 + $0x728] sm:$0xff] }
 0xd61   :  { %8167 = vmatmul.mubr.f32.gmra.mrb[80].mxu0 %v5232_v10  ;;  %v5247_v10 = vld [vmem:[#allocation22 + $0x730] sm:$0xff] }
 0xd62   :  { %8169 = vmatprep.mubr.f32.mxu0 %v5233_v2  ;;  %v5248_v2 = vld [vmem:[#allocation22 + $0x738] sm:$0xff] }
 0xd65   :  { %8170 = vmatmul.mubr.f32.gmra.mrb[82].mxu0 %v5234_v7  ;;  %v5249_v7 = vld [vmem:[#allocation22 + $0x740] sm:$0xff] }
 0xd66   :  { %8172 = vmatprep.mubr.f32.mxu0 %v5235_v5  ;;  %v5250_v5 = vld [vmem:[#allocation22 + $0x748] sm:$0xff] }
 0xd69   :  { %8173 = vmatmul.mubr.f32.gmra.mrb[84].mxu0 %v5236_v42  ;;  %v5251_v42 = vld [vmem:[#allocation22 + $0x750] sm:$0xff] }
 0xd6a   :  { %8175 = vmatprep.mubr.f32.mxu0 %v5237_v44  ;;  %v5252_v44 = vld [vmem:[#allocation22 + $0x758] sm:$0xff] }
 0xd6d   :  { %8176 = vmatmul.mubr.f32.gmra.mrb[86].mxu0 %v5238_v4  ;;  %v5253_v4 = vld [vmem:[#allocation22 + $0x760] sm:$0xff] }
 0xd6e   :  { %8178 = vmatprep.mubr.f32.mxu0 %v5239_v46  ;;  %v5254_v46 = vld [vmem:[#allocation22 + $0x768] sm:$0xff] }
 0xd71   :  { %8179 = vmatmul.mubr.f32.gmra.mrb[88].mxu0 %v5240_v17  ;;  %v5255_v17 = vld [vmem:[#allocation22 + $0x770] sm:$0xff] }
 0xd72   :  { %8181 = vmatprep.mubr.f32.mxu0 %v5241_v48  ;;  %v5256_v48 = vld [vmem:[#allocation22 + $0x778] sm:$0xff] }
 0xd75   :  { %8182 = vmatmul.mubr.f32.gmra.mrb[90].mxu0 %v5242_v49  ;;  %v5257_v49 = vld [vmem:[#allocation22 + $0x780] sm:$0xff] }
 0xd76   :  { %8184 = vmatprep.mubr.f32.mxu0 %v5243_v52  ;;  %v5258_v52 = vld [vmem:[#allocation22 + $0x788] sm:$0xff] }
 0xd79   :  { %8185 = vmatmul.mubr.f32.gmra.mrb[92].mxu0 %v5244_v35  ;;  %v5259_v35 = vld [vmem:[#allocation22 + $0x790] sm:$0xff] }
 0xd7a   :  { %8187 = vmatprep.mubr.f32.mxu0 %v5245_v3  ;;  %v5260_v3 = vld [vmem:[#allocation22 + $0x798] sm:$0xff] }
 0xd7d   :  { %8188 = vmatmul.mubr.f32.gmra.mrb[94].mxu0 %v5246_v53  ;;  %v5261_v53 = vld [vmem:[#allocation22 + $0x7a0] sm:$0xff] }
 0xd7e   :  { %8190 = vmatprep.mubr.f32.mxu0 %v5247_v10  ;;  %v5262_v10 = vld [vmem:[#allocation22 + $0x7a8] sm:$0xff] }
 0xd81   :  { %8191 = vmatmul.mubr.f32.gmra.mrb[96].mxu0 %v5248_v2  ;;  %v5263_v2 = vld [vmem:[#allocation22 + $0x7b0] sm:$0xff] }
 0xd82   :  { %8193 = vmatprep.mubr.f32.mxu0 %v5249_v7  ;;  %v5264_v7 = vld [vmem:[#allocation22 + $0x7b8] sm:$0xff] }
 0xd85   :  { %8194 = vmatmul.mubr.f32.gmra.mrb[98].mxu0 %v5250_v5  ;;  %v5265_v5 = vld [vmem:[#allocation22 + $0x7c0] sm:$0xff] }
 0xd86   :  { %8196 = vmatprep.mubr.f32.mxu0 %v5251_v42  ;;  %v5266_v42 = vld [vmem:[#allocation22 + $0x7c8] sm:$0xff] }
 0xd89   :  { %8197 = vmatmul.mubr.f32.gmra.mrb[100].mxu0 %v5252_v44  ;;  %v5267_v44 = vld [vmem:[#allocation22 + $0x7d0] sm:$0xff] }
 0xd8a   :  { %8199 = vmatprep.mubr.f32.mxu0 %v5253_v4  ;;  %v5268_v4 = vld [vmem:[#allocation22 + $0x7d8] sm:$0xff] }
 0xd8d   :  { %8200 = vmatmul.mubr.f32.gmra.mrb[102].mxu0 %v5254_v46  ;;  %v5269_v46 = vld [vmem:[#allocation22 + $0x7e0] sm:$0xff] }
 0xd8e   :  { %8202 = vmatprep.mubr.f32.mxu0 %v5255_v17  ;;  %v5270_v17 = vld [vmem:[#allocation22 + $0x7e8] sm:$0xff] }
 0xd91   :  { %8203 = vmatmul.mubr.f32.gmra.mrb[104].mxu0 %v5256_v48  ;;  %v5271_v48 = vld [vmem:[#allocation22 + $0x7f0] sm:$0xff] }
 0xd92   :  { %8205 = vmatprep.mubr.f32.mxu0 %v5257_v49  ;;  %v5272_v49 = vld [vmem:[#allocation22 + $0x7f8] sm:$0xff] }
 0xd95   :  { %8206 = vmatmul.mubr.f32.gmra.mrb[106].mxu0 %v5258_v52 }
 0xd96   :  { %8208 = vmatprep.mubr.f32.mxu0 %v5259_v35 }
 0xd99   :  { %8209 = vmatmul.mubr.f32.gmra.mrb[108].mxu0 %v5260_v3 }
 0xd9a   :  { %8211 = vmatprep.mubr.f32.mxu0 %v5261_v53 }
 0xd9d   :  { %8212 = vmatmul.mubr.f32.gmra.mrb[110].mxu0 %v5262_v10 }
 0xd9e   :  { %8214 = vmatprep.mubr.f32.mxu0 %v5263_v2 }
 0xda1   :  { %8215 = vmatmul.mubr.f32.gmra.mrb[112].mxu0 %v5264_v7 }
 0xda2   :  { %8217 = vmatprep.mubr.f32.mxu0 %v5265_v5 }
 0xda5   :  { %8218 = vmatmul.mubr.f32.gmra.mrb[114].mxu0 %v5266_v42 }
 0xda6   :  { %8220 = vmatprep.mubr.f32.mxu0 %v5267_v44 }
 0xda9   :  { %8221 = vmatmul.mubr.f32.gmra.mrb[116].mxu0 %v5268_v4 }
 0xdaa   :  { %8223 = vmatprep.mubr.f32.mxu0 %v5269_v46 }
 0xdad   :  { %8224 = vmatmul.mubr.f32.gmra.mrb[118].mxu0 %v5270_v17 }
 0xdae   :  { %8226 = vmatprep.mubr.f32.mxu0 %v5271_v48 }
 0xdb1   :  { %8227 = vmatmul.mubr.f32.gmra.mrb[120].mxu0 %v5272_v49 }
 0xe08   :  { %v8135_v52 = vpop.f32.mrb[58].mxu0 }
 0xe09   :  { %v10301_v35 = vadd.f32 %v8135_v52, %v10118_v59  ;;  %v5339_v3 = vpop.f32.mrb[59].mxu0 }
 0xe0a   :  { %v10304_v53 = vadd.f32 %v5339_v3, %v10120_v18 }
 0xe0b   :  { %v5723_v10 = vsel %vm3000_vm6, %v10301_v35, 0.0 }
 0xe0c   :  { %v5722_v2 = vsel %vm3000_vm6, %v10304_v53, 0.0  ;;  %v8138_v7 = vpop.f32.mrb[60].mxu0 }
 0xe0d   :  { %v10311_v5 = vadd.f32 %v8138_v7, %v10126_v20  ;;  %v5349_v42 = vpop.f32.mrb[61].mxu0  ;;  %v5724_v59 = vadd.f32 %v5723_v10, %v5722_v2 }
 0xe0e   :  { %v10314_v44 = vadd.f32 %v5349_v42, %v10128_v62 }
 0xe0f   :  { %v5727_v49 = vsel %vm3000_vm6, %v10311_v5, 0.0 }
 0xe10   :  { %v5725_v4 = vsel %vm3000_vm6, %v10314_v44, 0.0  ;;  %v8141_v18 = vpop.f32.mrb[62].mxu0 }
 0xe11   :  { %v5726_v46 = vadd.f32 %v5725_v4, %v5724_v59  ;;  %v10319_v17 = vadd.f32 %v8141_v18, %v10134_v21  ;;  %v5359_v48 = vpop.f32.mrb[63].mxu0 }
 0xe12   :  { %v10324_v20 = vadd.f32 %v5359_v48, %v10136_v19 }
 0xe13   :  { %v5728_v52 = vadd.f32 %v5727_v49, %v5726_v46  ;;  %v5731_v21 = vsel %vm3000_vm6, %v10319_v17, 0.0 }
 0xe14   :  { %v5729_v62 = vsel %vm3000_vm6, %v10324_v20, 0.0  ;;  %v8144_v3 = vpop.f32.mrb[64].mxu0 }
 0xe15   :  { %v5730_v10 = vadd.f32 %v5729_v62, %v5728_v52  ;;  %v10329_v2 = vadd.f32 %v8144_v3, %v10142_v22  ;;  %v5369_v7 = vpop.f32.mrb[65].mxu0 }
 0xe16   :  { %v10334_v42 = vadd.f32 %v5369_v7, %v10144_v24 }
 0xe17   :  { %v5732_v59 = vadd.f32 %v5731_v21, %v5730_v10  ;;  %v5735_v22 = vsel %vm3000_vm6, %v10329_v2, 0.0 }
 0xe18   :  { %v5733_v19 = vsel %vm3000_vm6, %v10334_v42, 0.0  ;;  %v8147_v4 = vpop.f32.mrb[66].mxu0 }
 0xe19   :  { %v5734_v18 = vadd.f32 %v5733_v19, %v5732_v59  ;;  %v10339_v46 = vadd.f32 %v8147_v4, %v10150_v25  ;;  %v5379_v48 = vpop.f32.mrb[67].mxu0 }
 0xe1a   :  { %v10344_v49 = vadd.f32 %v5379_v48, %v10152_v1 }
 0xe1b   :  { %v5736_v52 = vadd.f32 %v5735_v22, %v5734_v18  ;;  %v5739_v25 = vsel %vm3000_vm6, %v10339_v46, 0.0 }
 0xe1c   :  { %v5737_v24 = vsel %vm3000_vm6, %v10344_v49, 0.0  ;;  %v8150_v62 = vpop.f32.mrb[68].mxu0 }
 0xe1d   :  { %v5738_v3 = vadd.f32 %v5737_v24, %v5736_v52  ;;  %v10349_v10 = vadd.f32 %v8150_v62, %v10158_v26  ;;  %v5389_v7 = vpop.f32.mrb[69].mxu0 }
 0xe1e   :  { %v10354_v21 = vadd.f32 %v5389_v7, %v10160_v27 }
 0xe1f   :  { %v5740_v59 = vadd.f32 %v5739_v25, %v5738_v3  ;;  %v5743_v26 = vsel %vm3000_vm6, %v10349_v10, 0.0 }
 0xe20   :  { %v5741_v1 = vsel %vm3000_vm6, %v10354_v21, 0.0  ;;  %v8153_v19 = vpop.f32.mrb[70].mxu0 }
 0xe21   :  { %v5742_v4 = vadd.f32 %v5741_v1, %v5740_v59  ;;  %v10359_v18 = vadd.f32 %v8153_v19, %v10166_v28  ;;  %v5399_v48 = vpop.f32.mrb[71].mxu0 }
 0xe22   :  { %v10364_v22 = vadd.f32 %v5399_v48, %v10168_v23 }
 0xe23   :  { %v5744_v52 = vadd.f32 %v5743_v26, %v5742_v4  ;;  %v5747_v28 = vsel %vm3000_vm6, %v10359_v18, 0.0 }
 0xe24   :  { %v5745_v27 = vsel %vm3000_vm6, %v10364_v22, 0.0  ;;  %v8156_v24 = vpop.f32.mrb[72].mxu0 }
 0xe25   :  { %v5746_v62 = vadd.f32 %v5745_v27, %v5744_v52  ;;  %v10369_v3 = vadd.f32 %v8156_v24, %v10174_v29  ;;  %v5409_v7 = vpop.f32.mrb[73].mxu0 }
 0xe26   :  { %v10374_v25 = vadd.f32 %v5409_v7, %v10176_v30 }
 0xe27   :  { %v5748_v59 = vadd.f32 %v5747_v28, %v5746_v62  ;;  %v5751_v29 = vsel %vm3000_vm6, %v10369_v3, 0.0 }
 0xe28   :  { %v5749_v23 = vsel %vm3000_vm6, %v10374_v25, 0.0  ;;  %v8159_v1 = vpop.f32.mrb[74].mxu0 }
 0xe29   :  { %v5750_v19 = vadd.f32 %v5749_v23, %v5748_v59  ;;  %v10379_v4 = vadd.f32 %v8159_v1, %v10182_v34  ;;  %v5419_v48 = vpop.f32.mrb[75].mxu0 }
 0xe2a   :  { %v10384_v26 = vadd.f32 %v5419_v48, %v10184_v31 }
 0xe2b   :  { %v5752_v52 = vadd.f32 %v5751_v29, %v5750_v19  ;;  %v5755_v34 = vsel %vm3000_vm6, %v10379_v4, 0.0 }
 0xe2c   :  { %v5753_v30 = vsel %vm3000_vm6, %v10384_v26, 0.0  ;;  %v8162_v27 = vpop.f32.mrb[76].mxu0 }
 0xe2d   :  { %v5754_v24 = vadd.f32 %v5753_v30, %v5752_v52  ;;  %v10389_v62 = vadd.f32 %v8162_v27, %v10190_v39  ;;  %v5429_v7 = vpop.f32.mrb[77].mxu0 }
 0xe2e   :  { %v10394_v28 = vadd.f32 %v5429_v7, %v10192_v16 }
 0xe2f   :  { %v5756_v59 = vadd.f32 %v5755_v34, %v5754_v24  ;;  %v5759_v39 = vsel %vm3000_vm6, %v10389_v62, 0.0 }
 0xe30   :  { %v5757_v31 = vsel %vm3000_vm6, %v10394_v28, 0.0  ;;  %v8165_v23 = vpop.f32.mrb[78].mxu0 }
 0xe31   :  { %v5758_v1 = vadd.f32 %v5757_v31, %v5756_v59  ;;  %v10399_v19 = vadd.f32 %v8165_v23, %v10198_v6  ;;  %v5439_v48 = vpop.f32.mrb[79].mxu0 }
 0xe32   :  { %v10404_v29 = vadd.f32 %v5439_v48, %v10200_v9 }
 0xe33   :  { %v5760_v52 = vadd.f32 %v5759_v39, %v5758_v1  ;;  %v5763_v6 = vsel %vm3000_vm6, %v10399_v19, 0.0 }
 0xe34   :  { %v5761_v16 = vsel %vm3000_vm6, %v10404_v29, 0.0  ;;  %v8168_v30 = vpop.f32.mrb[80].mxu0 }
 0xe35   :  { %v5762_v27 = vadd.f32 %v5761_v16, %v5760_v52  ;;  %v10409_v24 = vadd.f32 %v8168_v30, %v10206_v12  ;;  %v5449_v7 = vpop.f32.mrb[81].mxu0 }
 0xe36   :  { %v10414_v34 = vadd.f32 %v5449_v7, %v10208_v14 }
 0xe37   :  { %v5764_v59 = vadd.f32 %v5763_v6, %v5762_v27  ;;  %v5767_v12 = vsel %vm3000_vm6, %v10409_v24, 0.0 }
 0xe38   :  { %v5765_v9 = vsel %vm3000_vm6, %v10414_v34, 0.0  ;;  %v8171_v31 = vpop.f32.mrb[82].mxu0 }
 0xe39   :  { %v5766_v23 = vadd.f32 %v5765_v9, %v5764_v59  ;;  %v10419_v1 = vadd.f32 %v8171_v31, %v10214_v33  ;;  %v5459_v48 = vpop.f32.mrb[83].mxu0 }
 0xe3a   :  { %v10424_v39 = vadd.f32 %v5459_v48, %v10216_v41 }
 0xe3b   :  { %v5768_v52 = vadd.f32 %v5767_v12, %v5766_v23  ;;  %v5771_v33 = vsel %vm3000_vm6, %v10419_v1, 0.0 }
 0xe3c   :  { %v5769_v14 = vsel %vm3000_vm6, %v10424_v39, 0.0  ;;  %v8174_v16 = vpop.f32.mrb[84].mxu0 }
 0xe3d   :  { %v5770_v30 = vadd.f32 %v5769_v14, %v5768_v52  ;;  %v10429_v27 = vadd.f32 %v8174_v16, %v10224_v54  ;;  %v5469_v7 = vpop.f32.mrb[85].mxu0 }
 0xe3e   :  { %v10434_v6 = vadd.f32 %v5469_v7, %v10226_v55 }
 0xe3f   :  { %v5772_v59 = vadd.f32 %v5771_v33, %v5770_v30  ;;  %v5775_v54 = vsel %vm3000_vm6, %v10429_v27, 0.0 }
 0xe40   :  { %v5773_v41 = vsel %vm3000_vm6, %v10434_v6, 0.0  ;;  %v8177_v9 = vpop.f32.mrb[86].mxu0 }
 0xe41   :  { %v5774_v31 = vadd.f32 %v5773_v41, %v5772_v59  ;;  %v10439_v23 = vadd.f32 %v8177_v9, %v10228_v57  ;;  %v5479_v48 = vpop.f32.mrb[87].mxu0 }
 0xe42   :  { %v10444_v12 = vadd.f32 %v5479_v48, %v10230_v58 }
 0xe43   :  { %11756 = vst [vmem:[#allocation53_spill] sm:$0xff] %v10439_v23  ;;  %v5776_v52 = vadd.f32 %v5775_v54, %v5774_v31  ;;  %v5779_v57 = vsel %vm3000_vm6, %v10439_v23, 0.0 }
 0xe44   :  { %11757 = vst [vmem:[#allocation54_spill] sm:$0xff] %v10444_v12  ;;  %v5777_v55 = vsel %vm3000_vm6, %v10444_v12, 0.0  ;;  %v8180_v14 = vpop.f32.mrb[88].mxu0 }
 0xe45   :  { %v5778_v16 = vadd.f32 %v5777_v55, %v5776_v52  ;;  %v10449_v30 = vadd.f32 %v8180_v14, %v10232_v50  ;;  %v5489_v7 = vpop.f32.mrb[89].mxu0 }
 0xe46   :  { %v10454_v33 = vadd.f32 %v5489_v7, %v10234_v60 }
 0xe47   :  { %11758 = vst [vmem:[#allocation55_spill] sm:$0xff] %v10449_v30  ;;  %v5780_v59 = vadd.f32 %v5779_v57, %v5778_v16  ;;  %v5783_v50 = vsel %vm3000_vm6, %v10449_v30, 0.0  ;;  %v11787_v30 = vld [vmem:[#allocation51_spill] sm:$0xff] }
 0xe48   :  { %11759 = vst [vmem:[#allocation56_spill] sm:$0xff] %v10454_v33  ;;  %v5781_v58 = vsel %vm3000_vm6, %v10454_v33, 0.0  ;;  %v8183_v41 = vpop.f32.mrb[90].mxu0 }
 0xe49   :  { %v5782_v9 = vadd.f32 %v5781_v58, %v5780_v59  ;;  %v10459_v31 = vadd.f32 %v8183_v41, %v10236_v51  ;;  %v5499_v48 = vpop.f32.mrb[91].mxu0 }
 0xe4a   :  { %v10464_v54 = vadd.f32 %v5499_v48, %v10238_v61 }
 0xe4b   :  { %11760 = vst [vmem:[#allocation57_spill] sm:$0xff] %v10459_v31  ;;  %v5784_v52 = vadd.f32 %v5783_v50, %v5782_v9  ;;  %v5787_v51 = vsel %vm3000_vm6, %v10459_v31, 0.0  ;;  %v11785_v31 = vld [vmem:[#allocation49_spill] sm:$0xff] }
 0xe4c   :  { %11761 = vst [vmem:[#allocation58_spill] sm:$0xff] %v10464_v54  ;;  %v5785_v60 = vsel %vm3000_vm6, %v10464_v54, 0.0  ;;  %v8186_v55 = vpop.f32.mrb[92].mxu0 }
 0xe4d   :  { %v5786_v14 = vadd.f32 %v5785_v60, %v5784_v52  ;;  %v10469_v16 = vadd.f32 %v8186_v55, %v10240_v56  ;;  %v5509_v7 = vpop.f32.mrb[93].mxu0 }
 0xe4e   :  { %v10474_v57 = vadd.f32 %v5509_v7, %v10242_v63 }
 0xe4f   :  { %11762 = vst [vmem:[#allocation59_spill] sm:$0xff] %v10469_v16  ;;  %v5788_v59 = vadd.f32 %v5787_v51, %v5786_v14  ;;  %v5791_v56 = vsel %vm3000_vm6, %v10469_v16, 0.0  ;;  %v11783_v16 = vld [vmem:[#allocation47_spill] sm:$0xff] }
 0xe50   :  { %11763 = vst [vmem:[#allocation60_spill] sm:$0xff] %v10474_v57  ;;  %v5789_v61 = vsel %vm3000_vm6, %v10474_v57, 0.0  ;;  %v8189_v58 = vpop.f32.mrb[94].mxu0 }
 0xe51   :  { %v5790_v41 = vadd.f32 %v5789_v61, %v5788_v59  ;;  %v10479_v9 = vadd.f32 %v8189_v58, %v10244_v11  ;;  %v5519_v48 = vpop.f32.mrb[95].mxu0 }
 0xe52   :  { %v10484_v50 = vadd.f32 %v5519_v48, %v10246_v43 }
 0xe53   :  { %11764 = vst [vmem:[#allocation61_spill] sm:$0xff] %v10479_v9  ;;  %v5792_v52 = vadd.f32 %v5791_v56, %v5790_v41  ;;  %v5795_v11 = vsel %vm3000_vm6, %v10479_v9, 0.0  ;;  %v11781_v9 = vld [vmem:[#allocation45_spill] sm:$0xff] }
 0xe54   :  { %11765 = vst [vmem:[#allocation62_spill] sm:$0xff] %v10484_v50  ;;  %v5793_v63 = vsel %vm3000_vm6, %v10484_v50, 0.0  ;;  %v8192_v60 = vpop.f32.mrb[96].mxu0 }
 0xe55   :  { %v5794_v55 = vadd.f32 %v5793_v63, %v5792_v52  ;;  %v10489_v14 = vadd.f32 %v8192_v60, %v10248_v15  ;;  %v5529_v7 = vpop.f32.mrb[97].mxu0 }
 0xe56   :  { %v10494_v51 = vadd.f32 %v5529_v7, %v10250_v32 }
 0xe57   :  { %11766 = vst [vmem:[#allocation63_spill] sm:$0xff] %v10489_v14  ;;  %v5796_v59 = vadd.f32 %v5795_v11, %v5794_v55  ;;  %v5799_v15 = vsel %vm3000_vm6, %v10489_v14, 0.0 }
 0xe58   :  { %11767 = vst [vmem:[#allocation64_spill] sm:$0xff] %v10494_v51  ;;  %v5797_v43 = vsel %vm3000_vm6, %v10494_v51, 0.0  ;;  %v8195_v61 = vpop.f32.mrb[98].mxu0 }
 0xe59   :  { %v5798_v58 = vadd.f32 %v5797_v43, %v5796_v59  ;;  %v10499_v41 = vadd.f32 %v8195_v61, %v10252_v45  ;;  %v5539_v48 = vpop.f32.mrb[99].mxu0 }
 0xe5a   :  { %v10504_v56 = vadd.f32 %v5539_v48, %v10254_v36 }
 0xe5b   :  { %11768 = vst [vmem:[#allocation65_spill] sm:$0xff] %v10499_v41  ;;  %v5800_v52 = vadd.f32 %v5799_v15, %v5798_v58  ;;  %v5803_v45 = vsel %vm3000_vm6, %v10499_v41, 0.0 }
 0xe5c   :  { %11769 = vst [vmem:[#allocation66_spill] sm:$0xff] %v10504_v56  ;;  %v5801_v32 = vsel %vm3000_vm6, %v10504_v56, 0.0  ;;  %v8198_v63 = vpop.f32.mrb[100].mxu0 }
 0xe5d   :  { %v5802_v60 = vadd.f32 %v5801_v32, %v5800_v52  ;;  %v10509_v55 = vadd.f32 %v8198_v63, %v10256_v37  ;;  %v5549_v7 = vpop.f32.mrb[101].mxu0 }
 0xe5e   :  { %v10514_v11 = vadd.f32 %v5549_v7, %v10258_v8 }
 0xe5f   :  { %11770 = vst [vmem:[#allocation67_spill] sm:$0xff] %v10509_v55  ;;  %v5804_v59 = vadd.f32 %v5803_v45, %v5802_v60  ;;  %v5807_v37 = vsel %vm3000_vm6, %v10509_v55, 0.0 }
 0xe60   :  { %11771 = vst [vmem:[#allocation68_spill] sm:$0xff] %v10514_v11  ;;  %v5805_v36 = vsel %vm3000_vm6, %v10514_v11, 0.0  ;;  %v8201_v43 = vpop.f32.mrb[102].mxu0 }
 0xe61   :  { %v5806_v61 = vadd.f32 %v5805_v36, %v5804_v59  ;;  %v10519_v58 = vadd.f32 %v8201_v43, %v10260_v47  ;;  %v5559_v48 = vpop.f32.mrb[103].mxu0 }
 0xe62   :  { %v10524_v15 = vadd.f32 %v5559_v48, %v10262_v38 }
 0xe63   :  { %11772 = vst [vmem:[#allocation69_spill] sm:$0xff] %v10519_v58  ;;  %v5808_v52 = vadd.f32 %v5807_v37, %v5806_v61  ;;  %v5811_v47 = vsel %vm3000_vm6, %v10519_v58, 0.0  ;;  %v11774_v37 = vld [vmem:[#allocation38_spill] sm:$0xff] }
 0xe64   :  { %11773 = vst [vmem:[#allocation70_spill] sm:$0xff] %v10524_v15  ;;  %v5809_v8 = vsel %vm3000_vm6, %v10524_v15, 0.0  ;;  %v8204_v32 = vpop.f32.mrb[104].mxu0 }
 0xe65   :  { %v5810_v63 = vadd.f32 %v5809_v8, %v5808_v52  ;;  %v10529_v60 = vadd.f32 %v8204_v32, %v10264_v13  ;;  %v5569_v7 = vpop.f32.mrb[105].mxu0 }
 0xe66   :  { %v10534_v45 = vadd.f32 %v5569_v7, %v10266_v40  ;;  %v11775_v7 = vld [vmem:[#allocation39_spill] sm:$0xff] }
 0xe67   :  { %v5812_v59 = vadd.f32 %v5811_v47, %v5810_v63  ;;  %v5815_v13 = vsel %vm3000_vm6, %v10529_v60, 0.0 }
 0xe68   :  { %v5813_v38 = vsel %vm3000_vm6, %v10534_v45, 0.0  ;;  %v8207_v36 = vpop.f32.mrb[106].mxu0 }
 0xe69   :  { %v5814_v43 = vadd.f32 %v5813_v38, %v5812_v59  ;;  %v10539_v61 = vadd.f32 %v8207_v36, %v10268_v0  ;;  %v5579_v48 = vpop.f32.mrb[107].mxu0  ;;  %v11776_v38 = vld [vmem:[#allocation40_spill] sm:$0xff] }
 0xe6a   :  { %v10544_v52 = vadd.f32 %v5579_v48, %v11774_v37  ;;  %v11777_v37 = vld [vmem:[#allocation41_spill] sm:$0xff] }
 0xe6b   :  { %v5816_v8 = vadd.f32 %v5815_v13, %v5814_v43  ;;  %v5819_v0 = vsel %vm3000_vm6, %v10539_v61, 0.0 }
 0xe6c   :  { %v5817_v40 = vsel %vm3000_vm6, %v10544_v52, 0.0  ;;  %v8210_v32 = vpop.f32.mrb[108].mxu0 }
 0xe6d   :  { %v5818_v63 = vadd.f32 %v5817_v40, %v5816_v8  ;;  %v10549_v47 = vadd.f32 %v8210_v32, %v11775_v7  ;;  %v5589_v59 = vpop.f32.mrb[109].mxu0  ;;  %v11778_v32 = vld [vmem:[#allocation42_spill] sm:$0xff] }
 0xe6e   :  { %v10554_v36 = vadd.f32 %v5589_v59, %v11776_v38 }
 0xe6f   :  { %v5820_v58 = vadd.f32 %v5819_v0, %v5818_v63  ;;  %v5823_v40 = vsel %vm3000_vm6, %v10549_v47, 0.0  ;;  %v11779_v63 = vld [vmem:[#allocation43_spill] sm:$0xff] }
 0xe70   :  { %v5821_v48 = vsel %vm3000_vm6, %v10554_v36, 0.0  ;;  %v8213_v43 = vpop.f32.mrb[110].mxu0 }
 0xe71   :  { %v5822_v13 = vadd.f32 %v5821_v48, %v5820_v58  ;;  %v10559_v15 = vadd.f32 %v8213_v43, %v11777_v37  ;;  %v5599_v8 = vpop.f32.mrb[111].mxu0  ;;  %v11780_v48 = vld [vmem:[#allocation44_spill] sm:$0xff] }
 0xe72   :  { %v8650_v7 = vadd.f32 %v5599_v8, %v11778_v32  ;;  %v11782_v32 = vld [vmem:[#allocation46_spill] sm:$0xff] }
 0xe73   :  { %v5824_v55 = vadd.f32 %v5823_v40, %v5822_v13  ;;  %v5827_v58 = vsel %vm3000_vm6, %v10559_v15, 0.0 }
 0xe74   :  { %v5825_v11 = vsel %vm3000_vm6, %v8650_v7, 0.0  ;;  %v8216_v59 = vpop.f32.mrb[112].mxu0 }
 0xe75   :  { %v5826_v38 = vadd.f32 %v5825_v11, %v5824_v55  ;;  %v8651_v0 = vadd.f32 %v8216_v59, %v11779_v63  ;;  %v5609_v41 = vpop.f32.mrb[113].mxu0 }
 0xe76   :  { %v8652_v43 = vadd.f32 %v5609_v41, %v11780_v48 }
 0xe77   :  { %v5828_v37 = vadd.f32 %v5827_v58, %v5826_v38  ;;  %v5831_v40 = vsel %vm3000_vm6, %v8651_v0, 0.0  ;;  %v11784_v58 = vld [vmem:[#allocation48_spill] sm:$0xff] }
 0xe78   :  { %v5829_v56 = vsel %vm3000_vm6, %v8652_v43, 0.0  ;;  %v8219_v14 = vpop.f32.mrb[114].mxu0 }
 0xe79   :  { %v5830_v51 = vadd.f32 %v5829_v56, %v5828_v37  ;;  %v8653_v8 = vadd.f32 %v8219_v14, %v11781_v9  ;;  %v5619_v13 = vpop.f32.mrb[115].mxu0 }
 0xe7a   :  { %v8654_v55 = vadd.f32 %v5619_v13, %v11782_v32 }
 0xe7b   :  { %v5832_v11 = vadd.f32 %v5831_v40, %v5830_v51  ;;  %v5835_v38 = vsel %vm3000_vm6, %v8653_v8, 0.0  ;;  %v11786_v40 = vld [vmem:[#allocation50_spill] sm:$0xff] }
 0xe7c   :  { %v5833_v59 = vsel %vm3000_vm6, %v8654_v55, 0.0  ;;  %v8222_v63 = vpop.f32.mrb[116].mxu0 }
 0xe7d   :  { %v5834_v50 = vadd.f32 %v5833_v59, %v5832_v11  ;;  %v8655_v57 = vadd.f32 %v8222_v63, %v11783_v16  ;;  %v5629_v41 = vpop.f32.mrb[117].mxu0 }
 0xe7e   :  { %v8656_v48 = vadd.f32 %v5629_v41, %v11784_v58 }
 0xe7f   :  { %v5836_v56 = vadd.f32 %v5835_v38, %v5834_v50  ;;  %v5839_v51 = vsel %vm3000_vm6, %v8655_v57, 0.0  ;;  %v11788_v38 = vld [vmem:[#allocation52_spill] sm:$0xff] }
 0xe80   :  { %v5837_v9 = vsel %vm3000_vm6, %v8656_v48, 0.0  ;;  %v8225_v14 = vpop.f32.mrb[118].mxu0 }
 0xe81   :  { %v5838_v37 = vadd.f32 %v5837_v9, %v5836_v56  ;;  %v8657_v54 = vadd.f32 %v8225_v14, %v11785_v31  ;;  %v5639_v13 = vpop.f32.mrb[119].mxu0 }
 0xe82   :  { %v8658_v32 = vadd.f32 %v5639_v13, %v11786_v40 }
 0xe83   :  { %v5840_v11 = vadd.f32 %v5839_v51, %v5838_v37  ;;  %v5843_v50 = vsel %vm3000_vm6, %v8657_v54, 0.0 }
 0xe84   :  { %v5841_v16 = vsel %vm3000_vm6, %v8658_v32, 0.0  ;;  %v8228_v59 = vpop.f32.mrb[120].mxu0 }
 0xe85   :  { %v5842_v63 = vadd.f32 %v5841_v16, %v5840_v11  ;;  %v8659_v33 = vadd.f32 %v8228_v59, %v11787_v30  ;;  %v5649_v41 = vpop.f32.mrb[121].mxu0 }
 0xe86   :  { %v8660_v58 = vadd.f32 %v5649_v41, %v11788_v38 }
 0xe87   :  { %v5844_v56 = vadd.f32 %v5843_v50, %v5842_v63  ;;  %v5847_v14 = vsel %vm3000_vm6, %v8659_v33, 0.0 }
 0xe88   :  { %v5845_v31 = vsel %vm3000_vm6, %v8660_v58, 0.0 }
 0xe89   :  { %v5846_v9 = vadd.f32 %v5845_v31, %v5844_v56 }
 0xe8b   :  { %v5848_v23 = vadd.f32 %v5847_v14, %v5846_v9 }
 0xe8d   :  { %v5849_v13 = vrot.slane %v5848_v23, 4 }
 0xe8f   :  { %v5850_v37 = vadd.f32 %v5849_v13, %v5848_v23 }
 0xe91   :  { %v5851_v51 = vrot.slane %v5850_v37, 2 }
 0xe93   :  { %v5852_v40 = vadd.f32 %v5851_v51, %v5850_v37 }
 0xe95   :  { %v5853_v12 = vrot.slane %v5852_v40, 1 }
 0xe97   :  { %v5854_v11 = vadd.f32 %v5853_v12, %v5852_v40 }
 0xe99   :  { %v10587_v16 = vmul.f32 0.001953125, %v5854_v11 }
 0xe9b   :  { %v10591_v30 = vsub.f32 %v10534_v45, %v10587_v16  ;;  %v10595_v59 = vsub.f32 %v10529_v60, %v10587_v16  ;;  %v10599_v63 = vsub.f32 %v10544_v52, %v10587_v16  ;;  %v10603_v23 = vsub.f32 %v10539_v61, %v10587_v16 }
 0xe9c   :  { %v10607_v12 = vsub.f32 %v10554_v36, %v10587_v16  ;;  %v10611_v45 = vsub.f32 %v10549_v47, %v10587_v16  ;;  %v10614_v41 = vsub.f32 %v8650_v7, %v10587_v16  ;;  %v10618_v60 = vsub.f32 %v10559_v15, %v10587_v16 }
 0xe9d   :  { %v10621_v52 = vsub.f32 %v8652_v43, %v10587_v16  ;;  %v10624_v61 = vsub.f32 %v8651_v0, %v10587_v16  ;;  %v10627_v36 = vsub.f32 %v8654_v55, %v10587_v16  ;;  %v10630_v50 = vsub.f32 %v8653_v8, %v10587_v16 }
 0xe9e   :  { %v10633_v47 = vsub.f32 %v8656_v48, %v10587_v16  ;;  %v10636_v7 = vsub.f32 %v8655_v57, %v10587_v16  ;;  %v10639_v15 = vsub.f32 %v8658_v32, %v10587_v16  ;;  %v10642_v43 = vsub.f32 %v8657_v54, %v10587_v16 }
 0xe9f   :  { %v10645_v0 = vsub.f32 %v8660_v58, %v10587_v16  ;;  %v10648_v55 = vsub.f32 %v8659_v33, %v10587_v16  ;;  %v10652_v8 = vsub.f32 %v10304_v53, %v10587_v16  ;;  %v10656_v57 = vsub.f32 %v10301_v35, %v10587_v16 }
 0xea0   :  { %11789 = vst [vmem:[#allocation38_spill] sm:$0xff] %v10633_v47  ;;  %11790 = vst [vmem:[#allocation39_spill] sm:$0xff] %v10636_v7  ;;  %v10660_v48 = vsub.f32 %v10314_v44, %v10587_v16  ;;  %v10664_v54 = vsub.f32 %v10311_v5, %v10587_v16  ;;  %v10672_v53 = vsub.f32 %v10324_v20, %v10587_v16 }
 0xea1   :  { %11791 = vst [vmem:[#allocation40_spill] sm:$0xff] %v10639_v15  ;;  %11792 = vst [vmem:[#allocation41_spill] sm:$0xff] %v10642_v43  ;;  %v5921_v33 = vmul.f32 %v10652_v8, %v10652_v8  ;;  %v5922_v32 = vmul.f32 %v10656_v57, %v10656_v57  ;;  %v10678_v44 = vsub.f32 %v10319_v17, %v10587_v16 }
 0xea2   :  { %11793 = vst [vmem:[#allocation42_spill] sm:$0xff] %v10645_v0  ;;  %11794 = vst [vmem:[#allocation43_spill] sm:$0xff] %v10648_v55  ;;  %v5923_v35 = vmul.f32 %v10660_v48, %v10660_v48  ;;  %v5924_v5 = vmul.f32 %v10664_v54, %v10664_v54  ;;  %v10686_v31 = vsub.f32 %v10334_v42, %v10587_v16 }
 0xea3   :  { %v5985_v38 = vsel %vm3000_vm6, %v5921_v33, 0.0  ;;  %v5986_v58 = vsel %vm3000_vm6, %v5922_v32, 0.0  ;;  %v5925_v20 = vmul.f32 %v10672_v53, %v10672_v53  ;;  %v10693_v17 = vsub.f32 %v10329_v2, %v10587_v16 }
 0xea4   :  { %v5987_v56 = vadd.f32 %v5986_v58, %v5985_v38  ;;  %v5988_v9 = vsel %vm3000_vm6, %v5923_v35, 0.0  ;;  %v5926_v13 = vmul.f32 %v10678_v44, %v10678_v44  ;;  %v5990_v37 = vsel %vm3000_vm6, %v5924_v5, 0.0 }
 0xea5   :  { %v10700_v42 = vsub.f32 %v10344_v49, %v10587_v16  ;;  %v5927_v40 = vmul.f32 %v10686_v31, %v10686_v31  ;;  %v5992_v11 = vsel %vm3000_vm6, %v5925_v20, 0.0  ;;  %v10707_v2 = vsub.f32 %v10339_v46, %v10587_v16 }
 0xea6   :  { %v5989_v14 = vadd.f32 %v5988_v9, %v5987_v56  ;;  %v5928_v32 = vmul.f32 %v10693_v17, %v10693_v17  ;;  %v5994_v35 = vsel %vm3000_vm6, %v5926_v13, 0.0  ;;  %v10714_v49 = vsub.f32 %v10354_v21, %v10587_v16 }
 0xea7   :  { %v5929_v38 = vmul.f32 %v10700_v42, %v10700_v42  ;;  %v5996_v58 = vsel %vm3000_vm6, %v5927_v40, 0.0  ;;  %v10721_v46 = vsub.f32 %v10349_v10, %v10587_v16  ;;  %v5930_v20 = vmul.f32 %v10707_v2, %v10707_v2 }
 0xea8   :  { %v5991_v51 = vadd.f32 %v5990_v37, %v5989_v14  ;;  %v5998_v9 = vsel %vm3000_vm6, %v5928_v32, 0.0  ;;  %v10728_v21 = vsub.f32 %v10364_v22, %v10587_v16  ;;  %v5931_v13 = vmul.f32 %v10714_v49, %v10714_v49 }
 0xea9   :  { %v6000_v37 = vsel %vm3000_vm6, %v5929_v38, 0.0  ;;  %v10735_v10 = vsub.f32 %v10359_v18, %v10587_v16  ;;  %v5932_v40 = vmul.f32 %v10721_v46, %v10721_v46  ;;  %v10742_v22 = vsub.f32 %v10374_v25, %v10587_v16 }
 0xeaa   :  { %v5993_v33 = vadd.f32 %v5992_v11, %v5991_v51  ;;  %v6002_v11 = vsel %vm3000_vm6, %v5930_v20, 0.0  ;;  %v5933_v32 = vmul.f32 %v10728_v21, %v10728_v21  ;;  %v10749_v18 = vsub.f32 %v10369_v3, %v10587_v16 }
 0xeab   :  { %v5934_v38 = vmul.f32 %v10735_v10, %v10735_v10  ;;  %v10756_v25 = vsub.f32 %v10384_v26, %v10587_v16  ;;  %v5935_v20 = vmul.f32 %v10742_v22, %v10742_v22  ;;  %v10763_v3 = vsub.f32 %v10379_v4, %v10587_v16 }
 0xeac   :  { %v5995_v5 = vadd.f32 %v5994_v35, %v5993_v33  ;;  %v6004_v35 = vsel %vm3000_vm6, %v5931_v13, 0.0  ;;  %v5936_v13 = vmul.f32 %v10749_v18, %v10749_v18  ;;  %v10770_v26 = vsub.f32 %v10394_v28, %v10587_v16 }
 0xead   :  { %v10777_v4 = vsub.f32 %v10389_v62, %v10587_v16  ;;  %v10784_v28 = vsub.f32 %v10404_v29, %v10587_v16  ;;  %v10791_v62 = vsub.f32 %v10399_v19, %v10587_v16  ;;  %v10798_v29 = vsub.f32 %v10414_v34, %v10587_v16 }
 0xeae   :  { %v5997_v56 = vadd.f32 %v5996_v58, %v5995_v5  ;;  %v6006_v58 = vsel %vm3000_vm6, %v5932_v40, 0.0  ;;  %v5937_v40 = vmul.f32 %v10756_v25, %v10756_v25  ;;  %v10805_v19 = vsub.f32 %v10409_v24, %v10587_v16 }
 0xeaf   :  { %v10812_v34 = vsub.f32 %v10424_v39, %v10587_v16  ;;  %v10819_v24 = vsub.f32 %v10419_v1, %v10587_v16  ;;  %v10826_v39 = vsub.f32 %v10434_v6, %v10587_v16  ;;  %v10833_v1 = vsub.f32 %v10429_v27, %v10587_v16 }
 0xeb0   :  { %v5999_v14 = vadd.f32 %v5998_v9, %v5997_v56  ;;  %v6008_v9 = vsel %vm3000_vm6, %v5933_v32, 0.0  ;;  %v5938_v32 = vmul.f32 %v10763_v3, %v10763_v3 }
 0xeb2   :  { %v6001_v51 = vadd.f32 %v6000_v37, %v5999_v14  ;;  %v6010_v37 = vsel %vm3000_vm6, %v5934_v38, 0.0  ;;  %v5939_v38 = vmul.f32 %v10770_v26, %v10770_v26 }
 0xeb4   :  { %v6003_v33 = vadd.f32 %v6002_v11, %v6001_v51  ;;  %v6012_v11 = vsel %vm3000_vm6, %v5935_v20, 0.0  ;;  %v5940_v20 = vmul.f32 %v10777_v4, %v10777_v4 }
 0xeb6   :  { %v6005_v5 = vadd.f32 %v6004_v35, %v6003_v33  ;;  %v6014_v35 = vsel %vm3000_vm6, %v5936_v13, 0.0  ;;  %v5941_v13 = vmul.f32 %v10784_v28, %v10784_v28 }
 0xeb8   :  { %v6007_v56 = vadd.f32 %v6006_v58, %v6005_v5  ;;  %v6016_v58 = vsel %vm3000_vm6, %v5937_v40, 0.0  ;;  %v5942_v40 = vmul.f32 %v10791_v62, %v10791_v62 }
 0xeba   :  { %v6009_v14 = vadd.f32 %v6008_v9, %v6007_v56  ;;  %v6018_v9 = vsel %vm3000_vm6, %v5938_v32, 0.0  ;;  %v5943_v32 = vmul.f32 %v10798_v29, %v10798_v29 }
 0xebc   :  { %v6011_v51 = vadd.f32 %v6010_v37, %v6009_v14  ;;  %v6020_v37 = vsel %vm3000_vm6, %v5939_v38, 0.0  ;;  %v5944_v38 = vmul.f32 %v10805_v19, %v10805_v19 }
 0xebe   :  { %v6013_v33 = vadd.f32 %v6012_v11, %v6011_v51  ;;  %v6022_v11 = vsel %vm3000_vm6, %v5940_v20, 0.0  ;;  %v5945_v20 = vmul.f32 %v10812_v34, %v10812_v34 }
 0xec0   :  { %v6015_v5 = vadd.f32 %v6014_v35, %v6013_v33  ;;  %v6024_v35 = vsel %vm3000_vm6, %v5941_v13, 0.0  ;;  %v5946_v13 = vmul.f32 %v10819_v24, %v10819_v24 }
 0xec2   :  { %v6017_v56 = vadd.f32 %v6016_v58, %v6015_v5  ;;  %v6026_v58 = vsel %vm3000_vm6, %v5942_v40, 0.0  ;;  %v11795_v40 = vld [vmem:[#allocation54_spill] sm:$0xff] }
 0xec3   :  { %v10840_v6 = vsub.f32 %v11795_v40, %v10587_v16 }
 0xec4   :  { %v6019_v14 = vadd.f32 %v6018_v9, %v6017_v56  ;;  %v6028_v9 = vsel %vm3000_vm6, %v5943_v32, 0.0 }
 0xec5   :  { %11796 = vst [vmem:[#allocation44_spill] sm:$0xff] %v10840_v6 }
 0xec6   :  { %v6021_v51 = vadd.f32 %v6020_v37, %v6019_v14  ;;  %v6030_v37 = vsel %vm3000_vm6, %v5944_v38, 0.0  ;;  %v6034_v38 = vsel %vm3000_vm6, %v5946_v13, 0.0 }
 0xec8   :  { %v6023_v33 = vadd.f32 %v6022_v11, %v6021_v51  ;;  %v5947_v11 = vmul.f32 %v10826_v39, %v10826_v39 }
 0xeca   :  { %v6025_v5 = vadd.f32 %v6024_v35, %v6023_v33  ;;  %v6032_v33 = vsel %vm3000_vm6, %v5945_v20, 0.0  ;;  %v11797_v35 = vld [vmem:[#allocation53_spill] sm:$0xff]  ;;  %v6036_v20 = vsel %vm3000_vm6, %v5947_v11, 0.0 }
 0xecb   :  { %v10847_v27 = vsub.f32 %v11797_v35, %v10587_v16  ;;  %v11803_v35 = vld [vmem:[#allocation58_spill] sm:$0xff] }
 0xecc   :  { %v6027_v56 = vadd.f32 %v6026_v58, %v6025_v5  ;;  %v5948_v5 = vmul.f32 %v10833_v1, %v10833_v1 }
 0xecd   :  { %11798 = vst [vmem:[#allocation45_spill] sm:$0xff] %v10847_v27 }
 0xece   :  { %v6029_v14 = vadd.f32 %v6028_v9, %v6027_v56  ;;  %v11799_v56 = vld [vmem:[#allocation56_spill] sm:$0xff]  ;;  %v6038_v13 = vsel %vm3000_vm6, %v5948_v5, 0.0 }
 0xecf   :  { %v10854_v9 = vsub.f32 %v11799_v56, %v10587_v16 }
 0xed0   :  { %v6031_v51 = vadd.f32 %v6030_v37, %v6029_v14  ;;  %v5949_v14 = vmul.f32 %v10840_v6, %v10840_v6 }
 0xed1   :  { %11800 = vst [vmem:[#allocation46_spill] sm:$0xff] %v10854_v9  ;;  %v5951_v56 = vmul.f32 %v10854_v9, %v10854_v9 }
 0xed2   :  { %v6033_v32 = vadd.f32 %v6032_v33, %v6031_v51  ;;  %v11801_v51 = vld [vmem:[#allocation55_spill] sm:$0xff]  ;;  %v5950_v33 = vmul.f32 %v10847_v27, %v10847_v27  ;;  %v6040_v11 = vsel %vm3000_vm6, %v5949_v14, 0.0 }
 0xed3   :  { %v10861_v40 = vsub.f32 %v11801_v51, %v10587_v16  ;;  %v6044_v14 = vsel %vm3000_vm6, %v5951_v56, 0.0 }
 0xed4   :  { %v6035_v58 = vadd.f32 %v6034_v38, %v6033_v32  ;;  %v10868_v38 = vsub.f32 %v11803_v35, %v10587_v16  ;;  %v6042_v5 = vsel %vm3000_vm6, %v5950_v33, 0.0 }
 0xed5   :  { %11802 = vst [vmem:[#allocation47_spill] sm:$0xff] %v10861_v40  ;;  %v5952_v27 = vmul.f32 %v10861_v40, %v10861_v40 }
 0xed6   :  { %v6037_v37 = vadd.f32 %v6036_v20, %v6035_v58  ;;  %11804 = vst [vmem:[#allocation48_spill] sm:$0xff] %v10868_v38  ;;  %v11805_v20 = vld [vmem:[#allocation57_spill] sm:$0xff]  ;;  %v5953_v9 = vmul.f32 %v10868_v38, %v10868_v38 }
 0xed7   :  { %v10875_v51 = vsub.f32 %v11805_v20, %v10587_v16  ;;  %v6046_v33 = vsel %vm3000_vm6, %v5952_v27, 0.0 }
 0xed8   :  { %v6039_v32 = vadd.f32 %v6038_v13, %v6037_v37  ;;  %v11807_v13 = vld [vmem:[#allocation60_spill] sm:$0xff]  ;;  %v6048_v56 = vsel %vm3000_vm6, %v5953_v9, 0.0 }
 0xed9   :  { %11806 = vst [vmem:[#allocation49_spill] sm:$0xff] %v10875_v51  ;;  %v10882_v35 = vsub.f32 %v11807_v13, %v10587_v16  ;;  %v5954_v40 = vmul.f32 %v10875_v51, %v10875_v51 }
 0xeda   :  { %v6041_v58 = vadd.f32 %v6040_v11, %v6039_v32  ;;  %v11809_v11 = vld [vmem:[#allocation59_spill] sm:$0xff] }
 0xedb   :  { %11808 = vst [vmem:[#allocation50_spill] sm:$0xff] %v10882_v35  ;;  %v10889_v20 = vsub.f32 %v11809_v11, %v10587_v16  ;;  %v5955_v38 = vmul.f32 %v10882_v35, %v10882_v35  ;;  %v6050_v27 = vsel %vm3000_vm6, %v5954_v40, 0.0 }
 0xedc   :  { %v6043_v37 = vadd.f32 %v6042_v5, %v6041_v58  ;;  %v11811_v5 = vld [vmem:[#allocation62_spill] sm:$0xff] }
 0xedd   :  { %11810 = vst [vmem:[#allocation51_spill] sm:$0xff] %v10889_v20  ;;  %v10896_v13 = vsub.f32 %v11811_v5, %v10587_v16  ;;  %v5956_v51 = vmul.f32 %v10889_v20, %v10889_v20  ;;  %v6052_v9 = vsel %vm3000_vm6, %v5955_v38, 0.0 }
 0xede   :  { %v6045_v32 = vadd.f32 %v6044_v14, %v6043_v37  ;;  %v11813_v14 = vld [vmem:[#allocation61_spill] sm:$0xff] }
 0xedf   :  { %11812 = vst [vmem:[#allocation52_spill] sm:$0xff] %v10896_v13  ;;  %v10903_v11 = vsub.f32 %v11813_v14, %v10587_v16  ;;  %v5957_v35 = vmul.f32 %v10896_v13, %v10896_v13  ;;  %v6054_v40 = vsel %vm3000_vm6, %v5956_v51, 0.0 }
 0xee0   :  { %v6047_v58 = vadd.f32 %v6046_v33, %v6045_v32  ;;  %v11815_v33 = vld [vmem:[#allocation64_spill] sm:$0xff] }
 0xee1   :  { %11814 = vst [vmem:[#allocation54_spill] sm:$0xff] %v10903_v11  ;;  %v10910_v5 = vsub.f32 %v11815_v33, %v10587_v16  ;;  %v5958_v20 = vmul.f32 %v10903_v11, %v10903_v11  ;;  %v6056_v38 = vsel %vm3000_vm6, %v5957_v35, 0.0 }
 0xee2   :  { %v6049_v37 = vadd.f32 %v6048_v56, %v6047_v58  ;;  %v11817_v56 = vld [vmem:[#allocation63_spill] sm:$0xff] }
 0xee3   :  { %11816 = vst [vmem:[#allocation53_spill] sm:$0xff] %v10910_v5  ;;  %v10917_v14 = vsub.f32 %v11817_v56, %v10587_v16  ;;  %v5959_v13 = vmul.f32 %v10910_v5, %v10910_v5  ;;  %v6058_v51 = vsel %vm3000_vm6, %v5958_v20, 0.0 }
 0xee4   :  { %v6051_v32 = vadd.f32 %v6050_v27, %v6049_v37  ;;  %v11819_v27 = vld [vmem:[#allocation66_spill] sm:$0xff] }
 0xee5   :  { %11818 = vst [vmem:[#allocation56_spill] sm:$0xff] %v10917_v14  ;;  %v10924_v33 = vsub.f32 %v11819_v27, %v10587_v16  ;;  %v5960_v11 = vmul.f32 %v10917_v14, %v10917_v14  ;;  %v6060_v35 = vsel %vm3000_vm6, %v5959_v13, 0.0 }
 0xee6   :  { %v6053_v58 = vadd.f32 %v6052_v9, %v6051_v32  ;;  %v11821_v9 = vld [vmem:[#allocation65_spill] sm:$0xff] }
 0xee7   :  { %11820 = vst [vmem:[#allocation55_spill] sm:$0xff] %v10924_v33  ;;  %v10931_v56 = vsub.f32 %v11821_v9, %v10587_v16  ;;  %v5961_v5 = vmul.f32 %v10924_v33, %v10924_v33  ;;  %v6062_v20 = vsel %vm3000_vm6, %v5960_v11, 0.0 }
 0xee8   :  { %v6055_v37 = vadd.f32 %v6054_v40, %v6053_v58  ;;  %v11823_v40 = vld [vmem:[#allocation68_spill] sm:$0xff] }
 0xee9   :  { %11822 = vst [vmem:[#allocation58_spill] sm:$0xff] %v10931_v56  ;;  %v10938_v27 = vsub.f32 %v11823_v40, %v10587_v16  ;;  %v5962_v14 = vmul.f32 %v10931_v56, %v10931_v56  ;;  %v6064_v13 = vsel %vm3000_vm6, %v5961_v5, 0.0 }
 0xeea   :  { %v6057_v32 = vadd.f32 %v6056_v38, %v6055_v37  ;;  %v11824_v38 = vld [vmem:[#allocation67_spill] sm:$0xff] }
 0xeeb   :  { %v10945_v9 = vsub.f32 %v11824_v38, %v10587_v16  ;;  %v5963_v33 = vmul.f32 %v10938_v27, %v10938_v27  ;;  %v6066_v11 = vsel %vm3000_vm6, %v5962_v14, 0.0  ;;  %v5968_v14 = vmul.f32 %v10595_v59, %v10595_v59 }
 0xeec   :  { %v6059_v58 = vadd.f32 %v6058_v51, %v6057_v32  ;;  %v11826_v51 = vld [vmem:[#allocation70_spill] sm:$0xff] }
 0xeed   :  { %11825 = vst [vmem:[#allocation57_spill] sm:$0xff] %v10945_v9  ;;  %v10952_v40 = vsub.f32 %v11826_v51, %v10587_v16  ;;  %v5964_v56 = vmul.f32 %v10945_v9, %v10945_v9  ;;  %v6068_v51 = vsel %vm3000_vm6, %v5963_v33, 0.0  ;;  %v5969_v33 = vmul.f32 %v10599_v63, %v10599_v63 }
 0xeee   :  { %v6061_v37 = vadd.f32 %v6060_v35, %v6059_v58  ;;  %v11827_v35 = vld [vmem:[#allocation69_spill] sm:$0xff] }
 0xeef   :  { %v10959_v38 = vsub.f32 %v11827_v35, %v10587_v16  ;;  %v5967_v16 = vmul.f32 %v10591_v30, %v10591_v30 }
 0xef0   :  { %v6063_v32 = vadd.f32 %v6062_v20, %v6061_v37  ;;  %v5965_v20 = vmul.f32 %v10952_v40, %v10952_v40 }
 0xef1   :  { %v5966_v5 = vmul.f32 %v10959_v38, %v10959_v38 }
 0xef2   :  { %v6065_v58 = vadd.f32 %v6064_v13, %v6063_v32  ;;  %v6070_v32 = vsel %vm3000_vm6, %v5964_v56, 0.0  ;;  %v6072_v35 = vsel %vm3000_vm6, %v5965_v20, 0.0  ;;  %v6078_v56 = vsel %vm3000_vm6, %v5968_v14, 0.0 }
 0xef3   :  { %v5971_v20 = vmul.f32 %v10607_v12, %v10607_v12  ;;  %v5974_v14 = vmul.f32 %v10618_v60, %v10618_v60 }
 0xef4   :  { %v6067_v37 = vadd.f32 %v6066_v11, %v6065_v58  ;;  %v6074_v58 = vsel %vm3000_vm6, %v5966_v5, 0.0 }
 0xef6   :  { %v6069_v6 = vadd.f32 %v6068_v51, %v6067_v37  ;;  %v6076_v37 = vsel %vm3000_vm6, %v5967_v16, 0.0  ;;  %v5973_v16 = vmul.f32 %v10614_v41, %v10614_v41 }
 0xef8   :  { %v6071_v13 = vadd.f32 %v6070_v32, %v6069_v6  ;;  %v5970_v6 = vmul.f32 %v10603_v23, %v10603_v23 }
 0xefa   :  { %v6073_v9 = vadd.f32 %v6072_v35, %v6071_v13  ;;  %v6080_v13 = vsel %vm3000_vm6, %v5969_v33, 0.0  ;;  %v6082_v5 = vsel %vm3000_vm6, %v5970_v6, 0.0  ;;  %v5975_v33 = vmul.f32 %v10621_v52, %v10621_v52 }
 0xefb   :  { %v5976_v6 = vmul.f32 %v10624_v61, %v10624_v61 }
 0xefc   :  { %v6075_v11 = vadd.f32 %v6074_v58, %v6073_v9  ;;  %v5972_v9 = vmul.f32 %v10611_v45, %v10611_v45 }
 0xefe   :  { %v6077_v51 = vadd.f32 %v6076_v37, %v6075_v11  ;;  %v6084_v11 = vsel %vm3000_vm6, %v5971_v20, 0.0  ;;  %v5977_v20 = vmul.f32 %v10627_v36, %v10627_v36 }
 0xf00   :  { %v6079_v32 = vadd.f32 %v6078_v56, %v6077_v51  ;;  %v6086_v51 = vsel %vm3000_vm6, %v5972_v9, 0.0  ;;  %v5978_v9 = vmul.f32 %v10630_v50, %v10630_v50 }
 0xf02   :  { %v6081_v35 = vadd.f32 %v6080_v13, %v6079_v32  ;;  %v6088_v32 = vsel %vm3000_vm6, %v5973_v16, 0.0  ;;  %v5979_v16 = vmul.f32 %v10633_v47, %v10633_v47 }
 0xf04   :  { %v6083_v58 = vadd.f32 %v6082_v5, %v6081_v35  ;;  %v6090_v35 = vsel %vm3000_vm6, %v5974_v14, 0.0  ;;  %v5980_v14 = vmul.f32 %v10636_v7, %v10636_v7 }
 0xf06   :  { %v6085_v37 = vadd.f32 %v6084_v11, %v6083_v58  ;;  %v6092_v58 = vsel %vm3000_vm6, %v5975_v33, 0.0  ;;  %v5981_v33 = vmul.f32 %v10639_v15, %v10639_v15 }
 0xf08   :  { %v6087_v56 = vadd.f32 %v6086_v51, %v6085_v37  ;;  %v6094_v37 = vsel %vm3000_vm6, %v5976_v6, 0.0  ;;  %v5982_v6 = vmul.f32 %v10642_v43, %v10642_v43 }
 0xf0a   :  { %v6089_v13 = vadd.f32 %v6088_v32, %v6087_v56  ;;  %v6096_v56 = vsel %vm3000_vm6, %v5977_v20, 0.0  ;;  %v5983_v20 = vmul.f32 %v10645_v0, %v10645_v0 }
 0xf0c   :  { %v6091_v5 = vadd.f32 %v6090_v35, %v6089_v13  ;;  %v6098_v13 = vsel %vm3000_vm6, %v5978_v9, 0.0  ;;  %v5984_v9 = vmul.f32 %v10648_v55, %v10648_v55 }
 0xf0e   :  { %v6093_v11 = vadd.f32 %v6092_v58, %v6091_v5  ;;  %v6100_v5 = vsel %vm3000_vm6, %v5979_v16, 0.0  ;;  %v6108_v16 = vsel %vm3000_vm6, %v5983_v20, 0.0 }
 0xf10   :  { %v6095_v51 = vadd.f32 %v6094_v37, %v6093_v11  ;;  %v6102_v11 = vsel %vm3000_vm6, %v5980_v14, 0.0 }
 0xf12   :  { %v6097_v32 = vadd.f32 %v6096_v56, %v6095_v51  ;;  %v6104_v51 = vsel %vm3000_vm6, %v5981_v33, 0.0 }
 0xf14   :  { %v6099_v35 = vadd.f32 %v6098_v13, %v6097_v32  ;;  %v6106_v32 = vsel %vm3000_vm6, %v5982_v6, 0.0  ;;  %v11828_v6 = vld [vmem:[#allocation37_spill] sm:$0xff] }
 0xf16   :  { %v6101_v58 = vadd.f32 %v6100_v5, %v6099_v35  ;;  %v6110_v5 = vsel %vm3000_vm6, %v5984_v9, 0.0  ;;  %v11831_v9 = vld [vmem:[#allocation46_spill] sm:$0xff] }
 0xf18   :  { %v6103_v37 = vadd.f32 %v6102_v11, %v6101_v58 }
 0xf1a   :  { %v6105_v56 = vadd.f32 %v6104_v51, %v6103_v37  ;;  %v6119_v51 = vld [vmem:[#allocation25] sm:$0x1] }
 0xf1c   :  { %v6107_v13 = vadd.f32 %v6106_v32, %v6105_v56  ;;  %v11832_v32 = vld [vmem:[#allocation47_spill] sm:$0xff] }
 0xf1e   :  { %v6109_v35 = vadd.f32 %v6108_v16, %v6107_v13  ;;  %v11833_v13 = vld [vmem:[#allocation48_spill] sm:$0xff]  ;;  %v11834_v16 = vld [vmem:[#allocation49_spill] sm:$0xff] }
 0xf20   :  { %v6111_v43 = vadd.f32 %v6110_v5, %v6109_v35  ;;  %v11835_v5 = vld [vmem:[#allocation50_spill] sm:$0xff] }
 0xf22   :  { %v6112_v14 = vrot.slane %v6111_v43, 4 }
 0xf24   :  { %v6113_v58 = vadd.f32 %v6112_v14, %v6111_v43 }
 0xf26   :  { %v6114_v11 = vrot.slane %v6113_v58, 2 }
 0xf28   :  { %v6115_v15 = vadd.f32 %v6114_v11, %v6113_v58  ;;  %v11836_v58 = vld [vmem:[#allocation51_spill] sm:$0xff] }
 0xf2a   :  { %v6116_v0 = vrot.slane %v6115_v15, 1 }
 0xf2c   :  { %v6117_v7 = vadd.f32 %v6116_v0, %v6115_v15 }
 0xf2e   :  { %v6118_v33 = vmul.f32 0.001953125, %v6117_v7 }
 0xf30   :  { %v6120_v37 = vadd.f32 1e-05, %v6118_v33  ;;  %v11837_v33 = vld [vmem:[#allocation52_spill] sm:$0xff] }
 0xf32   :  { %8883 = vrsqrt.f32 %v6120_v37 }
 0xf3c   :  { %v8884_v55 = vpop.eup %8883 }
 0xf3d   :  { %v6122_v47 = vmul.f32 %v8884_v55, %v6119_v51  ;;  %v11838_v51 = vld [vmem:[#allocation54_spill] sm:$0xff] }
 0xf3f   :  { %v11027_v56 = vrot.slane %v6122_v47, %v11828_v6 }
 0xf41   :  { %v11031_v20 = vmul.f32 %v11027_v56, %v10652_v8  ;;  %v11035_v43 = vmul.f32 %v11027_v56, %v10656_v57  ;;  %v11039_v15 = vmul.f32 %v11027_v56, %v10660_v48  ;;  %v11043_v7 = vmul.f32 %v11027_v56, %v10664_v54 }
 0xf42   :  { %v11047_v47 = vmul.f32 %v11027_v56, %v10672_v53  ;;  %v11051_v0 = vmul.f32 %v11027_v56, %v10678_v44  ;;  %v11055_v55 = vmul.f32 %v11027_v56, %v10686_v31  ;;  %v11059_v8 = vmul.f32 %v11027_v56, %v10693_v17 }
 0xf43   :  { %v11063_v57 = vmul.f32 %v11027_v56, %v10700_v42  ;;  %v11067_v48 = vmul.f32 %v11027_v56, %v10707_v2  ;;  %v11071_v54 = vmul.f32 %v11027_v56, %v10714_v49  ;;  %v11075_v53 = vmul.f32 %v11027_v56, %v10721_v46 }
 0xf44   :  { %v11079_v44 = vmul.f32 %v11027_v56, %v10728_v21  ;;  %v11083_v31 = vmul.f32 %v11027_v56, %v10735_v10  ;;  %v11087_v17 = vmul.f32 %v11027_v56, %v10742_v22  ;;  %v11091_v42 = vmul.f32 %v11027_v56, %v10749_v18 }
 0xf45   :  { %v11095_v2 = vmul.f32 %v11027_v56, %v10756_v25  ;;  %v11099_v49 = vmul.f32 %v11027_v56, %v10763_v3  ;;  %v11103_v46 = vmul.f32 %v11027_v56, %v10770_v26  ;;  %v11107_v21 = vmul.f32 %v11027_v56, %v10777_v4 }
 0xf46   :  { %v11111_v10 = vmul.f32 %v11027_v56, %v10784_v28  ;;  %v11115_v22 = vmul.f32 %v11027_v56, %v10791_v62  ;;  %v11119_v18 = vmul.f32 %v11027_v56, %v10798_v29  ;;  %v11123_v25 = vmul.f32 %v11027_v56, %v10805_v19  ;;  %v11829_v62 = vld [vmem:[#allocation44_spill] sm:$0xff]  ;;  %v11830_v19 = vld [vmem:[#allocation45_spill] sm:$0xff] }
 0xf47   :  { %v11127_v3 = vmul.f32 %v11027_v56, %v10812_v34  ;;  %v11131_v26 = vmul.f32 %v11027_v56, %v10819_v24  ;;  %v11135_v4 = vmul.f32 %v11027_v56, %v10826_v39  ;;  %v11139_v28 = vmul.f32 %v11027_v56, %v10833_v1 }
 0xf48   :  { %v11143_v29 = vmul.f32 %v11027_v56, %v11829_v62  ;;  %v11147_v34 = vmul.f32 %v11027_v56, %v11830_v19  ;;  %v11151_v24 = vmul.f32 %v11027_v56, %v11831_v9  ;;  %v11155_v39 = vmul.f32 %v11027_v56, %v11832_v32  ;;  %v11839_v62 = vld [vmem:[#allocation53_spill] sm:$0xff]  ;;  %v11840_v9 = vld [vmem:[#allocation56_spill] sm:$0xff] }
 0xf49   :  { %v11159_v1 = vmul.f32 %v11027_v56, %v11833_v13  ;;  %v11163_v35 = vmul.f32 %v11027_v56, %v11834_v16  ;;  %v11167_v14 = vmul.f32 %v11027_v56, %v11835_v5  ;;  %v11171_v11 = vmul.f32 %v11027_v56, %v11836_v58  ;;  %v11841_v13 = vld [vmem:[#allocation55_spill] sm:$0xff]  ;;  %v11842_v5 = vld [vmem:[#allocation58_spill] sm:$0xff] }
 0xf4a   :  { %v11175_v37 = vmul.f32 %v11027_v56, %v11837_v33  ;;  %v11179_v6 = vmul.f32 %v11027_v56, %v11838_v51  ;;  %v11183_v19 = vmul.f32 %v11027_v56, %v11839_v62  ;;  %v11187_v32 = vmul.f32 %v11027_v56, %v11840_v9  ;;  %v11843_v51 = vld [vmem:[#allocation57_spill] sm:$0xff] }
 0xf4b   :  { %v11191_v16 = vmul.f32 %v11027_v56, %v11841_v13  ;;  %v11195_v58 = vmul.f32 %v11027_v56, %v11842_v5  ;;  %v11199_v33 = vmul.f32 %v11027_v56, %v10938_v27  ;;  %v11203_v62 = vmul.f32 %v11027_v56, %v11843_v51 }
 0xf4c   :  { %v11207_v9 = vmul.f32 %v11027_v56, %v10952_v40  ;;  %v11211_v13 = vmul.f32 %v11027_v56, %v10959_v38  ;;  %v11215_v5 = vmul.f32 %v11027_v56, %v10591_v30  ;;  %v11219_v27 = vmul.f32 %v11027_v56, %v10595_v59 }
 0xf4d   :  { %v11223_v51 = vmul.f32 %v11027_v56, %v10599_v63  ;;  %v11227_v40 = vmul.f32 %v11027_v56, %v10603_v23  ;;  %v11231_v38 = vmul.f32 %v11027_v56, %v10607_v12  ;;  %v11235_v30 = vmul.f32 %v11027_v56, %v10611_v45 }
 0xf4e   :  { %v11239_v59 = vmul.f32 %v11027_v56, %v10614_v41  ;;  %v11243_v63 = vmul.f32 %v11027_v56, %v10618_v60  ;;  %v11247_v23 = vmul.f32 %v11027_v56, %v10621_v52  ;;  %v11251_v12 = vmul.f32 %v11027_v56, %v10624_v61  ;;  %v11851_v60 = vld [vmem:[#allocation38_spill] sm:$0xff]  ;;  %v11852_v52 = vld [vmem:[#allocation39_spill] sm:$0xff]  ;;  %v11854_v61 = vld [vmem:[#allocation40_spill] sm:$0xff] }
 0xf4f   :  { %11844 = vst [vmem:[#allocation60_spill] sm:$0xff] %v11231_v38  ;;  %v11253_v38 = vld [vmem:[#allocation27] ss:$0 sm:$0xff]  ;;  %v11257_v45 = vmul.f32 %v11027_v56, %v10627_v36  ;;  %v11261_v41 = vmul.f32 %v11027_v56, %v10630_v50 }
 0xf50   :  { %11845 = vst [vmem:[#allocation59_spill] sm:$0xff] %v11239_v59  ;;  %11846 = vst [vmem:[#allocation62_spill] sm:$0xff] %v11243_v63  ;;  %v11265_v63 = vmul.f32 %v11027_v56, %v11851_v60  ;;  %v11855_v59 = vld [vmem:[#allocation41_spill] sm:$0xff] }
 0xf51   :  { %11847 = vst [vmem:[#allocation61_spill] sm:$0xff] %v11247_v23  ;;  %11848 = vst [vmem:[#allocation64_spill] sm:$0xff] %v11251_v12  ;;  %v11269_v23 = vmul.f32 %v11027_v56, %v11852_v52  ;;  %v11273_v12 = vmul.f32 %v11027_v56, %v11854_v61  ;;  %v11277_v36 = vmul.f32 %v11027_v56, %v11855_v59 }
 0xf52   :  { %11849 = vst [vmem:[#allocation63_spill] sm:$0xff] %v11257_v45  ;;  %11850 = vst [vmem:[#allocation66_spill] sm:$0xff] %v11261_v41  ;;  %v11856_v45 = vld [vmem:[#allocation42_spill] sm:$0xff]  ;;  %v11858_v41 = vld [vmem:[#allocation43_spill] sm:$0xff]  ;;  %v6200_v52 = vadd.f32 %v11253_v38, %v11031_v20  ;;  %v6202_v61 = vadd.f32 %v11253_v38, %v11039_v15  ;;  %v6203_v59 = vadd.f32 %v11253_v38, %v11043_v7 }
 0xf53   :  { %11853 = vst [vmem:[#allocation65_spill] sm:$0xff] %v11269_v23  ;;  %v11281_v50 = vmul.f32 %v11027_v56, %v11856_v45  ;;  %v11285_v60 = vmul.f32 %v11027_v56, %v11858_v41  ;;  %v6201_v23 = vadd.f32 %v11253_v38, %v11035_v43  ;;  %v6204_v45 = vadd.f32 %v11253_v38, %v11047_v47 }
 0xf54   :  { %v6206_v56 = vadd.f32 %v11253_v38, %v11055_v55  ;;  %v6207_v20 = vadd.f32 %v11253_v38, %v11059_v8  ;;  %v6208_v43 = vadd.f32 %v11253_v38, %v11063_v57  ;;  %v6209_v15 = vadd.f32 %v11253_v38, %v11067_v48  ;;  %6264 = vst.msk [vmem:[%s11859_s9] sm:$0xff] %vm3000_vm6, %v6200_v52 }
 0xf55   :  { %11857 = vst [vmem:[#allocation68_spill] sm:$0xff] %v11281_v50  ;;  %v6205_v50 = vadd.f32 %v11253_v38, %v11051_v0  ;;  %v6210_v7 = vadd.f32 %v11253_v38, %v11071_v54  ;;  %v6211_v47 = vadd.f32 %v11253_v38, %v11075_v53  ;;  %6265 = vst.msk [vmem:[%s11859_s9 + $0x8] sm:$0xff] %vm3000_vm6, %v6201_v23 }
 0xf56   :  { %6266 = vst.msk [vmem:[%s11859_s9 + $0x10] sm:$0xff] %vm3000_vm6, %v6202_v61  ;;  %6267 = vst.msk [vmem:[%s11859_s9 + $0x18] sm:$0xff] %vm3000_vm6, %v6203_v59  ;;  %v6212_v0 = vadd.f32 %v11253_v38, %v11079_v44  ;;  %v6213_v55 = vadd.f32 %v11253_v38, %v11083_v31  ;;  %v6214_v8 = vadd.f32 %v11253_v38, %v11087_v17 }
 0xf57   :  { %v6215_v57 = vadd.f32 %v11253_v38, %v11091_v42  ;;  %6268 = vst.msk [vmem:[%s11859_s9 + $0x20] sm:$0xff] %vm3000_vm6, %v6204_v45  ;;  %6269 = vst.msk [vmem:[%s11859_s9 + $0x28] sm:$0xff] %vm3000_vm6, %v6205_v50  ;;  %v6216_v48 = vadd.f32 %v11253_v38, %v11095_v2  ;;  %v6217_v54 = vadd.f32 %v11253_v38, %v11099_v49 }
 0xf58   :  { %6270 = vst.msk [vmem:[%s11859_s9 + $0x30] sm:$0xff] %vm3000_vm6, %v6206_v56  ;;  %6271 = vst.msk [vmem:[%s11859_s9 + $0x38] sm:$0xff] %vm3000_vm6, %v6207_v20  ;;  %v6218_v53 = vadd.f32 %v11253_v38, %v11103_v46  ;;  %v6219_v44 = vadd.f32 %v11253_v38, %v11107_v21  ;;  %v6220_v31 = vadd.f32 %v11253_v38, %v11111_v10  ;;  %v11864_v41 = vld [vmem:[#allocation64_spill] sm:$0xff] }
 0xf59   :  { %6272 = vst.msk [vmem:[%s11859_s9 + $0x40] sm:$0xff] %vm3000_vm6, %v6208_v43  ;;  %6273 = vst.msk [vmem:[%s11859_s9 + $0x48] sm:$0xff] %vm3000_vm6, %v6209_v15  ;;  %v6221_v17 = vadd.f32 %v11253_v38, %v11115_v22  ;;  %v6222_v42 = vadd.f32 %v11253_v38, %v11119_v18  ;;  %v6223_v2 = vadd.f32 %v11253_v38, %v11123_v25  ;;  %v11865_v52 = vld [vmem:[#allocation63_spill] sm:$0xff]  ;;  %v11866_v59 = vld [vmem:[#allocation66_spill] sm:$0xff] }
 0xf5a   :  { %6274 = vst.msk [vmem:[%s11859_s9 + $0x50] sm:$0xff] %vm3000_vm6, %v6210_v7  ;;  %6275 = vst.msk [vmem:[%s11859_s9 + $0x58] sm:$0xff] %vm3000_vm6, %v6211_v47  ;;  %v6224_v49 = vadd.f32 %v11253_v38, %v11127_v3  ;;  %v6225_v46 = vadd.f32 %v11253_v38, %v11131_v26  ;;  %v6226_v21 = vadd.f32 %v11253_v38, %v11135_v4  ;;  %v11867_v20 = vld [vmem:[#allocation65_spill] sm:$0xff] }
 0xf5b   :  { %6276 = vst.msk [vmem:[%s11859_s9 + $0x60] sm:$0xff] %vm3000_vm6, %v6212_v0  ;;  %6277 = vst.msk [vmem:[%s11859_s9 + $0x68] sm:$0xff] %vm3000_vm6, %v6213_v55  ;;  %v6227_v10 = vadd.f32 %v11253_v38, %v11139_v28  ;;  %v6228_v22 = vadd.f32 %v11253_v38, %v11143_v29  ;;  %v6229_v18 = vadd.f32 %v11253_v38, %v11147_v34 }
 0xf5c   :  { %6278 = vst.msk [vmem:[%s11859_s9 + $0x70] sm:$0xff] %vm3000_vm6, %v6214_v8  ;;  %6279 = vst.msk [vmem:[%s11859_s9 + $0x78] sm:$0xff] %vm3000_vm6, %v6215_v57  ;;  %v6230_v25 = vadd.f32 %v11253_v38, %v11151_v24  ;;  %v6231_v3 = vadd.f32 %v11253_v38, %v11155_v39  ;;  %v6232_v26 = vadd.f32 %v11253_v38, %v11159_v1  ;;  %v11868_v7 = vld [vmem:[#allocation68_spill] sm:$0xff] }
 0xf5d   :  { %6280 = vst.msk [vmem:[%s11859_s9 + $0x80] sm:$0xff] %vm3000_vm6, %v6216_v48  ;;  %6281 = vst.msk [vmem:[%s11859_s9 + $0x88] sm:$0xff] %vm3000_vm6, %v6217_v54  ;;  %v6233_v4 = vadd.f32 %v11253_v38, %v11163_v35  ;;  %v6234_v28 = vadd.f32 %v11253_v38, %v11167_v14  ;;  %v6235_v29 = vadd.f32 %v11253_v38, %v11171_v11 }
 0xf5e   :  { %6282 = vst.msk [vmem:[%s11859_s9 + $0x90] sm:$0xff] %vm3000_vm6, %v6218_v53  ;;  %6283 = vst.msk [vmem:[%s11859_s9 + $0x98] sm:$0xff] %vm3000_vm6, %v6219_v44  ;;  %v6236_v34 = vadd.f32 %v11253_v38, %v11175_v37  ;;  %v6237_v24 = vadd.f32 %v11253_v38, %v11179_v6  ;;  %v6238_v39 = vadd.f32 %v11253_v38, %v11183_v19 }
 0xf5f   :  { %6284 = vst.msk [vmem:[%s11859_s9 + $0xa0] sm:$0xff] %vm3000_vm6, %v6220_v31  ;;  %6285 = vst.msk [vmem:[%s11859_s9 + $0xa8] sm:$0xff] %vm3000_vm6, %v6221_v17  ;;  %v6239_v1 = vadd.f32 %v11253_v38, %v11187_v32  ;;  %v6240_v35 = vadd.f32 %v11253_v38, %v11191_v16  ;;  %v6241_v14 = vadd.f32 %v11253_v38, %v11195_v58 }
 0xf60   :  { %6286 = vst.msk [vmem:[%s11859_s9 + $0xb0] sm:$0xff] %vm3000_vm6, %v6222_v42  ;;  %6287 = vst.msk [vmem:[%s11859_s9 + $0xb8] sm:$0xff] %vm3000_vm6, %v6223_v2  ;;  %v6242_v11 = vadd.f32 %v11253_v38, %v11199_v33  ;;  %v6243_v37 = vadd.f32 %v11253_v38, %v11203_v62  ;;  %v6244_v6 = vadd.f32 %v11253_v38, %v11207_v9  ;;  %v11860_v62 = vld [vmem:[#allocation60_spill] sm:$0xff] }
 0xf61   :  { %6288 = vst.msk [vmem:[%s11859_s9 + $0xc0] sm:$0xff] %vm3000_vm6, %v6224_v49  ;;  %6289 = vst.msk [vmem:[%s11859_s9 + $0xc8] sm:$0xff] %vm3000_vm6, %v6225_v46  ;;  %v6245_v19 = vadd.f32 %v11253_v38, %v11211_v13  ;;  %v6246_v32 = vadd.f32 %v11253_v38, %v11215_v5  ;;  %v6247_v16 = vadd.f32 %v11253_v38, %v11219_v27  ;;  %v11861_v5 = vld [vmem:[#allocation59_spill] sm:$0xff] }
 0xf62   :  { %6290 = vst.msk [vmem:[%s11859_s9 + $0xd0] sm:$0xff] %vm3000_vm6, %v6226_v21  ;;  %6291 = vst.msk [vmem:[%s11859_s9 + $0xd8] sm:$0xff] %vm3000_vm6, %v6227_v10  ;;  %v6248_v58 = vadd.f32 %v11253_v38, %v11223_v51  ;;  %v6249_v33 = vadd.f32 %v11253_v38, %v11227_v40  ;;  %v6250_v9 = vadd.f32 %v11253_v38, %v11860_v62  ;;  %v11862_v51 = vld [vmem:[#allocation62_spill] sm:$0xff] }
 0xf63   :  { %6292 = vst.msk [vmem:[%s11859_s9 + $0xe0] sm:$0xff] %vm3000_vm6, %v6228_v22  ;;  %6293 = vst.msk [vmem:[%s11859_s9 + $0xe8] sm:$0xff] %vm3000_vm6, %v6229_v18  ;;  %v6251_v13 = vadd.f32 %v11253_v38, %v11235_v30  ;;  %v6252_v27 = vadd.f32 %v11253_v38, %v11861_v5  ;;  %v6253_v40 = vadd.f32 %v11253_v38, %v11862_v51  ;;  %v11863_v30 = vld [vmem:[#allocation61_spill] sm:$0xff] }
 0xf64   :  { %6294 = vst.msk [vmem:[%s11859_s9 + $0xf0] sm:$0xff] %vm3000_vm6, %v6230_v25  ;;  %6295 = vst.msk [vmem:[%s11859_s9 + $0xf8] sm:$0xff] %vm3000_vm6, %v6231_v3  ;;  %v6254_v23 = vadd.f32 %v11253_v38, %v11863_v30  ;;  %v6255_v50 = vadd.f32 %v11253_v38, %v11864_v41  ;;  %v6256_v61 = vadd.f32 %v11253_v38, %v11865_v52 }
 0xf65   :  { %6296 = vst.msk [vmem:[%s11859_s9 + $0x100] sm:$0xff] %vm3000_vm6, %v6232_v26  ;;  %6297 = vst.msk [vmem:[%s11859_s9 + $0x108] sm:$0xff] %vm3000_vm6, %v6233_v4  ;;  %v6257_v45 = vadd.f32 %v11253_v38, %v11866_v59  ;;  %v6258_v56 = vadd.f32 %v11253_v38, %v11265_v63  ;;  %v6259_v43 = vadd.f32 %v11253_v38, %v11867_v20 }
 0xf66   :  { %6298 = vst.msk [vmem:[%s11859_s9 + $0x110] sm:$0xff] %vm3000_vm6, %v6234_v28  ;;  %6299 = vst.msk [vmem:[%s11859_s9 + $0x118] sm:$0xff] %vm3000_vm6, %v6235_v29  ;;  %v6260_v63 = vadd.f32 %v11253_v38, %v11273_v12  ;;  %v6261_v15 = vadd.f32 %v11253_v38, %v11277_v36  ;;  %v6262_v47 = vadd.f32 %v11253_v38, %v11868_v7 }
 0xf67   :  { %6300 = vst.msk [vmem:[%s11859_s9 + $0x120] sm:$0xff] %vm3000_vm6, %v6236_v34  ;;  %6301 = vst.msk [vmem:[%s11859_s9 + $0x128] sm:$0xff] %vm3000_vm6, %v6237_v24  ;;  %v6263_v0 = vadd.f32 %v11253_v38, %v11285_v60 }
 0xf68   :  { %6302 = vst.msk [vmem:[%s11859_s9 + $0x130] sm:$0xff] %vm3000_vm6, %v6238_v39  ;;  %6303 = vst.msk [vmem:[%s11859_s9 + $0x138] sm:$0xff] %vm3000_vm6, %v6239_v1 }
 0xf69   :  { %6304 = vst.msk [vmem:[%s11859_s9 + $0x140] sm:$0xff] %vm3000_vm6, %v6240_v35  ;;  %6305 = vst.msk [vmem:[%s11859_s9 + $0x148] sm:$0xff] %vm3000_vm6, %v6241_v14 }
 0xf6a   :  { %6306 = vst.msk [vmem:[%s11859_s9 + $0x150] sm:$0xff] %vm3000_vm6, %v6242_v11  ;;  %6307 = vst.msk [vmem:[%s11859_s9 + $0x158] sm:$0xff] %vm3000_vm6, %v6243_v37 }
 0xf6b   :  { %6308 = vst.msk [vmem:[%s11859_s9 + $0x160] sm:$0xff] %vm3000_vm6, %v6244_v6  ;;  %6309 = vst.msk [vmem:[%s11859_s9 + $0x168] sm:$0xff] %vm3000_vm6, %v6245_v19 }
 0xf6c   :  { %6310 = vst.msk [vmem:[%s11859_s9 + $0x170] sm:$0xff] %vm3000_vm6, %v6246_v32  ;;  %6311 = vst.msk [vmem:[%s11859_s9 + $0x178] sm:$0xff] %vm3000_vm6, %v6247_v16 }
 0xf6d   :  { %6312 = vst.msk [vmem:[%s11859_s9 + $0x180] sm:$0xff] %vm3000_vm6, %v6248_v58  ;;  %6313 = vst.msk [vmem:[%s11859_s9 + $0x188] sm:$0xff] %vm3000_vm6, %v6249_v33 }
 0xf6e   :  { %6314 = vst.msk [vmem:[%s11859_s9 + $0x190] sm:$0xff] %vm3000_vm6, %v6250_v9  ;;  %6315 = vst.msk [vmem:[%s11859_s9 + $0x198] sm:$0xff] %vm3000_vm6, %v6251_v13 }
 0xf6f   :  { %6316 = vst.msk [vmem:[%s11859_s9 + $0x1a0] sm:$0xff] %vm3000_vm6, %v6252_v27  ;;  %6317 = vst.msk [vmem:[%s11859_s9 + $0x1a8] sm:$0xff] %vm3000_vm6, %v6253_v40 }
 0xf70   :  { %6318 = vst.msk [vmem:[%s11859_s9 + $0x1b0] sm:$0xff] %vm3000_vm6, %v6254_v23  ;;  %6319 = vst.msk [vmem:[%s11859_s9 + $0x1b8] sm:$0xff] %vm3000_vm6, %v6255_v50 }
 0xf71   :  { %6320 = vst.msk [vmem:[%s11859_s9 + $0x1c0] sm:$0xff] %vm3000_vm6, %v6256_v61  ;;  %6321 = vst.msk [vmem:[%s11859_s9 + $0x1c8] sm:$0xff] %vm3000_vm6, %v6257_v45 }
 0xf72   :  { %6322 = vst.msk [vmem:[%s11859_s9 + $0x1d0] sm:$0xff] %vm3000_vm6, %v6258_v56  ;;  %6323 = vst.msk [vmem:[%s11859_s9 + $0x1d8] sm:$0xff] %vm3000_vm6, %v6259_v43 }
 0xf73   :  { %6324 = vst.msk [vmem:[%s11859_s9 + $0x1e0] sm:$0xff] %vm3000_vm6, %v6260_v63  ;;  %6325 = vst.msk [vmem:[%s11859_s9 + $0x1e8] sm:$0xff] %vm3000_vm6, %v6261_v15 }
 0xf74   :  { %6326 = vst.msk [vmem:[%s11859_s9 + $0x1f0] sm:$0xff] %vm3000_vm6, %v6262_v47  ;;  %6327 = vst.msk [vmem:[%s11859_s9 + $0x1f8] sm:$0xff] %vm3000_vm6, %v6263_v0 }
 0xf75   :  { %6332 = vsyncpa [#allocation3], 1 }
 0xf76   :  { %6333 = vsyncpa [#allocation5], 1 }
 0xf77   :  { %6334 = vsyncpa [#allocation8], 1 }
 0xf78   :  { %6335 = vsyncpa [#allocation11], 1 }
 0xf79   :  { %6336 = vsyncpa [#allocation14], 1 }
 0xf7a   :  { %6337 = vsyncpa [#allocation17], 1 }
 0xf7b   :  { %6338 = vsyncpa [#allocation20], 1 }
 0xf7c   :  { %6339 = vsyncpa [#allocation23], 1 }
 0xf7d   :  { %6340 = vsyncpa [#allocation26], 1 }

</bundles_post_ra>
